<compile_context>
chip_gen: v7x
topology: tpu7x:2x2x1
jax: 0.10.0
libtpu: 0.0.40
codegen_flags: <defaults>
</compile_context>

<pallas_src>
import jax
import jax.numpy as jnp
from jax import lax
from jax.experimental import pallas as pl
from jax.experimental.pallas import tpu as pltpu


# --------------------------- Pallas kernel ---------------------------------
def _unet_conv_block_kernel(up_ref, br_ref, w1_ref, w2_ref, frn_ref, eps_ref,
                            o_ref):
    """One batch image per grid step. NHWC, channels on lanes."""
    _, H2, W2, _ = up_ref.shape
    Cout = w1_ref.shape[1]

    frn = frn_ref[...]                       # (2, 3, Cout) f32, loaded once

    def conv3x3(img, w_ref):
        # single fused im2col matmul: (HW, 9C) @ (9C, Cout), K = 9*C
        Hh, Ww, C = img.shape
        p = jnp.pad(img, ((1, 1), (1, 1), (0, 0)))
        cols = jnp.concatenate(
            [p[ky:ky + Hh, kx:kx + Ww, :] for ky in range(3) for kx in range(3)],
            axis=-1).reshape(Hh * Ww, 9 * C)
        return jnp.dot(cols, w_ref[...], preferred_element_type=jnp.float32)

    def frn_relu(v, idx, eps):
        gamma = frn[idx, 0:1, :]             # (1, Cout), hoisted broadcasts
        beta = frn[idx, 1:2, :]
        tau = frn[idx, 2:3, :]
        nu2 = jnp.mean(v * v, axis=0, keepdims=True)          # per-channel E[x^2]
        v = v * lax.rsqrt(nu2 + jnp.abs(eps))
        v = jnp.maximum(gamma * v + beta, tau)                # FRN + TLU
        return jnp.maximum(v, 0.0)                            # ReLU

    # concat([up, center_crop(bridge)], channels) -- lane-axis concat in VMEM
    h = jnp.concatenate([up_ref[0], br_ref[0]], axis=-1)      # (H2, W2, Cin)

    v = conv3x3(h, w1_ref)                                    # (H2*W2, Cout) f32
    v = frn_relu(v, 0, eps_ref[0])
    v = conv3x3(v.astype(w2_ref.dtype).reshape(H2, W2, Cout), w2_ref)
    v = frn_relu(v, 1, eps_ref[1])

    o_ref[0] = v.reshape(H2, W2, Cout).astype(o_ref.dtype)


# ------------------------------ wrapper -------------------------------------
def unet_up_block_pallas(x, bridge, params, *, channels_last=False,
                         matmul_dtype=None):
    """UNetUpBlock forward.

    x: (N, in_chans, H, W)           [NCHW, or NHWC if channels_last=True]
    bridge: (N, in_chans - out_chans, Hb, Wb)
    matmul_dtype: e.g. jnp.bfloat16 on v6e/v7x (FRN math stays f32).
    """
    (wup, bup, w1, w2, g1, b1, t1, e1, g2, b2, t2, e2) = params

    if not channels_last:
        x = jnp.transpose(x, (0, 2, 3, 1))
        bridge = jnp.transpose(bridge, (0, 2, 3, 1))
    N, H, W, _ = x.shape
    _, Hb, Wb, Cb = bridge.shape
    Cup = wup.shape[1]
    Cout, Cin1 = w1.shape[0], w1.shape[1]
    H2, W2 = 2 * H, 2 * W
    assert Cup + Cb == Cin1, "concat([up, bridge]) must match conv1 in_chans"

    # ---- up = ConvTranspose2d(k=2, s=2)(x): matmul + stride-2 interleave ----
    up = jnp.einsum('nhwc,cokl->nhkwlo', x, wup,
                    precision=lax.Precision.HIGHEST).reshape(N, H2, W2, Cup)
    up = up + bup[None, None, None, :]

    # ---- center_crop(bridge, (H2, W2)) (static slice) ----
    dy, dx = (Hb - H2) // 2, (Wb - W2) // 2
    br = bridge[:, dy:dy + H2, dx:dx + W2, :]

    # ---- weights in im2col layout: rows ordered (ky, kx, ci) ----
    w1_k = jnp.transpose(w1, (2, 3, 1, 0)).reshape(9 * Cin1, Cout)
    w2_k = jnp.transpose(w2, (2, 3, 1, 0)).reshape(9 * Cout, Cout)
    frn = jnp.stack([
        jnp.stack([g1.reshape(Cout), b1.reshape(Cout), t1.reshape(Cout)]),
        jnp.stack([g2.reshape(Cout), b2.reshape(Cout), t2.reshape(Cout)]),
    ]).astype(jnp.float32)                                    # (2, 3, Cout)
    eps = jnp.stack([e1.reshape(()), e2.reshape(())]).astype(jnp.float32)  # (2,)

    if matmul_dtype is not None:
        up, br = up.astype(matmul_dtype), br.astype(matmul_dtype)
        w1_k, w2_k = w1_k.astype(matmul_dtype), w2_k.astype(matmul_dtype)

    # ---- explicit per-step VMEM budget (f32 words, generous headroom) ----
    est_words = (2 * H2 * W2 * (Cup + Cb + Cout)              # dbl-buffered blocks
                 + 9 * Cin1 * Cout + 9 * Cout * Cout          # weights
                 + (H2 + 2) * (W2 + 2) * Cin1                 # padded image
                 + H2 * W2 * 9 * (Cin1 + Cout)                # im2col slabs
                 + 4 * H2 * W2 * max(Cin1, Cout))             # misc temporaries
    vmem_limit = int(max(32 * 2 ** 20, min(48 * 2 ** 20, 8 * est_words)))

    out = pl.pallas_call(
        _unet_conv_block_kernel,
        out_shape=jax.ShapeDtypeStruct((N, H2, W2, Cout), jnp.float32),
        grid=(N,),
        in_specs=[
            pl.BlockSpec((1, H2, W2, Cup), lambda n: (n, 0, 0, 0)),
            pl.BlockSpec((1, H2, W2, Cb), lambda n: (n, 0, 0, 0)),
            pl.BlockSpec((9 * Cin1, Cout), lambda n: (0, 0)),
            pl.BlockSpec((9 * Cout, Cout), lambda n: (0, 0)),
            pl.BlockSpec((2, 3, Cout), lambda n: (0, 0, 0)),
            pl.BlockSpec(memory_space=pltpu.MemorySpace.SMEM),   # eps scalars
        ],
        out_specs=pl.BlockSpec((1, H2, W2, Cout), lambda n: (n, 0, 0, 0)),
        compiler_params=pltpu.CompilerParams(
            dimension_semantics=("parallel",),       # batch images independent
            vmem_limit_bytes=vmem_limit),
    )(up, br, w1_k, w2_k, frn, eps)

    if channels_last:
        return out
    return jnp.transpose(out, (0, 3, 1, 2))


# ---------------- pure-JAX reference (correctness check) --------------------
def _frn_nchw_ref(h, gamma, beta, tau, eps):
    nu2 = jnp.mean(h * h, axis=(2, 3), keepdims=True)
    h = h * lax.rsqrt(nu2 + jnp.abs(eps))
    return jnp.maximum(gamma * h + beta, tau)


def unet_up_block_ref(x, bridge, params):
    (wup, bup, w1, w2, g1, b1, t1, e1, g2, b2, t2, e2) = params
    N, _, H, W = x.shape
    Cup = wup.shape[1]
    H2, W2 = 2 * H, 2 * W
    u = jnp.einsum('nchw,cokl->nohkwl', x, wup,
                   precision=lax.Precision.HIGHEST).reshape(N, Cup, H2, W2)
    u = u + bup[None, :, None, None]
    Hb, Wb = bridge.shape[2], bridge.shape[3]
    dy, dx = (Hb - H2) // 2, (Wb - W2) // 2
    h = jnp.concatenate([u, bridge[:, :, dy:dy + H2, dx:dx + W2]], axis=1)
    dn = ('NCHW', 'OIHW', 'NCHW')
    h = lax.conv_general_dilated(h, w1, (1, 1), ((1, 1), (1, 1)),
                                 dimension_numbers=dn,
                                 precision=lax.Precision.HIGHEST)
    h = jnp.maximum(_frn_nchw_ref(h, g1, b1, t1, e1), 0.0)
    h = lax.conv_general_dilated(h, w2, (1, 1), ((1, 1), (1, 1)),
                                 dimension_numbers=dn,
                                 precision=lax.Precision.HIGHEST)
    h = jnp.maximum(_frn_nchw_ref(h, g2, b2, t2, e2), 0.0)
    return h


if __name__ == "__main__":
    # Small but lane-dense demo: channel counts are multiples of 128 so every
    # vector op / store uses full 128-lane vregs (per review).
    N = 2
    out_chans = 128
    in_chans = 2 * out_chans           # bridge carries in_chans - out_chans
    H = W = 8                          # up-sampled spatial size: 16 x 16
    Hb = Wb = 20                       # bridge larger -> exercises center_crop

    key = jax.random.PRNGKey(0)
    ks = iter(jax.random.split(key, 16))
    x = jax.random.normal(next(ks), (N, in_chans, H, W), jnp.float32)
    bridge = jax.random.normal(next(ks), (N, in_chans - out_chans, Hb, Wb),
                               jnp.float32)

    # Parameters in PyTorch layouts
    wup = jax.random.normal(next(ks), (in_chans, out_chans, 2, 2), jnp.float32) * 0.05
    bup = jax.random.normal(next(ks), (out_chans,), jnp.float32) * 0.05
    w1 = jax.random.normal(next(ks), (out_chans, in_chans, 3, 3), jnp.float32) * 0.05
    w2 = jax.random.normal(next(ks), (out_chans, out_chans, 3, 3), jnp.float32) * 0.05

    def frn_params(k, c):
        kg, kb, kt = jax.random.split(k, 3)
        return (1.0 + 0.1 * jax.random.normal(kg, (1, c, 1, 1), jnp.float32),
                0.1 * jax.random.normal(kb, (1, c, 1, 1), jnp.float32),
                0.1 * jax.random.normal(kt, (1, c, 1, 1), jnp.float32),
                jnp.full((1,), 1e-6, jnp.float32))

    g1, b1, t1, e1 = frn_params(next(ks), out_chans)
    g2, b2, t2, e2 = frn_params(next(ks), out_chans)
    params = (wup, bup, w1, w2, g1, b1, t1, e1, g2, b2, t2, e2)

    run = jax.jit(lambda a, b: unet_up_block_pallas(a, b, params))
    out = jax.block_until_ready(run(x, bridge))
    ref = jax.block_until_ready(unet_up_block_ref(x, bridge, params))

    assert out.shape == (N, out_chans, 2 * H, 2 * W), out.shape
    max_err = float(jnp.max(jnp.abs(out - ref)))
    assert jnp.allclose(out, ref, atol=3e-2, rtol=3e-2), max_err
    print("KERNEL_OK")
</pallas_src>

<mosaic_0001>
module attributes {stable_mosaic.version = 11 : i64} {
  func.func @_unet_conv_block_kernel(%arg0: i32, %arg1: memref<1x16x16x128xf32, #tpu.memory_space<vmem>>, %arg2: memref<1x16x16x128xf32, #tpu.memory_space<vmem>>, %arg3: memref<2304x128xf32, #tpu.memory_space<vmem>>, %arg4: memref<1152x128xf32, #tpu.memory_space<vmem>>, %arg5: memref<2x3x128xf32, #tpu.memory_space<vmem>>, %arg6: memref<2xf32, #tpu.memory_space<smem>>, %arg7: memref<1x16x16x128xf32, #tpu.memory_space<vmem>>) attributes {dimension_semantics = [#tpu.dimension_semantics<parallel>], iteration_bounds = array<i64: 2>, scalar_prefetch = 0 : i64, scratch_operands = 0 : i64, tpu.core_type = #tpu.core_type<tc>, window_params = [{transform_indices = @transform_0, window_bounds = array<i64: 1, 16, 16, 128>}, {transform_indices = @transform_1, window_bounds = array<i64: 1, 16, 16, 128>}, {pipeline_mode = #tpu.pipeline_mode<synchronous>, transform_indices = @transform_2, window_bounds = array<i64: 2304, 128>}, {pipeline_mode = #tpu.pipeline_mode<synchronous>, transform_indices = @transform_3, window_bounds = array<i64: 1152, 128>}, {pipeline_mode = #tpu.pipeline_mode<synchronous>, transform_indices = @transform_4, window_bounds = array<i64: 2, 3, 128>}, {transform_indices = @transform_5, window_bounds = array<i64: 2>}, {transform_indices = @transform_6, window_bounds = array<i64: 1, 16, 16, 128>}]} {
    %c0 = arith.constant 0 : index
    %c0_0 = arith.constant 0 : index
    %c0_1 = arith.constant 0 : index
    %0 = vector.load %arg5[%c0, %c0_0, %c0_1] : memref<2x3x128xf32, #tpu.memory_space<vmem>>, vector<2x3x128xf32>
    %c0_2 = arith.constant 0 : index
    %c0_3 = arith.constant 0 : index
    %c0_4 = arith.constant 0 : index
    %c0_5 = arith.constant 0 : index
    %1 = vector.load %arg1[%c0_2, %c0_3, %c0_4, %c0_5] : memref<1x16x16x128xf32, #tpu.memory_space<vmem>>, vector<1x16x16x128xf32>
    %2 = vector.shape_cast %1 : vector<1x16x16x128xf32> to vector<16x16x128xf32>
    %c0_6 = arith.constant 0 : index
    %c0_7 = arith.constant 0 : index
    %c0_8 = arith.constant 0 : index
    %c0_9 = arith.constant 0 : index
    %3 = vector.load %arg2[%c0_6, %c0_7, %c0_8, %c0_9] : memref<1x16x16x128xf32, #tpu.memory_space<vmem>>, vector<1x16x16x128xf32>
    %4 = vector.shape_cast %3 : vector<1x16x16x128xf32> to vector<16x16x128xf32>
    %5 = tpu.concatenate %2, %4 in 2 : vector<16x16x128xf32>, vector<16x16x128xf32> -> vector<16x16x256xf32>
    %c0_i32 = arith.constant 0 : i32
    %6 = arith.sitofp %c0_i32 : i32 to f32
    %7 = vector.broadcast %6 : f32 to vector<1x16x256xf32>
    %8 = tpu.concatenate %7, %5 in 0 : vector<1x16x256xf32>, vector<16x16x256xf32> -> vector<17x16x256xf32>
    %9 = vector.broadcast %6 : f32 to vector<1x16x256xf32>
    %10 = tpu.concatenate %8, %9 in 0 : vector<17x16x256xf32>, vector<1x16x256xf32> -> vector<18x16x256xf32>
    %11 = vector.broadcast %6 : f32 to vector<18x1x256xf32>
    %12 = tpu.concatenate %11, %10 in 1 : vector<18x1x256xf32>, vector<18x16x256xf32> -> vector<18x17x256xf32>
    %13 = vector.broadcast %6 : f32 to vector<18x1x256xf32>
    %14 = tpu.concatenate %12, %13 in 1 : vector<18x17x256xf32>, vector<18x1x256xf32> -> vector<18x18x256xf32>
    %15 = vector.extract_strided_slice %14 {offsets = [0, 0, 0], sizes = [16, 16, 256], strides = [1, 1, 1]} : vector<18x18x256xf32> to vector<16x16x256xf32>
    %16 = vector.extract_strided_slice %14 {offsets = [0, 1, 0], sizes = [16, 16, 256], strides = [1, 1, 1]} : vector<18x18x256xf32> to vector<16x16x256xf32>
    %17 = vector.extract_strided_slice %14 {offsets = [0, 2, 0], sizes = [16, 16, 256], strides = [1, 1, 1]} : vector<18x18x256xf32> to vector<16x16x256xf32>
    %18 = vector.extract_strided_slice %14 {offsets = [1, 0, 0], sizes = [16, 16, 256], strides = [1, 1, 1]} : vector<18x18x256xf32> to vector<16x16x256xf32>
    %19 = vector.extract_strided_slice %14 {offsets = [1, 1, 0], sizes = [16, 16, 256], strides = [1, 1, 1]} : vector<18x18x256xf32> to vector<16x16x256xf32>
    %20 = vector.extract_strided_slice %14 {offsets = [1, 2, 0], sizes = [16, 16, 256], strides = [1, 1, 1]} : vector<18x18x256xf32> to vector<16x16x256xf32>
    %21 = vector.extract_strided_slice %14 {offsets = [2, 0, 0], sizes = [16, 16, 256], strides = [1, 1, 1]} : vector<18x18x256xf32> to vector<16x16x256xf32>
    %22 = vector.extract_strided_slice %14 {offsets = [2, 1, 0], sizes = [16, 16, 256], strides = [1, 1, 1]} : vector<18x18x256xf32> to vector<16x16x256xf32>
    %23 = vector.extract_strided_slice %14 {offsets = [2, 2, 0], sizes = [16, 16, 256], strides = [1, 1, 1]} : vector<18x18x256xf32> to vector<16x16x256xf32>
    %24 = tpu.concatenate %15, %16, %17, %18, %19, %20, %21, %22, %23 in 2 : vector<16x16x256xf32>, vector<16x16x256xf32>, vector<16x16x256xf32>, vector<16x16x256xf32>, vector<16x16x256xf32>, vector<16x16x256xf32>, vector<16x16x256xf32>, vector<16x16x256xf32>, vector<16x16x256xf32> -> vector<16x16x2304xf32>
    %25 = vector.shape_cast %24 : vector<16x16x2304xf32> to vector<256x2304xf32>
    %c0_10 = arith.constant 0 : index
    %c0_11 = arith.constant 0 : index
    %26 = vector.load %arg3[%c0_10, %c0_11] : memref<2304x128xf32, #tpu.memory_space<vmem>>, vector<2304x128xf32>
    %cst = arith.constant dense<0.000000e+00> : vector<256x128xf32>
    %27 = tpu.matmul %25, %26, %cst {dimension_numbers = #tpu.dot_dimension_numbers<[1], [0], [0], [1], [0, 0, 1, 1], [], []>} : vector<256x2304xf32>, vector<2304x128xf32>, vector<256x128xf32> -> vector<256x128xf32>
    %c0_12 = arith.constant 0 : index
    %28 = memref.load %arg6[%c0_12] : memref<2xf32, #tpu.memory_space<smem>>
    %29 = vector.extract_strided_slice %0 {offsets = [0, 0, 0], sizes = [1, 1, 128], strides = [1, 1, 1]} : vector<2x3x128xf32> to vector<1x1x128xf32>
    %30 = vector.shape_cast %29 : vector<1x1x128xf32> to vector<1x128xf32>
    %31 = vector.extract_strided_slice %0 {offsets = [0, 1, 0], sizes = [1, 1, 128], strides = [1, 1, 1]} : vector<2x3x128xf32> to vector<1x1x128xf32>
    %32 = vector.shape_cast %31 : vector<1x1x128xf32> to vector<1x128xf32>
    %33 = vector.extract_strided_slice %0 {offsets = [0, 2, 0], sizes = [1, 1, 128], strides = [1, 1, 1]} : vector<2x3x128xf32> to vector<1x1x128xf32>
    %34 = vector.shape_cast %33 : vector<1x1x128xf32> to vector<1x128xf32>
    %35 = arith.mulf %27, %27 : vector<256x128xf32>
    %cst_13 = arith.constant dense<0.000000e+00> : vector<128xf32>
    %36 = vector.multi_reduction <add>, %35, %cst_13 [0] : vector<256x128xf32> to vector<128xf32>
    %37 = vector.shape_cast %36 : vector<128xf32> to vector<1x128xf32>
    %cst_14 = arith.constant 2.560000e+02 : f32
    %38 = vector.broadcast %cst_14 : f32 to vector<1x128xf32>
    %39 = arith.divf %37, %38 : vector<1x128xf32>
    %40 = math.absf %28 : f32
    %41 = vector.broadcast %40 : f32 to vector<1x128xf32>
    %42 = arith.addf %39, %41 : vector<1x128xf32>
    %43 = math.rsqrt %42 : vector<1x128xf32>
    %44 = vector.broadcast %43 : vector<1x128xf32> to vector<256x128xf32>
    %45 = arith.mulf %27, %44 : vector<256x128xf32>
    %46 = vector.broadcast %30 : vector<1x128xf32> to vector<256x128xf32>
    %47 = arith.mulf %46, %45 : vector<256x128xf32>
    %48 = vector.broadcast %32 : vector<1x128xf32> to vector<256x128xf32>
    %49 = arith.addf %47, %48 : vector<256x128xf32>
    %50 = vector.broadcast %34 : vector<1x128xf32> to vector<256x128xf32>
    %51 = arith.maximumf %49, %50 : vector<256x128xf32>
    %cst_15 = arith.constant 0.000000e+00 : f32
    %52 = vector.broadcast %cst_15 : f32 to vector<256x128xf32>
    %53 = arith.maximumf %51, %52 : vector<256x128xf32>
    %54 = vector.shape_cast %53 : vector<256x128xf32> to vector<16x16x128xf32>
    %c0_i32_16 = arith.constant 0 : i32
    %55 = arith.sitofp %c0_i32_16 : i32 to f32
    %56 = vector.broadcast %55 : f32 to vector<1x16x128xf32>
    %57 = tpu.concatenate %56, %54 in 0 : vector<1x16x128xf32>, vector<16x16x128xf32> -> vector<17x16x128xf32>
    %58 = vector.broadcast %55 : f32 to vector<1x16x128xf32>
    %59 = tpu.concatenate %57, %58 in 0 : vector<17x16x128xf32>, vector<1x16x128xf32> -> vector<18x16x128xf32>
    %60 = vector.broadcast %55 : f32 to vector<18x1x128xf32>
    %61 = tpu.concatenate %60, %59 in 1 : vector<18x1x128xf32>, vector<18x16x128xf32> -> vector<18x17x128xf32>
    %62 = vector.broadcast %55 : f32 to vector<18x1x128xf32>
    %63 = tpu.concatenate %61, %62 in 1 : vector<18x17x128xf32>, vector<18x1x128xf32> -> vector<18x18x128xf32>
    %64 = vector.extract_strided_slice %63 {offsets = [0, 0, 0], sizes = [16, 16, 128], strides = [1, 1, 1]} : vector<18x18x128xf32> to vector<16x16x128xf32>
    %65 = vector.extract_strided_slice %63 {offsets = [0, 1, 0], sizes = [16, 16, 128], strides = [1, 1, 1]} : vector<18x18x128xf32> to vector<16x16x128xf32>
    %66 = vector.extract_strided_slice %63 {offsets = [0, 2, 0], sizes = [16, 16, 128], strides = [1, 1, 1]} : vector<18x18x128xf32> to vector<16x16x128xf32>
    %67 = vector.extract_strided_slice %63 {offsets = [1, 0, 0], sizes = [16, 16, 128], strides = [1, 1, 1]} : vector<18x18x128xf32> to vector<16x16x128xf32>
    %68 = vector.extract_strided_slice %63 {offsets = [1, 1, 0], sizes = [16, 16, 128], strides = [1, 1, 1]} : vector<18x18x128xf32> to vector<16x16x128xf32>
    %69 = vector.extract_strided_slice %63 {offsets = [1, 2, 0], sizes = [16, 16, 128], strides = [1, 1, 1]} : vector<18x18x128xf32> to vector<16x16x128xf32>
    %70 = vector.extract_strided_slice %63 {offsets = [2, 0, 0], sizes = [16, 16, 128], strides = [1, 1, 1]} : vector<18x18x128xf32> to vector<16x16x128xf32>
    %71 = vector.extract_strided_slice %63 {offsets = [2, 1, 0], sizes = [16, 16, 128], strides = [1, 1, 1]} : vector<18x18x128xf32> to vector<16x16x128xf32>
    %72 = vector.extract_strided_slice %63 {offsets = [2, 2, 0], sizes = [16, 16, 128], strides = [1, 1, 1]} : vector<18x18x128xf32> to vector<16x16x128xf32>
    %73 = tpu.concatenate %64, %65, %66, %67, %68, %69, %70, %71, %72 in 2 : vector<16x16x128xf32>, vector<16x16x128xf32>, vector<16x16x128xf32>, vector<16x16x128xf32>, vector<16x16x128xf32>, vector<16x16x128xf32>, vector<16x16x128xf32>, vector<16x16x128xf32>, vector<16x16x128xf32> -> vector<16x16x1152xf32>
    %74 = vector.shape_cast %73 : vector<16x16x1152xf32> to vector<256x1152xf32>
    %c0_17 = arith.constant 0 : index
    %c0_18 = arith.constant 0 : index
    %75 = vector.load %arg4[%c0_17, %c0_18] : memref<1152x128xf32, #tpu.memory_space<vmem>>, vector<1152x128xf32>
    %cst_19 = arith.constant dense<0.000000e+00> : vector<256x128xf32>
    %76 = tpu.matmul %74, %75, %cst_19 {dimension_numbers = #tpu.dot_dimension_numbers<[1], [0], [0], [1], [0, 0, 1, 1], [], []>} : vector<256x1152xf32>, vector<1152x128xf32>, vector<256x128xf32> -> vector<256x128xf32>
    %c1 = arith.constant 1 : index
    %77 = memref.load %arg6[%c1] : memref<2xf32, #tpu.memory_space<smem>>
    %78 = vector.extract_strided_slice %0 {offsets = [1, 0, 0], sizes = [1, 1, 128], strides = [1, 1, 1]} : vector<2x3x128xf32> to vector<1x1x128xf32>
    %79 = vector.shape_cast %78 : vector<1x1x128xf32> to vector<1x128xf32>
    %80 = vector.extract_strided_slice %0 {offsets = [1, 1, 0], sizes = [1, 1, 128], strides = [1, 1, 1]} : vector<2x3x128xf32> to vector<1x1x128xf32>
    %81 = vector.shape_cast %80 : vector<1x1x128xf32> to vector<1x128xf32>
    %82 = vector.extract_strided_slice %0 {offsets = [1, 2, 0], sizes = [1, 1, 128], strides = [1, 1, 1]} : vector<2x3x128xf32> to vector<1x1x128xf32>
    %83 = vector.shape_cast %82 : vector<1x1x128xf32> to vector<1x128xf32>
    %84 = arith.mulf %76, %76 : vector<256x128xf32>
    %cst_20 = arith.constant dense<0.000000e+00> : vector<128xf32>
    %85 = vector.multi_reduction <add>, %84, %cst_20 [0] : vector<256x128xf32> to vector<128xf32>
    %86 = vector.shape_cast %85 : vector<128xf32> to vector<1x128xf32>
    %cst_21 = arith.constant 2.560000e+02 : f32
    %87 = vector.broadcast %cst_21 : f32 to vector<1x128xf32>
    %88 = arith.divf %86, %87 : vector<1x128xf32>
    %89 = math.absf %77 : f32
    %90 = vector.broadcast %89 : f32 to vector<1x128xf32>
    %91 = arith.addf %88, %90 : vector<1x128xf32>
    %92 = math.rsqrt %91 : vector<1x128xf32>
    %93 = vector.broadcast %92 : vector<1x128xf32> to vector<256x128xf32>
    %94 = arith.mulf %76, %93 : vector<256x128xf32>
    %95 = vector.broadcast %79 : vector<1x128xf32> to vector<256x128xf32>
    %96 = arith.mulf %95, %94 : vector<256x128xf32>
    %97 = vector.broadcast %81 : vector<1x128xf32> to vector<256x128xf32>
    %98 = arith.addf %96, %97 : vector<256x128xf32>
    %99 = vector.broadcast %83 : vector<1x128xf32> to vector<256x128xf32>
    %100 = arith.maximumf %98, %99 : vector<256x128xf32>
    %cst_22 = arith.constant 0.000000e+00 : f32
    %101 = vector.broadcast %cst_22 : f32 to vector<256x128xf32>
    %102 = arith.maximumf %100, %101 : vector<256x128xf32>
    %103 = vector.shape_cast %102 : vector<256x128xf32> to vector<16x16x128xf32>
    %c0_23 = arith.constant 0 : index
    %c0_24 = arith.constant 0 : index
    %c0_25 = arith.constant 0 : index
    %c0_26 = arith.constant 0 : index
    %104 = vector.load %arg7[%c0_23, %c0_24, %c0_25, %c0_26] : memref<1x16x16x128xf32, #tpu.memory_space<vmem>>, vector<1x16x16x128xf32>
    %105 = vector.shape_cast %104 : vector<1x16x16x128xf32> to vector<16x16x128xf32>
    %106 = vector.shape_cast %103 : vector<16x16x128xf32> to vector<1x16x16x128xf32>
    tpu.vector_store %arg7[%c0_23, %c0_24, %c0_25, %c0_26], %106 {strides = array<i32>} : memref<1x16x16x128xf32, #tpu.memory_space<vmem>>, vector<1x16x16x128xf32>,
    return
  }
  func.func @transform_0(%arg0: i32) -> (i32, i32, i32, i32) {
    %c0_i32 = arith.constant 0 : i32
    %c0_i32_0 = arith.constant 0 : i32
    %c0_i32_1 = arith.constant 0 : i32
    %c0_i32_2 = arith.constant 0 : i32
    return %arg0, %c0_i32, %c0_i32_0, %c0_i32_1 : i32, i32, i32, i32
  }
  func.func @transform_1(%arg0: i32) -> (i32, i32, i32, i32) {
    %c0_i32 = arith.constant 0 : i32
    %c0_i32_0 = arith.constant 0 : i32
    %c0_i32_1 = arith.constant 0 : i32
    %c0_i32_2 = arith.constant 0 : i32
    return %arg0, %c0_i32, %c0_i32_0, %c0_i32_1 : i32, i32, i32, i32
  }
  func.func @transform_2(%arg0: i32) -> (i32, i32) {
    %c0_i32 = arith.constant 0 : i32
    %c0_i32_0 = arith.constant 0 : i32
    %c0_i32_1 = arith.constant 0 : i32
    return %c0_i32, %c0_i32_0 : i32, i32
  }
  func.func @transform_3(%arg0: i32) -> (i32, i32) {
    %c0_i32 = arith.constant 0 : i32
    %c0_i32_0 = arith.constant 0 : i32
    %c0_i32_1 = arith.constant 0 : i32
    return %c0_i32, %c0_i32_0 : i32, i32
  }
  func.func @transform_4(%arg0: i32) -> (i32, i32, i32) {
    %c0_i32 = arith.constant 0 : i32
    %c0_i32_0 = arith.constant 0 : i32
    %c0_i32_1 = arith.constant 0 : i32
    %c0_i32_2 = arith.constant 0 : i32
    return %c0_i32, %c0_i32_0, %c0_i32_1 : i32, i32, i32
  }
  func.func @transform_5(%arg0: i32) -> i32 {
    %c0_i32 = arith.constant 0 : i32
    %c0_i32_0 = arith.constant 0 : i32
    return %c0_i32 : i32
  }
  func.func @transform_6(%arg0: i32) -> (i32, i32, i32, i32) {
    %c0_i32 = arith.constant 0 : i32
    %c0_i32_0 = arith.constant 0 : i32
    %c0_i32_1 = arith.constant 0 : i32
    %c0_i32_2 = arith.constant 0 : i32
    return %arg0, %c0_i32, %c0_i32_0, %c0_i32_1 : i32, i32, i32, i32
  }
}

</mosaic_0001>

<bundles_post_ra>
// kernel: _lambda_.1
= control target key start
LH: loop header
LB: loop body
LE: loop exit
PB: predicated region body
PF: predicated region fallthrough
CT: control target
= control target key end

     0   :  { %11 = vsyncpa [#allocation4], 0  ;;  %s13064_s0 = inlined_call_operand.vmem [shape: f32[2,16,16,128], index: 0, kind: input, shape index: {}]   ;;  %s13065_s1 = inlined_call_operand.vmem [shape: f32[2,16,16,128], index: 1, kind: input, shape index: {}]   ;;  %s13066_s2 = inlined_call_operand.vmem [shape: f32[2304,128], index: 2, kind: input, shape index: {}]   ;;  %s13067_s3 = inlined_call_operand.vmem [shape: f32[1152,128], index: 3, kind: input, shape index: {}]   ;;  %s13068_s4 = inlined_call_operand.vmem [shape: f32[2,3,128], index: 4, kind: input, shape index: {}]   ;;  %s13069_s5 = inlined_call_operand.vmem [shape: f32[2], index: 5, kind: input, shape index: {}]   ;;  %s13070_s6 = inlined_call_operand.hbm [shape: f32[2,16,16,128], index: 6, kind: output, shape index: {}]  }
   0x1   :  { %12 = vsyncpa [#allocation3], 0 }
   0x2   :  { %14 = vsyncpa [#allocation3 + $0x1], 0  ;;  %s7779_s21 = smov 0   ;;  %s7781_s22 = smov 0  }
   0x3   :  { %s7783_s23 = smov 0   ;;  %s7785_s24 = smov 0  }
   0x4 LB: > { %s7800_s25 = sadd.s32 4294967295, %s7736_s24   ;;  %s5833_s26 = sadd.s32 4294967294, %s7736_s24   ;;  %s7736_s24 = sphi %s7785_s24, %s14264_s24   ;;  %s7732_s23 = sphi %s7783_s23, %s14263_s23   ;;  %s7728_s22 = sphi %s7781_s22, %s14262_s22   ;;  %s7724_s21 = sphi %s7779_s21, %s14261_s21  }
   0x5   : > { %s7804_s27 = sadd.s32 1, %s7736_s24   ;;  %s163_s28 = sadd.s32 1, %s7732_s23 }
   0x6   : > { %s160_s29 = ssub.s32 %s7736_s24, %s7804_s27  ;;  %p173_p0 = scmp.ne.s32.totalorder %s7732_s23, %s7728_s22 }
   0x7   : > { %p161_p1 = scmp.eq.s32.totalorder %s160_s29, 0  ;;  %p174_p2 = scmp.eq.s32.totalorder %s7800_s25, 1 }
   0x8   : > { %p179_p3 = scmp.ne.s32.totalorder %s7728_s22, %s7724_s21  ;;  %p180_p4 = scmp.eq.s32.totalorder %s5833_s26, 1 }
   0x9   : > { %s7815_s30 = scalar_select %p161_p1, %s7732_s23, %s163_s28  }
   0xa   : > { %p7817_p5 = por %p174_p2, %p173_p0  ;;  %p7821_p6 = por %p180_p4, %p179_p3 }
   0xb   : > { %p5834_p7 = scmp.ge.s32.totalorder %s7736_s24, 1  ;;  %p187_p8 = scmp.lt.s32.totalorder %s7736_s24, 3 }
   0xc   : > { %p7611_p9 = scmp.eq.s32.totalorder %s7800_s25, 0  ;;  %s209_s12 = sshll.u32 %s13069_s5, 4  ;;  %s210_s12 = int_to_ptr.vmem [resolvable:$true] %s209_s12 }
   0xd   : > { %p7828_p10 = pnand %p5834_p7, %p187_p8  ;;  %s7655_s13 = scalar_lea.vmem %s210_s12, 16 }
   0xe   : > { %p7656_p13 = scmp.ne.s32.totalorder %s210_s12, %s7655_s13  ;;  %p7663_p3 = scmp.lt.s32.totalorder %s210_s12, %s210_s12 }
   0xf   : > { %p7603_p11 = pneg %p7828_p10  ;;  %p7664_p4 = scmp.lt.s32.totalorder %s7655_s13, %s7655_s13 }
  0x11   : > { %p7604_p12 = pnand %p7611_p9, %p7603_p11  ;;  %p7665_p7 = por %p7664_p4, %p7663_p3 }
  0x13   : > { %p7657_p0 = pneg %p7604_p12 }
  0x15   : > { %p7658_p1 = pnand %p7657_p0, %p7656_p13 }
  0x17   : > { %p7659_p2 = pneg %p7658_p1 }
  0x19   : > { %p7666_p8 = pnand %p7665_p7, %p7659_p2 }
  0x1b   : > { %7669 = shalt.err (!%p7666_p8)
}
  0x1c   : > { %s7738_s14 = smov [#allocation2]   ;;  %238 = sbr.rel (%p7828_p10) target bundleno = 2144 (0x860), region = 44 }
  0x1d   : > { %7606 = dma.vmem_to_smem (!%p7604_p12), %s210_s12, 16, %s7738_s14, [#allocation4]  }
  0x23   : > { %7715 = dma.done.wait (%p7611_p9), [#allocation4], 16  }
  0x24   : > { %7717 = vsyncadd (%p7611_p9), [#allocation4], 4294967280 }
  0x25   : > { %244 = sfence }
  0x26   : > { %v1272_v0 = vld [vmem:[%s13066_s2 + $0x200] sm:$0xff]  ;;  %v1273_v1 = vld [vmem:[%s13066_s2 + $0x208] sm:$0xff]  ;;  %v1274_v2 = vld [vmem:[%s13066_s2 + $0x210] sm:$0xff]  ;;  %vm415_vm0 = vcmask 1040384   ;;  %v13075_v3 = vmov 0.0|0.0   ;;  %v7740_v6 = vmov 0.0  }
  0x27   : > { %6365 = vmatprep.subr.bf16.mxu0 %v13075_v3  ;;  %v6366_v4 = vpack.c.bf16 %v1273_v1, %v1272_v0  ;;  %v1275_v5 = vld [vmem:[%s13066_s2 + $0x218] sm:$0xff]  ;;  %v7858_v7 = vrot.slane %v7740_v6, 7  ;;  %6269 = vmatprep.subr.bf16.mxu1 %v13075_v3  ;;  %vm958_vm1 = vcmask 1045504   ;;  %v1276_v11 = vld [vmem:[%s13066_s2 + $0x220] sm:$0xff]  ;;  %v1277_v12 = vld [vmem:[%s13066_s2 + $0x228] sm:$0xff]  ;;  %p274_p9 = scmp.lt.s32.totalorder %s7800_s25, 1 }
  0x28   : > { %v6369_v8 = vpack.c.bf16 %v1275_v5, %v1274_v2  ;;  %v6372_v15 = vpack.c.bf16 %v1277_v12, %v1276_v11  ;;  %v1278_v16 = vld [vmem:[%s13066_s2 + $0x230] sm:$0xff]  ;;  %v1279_v17 = vld [vmem:[%s13066_s2 + $0x238] sm:$0xff]  ;;  %v1280_v19 = vld [vmem:[%s13066_s2 + $0x240] sm:$0xff]  ;;  %v13572_v11 = vmov 0  ;;  %vm740_vm3 = vcmask 1046528   ;;  %s3521_s20 = sld [smem:[#allocation2]] }
  0x29   : > { %13567 = vst [vmem:[#allocation8_spill] sm:$0xff] %v7858_v7  ;;  %6367 = vmatpush1.bf16.msra.mxu0 %v6366_v4  ;;  %v7863_v9 = vsel %vm415_vm0, 0.0, %v7858_v7  ;;  %v960_v10 = vrot.slane %v7858_v7, 2  ;;  %v6375_v18 = vpack.c.bf16 %v1279_v17, %v1278_v16  ;;  %v1281_v20 = vld [vmem:[%s13066_s2 + $0x248] sm:$0xff]  ;;  %v1282_v22 = vld [vmem:[%s13066_s2 + $0x250] sm:$0xff]  ;;  %v1283_v23 = vld [vmem:[%s13066_s2 + $0x258] sm:$0xff] }
  0x2a   : > { %13568 = vst [vmem:[#allocation9_spill] sm:$0xff] %v7863_v9  ;;  %6368 = vmatprep.subr.bf16.mxu0 %v13075_v3  ;;  %v959_v13 = vrot.slane %v7863_v9, 2  ;;  %v6378_v21 = vpack.c.bf16 %v1281_v20, %v1280_v19  ;;  %v6381_v24 = vpack.c.bf16 %v1283_v23, %v1282_v22  ;;  %v1284_v25 = vld [vmem:[%s13066_s2 + $0x260] sm:$0xff]  ;;  %v1285_v26 = vld [vmem:[%s13066_s2 + $0x268] sm:$0xff]  ;;  %v1286_v28 = vld [vmem:[%s13066_s2 + $0x270] sm:$0xff]  ;;  %s275_s28 = scalar_select %p274_p9, %s7800_s25, 1 }
  0x2b   : > { %v6384_v27 = vpack.c.bf16 %v1285_v26, %v1284_v25  ;;  %v1287_v29 = vld [vmem:[%s13066_s2 + $0x278] sm:$0xff]  ;;  %v1288_v31 = vld [vmem:[%s13066_s2 + $0x280] sm:$0xff]  ;;  %v1289_v32 = vld [vmem:[%s13066_s2 + $0x288] sm:$0xff]  ;;  %v7987_v56 = vsel %vm415_vm0, %v7858_v7, 0.0  ;;  %v13608_v9 = vmov 0.0|0.0   ;;  %s271_s13 = sand.u32 1, %s7728_s22  }
  0x2c   : > { %v7877_v14 = vsel %vm958_vm1, %v959_v13, %v960_v10  ;;  %v6387_v30 = vpack.c.bf16 %v1287_v29, %v1286_v28  ;;  %v6390_v33 = vpack.c.bf16 %v1289_v32, %v1288_v31  ;;  %v1290_v34 = vld [vmem:[%s13066_s2 + $0x290] sm:$0xff]  ;;  %v1291_v35 = vld [vmem:[%s13066_s2 + $0x298] sm:$0xff]  ;;  %v1292_v37 = vld [vmem:[%s13066_s2 + $0x2a0] sm:$0xff]  ;;  %s6138_s12 = sshll.u32 %s275_s28, 8  ;;  %13570 = vst [vmem:[#allocation11_spill] sm:$0xff] %v7987_v56  ;;  %v962_v62 = vrot.slane %v7987_v56, 2 }
  0x2d   : > { %13569 = vst [vmem:[#allocation10_spill] sm:$0xff] %v7877_v14  ;;  %6370 = vmatpush1.bf16.msra.mxu0 %v6369_v8  ;;  %2010 = vmatprep.mubr.f32.mxu0 %v7877_v14  ;;  %v6393_v36 = vpack.c.bf16 %v1291_v35, %v1290_v34  ;;  %v1293_v38 = vld [vmem:[%s13066_s2 + $0x2a8] sm:$0xff]  ;;  %v1294_v40 = vld [vmem:[%s13066_s2 + $0x2b0] sm:$0xff]  ;;  %v1295_v41 = vld [vmem:[%s13066_s2 + $0x2b8] sm:$0xff]  ;;  %s7962_s15 = scalar_lea.vmem %s13065_s1, %s6138_s12  ;;  %s7976_s28 = scalar_lea.vmem %s13064_s0, %s6138_s12 }
  0x2e   : > { %6371 = vmatprep.subr.bf16.mxu0 %v13075_v3  ;;  %v6396_v39 = vpack.c.bf16 %v1293_v38, %v1292_v37  ;;  %v6399_v42 = vpack.c.bf16 %v1295_v41, %v1294_v40  ;;  %v1296_v43 = vld [vmem:[%s13066_s2 + $0x2c0] sm:$0xff]  ;;  %v1297_v44 = vld [vmem:[%s13066_s2 + $0x2c8] sm:$0xff]  ;;  %v1298_v46 = vld [vmem:[%s13066_s2 + $0x2d0] sm:$0xff]  ;;  %v8021_v13 = vsel %vm958_vm1, %v960_v10, %v962_v62  ;;  %s5839_s14 = sshll.u32 %s271_s13, 8  ;;  %s6140_s17 = sshll.u32 %s7800_s25, 12 }
  0x2f   : > { %v6402_v45 = vpack.c.bf16 %v1297_v44, %v1296_v43  ;;  %v1299_v47 = vld [vmem:[%s13066_s2 + $0x2d8] sm:$0xff]  ;;  %v1300_v49 = vld [vmem:[%s13066_s2 + $0x2e0] sm:$0xff]  ;;  %v1301_v50 = vld [vmem:[%s13066_s2 + $0x2e8] sm:$0xff]  ;;  %13575 = vst [vmem:[#allocation14_spill] sm:$0xff] %v8021_v13  ;;  %s12829_s16 = scalar_lea.vmem [#allocation5], %s5839_s14  ;;  %s13023_s26 = scalar_lea.sflag [#allocation3], %s271_s13 }
  0x30   : > { %v6405_v48 = vpack.c.bf16 %v1299_v47, %v1298_v46  ;;  %v318_v51 = vld [vmem:[%s7962_s15] sm:$0xff]  ;;  %v319_v52 = vld [vmem:[%s7962_s15 + $0x8] sm:$0xff]  ;;  %v6408_v53 = vpack.c.bf16 %v1301_v50, %v1300_v49  ;;  %v1302_v54 = vld [vmem:[%s13066_s2 + $0x2f0] sm:$0xff]  ;;  %s5747_s18 = sshll.u32 %s12829_s16, 4  ;;  %s7741_s9 = smov [#allocation5]   ;;  %s13007_s18 = int_to_ptr.vmem [resolvable:$true] %s5747_s18 }
  0x31   : > { %6373 = vmatpush1.bf16.msra.mxu0 %v6372_v15  ;;  %v1303_v55 = vld [vmem:[%s13066_s2 + $0x2f8] sm:$0xff]  ;;  %v7989_v57 = vrot.slane %v318_v51, 7  ;;  %v422_v58 = vrot.slane %v319_v52, 7  ;;  %v286_v59 = vld [vmem:[%s7976_s28] sm:$0xff]  ;;  %v287_v60 = vld [vmem:[%s7976_s28 + $0x8] sm:$0xff]  ;;  %s7670_s29 = scalar_lea.vmem %s13007_s18, 4096 }
  0x32   : > { %6374 = vmatprep.subr.bf16.mxu0 %v13075_v3  ;;  %v6411_v61 = vpack.c.bf16 %v1303_v55, %v1302_v54  ;;  %v1304_v63 = vld [vmem:[%s13066_s2 + $0x300] sm:$0xff]  ;;  %v1305_v0 = vld [vmem:[%s13066_s2 + $0x308] sm:$0xff]  ;;  %v8001_v1 = vrot.slane %v286_v59, 7  ;;  %v420_v2 = vrot.slane %v287_v60, 7  ;;  %v320_v6 = vld [vmem:[%s7962_s15 + $0x10] sm:$0xff]  ;;  %p7671_p10 = scmp.ne.s32.totalorder %s13007_s18, %s7670_s29 }
  0x33   : > { %v8005_v4 = vsel %vm415_vm0, %v7989_v57, %v422_v58  ;;  %v8009_v5 = vsel %vm415_vm0, 0.0, %v7989_v57  ;;  %v321_v8 = vld [vmem:[%s7962_s15 + $0x18] sm:$0xff]  ;;  %vm8014_vm2 = vmneg %vm415_vm0  ;;  %v6414_v12 = vpack.c.bf16 %v1305_v0, %v1304_v63  ;;  %v1306_v15 = vld [vmem:[%s13066_s2 + $0x310] sm:$0xff]  ;;  %v8047_v22 = vrot.slane %v320_v6, 7 }
  0x34   : > { %13571 = vst [vmem:[#allocation12_spill] sm:$0xff] %v8009_v5  ;;  %v13573_v11 = vsel %vm8014_vm2, 4294967295, %v13572_v11  ;;  %v1307_v16 = vld [vmem:[%s13066_s2 + $0x318] sm:$0xff]  ;;  %5845 = vmatprep.mubr.msk.f32.mxu1 %vm8014_vm2, %v7858_v7  ;;  %v967_v17 = vrot.slane %v8009_v5, 2  ;;  %v8037_v10 = vsel %vm415_vm0, %v8001_v1, %v420_v2  ;;  %v8041_v19 = vsel %vm415_vm0, 0.0, %v8001_v1  ;;  %v288_v20 = vld [vmem:[%s7976_s28 + $0x10] sm:$0xff]  ;;  %p7672_p11 = pnand %p7671_p10, %p7817_p5 }
  0x35   : > { %6376 = vmatpush1.bf16.msra.mxu0 %v6375_v18  ;;  %13574 = vst [vmem:[#allocation13_spill] sm:$0xff] %v13573_v11  ;;  %v968_v18 = vrot.slane %v8005_v4, 2  ;;  %13576 = vst [vmem:[#allocation15_spill] sm:$0xff] %v8041_v19  ;;  %v428_v23 = vrot.slane %v321_v8, 7  ;;  %v6417_v25 = vpack.c.bf16 %v1307_v16, %v1306_v15  ;;  %v964_v26 = vrot.slane %v8041_v19, 2  ;;  %v1309_v34 = vld [vmem:[%s13066_s2 + $0x328] sm:$0xff] }
  0x36   : > { %6377 = vmatprep.subr.bf16.mxu0 %v13075_v3  ;;  %v8055_v28 = vsel %vm415_vm0, %v420_v2, 0.0  ;;  %v8057_v29 = vrot.slane %v288_v20, 7  ;;  %v322_v38 = vld [vmem:[%s7962_s15 + $0x20] sm:$0xff]  ;;  %v1310_v49 = vld [vmem:[%s13066_s2 + $0x330] sm:$0xff]  ;;  %v1311_v50 = vld [vmem:[%s13066_s2 + $0x338] sm:$0xff]  ;;  %p7673_p12 = pneg %p7672_p11 }
  0x37   : > { %13578 = vst [vmem:[#allocation17_spill] sm:$0xff] %v8055_v28  ;;  %v8072_v35 = vsel %vm415_vm0, %v8047_v22, %v428_v23  ;;  %v970_v37 = vrot.slane %v8055_v28, 2  ;;  %v290_v43 = vld [vmem:[%s7976_s28 + $0x20] sm:$0xff]  ;;  %v8109_v51 = vsel %vm415_vm0, %v428_v23, 0.0  ;;  %v8111_v52 = vrot.slane %v322_v38, 7  ;;  %v1313_v6 = vld [vmem:[%s13066_s2 + $0x348] sm:$0xff] }
  0x38   : > { %v8088_v41 = vsel %vm415_vm0, 0.0, %v8057_v29  ;;  %v978_v46 = vrot.slane %v8072_v35, 2  ;;  %13584 = vst [vmem:[#allocation23_spill] sm:$0xff] %v8109_v51  ;;  %v8123_v60 = vrot.slane %v290_v43, 7  ;;  %v6423_v62 = vpack.c.bf16 %v1311_v50, %v1310_v49  ;;  %v1312_v2 = vld [vmem:[%s13066_s2 + $0x340] sm:$0xff]  ;;  %v324_v16 = vld [vmem:[%s7962_s15 + $0x30] sm:$0xff] }
  0x39   : > { %6379 = vmatpush1.bf16.msra.mxu0 %v6378_v21  ;;  %v8045_v21 = vsel %vm415_vm0, %v422_v58, 0.0  ;;  %13582 = vst [vmem:[#allocation21_spill] sm:$0xff] %v8088_v41  ;;  %v974_v55 = vrot.slane %v8088_v41, 2  ;;  %v982_v0 = vrot.slane %v8109_v51, 2  ;;  %v8177_v38 = vrot.slane %v324_v16, 7 }
  0x3a   : > { %6380 = vmatprep.subr.bf16.mxu0 %v13075_v3  ;;  %13577 = vst [vmem:[#allocation16_spill] sm:$0xff] %v8045_v21  ;;  %v972_v31 = vrot.slane %v8045_v21, 2  ;;  %v8158_v23 = vsel %vm415_vm0, 0.0, %v8123_v60 }
  0x3b   : > { %13590 = vst [vmem:[#allocation29_spill] sm:$0xff] %v8158_v23  ;;  %13593 = vst [vmem:[#allocation32_spill] sm:$0xff] %v8177_v38  ;;  %v984_v43 = vrot.slane %v8158_v23, 2  ;;  %v1334_v23 = vld [vmem:[%s13066_s2 + $0x3f0] sm:$0xff] }
  0x3c   : > { %v8092_v44 = vsel %vm958_vm1, %v968_v18, %v972_v31 }
  0x3d   : > { %6382 = vmatpush1.bf16.msra.mxu0 %v6381_v24  ;;  %v289_v24 = vld [vmem:[%s7976_s28 + $0x18] sm:$0xff]  ;;  %13583 = vst [vmem:[#allocation22_spill] sm:$0xff] %v8092_v44 }
  0x3e   : > { %6383 = vmatprep.subr.bf16.mxu0 %v13075_v3  ;;  %v426_v32 = vrot.slane %v289_v24, 7  ;;  %v292_v24 = vld [vmem:[%s7976_s28 + $0x30] sm:$0xff] }
  0x40   : > { %v8098_v47 = vsel %vm415_vm0, %v8057_v29, %v426_v32  ;;  %v8119_v58 = vsel %vm415_vm0, %v426_v32, 0.0  ;;  %v293_v32 = vld [vmem:[%s7976_s28 + $0x38] sm:$0xff] }
  0x41   : > { %6385 = vmatpush1.bf16.msra.mxu0 %v6384_v27  ;;  %v965_v27 = vrot.slane %v8037_v10, 2  ;;  %13586 = vst [vmem:[#allocation25_spill] sm:$0xff] %v8119_v58  ;;  %v975_v59 = vrot.slane %v8098_v47, 2  ;;  %v980_v15 = vrot.slane %v8119_v58, 2  ;;  %v438_v49 = vrot.slane %v293_v32, 7 }
  0x42   : > { %6386 = vmatprep.subr.bf16.mxu0 %v13075_v3 }
  0x43   : > { %v8084_v40 = vsel %vm958_vm1, %v964_v26, %v965_v27  ;;  %v8115_v54 = vsel %vm958_vm1, %v965_v27, %v970_v37  ;;  %v8162_v26 = vsel %vm958_vm1, %v978_v46, %v982_v0  ;;  %v8208_v0 = vsel %vm415_vm0, 0.0, %v8177_v38 }
  0x44   : > { %13581 = vst [vmem:[#allocation20_spill] sm:$0xff] %v8084_v40  ;;  %13585 = vst [vmem:[#allocation24_spill] sm:$0xff] %v8115_v54  ;;  %v8253_v56 = vsel %vm415_vm0, %v438_v49, 0.0 }
  0x45   : > { %6388 = vmatpush1.bf16.msra.mxu0 %v6387_v30  ;;  %v8060_v30 = vsel %vm958_vm1, %v967_v17, %v968_v18  ;;  %v325_v17 = vld [vmem:[%s7962_s15 + $0x38] sm:$0xff]  ;;  %v8150_v18 = vsel %vm958_vm1, %v974_v55, %v975_v59  ;;  %13591 = vst [vmem:[#allocation30_spill] sm:$0xff] %v8162_v26  ;;  %13598 = vst [vmem:[#allocation37_spill] sm:$0xff] %v8208_v0 }
  0x46   : > { %6389 = vmatprep.subr.bf16.mxu0 %v13075_v3  ;;  %13579 = vst [vmem:[#allocation18_spill] sm:$0xff] %v8060_v30  ;;  %13589 = vst [vmem:[#allocation28_spill] sm:$0xff] %v8150_v18 }
  0x47   : > { %13605 = vst [vmem:[#allocation44_spill] sm:$0xff] %v8253_v56 }
  0x49   : > { %6391 = vmatpush1.bf16.msra.mxu0 %v6390_v33  ;;  %v1308_v33 = vld [vmem:[%s13066_s2 + $0x320] sm:$0xff] }
  0x4a   : > { %6392 = vmatprep.subr.bf16.mxu0 %v13075_v3 }
  0x4d   : > { %6394 = vmatpush1.bf16.msra.mxu0 %v6393_v36  ;;  %v8076_v36 = vsel %vm415_vm0, 0.0, %v8047_v22 }
  0x4e   : > { %6395 = vmatprep.subr.bf16.mxu0 %v13075_v3  ;;  %13580 = vst [vmem:[#allocation19_spill] sm:$0xff] %v8076_v36 }
  0x51   : > { %6397 = vmatpush1.bf16.msra.mxu0 %v6396_v39  ;;  %v323_v39 = vld [vmem:[%s7962_s15 + $0x28] sm:$0xff] }
  0x52   : > { %6398 = vmatprep.subr.bf16.mxu0 %v13075_v3 }
  0x55   : > { %6400 = vmatpush1.bf16.msra.mxu0 %v6399_v42  ;;  %v6420_v42 = vpack.c.bf16 %v1309_v34, %v1308_v33  ;;  %v1314_v33 = vld [vmem:[%s13066_s2 + $0x350] sm:$0xff]  ;;  %v1315_v34 = vld [vmem:[%s13066_s2 + $0x358] sm:$0xff] }
  0x56   : > { %6401 = vmatprep.subr.bf16.mxu0 %v13075_v3  ;;  %v6429_v50 = vpack.c.bf16 %v1315_v34, %v1314_v33  ;;  %v997_v33 = vrot.slane %v8208_v0, 2  ;;  %v1331_v0 = vld [vmem:[%s13066_s2 + $0x3d8] sm:$0xff] }
  0x59   : > { %6403 = vmatpush1.bf16.msra.mxu0 %v6402_v45  ;;  %v977_v45 = vrot.slane %v8076_v36, 2 }
  0x5a   : > { %6404 = vmatprep.subr.bf16.mxu0 %v13075_v3 }
  0x5b   : > { %v8126_v63 = vsel %vm958_vm1, %v977_v45, %v978_v46 }
  0x5c   : > { %13587 = vst [vmem:[#allocation26_spill] sm:$0xff] %v8126_v63 }
  0x5d   : > { %6406 = vmatpush1.bf16.msra.mxu0 %v6405_v48  ;;  %v291_v48 = vld [vmem:[%s7976_s28 + $0x28] sm:$0xff] }
  0x5e   : > { %6407 = vmatprep.subr.bf16.mxu0 %v13075_v3 }
  0x61   : > { %6409 = vmatpush1.bf16.msra.mxu0 %v6408_v53  ;;  %v434_v53 = vrot.slane %v323_v39, 7  ;;  %v440_v39 = vrot.slane %v325_v17, 7 }
  0x62   : > { %6410 = vmatprep.subr.bf16.mxu0 %v13075_v3 }
  0x63   : > { %v8138_v8 = vsel %vm415_vm0, %v8111_v52, %v434_v53  ;;  %v8175_v37 = vsel %vm415_vm0, %v434_v53, 0.0 }
  0x64   : > { %v988_v31 = vrot.slane %v8138_v8, 2  ;;  %13592 = vst [vmem:[#allocation31_spill] sm:$0xff] %v8175_v37  ;;  %v992_v55 = vrot.slane %v8175_v37, 2 }
  0x65   : > { %6412 = vmatpush1.bf16.msra.mxu0 %v6411_v61  ;;  %v432_v61 = vrot.slane %v291_v48, 7  ;;  %v8189_v48 = vrot.slane %v292_v24, 7 }
  0x66   : > { %6413 = vmatprep.subr.bf16.mxu0 %v13075_v3  ;;  %v8228_v32 = vsel %vm958_vm1, %v988_v31, %v992_v55 }
  0x67   : > { %v8154_v20 = vsel %vm415_vm0, %v8123_v60, %v432_v61  ;;  %v8187_v46 = vsel %vm415_vm0, %v432_v61, 0.0  ;;  %13596 = vst [vmem:[#allocation35_spill] sm:$0xff] %v8189_v48  ;;  %v1317_v61 = vld [vmem:[%s13066_s2 + $0x368] sm:$0xff]  ;;  %v8220_v17 = vsel %vm415_vm0, %v8189_v48, %v438_v49  ;;  %v8224_v24 = vsel %vm415_vm0, 0.0, %v8189_v48  ;;  %13601 = vst [vmem:[#allocation40_spill] sm:$0xff] %v8228_v32 }
  0x68   : > { %2011 = vmatmul.mubr.f32.vlgmr.msra.gmra.mrb[0].mxu0 %v7877_v14  ;;  %v985_v45 = vrot.slane %v8154_v20, 2  ;;  %13595 = vst [vmem:[#allocation34_spill] sm:$0xff] %v8187_v46  ;;  %13600 = vst [vmem:[#allocation39_spill] sm:$0xff] %v8224_v24  ;;  %v1319_v14 = vld [vmem:[%s13066_s2 + $0x378] sm:$0xff]  ;;  %v1321_v49 = vld [vmem:[%s13066_s2 + $0x388] sm:$0xff] }
  0x69   : > { %6415 = vmatpush1.bf16.msra.mxu0 %v6414_v12  ;;  %2015 = vmatprep.mubr.f32.mxu0 %v8021_v13  ;;  %v8142_v12 = vsel %vm415_vm0, 0.0, %v8111_v52 }
  0x6a   : > { %6416 = vmatprep.subr.bf16.mxu0 %v13075_v3  ;;  %13588 = vst [vmem:[#allocation27_spill] sm:$0xff] %v8142_v12  ;;  %v987_v27 = vrot.slane %v8142_v12, 2  ;;  %v8216_v16 = vsel %vm958_vm1, %v984_v43, %v985_v45  ;;  %v295_v43 = vld [vmem:[%s7976_s28 + $0x48] sm:$0xff]  ;;  %v1335_v12 = vld [vmem:[%s13066_s2 + $0x3f8] sm:$0xff] }
  0x6b   : > { %13599 = vst [vmem:[#allocation38_spill] sm:$0xff] %v8216_v16 }
  0x6c   : > { %2016 = vmatmul.mubr.f32.gmra.mrb[2].mxu0 %v8021_v13  ;;  %v8192_v53 = vsel %vm958_vm1, %v987_v27, %v988_v31  ;;  %v1318_v13 = vld [vmem:[%s13066_s2 + $0x370] sm:$0xff] }
  0x6d   : > { %2020 = vmatprep.mubr.f32.mxu0 %v8060_v30  ;;  %6418 = vmatpush1.bf16.msra.mxu0 %v6417_v25  ;;  %v6426_v25 = vpack.c.bf16 %v1313_v6, %v1312_v2  ;;  %13597 = vst [vmem:[#allocation36_spill] sm:$0xff] %v8192_v53  ;;  %v990_v2 = vrot.slane %v8187_v46, 2  ;;  %v326_v6 = vld [vmem:[%s7962_s15 + $0x40] sm:$0xff] }
  0x6e   : > { %6419 = vmatprep.subr.bf16.mxu0 %v13075_v3  ;;  %v8243_v31 = vrot.slane %v326_v6, 7  ;;  %v444_v6 = vrot.slane %v295_v43, 7  ;;  %v298_v30 = vld [vmem:[%s7976_s28 + $0x60] sm:$0xff] }
  0x70   : > { %2021 = vmatmul.mubr.f32.gmra.mrb[4].mxu0 %v8084_v40  ;;  %13603 = vst [vmem:[#allocation42_spill] sm:$0xff] %v8243_v31  ;;  %v8319_v40 = vsel %vm415_vm0, %v444_v6, 0.0 }
  0x71   : > { %2025 = vmatprep.mubr.f32.mxu0 %v8092_v44  ;;  %6421 = vmatpush1.bf16.msra.mxu0 %v6420_v42  ;;  %v8181_v42 = vsel %vm958_vm1, %v975_v59, %v980_v15  ;;  %v1316_v59 = vld [vmem:[%s13066_s2 + $0x360] sm:$0xff]  ;;  %v327_v15 = vld [vmem:[%s7962_s15 + $0x48] sm:$0xff]  ;;  %13616 = vst [vmem:[#allocation54_spill] sm:$0xff] %v8319_v40 }
  0x72   : > { %6422 = vmatprep.subr.bf16.mxu0 %v13075_v3  ;;  %13594 = vst [vmem:[#allocation33_spill] sm:$0xff] %v8181_v42  ;;  %v6432_v27 = vpack.c.bf16 %v1317_v61, %v1316_v59  ;;  %v446_v55 = vrot.slane %v327_v15, 7  ;;  %v8247_v59 = vsel %vm958_vm1, %v985_v45, %v990_v2  ;;  %v994_v61 = vrot.slane %v8224_v24, 2  ;;  %v1330_v24 = vld [vmem:[%s13066_s2 + $0x3d0] sm:$0xff] }
  0x73   : > { %13604 = vst [vmem:[#allocation43_spill] sm:$0xff] %v8247_v59  ;;  %v6435_v15 = vpack.c.bf16 %v1319_v14, %v1318_v13  ;;  %v8274_v14 = vsel %vm415_vm0, 0.0, %v8243_v31  ;;  %v1000_v13 = vrot.slane %v8253_v56, 2 }
  0x74   : > { %2026 = vmatmul.mubr.f32.gmra.mrb[6].mxu0 %v8115_v54  ;;  %13609 = vst [vmem:[#allocation47_spill] sm:$0xff] %v8274_v14  ;;  %v1323_v54 = vld [vmem:[%s13066_s2 + $0x398] sm:$0xff] }
  0x75   : > { %2030 = vmatprep.mubr.f32.mxu0 %v8126_v63  ;;  %6424 = vmatpush1.bf16.msra.mxu0 %v6423_v62  ;;  %v8204_v62 = vsel %vm415_vm0, %v8177_v38, %v440_v39  ;;  %v1322_v63 = vld [vmem:[%s13066_s2 + $0x390] sm:$0xff] }
  0x76   : > { %6425 = vmatprep.subr.bf16.mxu0 %v13075_v3  ;;  %v998_v34 = vrot.slane %v8204_v62, 2 }
  0x78   : > { %2031 = vmatmul.mubr.f32.gmra.mrb[8].mxu0 %v8150_v18  ;;  %v8258_v45 = vsel %vm958_vm1, %v997_v33, %v998_v34  ;;  %v329_v33 = vld [vmem:[%s7962_s15 + $0x58] sm:$0xff]  ;;  %v1007_v18 = vrot.slane %v8274_v14, 2 }
  0x79   : > { %2035 = vmatprep.mubr.f32.mxu0 %v8162_v26  ;;  %6427 = vmatpush1.bf16.msra.mxu0 %v6426_v25  ;;  %v294_v25 = vld [vmem:[%s7976_s28 + $0x40] sm:$0xff]  ;;  %13607 = vst [vmem:[#allocation46_spill] sm:$0xff] %v8258_v45  ;;  %v1327_v14 = vld [vmem:[%s13066_s2 + $0x3b8] sm:$0xff] }
  0x7a   : > { %6428 = vmatprep.subr.bf16.mxu0 %v13075_v3 }
  0x7c   : > { %2036 = vmatmul.mubr.f32.gmra.mrb[10].mxu0 %v8181_v42  ;;  %v296_v42 = vld [vmem:[%s7976_s28 + $0x50] sm:$0xff] }
  0x7d   : > { %2040 = vmatprep.mubr.f32.mxu0 %v8192_v53  ;;  %6430 = vmatpush1.bf16.msra.mxu0 %v6429_v50  ;;  %v8241_v50 = vsel %vm415_vm0, %v440_v39, 0.0  ;;  %v8255_v39 = vrot.slane %v294_v25, 7  ;;  %v8270_v25 = vsel %vm415_vm0, %v8243_v31, %v446_v55 }
  0x7e   : > { %6431 = vmatprep.subr.bf16.mxu0 %v13075_v3  ;;  %13602 = vst [vmem:[#allocation41_spill] sm:$0xff] %v8241_v50  ;;  %v995_v3 = vrot.slane %v8220_v17, 2  ;;  %v1002_v2 = vrot.slane %v8241_v50, 2 }
  0x7f   : > { %13606 = vst [vmem:[#allocation45_spill] sm:$0xff] %v8255_v39  ;;  %v8290_v53 = vsel %vm415_vm0, 0.0, %v8255_v39 }
  0x80   : > { %2041 = vmatmul.mubr.f32.gmra.mrb[12].mxu0 %v8216_v16  ;;  %v8282_v43 = vsel %vm958_vm1, %v994_v61, %v995_v3  ;;  %v8286_v16 = vsel %vm415_vm0, %v8255_v39, %v444_v6  ;;  %13611 = vst [vmem:[#allocation49_spill] sm:$0xff] %v8290_v53  ;;  %v8294_v26 = vsel %vm958_vm1, %v998_v34, %v1002_v2  ;;  %v297_v61 = vld [vmem:[%s7976_s28 + $0x58] sm:$0xff]  ;;  %v331_v6 = vld [vmem:[%s7962_s15 + $0x68] sm:$0xff] }
  0x81   : > { %2045 = vmatprep.mubr.f32.mxu0 %v8228_v32  ;;  %6433 = vmatpush1.bf16.msra.mxu0 %v6432_v27  ;;  %v1320_v32 = vld [vmem:[%s13066_s2 + $0x380] sm:$0xff]  ;;  %v328_v27 = vld [vmem:[%s7962_s15 + $0x50] sm:$0xff]  ;;  %13610 = vst [vmem:[#allocation48_spill] sm:$0xff] %v8282_v43  ;;  %13612 = vst [vmem:[#allocation50_spill] sm:$0xff] %v8294_v26  ;;  %v8313_v2 = vsel %vm958_vm1, %v995_v3, %v1000_v13  ;;  %v1005_v44 = vrot.slane %v8286_v16, 2 }
  0x82   : > { %6434 = vmatprep.subr.bf16.mxu0 %v13608_v9  ;;  %v8309_v34 = vrot.slane %v328_v27, 7  ;;  %13615 = vst [vmem:[#allocation53_spill] sm:$0xff] %v8313_v2  ;;  %v450_v27 = vrot.slane %v297_v61, 7 }
  0x84   : > { %2046 = vmatmul.mubr.f32.gmra.mrb[14].mxu0 %v8247_v59  ;;  %v6438_v59 = vpack.c.bf16 %v1321_v49, %v1320_v32  ;;  %v8307_v32 = vsel %vm415_vm0, %v446_v55, 0.0  ;;  %13614 = vst [vmem:[#allocation52_spill] sm:$0xff] %v8309_v34  ;;  %v1004_v49 = vrot.slane %v8290_v53, 2  ;;  %v8321_v55 = vrot.slane %v296_v42, 7  ;;  %v1325_v42 = vld [vmem:[%s13066_s2 + $0x3a8] sm:$0xff]  ;;  %v1326_v53 = vld [vmem:[%s13066_s2 + $0x3b0] sm:$0xff] }
  0x85   : > { %2050 = vmatprep.mubr.f32.mxu0 %v8258_v45  ;;  %6436 = vmatpush1.bf16.msra.mxu0 %v6435_v15  ;;  %v1008_v45 = vrot.slane %v8270_v25, 2  ;;  %13613 = vst [vmem:[#allocation51_spill] sm:$0xff] %v8307_v32  ;;  %v452_v15 = vrot.slane %v329_v33, 7  ;;  %v6441_v33 = vpack.c.bf16 %v1323_v54, %v1322_v63  ;;  %v1012_v13 = vrot.slane %v8307_v32, 2 }
  0x86   : > { %6437 = vmatprep.subr.bf16.mxu0 %v13608_v9  ;;  %13617 = vst [vmem:[#allocation55_spill] sm:$0xff] %v8321_v55  ;;  %v8340_v54 = vsel %vm415_vm0, 0.0, %v8309_v34  ;;  %v1010_v63 = vrot.slane %v8319_v40, 2  ;;  %v8348_v61 = vsel %vm958_vm1, %v1004_v49, %v1005_v44  ;;  %v8356_v7 = vsel %vm415_vm0, 0.0, %v8321_v55  ;;  %v299_v49 = vld [vmem:[%s7976_s28 + $0x68] sm:$0xff] }
  0x87   : > { %v8324_v3 = vsel %vm958_vm1, %v1007_v18, %v1008_v45  ;;  %13619 = vst [vmem:[#allocation57_spill] sm:$0xff] %v8340_v54  ;;  %v330_v18 = vld [vmem:[%s7962_s15 + $0x60] sm:$0xff]  ;;  %13620 = vst [vmem:[#allocation58_spill] sm:$0xff] %v8348_v61  ;;  %v8360_v40 = vsel %vm958_vm1, %v1008_v45, %v1012_v13  ;;  %v1017_v32 = vrot.slane %v8340_v54, 2  ;;  %v8385_v56 = vsel %vm415_vm0, %v450_v27, 0.0 }
  0x88   : > { %2051 = vmatmul.mubr.f32.gmra.mrb[16].mxu0 %v8282_v43  ;;  %13618 = vst [vmem:[#allocation56_spill] sm:$0xff] %v8324_v3  ;;  %v8352_v43 = vsel %vm415_vm0, %v8321_v55, %v450_v27  ;;  %13621 = vst [vmem:[#allocation59_spill] sm:$0xff] %v8356_v7  ;;  %v8375_v45 = vrot.slane %v330_v18, 7  ;;  %v8379_v13 = vsel %vm958_vm1, %v1005_v44, %v1010_v63  ;;  %v456_v18 = vrot.slane %v299_v49, 7  ;;  %v333_v27 = vld [vmem:[%s7962_s15 + $0x78] sm:$0xff] }
  0x89   : > { %2055 = vmatprep.mubr.f32.mxu0 %v8294_v26  ;;  %6439 = vmatpush1.bf16.msra.mxu0 %v6438_v59  ;;  %v1324_v26 = vld [vmem:[%s13066_s2 + $0x3a0] sm:$0xff]  ;;  %v8336_v59 = vsel %vm415_vm0, %v8309_v34, %v452_v15  ;;  %13622 = vst [vmem:[#allocation60_spill] sm:$0xff] %v8360_v40  ;;  %13625 = vst [vmem:[#allocation63_spill] sm:$0xff] %v8379_v13  ;;  %v1015_v54 = vrot.slane %v8352_v43, 2 }
  0x8a   : > { %6440 = vmatprep.subr.bf16.mxu0 %v13608_v9  ;;  %13624 = vst [vmem:[#allocation62_spill] sm:$0xff] %v8375_v45  ;;  %13626 = vst [vmem:[#allocation64_spill] sm:$0xff] %v8385_v56  ;;  %v8451_v46 = vsel %vm415_vm0, %v456_v18, 0.0 }
  0x8b   : > { %13636 = vst [vmem:[#allocation74_spill] sm:$0xff] %v8451_v46 }
  0x8c   : > { %2056 = vmatmul.mubr.f32.gmra.mrb[18].mxu0 %v8313_v2  ;;  %v6444_v2 = vpack.c.bf16 %v1325_v42, %v1324_v26  ;;  %v8373_v26 = vsel %vm415_vm0, %v452_v15, 0.0  ;;  %v1014_v42 = vrot.slane %v8356_v7, 2  ;;  %v8387_v15 = vrot.slane %v298_v30, 7  ;;  %v1329_v30 = vld [vmem:[%s13066_s2 + $0x3c8] sm:$0xff]  ;;  %v300_v7 = vld [vmem:[%s7976_s28 + $0x70] sm:$0xff] }
  0x8d   : > { %2060 = vmatprep.mubr.f32.mxu0 %v8324_v3  ;;  %6442 = vmatpush1.bf16.msra.mxu0 %v6441_v33  ;;  %v1018_v3 = vrot.slane %v8336_v59, 2  ;;  %13623 = vst [vmem:[#allocation61_spill] sm:$0xff] %v8373_v26  ;;  %v458_v33 = vrot.slane %v331_v6, 7  ;;  %v6447_v6 = vpack.c.bf16 %v1327_v14, %v1326_v53  ;;  %v1022_v63 = vrot.slane %v8373_v26, 2 }
  0x8e   : > { %6443 = vmatprep.subr.bf16.mxu0 %v13608_v9  ;;  %13627 = vst [vmem:[#allocation65_spill] sm:$0xff] %v8387_v15  ;;  %v8406_v53 = vsel %vm415_vm0, 0.0, %v8375_v45  ;;  %v1020_v14 = vrot.slane %v8385_v56, 2  ;;  %v8414_v49 = vsel %vm958_vm1, %v1014_v42, %v1015_v54  ;;  %v8422_v26 = vsel %vm415_vm0, 0.0, %v8387_v15  ;;  %v301_v42 = vld [vmem:[%s7976_s28 + $0x78] sm:$0xff] }
  0x8f   : > { %v8390_v44 = vsel %vm958_vm1, %v1017_v32, %v1018_v3  ;;  %13629 = vst [vmem:[#allocation67_spill] sm:$0xff] %v8406_v53  ;;  %v332_v32 = vld [vmem:[%s7962_s15 + $0x70] sm:$0xff]  ;;  %13630 = vst [vmem:[#allocation68_spill] sm:$0xff] %v8414_v49  ;;  %v8426_v56 = vsel %vm958_vm1, %v1018_v3, %v1022_v63  ;;  %v1027_v50 = vrot.slane %v8406_v53, 2 }
  0x90   : > { %2061 = vmatmul.mubr.f32.gmra.mrb[20].mxu0 %v8348_v61  ;;  %13628 = vst [vmem:[#allocation66_spill] sm:$0xff] %v8390_v44  ;;  %v8418_v61 = vsel %vm415_vm0, %v8387_v15, %v456_v18  ;;  %13631 = vst [vmem:[#allocation69_spill] sm:$0xff] %v8422_v26  ;;  %v8441_v3 = vrot.slane %v332_v32, 7  ;;  %v8445_v63 = vsel %vm958_vm1, %v1015_v54, %v1020_v14  ;;  %v462_v32 = vrot.slane %v301_v42, 7  ;;  %v335_v18 = vld [vmem:[%s7962_s15 + $0x88] sm:$0xff] }
  0x91   : > { %2065 = vmatprep.mubr.f32.mxu0 %v8360_v40  ;;  %6445 = vmatpush1.bf16.msra.mxu0 %v6444_v2  ;;  %v1328_v40 = vld [vmem:[%s13066_s2 + $0x3c0] sm:$0xff]  ;;  %v8402_v2 = vsel %vm415_vm0, %v8375_v45, %v458_v33  ;;  %13632 = vst [vmem:[#allocation70_spill] sm:$0xff] %v8426_v56  ;;  %13635 = vst [vmem:[#allocation73_spill] sm:$0xff] %v8445_v63  ;;  %v1025_v53 = vrot.slane %v8418_v61, 2 }
  0x92   : > { %6446 = vmatprep.subr.bf16.mxu0 %v13608_v9  ;;  %13634 = vst [vmem:[#allocation72_spill] sm:$0xff] %v8441_v3  ;;  %v8517_v58 = vsel %vm415_vm0, %v462_v32, 0.0 }
  0x93   : > { %13646 = vst [vmem:[#allocation84_spill] sm:$0xff] %v8517_v58 }
  0x94   : > { %2066 = vmatmul.mubr.f32.gmra.mrb[22].mxu0 %v8379_v13  ;;  %v6450_v13 = vpack.c.bf16 %v1329_v30, %v1328_v40  ;;  %v8439_v40 = vsel %vm415_vm0, %v458_v33, 0.0  ;;  %v1024_v30 = vrot.slane %v8422_v26, 2  ;;  %v8453_v33 = vrot.slane %v300_v7, 7  ;;  %v1333_v7 = vld [vmem:[%s13066_s2 + $0x3e8] sm:$0xff]  ;;  %v302_v26 = vld [vmem:[%s7976_s28 + $0x80] sm:$0xff] }
  0x95   : > { %2070 = vmatprep.mubr.f32.mxu0 %v8390_v44  ;;  %6448 = vmatpush1.bf16.msra.mxu0 %v6447_v6  ;;  %v1028_v44 = vrot.slane %v8402_v2, 2  ;;  %13633 = vst [vmem:[#allocation71_spill] sm:$0xff] %v8439_v40  ;;  %v464_v6 = vrot.slane %v333_v27, 7  ;;  %v6453_v27 = vpack.c.bf16 %v1331_v0, %v1330_v24  ;;  %v1032_v14 = vrot.slane %v8439_v40, 2 }
  0x96   : > { %6449 = vmatprep.subr.bf16.mxu0 %v13608_v9  ;;  %13637 = vst [vmem:[#allocation75_spill] sm:$0xff] %v8453_v33  ;;  %v8472_v0 = vsel %vm415_vm0, 0.0, %v8441_v3  ;;  %v1030_v24 = vrot.slane %v8451_v46, 2  ;;  %v8480_v42 = vsel %vm958_vm1, %v1024_v30, %v1025_v53  ;;  %v8488_v40 = vsel %vm415_vm0, 0.0, %v8453_v33  ;;  %v303_v30 = vld [vmem:[%s7976_s28 + $0x88] sm:$0xff] }
  0x97   : > { %v8456_v54 = vsel %vm958_vm1, %v1027_v50, %v1028_v44  ;;  %13639 = vst [vmem:[#allocation77_spill] sm:$0xff] %v8472_v0  ;;  %v334_v50 = vld [vmem:[%s7962_s15 + $0x80] sm:$0xff]  ;;  %13640 = vst [vmem:[#allocation78_spill] sm:$0xff] %v8480_v42  ;;  %v8492_v46 = vsel %vm958_vm1, %v1028_v44, %v1032_v14  ;;  %v1037_v37 = vrot.slane %v8472_v0, 2 }
  0x98   : > { %2071 = vmatmul.mubr.f32.gmra.mrb[24].mxu0 %v8414_v49  ;;  %13638 = vst [vmem:[#allocation76_spill] sm:$0xff] %v8456_v54  ;;  %v8484_v49 = vsel %vm415_vm0, %v8453_v33, %v462_v32  ;;  %13641 = vst [vmem:[#allocation79_spill] sm:$0xff] %v8488_v40  ;;  %v8507_v44 = vrot.slane %v334_v50, 7  ;;  %v8511_v14 = vsel %vm958_vm1, %v1025_v53, %v1030_v24  ;;  %v468_v50 = vrot.slane %v303_v30, 7 }
  0x99   : > { %2075 = vmatprep.mubr.f32.mxu0 %v8426_v56  ;;  %6451 = vmatpush1.bf16.msra.mxu0 %v6450_v13  ;;  %v1332_v56 = vld [vmem:[%s13066_s2 + $0x3e0] sm:$0xff]  ;;  %v8468_v13 = vsel %vm415_vm0, %v8441_v3, %v464_v6  ;;  %13642 = vst [vmem:[#allocation80_spill] sm:$0xff] %v8492_v46  ;;  %13645 = vst [vmem:[#allocation83_spill] sm:$0xff] %v8511_v14  ;;  %v1035_v0 = vrot.slane %v8484_v49, 2 }
  0x9a   : > { %6452 = vmatprep.subr.bf16.mxu0 %v13608_v9  ;;  %13644 = vst [vmem:[#allocation82_spill] sm:$0xff] %v8507_v44 }
  0x9c   : > { %2076 = vmatmul.mubr.f32.gmra.mrb[26].mxu0 %v8445_v63  ;;  %v6456_v63 = vpack.c.bf16 %v1333_v7, %v1332_v56  ;;  %v8505_v56 = vsel %vm415_vm0, %v464_v6, 0.0  ;;  %v1034_v7 = vrot.slane %v8488_v40, 2  ;;  %v8519_v6 = vrot.slane %v302_v26, 7 }
  0x9d   : > { %2080 = vmatprep.mubr.f32.mxu0 %v8456_v54  ;;  %6454 = vmatpush1.bf16.msra.mxu0 %v6453_v27  ;;  %v1038_v54 = vrot.slane %v8468_v13, 2  ;;  %13643 = vst [vmem:[#allocation81_spill] sm:$0xff] %v8505_v56  ;;  %v470_v27 = vrot.slane %v335_v18, 7  ;;  %v6459_v18 = vpack.c.bf16 %v1335_v12, %v1334_v23  ;;  %v1042_v53 = vrot.slane %v8505_v56, 2  ;;  %v336_v23 = vld [vmem:[%s7962_s15 + $0x90] sm:$0xff]  ;;  %v305_v56 = vld [vmem:[%s7976_s28 + $0x98] sm:$0xff] }
  0x9e   : > { %6455 = vmatprep.subr.bf16.mxu0 %v13608_v9  ;;  %13647 = vst [vmem:[#allocation85_spill] sm:$0xff] %v8519_v6  ;;  %v8532_v26 = vsel %vm415_vm0, 0.0, %v8507_v44  ;;  %v1040_v12 = vrot.slane %v8517_v58, 2  ;;  %v8544_v32 = vsel %vm415_vm0, %v8519_v6, %v468_v50  ;;  %v8548_v30 = vsel %vm415_vm0, 0.0, %v8519_v6 }
  0x9f   : > { %v8528_v24 = vsel %vm415_vm0, %v8507_v44, %v470_v27  ;;  %13649 = vst [vmem:[#allocation87_spill] sm:$0xff] %v8532_v26  ;;  %13651 = vst [vmem:[#allocation89_spill] sm:$0xff] %v8548_v30  ;;  %v8561_v40 = vrot.slane %v336_v23, 7 }
  0xa0   : > { %2081 = vmatmul.mubr.f32.gmra.mrb[28].mxu0 %v8480_v42  ;;  %v8522_v42 = vsel %vm958_vm1, %v1037_v37, %v1038_v54  ;;  %v337_v37 = vld [vmem:[%s7962_s15 + $0x98] sm:$0xff]  ;;  %v1048_v58 = vrot.slane %v8528_v24, 2 }
  0xa1   : > { %2085 = vmatprep.mubr.f32.mxu0 %v8492_v46  ;;  %6457 = vmatpush1.bf16.msra.mxu0 %v6456_v63  ;;  %13648 = vst [vmem:[#allocation86_spill] sm:$0xff] %v8522_v42  ;;  %v8540_v63 = vsel %vm958_vm1, %v1034_v7, %v1035_v0  ;;  %v1047_v46 = vrot.slane %v8532_v26, 2  ;;  %v304_v7 = vld [vmem:[%s7976_s28 + $0x90] sm:$0xff]  ;;  %13654 = vst [vmem:[#allocation92_spill] sm:$0xff] %v8561_v40  ;;  %v476_v51 = vrot.slane %v337_v37, 7  ;;  %v8572_v26 = vsel %vm415_vm0, %v468_v50, 0.0 }
  0xa2   : > { %6458 = vmatprep.subr.bf16.mxu0 %v13608_v9  ;;  %13650 = vst [vmem:[#allocation88_spill] sm:$0xff] %v8540_v63  ;;  %13656 = vst [vmem:[#allocation94_spill] sm:$0xff] %v8572_v26  ;;  %v8574_v23 = vrot.slane %v304_v7, 7  ;;  %v474_v37 = vrot.slane %v305_v56, 7  ;;  %v1050_v50 = vrot.slane %v8572_v26, 2  ;;  %v339_v7 = vld [vmem:[%s7962_s15 + $0xa8] sm:$0xff] }
  0xa3   : > { %v8577_v41 = vsel %vm958_vm1, %v1047_v46, %v1048_v58 }
  0xa4   : > { %2086 = vmatmul.mubr.f32.gmra.mrb[30].mxu0 %v8511_v14  ;;  %v8551_v14 = vsel %vm958_vm1, %v1038_v54, %v1042_v53  ;;  %v8565_v54 = vsel %vm958_vm1, %v1035_v0, %v1040_v12  ;;  %v1045_v53 = vrot.slane %v8544_v32, 2  ;;  %13657 = vst [vmem:[#allocation95_spill] sm:$0xff] %v8574_v23  ;;  %13658 = vst [vmem:[#allocation96_spill] sm:$0xff] %v8577_v41  ;;  %v8585_v12 = vsel %vm415_vm0, 0.0, %v8561_v40 }
  0xa5   : > { %2090 = vmatprep.mubr.f32.mxu0 %v8522_v42  ;;  %6460 = vmatpush1.bf16.msra.mxu0 %v6459_v18  ;;  %13652 = vst [vmem:[#allocation90_spill] sm:$0xff] %v8551_v14  ;;  %v8556_v42 = vsel %vm415_vm0, %v470_v27, 0.0  ;;  %13655 = vst [vmem:[#allocation93_spill] sm:$0xff] %v8565_v54  ;;  %v1044_v18 = vrot.slane %v8548_v30, 2  ;;  %v8581_v0 = vsel %vm415_vm0, %v8561_v40, %v476_v51  ;;  %v482_v30 = vrot.slane %v339_v7, 7 }
  0xa6   : > { %13653 = vst [vmem:[#allocation91_spill] sm:$0xff] %v8556_v42  ;;  %6461 = vmatprep.subr.bf16.mxu0 %v13608_v9  ;;  %v1052_v27 = vrot.slane %v8556_v42, 2  ;;  %13659 = vst [vmem:[#allocation97_spill] sm:$0xff] %v8585_v12  ;;  %v8604_v42 = vsel %vm415_vm0, 0.0, %v8574_v23  ;;  %v1058_v26 = vrot.slane %v8581_v0, 2  ;;  %v8617_v36 = vsel %vm958_vm1, %v1045_v53, %v1050_v50 }
  0xa7   : > { %v8593_v46 = vsel %vm958_vm1, %v1044_v18, %v1045_v53  ;;  %13662 = vst [vmem:[#allocation100_spill] sm:$0xff] %v8604_v42  ;;  %13665 = vst [vmem:[#allocation103_spill] sm:$0xff] %v8617_v36  ;;  %v1054_v28 = vrot.slane %v8604_v42, 2 }
  0xa8   : > { %2091 = vmatmul.mubr.f32.gmra.mrb[32].mxu0 %v8540_v63  ;;  %13660 = vst [vmem:[#allocation98_spill] sm:$0xff] %v8593_v46  ;;  %v8596_v56 = vsel %vm958_vm1, %v1048_v58, %v1052_v27  ;;  %v8600_v63 = vsel %vm415_vm0, %v8574_v23, %v474_v37  ;;  %v306_v58 = vld [vmem:[%s7976_s28 + $0xa0] sm:$0xff]  ;;  %v307_v27 = vld [vmem:[%s7976_s28 + $0xa8] sm:$0xff] }
  0xa9   : > { %2095 = vmatprep.mubr.f32.mxu0 %v8551_v14  ;;  %v338_v14 = vld [vmem:[%s7962_s15 + $0xa0] sm:$0xff]  ;;  %13661 = vst [vmem:[#allocation99_spill] sm:$0xff] %v8596_v56  ;;  %v8626_v21 = vrot.slane %v306_v58, 7  ;;  %v480_v19 = vrot.slane %v307_v27, 7 }
  0xaa   : > { %v8611_v18 = vrot.slane %v338_v14, 7  ;;  %v8624_v14 = vsel %vm415_vm0, %v474_v37, 0.0 }
  0xab   : > { %13666 = vst [vmem:[#allocation104_spill] sm:$0xff] %v8624_v14  ;;  %13667 = vst [vmem:[#allocation105_spill] sm:$0xff] %v8626_v21  ;;  %v8657_v42 = vsel %vm415_vm0, 0.0, %v8626_v21 }
  0xac   : > { %2096 = vmatmul.mubr.f32.gmra.mrb[34].mxu0 %v8565_v54  ;;  %v1057_v54 = vrot.slane %v8585_v12, 2  ;;  %13664 = vst [vmem:[#allocation102_spill] sm:$0xff] %v8611_v18  ;;  %v1055_v12 = vrot.slane %v8600_v63, 2  ;;  %v8633_v53 = vsel %vm415_vm0, 0.0, %v8611_v18  ;;  %v8637_v50 = vsel %vm415_vm0, %v8611_v18, %v482_v30  ;;  %13674 = vst [vmem:[#allocation112_spill] sm:$0xff] %v8657_v42 }
  0xad   : > { %2100 = vmatprep.mubr.f32.mxu0 %v8577_v41  ;;  %v8609_v41 = vsel %vm415_vm0, %v476_v51, 0.0  ;;  %13669 = vst [vmem:[#allocation107_spill] sm:$0xff] %v8633_v53  ;;  %13670 = vst [vmem:[#allocation108_spill] sm:$0xff] %v8637_v50  ;;  %v1067_v27 = vrot.slane %v8633_v53, 2  ;;  %v1064_v53 = vrot.slane %v8657_v42, 2 }
  0xae   : > { %13663 = vst [vmem:[#allocation101_spill] sm:$0xff] %v8609_v41  ;;  %v1062_v51 = vrot.slane %v8609_v41, 2  ;;  %v8629_v7 = vsel %vm958_vm1, %v1057_v54, %v1058_v26  ;;  %v8643_v37 = vsel %vm958_vm1, %v1054_v28, %v1055_v12  ;;  %v1060_v54 = vrot.slane %v8624_v14, 2 }
  0xaf   : > { %13668 = vst [vmem:[#allocation106_spill] sm:$0xff] %v8629_v7  ;;  %13671 = vst [vmem:[#allocation109_spill] sm:$0xff] %v8643_v37  ;;  %v8653_v41 = vsel %vm415_vm0, %v8626_v21, %v480_v19  ;;  %v1068_v28 = vrot.slane %v8637_v50, 2 }
  0xb0   : > { %2101 = vmatmul.mubr.f32.gmra.mrb[36].mxu0 %v8593_v46  ;;  %v341_v46 = vld [vmem:[%s7962_s15 + $0xb8] sm:$0xff]  ;;  %v8648_v58 = vsel %vm958_vm1, %v1058_v26, %v1062_v51  ;;  %13673 = vst [vmem:[#allocation111_spill] sm:$0xff] %v8653_v41  ;;  %v308_v51 = vld [vmem:[%s7976_s28 + $0xb0] sm:$0xff]  ;;  %v1065_v5 = vrot.slane %v8653_v41, 2  ;;  %v8672_v50 = vsel %vm958_vm1, %v1055_v12, %v1060_v54  ;;  %v342_v54 = vld [vmem:[%s7962_s15 + $0xc0] sm:$0xff] }
  0xb1   : > { %2105 = vmatprep.mubr.f32.mxu0 %v8596_v56  ;;  %v340_v56 = vld [vmem:[%s7962_s15 + $0xb0] sm:$0xff]  ;;  %13672 = vst [vmem:[#allocation110_spill] sm:$0xff] %v8648_v58  ;;  %v488_v26 = vrot.slane %v341_v46, 7  ;;  %13677 = vst [vmem:[#allocation115_spill] sm:$0xff] %v8672_v50  ;;  %v8678_v46 = vrot.slane %v308_v51, 7  ;;  %v8681_v21 = vsel %vm958_vm1, %v1067_v27, %v1068_v28 }
  0xb2   : > { %v8663_v14 = vrot.slane %v340_v56, 7  ;;  %v8676_v56 = vsel %vm415_vm0, %v480_v19, 0.0  ;;  %13680 = vst [vmem:[#allocation118_spill] sm:$0xff] %v8681_v21  ;;  %v8695_v19 = vsel %vm958_vm1, %v1064_v53, %v1065_v5 }
  0xb3   : > { %13678 = vst [vmem:[#allocation116_spill] sm:$0xff] %v8676_v56  ;;  %13679 = vst [vmem:[#allocation117_spill] sm:$0xff] %v8678_v46  ;;  %v1070_v27 = vrot.slane %v8676_v56, 2  ;;  %v8713_v53 = vsel %vm415_vm0, %v488_v26, 0.0  ;;  %v8715_v56 = vrot.slane %v342_v54, 7 }
  0xb4   : > { %2106 = vmatmul.mubr.f32.gmra.mrb[38].mxu0 %v8617_v36  ;;  %v8661_v36 = vsel %vm415_vm0, %v482_v30, 0.0  ;;  %13676 = vst [vmem:[#allocation114_spill] sm:$0xff] %v8663_v14  ;;  %13683 = vst [vmem:[#allocation121_spill] sm:$0xff] %v8695_v19  ;;  %v1082_v54 = vrot.slane %v8713_v53, 2 }
  0xb5   : > { %2110 = vmatprep.mubr.f32.mxu0 %v8629_v7  ;;  %13675 = vst [vmem:[#allocation113_spill] sm:$0xff] %v8661_v36  ;;  %v309_v7 = vld [vmem:[%s7976_s28 + $0xb8] sm:$0xff]  ;;  %v1072_v30 = vrot.slane %v8661_v36, 2  ;;  %v343_v36 = vld [vmem:[%s7962_s15 + $0xc8] sm:$0xff]  ;;  %13687 = vst [vmem:[#allocation125_spill] sm:$0xff] %v8713_v53 }
  0xb6   : > { %v486_v12 = vrot.slane %v309_v7, 7  ;;  %v8706_v7 = vsel %vm415_vm0, 0.0, %v8678_v46  ;;  %13688 = vst [vmem:[#allocation126_spill] sm:$0xff] %v8715_v56 }
  0xb7   : > { %v8700_v51 = vsel %vm958_vm1, %v1068_v28, %v1072_v30  ;;  %13685 = vst [vmem:[#allocation123_spill] sm:$0xff] %v8706_v7  ;;  %v494_v28 = vrot.slane %v343_v36, 7  ;;  %v310_v30 = vld [vmem:[%s7976_s28 + $0xc0] sm:$0xff] }
  0xb8   : > { %2111 = vmatmul.mubr.f32.gmra.mrb[40].mxu0 %v8643_v37  ;;  %v8685_v37 = vsel %vm415_vm0, %v8663_v14, %v488_v26  ;;  %13684 = vst [vmem:[#allocation122_spill] sm:$0xff] %v8700_v51  ;;  %v8731_v36 = vsel %vm415_vm0, %v486_v12, 0.0 }
  0xb9   : > { %2115 = vmatprep.mubr.f32.mxu0 %v8648_v58  ;;  %13681 = vst [vmem:[#allocation119_spill] sm:$0xff] %v8685_v37  ;;  %v8689_v58 = vsel %vm415_vm0, 0.0, %v8663_v14  ;;  %v1078_v14 = vrot.slane %v8685_v37, 2  ;;  %v1074_v37 = vrot.slane %v8706_v7, 2  ;;  %13691 = vst [vmem:[#allocation129_spill] sm:$0xff] %v8731_v36  ;;  %v1080_v53 = vrot.slane %v8731_v36, 2 }
  0xba   : > { %13682 = vst [vmem:[#allocation120_spill] sm:$0xff] %v8689_v58  ;;  %v1077_v42 = vrot.slane %v8689_v58, 2  ;;  %v8721_v58 = vsel %vm958_vm1, %v1065_v5, %v1070_v27  ;;  %v8739_v5 = vsel %vm415_vm0, 0.0, %v8715_v56  ;;  %v8741_v27 = vrot.slane %v310_v30, 7 }
  0xbb   : > { %13689 = vst [vmem:[#allocation127_spill] sm:$0xff] %v8721_v58  ;;  %13693 = vst [vmem:[#allocation131_spill] sm:$0xff] %v8739_v5  ;;  %v1087_v30 = vrot.slane %v8739_v5, 2 }
  0xbc   : > { %2116 = vmatmul.mubr.f32.gmra.mrb[42].mxu0 %v8672_v50  ;;  %v8710_v50 = vsel %vm415_vm0, %v8678_v46, %v486_v12  ;;  %v8726_v46 = vsel %vm958_vm1, %v1077_v42, %v1078_v14  ;;  %13694 = vst [vmem:[#allocation132_spill] sm:$0xff] %v8741_v27  ;;  %v345_v12 = vld [vmem:[%s7962_s15 + $0xd8] sm:$0xff] }
  0xbd   : > { %2120 = vmatprep.mubr.f32.mxu0 %v8681_v21  ;;  %13686 = vst [vmem:[#allocation124_spill] sm:$0xff] %v8710_v50  ;;  %v311_v21 = vld [vmem:[%s7976_s28 + $0xc8] sm:$0xff]  ;;  %13690 = vst [vmem:[#allocation128_spill] sm:$0xff] %v8726_v46  ;;  %v1075_v26 = vrot.slane %v8710_v50, 2  ;;  %v8752_v50 = vsel %vm958_vm1, %v1078_v14, %v1082_v54  ;;  %v500_v36 = vrot.slane %v345_v12, 7  ;;  %v312_v14 = vld [vmem:[%s7976_s28 + $0xd0] sm:$0xff] }
  0xbe   : > { %v492_v42 = vrot.slane %v311_v21, 7  ;;  %13696 = vst [vmem:[#allocation134_spill] sm:$0xff] %v8752_v50  ;;  %v313_v54 = vld [vmem:[%s7976_s28 + $0xd8] sm:$0xff] }
  0xbf   : > { %v8749_v7 = vsel %vm958_vm1, %v1074_v37, %v1075_v26  ;;  %v8773_v5 = vsel %vm958_vm1, %v1075_v26, %v1080_v53  ;;  %v8789_v53 = vrot.slane %v312_v14, 7  ;;  %v498_v26 = vrot.slane %v313_v54, 7 }
  0xc0   : > { %2121 = vmatmul.mubr.f32.gmra.mrb[44].mxu0 %v8695_v19  ;;  %v8735_v19 = vsel %vm415_vm0, %v8715_v56, %v494_v28  ;;  %13695 = vst [vmem:[#allocation133_spill] sm:$0xff] %v8749_v7  ;;  %v8758_v21 = vsel %vm415_vm0, %v8741_v27, %v492_v42  ;;  %13701 = vst [vmem:[#allocation139_spill] sm:$0xff] %v8773_v5 }
  0xc1   : > { %2125 = vmatprep.mubr.f32.mxu0 %v8700_v51  ;;  %13692 = vst [vmem:[#allocation130_spill] sm:$0xff] %v8735_v19  ;;  %v344_v51 = vld [vmem:[%s7962_s15 + $0xd0] sm:$0xff]  ;;  %v1088_v56 = vrot.slane %v8735_v19, 2  ;;  %13697 = vst [vmem:[#allocation135_spill] sm:$0xff] %v8758_v21 }
  0xc2   : > { %v8767_v37 = vrot.slane %v344_v51, 7  ;;  %v8780_v51 = vsel %vm415_vm0, %v492_v42, 0.0  ;;  %13705 = vst [vmem:[#allocation143_spill] sm:$0xff] %v8789_v53  ;;  %v346_v42 = vld [vmem:[%s7962_s15 + $0xe0] sm:$0xff] }
  0xc3   : > { %13702 = vst [vmem:[#allocation140_spill] sm:$0xff] %v8780_v51  ;;  %v8783_v12 = vsel %vm958_vm1, %v1087_v30, %v1088_v56  ;;  %v1090_v14 = vrot.slane %v8780_v51, 2  ;;  %v315_v51 = vld [vmem:[%s7976_s28 + $0xe8] sm:$0xff] }
  0xc4   : > { %2126 = vmatmul.mubr.f32.gmra.mrb[46].mxu0 %v8721_v58  ;;  %v8762_v58 = vsel %vm415_vm0, 0.0, %v8741_v27  ;;  %13700 = vst [vmem:[#allocation138_spill] sm:$0xff] %v8767_v37  ;;  %v1085_v27 = vrot.slane %v8758_v21, 2  ;;  %13703 = vst [vmem:[#allocation141_spill] sm:$0xff] %v8783_v12  ;;  %v8810_v21 = vsel %vm415_vm0, %v8789_v53, %v498_v26 }
  0xc5   : > { %2130 = vmatprep.mubr.f32.mxu0 %v8726_v46  ;;  %13698 = vst [vmem:[#allocation136_spill] sm:$0xff] %v8762_v58  ;;  %v8765_v46 = vsel %vm415_vm0, %v494_v28, 0.0  ;;  %v1084_v19 = vrot.slane %v8762_v58, 2 }
  0xc6   : > { %13699 = vst [vmem:[#allocation137_spill] sm:$0xff] %v8765_v46  ;;  %v1092_v28 = vrot.slane %v8765_v46, 2  ;;  %v347_v46 = vld [vmem:[%s7962_s15 + $0xe8] sm:$0xff] }
  0xc7   : > { %v8800_v30 = vsel %vm958_vm1, %v1084_v19, %v1085_v27  ;;  %v8817_v19 = vsel %vm415_vm0, %v500_v36, 0.0 }
  0xc8   : > { %2131 = vmatmul.mubr.f32.gmra.mrb[48].mxu0 %v8749_v7  ;;  %v8787_v7 = vsel %vm415_vm0, 0.0, %v8767_v37  ;;  %13707 = vst [vmem:[#allocation145_spill] sm:$0xff] %v8800_v30  ;;  %v8803_v58 = vsel %vm958_vm1, %v1088_v56, %v1092_v28  ;;  %13710 = vst [vmem:[#allocation148_spill] sm:$0xff] %v8817_v19  ;;  %v506_v56 = vrot.slane %v347_v46, 7  ;;  %v314_v28 = vld [vmem:[%s7976_s28 + $0xe0] sm:$0xff]  ;;  %v1102_v41 = vrot.slane %v8817_v19, 2 }
  0xc9   : > { %2135 = vmatprep.mubr.f32.mxu0 %v8752_v50  ;;  %13704 = vst [vmem:[#allocation142_spill] sm:$0xff] %v8787_v7  ;;  %v8793_v50 = vsel %vm415_vm0, %v8767_v37, %v500_v36  ;;  %13708 = vst [vmem:[#allocation146_spill] sm:$0xff] %v8803_v58  ;;  %v1097_v54 = vrot.slane %v8787_v7, 2  ;;  %v8826_v7 = vsel %vm958_vm1, %v1085_v27, %v1090_v14  ;;  %v8835_v46 = vsel %vm415_vm0, %v498_v26, 0.0 }
  0xca   : > { %13706 = vst [vmem:[#allocation144_spill] sm:$0xff] %v8793_v50  ;;  %v1098_v37 = vrot.slane %v8793_v50, 2  ;;  %13712 = vst [vmem:[#allocation150_spill] sm:$0xff] %v8826_v7 }
  0xcb   : > { %13714 = vst [vmem:[#allocation152_spill] sm:$0xff] %v8835_v46 }
  0xcc   : > { %2136 = vmatmul.mubr.f32.gmra.mrb[50].mxu0 %v8773_v5  ;;  %v8814_v5 = vsel %vm415_vm0, 0.0, %v8789_v53  ;;  %v1095_v53 = vrot.slane %v8810_v21, 2  ;;  %v8832_v36 = vsel %vm958_vm1, %v1097_v54, %v1098_v37  ;;  %v8853_v26 = vsel %vm958_vm1, %v1098_v37, %v1102_v41 }
  0xcd   : > { %2140 = vmatprep.mubr.f32.mxu0 %v8783_v12  ;;  %13709 = vst [vmem:[#allocation147_spill] sm:$0xff] %v8814_v5  ;;  %v8819_v12 = vrot.slane %v346_v42, 7  ;;  %v1094_v50 = vrot.slane %v8814_v5, 2  ;;  %13713 = vst [vmem:[#allocation151_spill] sm:$0xff] %v8832_v36  ;;  %v8837_v42 = vrot.slane %v314_v28, 7 }
  0xce   : > { %13718 = vst [vmem:[#allocation156_spill] sm:$0xff] %v8853_v26 }
  0xcf   : > { %13711 = vst [vmem:[#allocation149_spill] sm:$0xff] %v8819_v12  ;;  %13715 = vst [vmem:[#allocation153_spill] sm:$0xff] %v8837_v42  ;;  %v8845_v27 = vsel %vm415_vm0, 0.0, %v8819_v12  ;;  %v8850_v14 = vsel %vm958_vm1, %v1094_v50, %v1095_v53  ;;  %v8867_v50 = vsel %vm415_vm0, %v506_v56, 0.0 }
  0xd0   : > { %2141 = vmatmul.mubr.f32.gmra.mrb[52].mxu0 %v8800_v30  ;;  %v504_v30 = vrot.slane %v315_v51, 7  ;;  %13716 = vst [vmem:[#allocation154_spill] sm:$0xff] %v8845_v27  ;;  %13717 = vst [vmem:[#allocation155_spill] sm:$0xff] %v8850_v14  ;;  %v1100_v51 = vrot.slane %v8835_v46, 2  ;;  %v1107_v54 = vrot.slane %v8845_v27, 2  ;;  %v1112_v46 = vrot.slane %v8867_v50, 2 }
  0xd1   : > { %2145 = vmatprep.mubr.f32.mxu0 %v8803_v58  ;;  %v8841_v58 = vsel %vm415_vm0, %v8819_v12, %v506_v56 }
  0xd2   : > { %v1108_v28 = vrot.slane %v8841_v58, 2  ;;  %v8860_v19 = vsel %vm415_vm0, %v8837_v42, %v504_v30  ;;  %v8872_v41 = vsel %vm958_vm1, %v1095_v53, %v1100_v51  ;;  %v8881_v5 = vsel %vm415_vm0, %v504_v30, 0.0  ;;  %v1336_v30 = vld [vmem:[%s13066_s2 + $0x400] sm:$0xff] }
  0xd3   : > { %13719 = vst [vmem:[#allocation157_spill] sm:$0xff] %v8872_v41  ;;  %v1110_v53 = vrot.slane %v8881_v5, 2 }
  0xd4   : > { %2146 = vmatmul.mubr.f32.gmra.mrb[54].mxu0 %v8826_v7  ;;  %v8864_v7 = vsel %vm415_vm0, 0.0, %v8837_v42  ;;  %v8877_v27 = vsel %vm958_vm1, %v1107_v54, %v1108_v28  ;;  %v8890_v51 = vsel %vm958_vm1, %v1108_v28, %v1112_v46  ;;  %v1339_v28 = vld [vmem:[%s13066_s2 + $0x418] sm:$0xff] }
  0xd5   : > { %2150 = vmatprep.mubr.f32.mxu0 %v8832_v36  ;;  %v1104_v37 = vrot.slane %v8864_v7, 2  ;;  %v1105_v36 = vrot.slane %v8860_v19, 2  ;;  %13720 = vst [vmem:[#allocation158_spill] sm:$0xff] %v8877_v27  ;;  %13722 = vst [vmem:[#allocation160_spill] sm:$0xff] %v8890_v51 }
  0xd7   : > { %v8886_v56 = vsel %vm958_vm1, %v1104_v37, %v1105_v36  ;;  %v8895_v54 = vsel %vm958_vm1, %v1105_v36, %v1110_v53  ;;  %v1337_v37 = vld [vmem:[%s13066_s2 + $0x408] sm:$0xff]  ;;  %v1338_v36 = vld [vmem:[%s13066_s2 + $0x410] sm:$0xff] }
  0xd8   : > { %2151 = vmatmul.mubr.f32.gmra.mrb[56].mxu0 %v8850_v14  ;;  %13721 = vst [vmem:[#allocation159_spill] sm:$0xff] %v8886_v56  ;;  %13723 = vst [vmem:[#allocation161_spill] sm:$0xff] %v8895_v54  ;;  %v6462_v46 = vpack.c.bf16 %v1337_v37, %v1336_v30  ;;  %v6465_v53 = vpack.c.bf16 %v1339_v28, %v1338_v36  ;;  %v1340_v30 = vld [vmem:[%s13066_s2 + $0x420] sm:$0xff]  ;;  %v1341_v37 = vld [vmem:[%s13066_s2 + $0x428] sm:$0xff] }
  0xd9   : > { %2155 = vmatprep.mubr.f32.mxu0 %v8853_v26  ;;  %v1342_v36 = vld [vmem:[%s13066_s2 + $0x430] sm:$0xff]  ;;  %v1343_v28 = vld [vmem:[%s13066_s2 + $0x438] sm:$0xff] }
  0xda   : > { %v13735_v26 = vld [vmem:[#allocation138_spill] sm:$0xff]  ;;  %v13736_v14 = vld [vmem:[#allocation143_spill] sm:$0xff] }
  0xdc   : > { %2156 = vmatmul.mubr.f32.gmra.mrb[58].mxu0 %v8872_v41  ;;  %v13734_v41 = vld [vmem:[#allocation135_spill] sm:$0xff] }
  0xdd   : > { %2160 = vmatprep.mubr.f32.mxu0 %v8877_v27  ;;  %v13733_v27 = vld [vmem:[#allocation130_spill] sm:$0xff] }
  0xe0   : > { %2161 = vmatmul.mubr.f32.gmra.mrb[60].mxu0 %v8886_v56  ;;  %v13732_v56 = vld [vmem:[#allocation132_spill] sm:$0xff] }
  0xe1   : > { %2165 = vmatprep.mubr.f32.mxu0 %v8890_v51  ;;  %v13731_v51 = vld [vmem:[#allocation126_spill] sm:$0xff] }
  0xe4   : > { %2166 = vmatmul.mubr.f32.gmra.mrb[62].mxu0 %v8895_v54  ;;  %v6471_v54 = vpack.c.bf16 %v1343_v28, %v1342_v36  ;;  %v1347_v36 = vld [vmem:[%s13066_s2 + $0x458] sm:$0xff] }
  0xe5   : > { %5909 = vmatprep.mubr.msk.f32.mxu0 %vm8014_vm2, %v7989_v57 }
  0xe8   : > { %5911 = vmatmul.mubr.msk.f32.vlgmr.msra.gmra.mrb[0].mxu0 %vm8014_vm2, %v8001_v1 }
  0xe9   : > { %6463 = vmatpush1.bf16.msra.mxu0 %v6462_v46  ;;  %2240 = vmatprep.mubr.f32.mxu0 %v8005_v4  ;;  %v6468_v46 = vpack.c.bf16 %v1341_v37, %v1340_v30  ;;  %v1345_v30 = vld [vmem:[%s13066_s2 + $0x448] sm:$0xff] }
  0xea   : > { %6464 = vmatprep.subr.bf16.mxu0 %v13608_v9 }
  0xec   : > { %2241 = vmatmul.mubr.f32.gmra.mrb[2].mxu0 %v8037_v10 }
  0xed   : > { %5913 = vmatprep.mubr.msk.f32.mxu0 %vm8014_vm2, %v8047_v22  ;;  %6466 = vmatpush1.bf16.msra.mxu0 %v6465_v53  ;;  %v1344_v53 = vld [vmem:[%s13066_s2 + $0x440] sm:$0xff] }
  0xee   : > { %6467 = vmatprep.subr.bf16.mxu0 %v13608_v9  ;;  %v6474_v37 = vpack.c.bf16 %v1345_v30, %v1344_v53  ;;  %v1349_v53 = vld [vmem:[%s13066_s2 + $0x468] sm:$0xff] }
  0xf0   : > { %5915 = vmatmul.mubr.msk.f32.gmra.mrb[4].mxu0 %vm8014_vm2, %v8057_v29 }
  0xf1   : > { %2250 = vmatprep.mubr.f32.mxu0 %v8072_v35  ;;  %6469 = vmatpush1.bf16.msra.mxu0 %v6468_v46  ;;  %v1346_v46 = vld [vmem:[%s13066_s2 + $0x450] sm:$0xff] }
  0xf2   : > { %6470 = vmatprep.subr.bf16.mxu0 %v13608_v9  ;;  %v6477_v28 = vpack.c.bf16 %v1347_v36, %v1346_v46  ;;  %v1351_v46 = vld [vmem:[%s13066_s2 + $0x478] sm:$0xff] }
  0xf4   : > { %2251 = vmatmul.mubr.f32.gmra.mrb[6].mxu0 %v8098_v47 }
  0xf5   : > { %5917 = vmatprep.mubr.msk.f32.mxu0 %vm8014_vm2, %v8111_v52  ;;  %6472 = vmatpush1.bf16.msra.mxu0 %v6471_v54  ;;  %v1348_v54 = vld [vmem:[%s13066_s2 + $0x460] sm:$0xff] }
  0xf6   : > { %6473 = vmatprep.subr.bf16.mxu0 %v13608_v9  ;;  %v6480_v30 = vpack.c.bf16 %v1349_v53, %v1348_v54  ;;  %v1353_v54 = vld [vmem:[%s13066_s2 + $0x488] sm:$0xff] }
  0xf8   : > { %5919 = vmatmul.mubr.msk.f32.gmra.mrb[8].mxu0 %vm8014_vm2, %v8123_v60 }
  0xf9   : > { %2260 = vmatprep.mubr.f32.mxu0 %v8138_v8  ;;  %6475 = vmatpush1.bf16.msra.mxu0 %v6474_v37  ;;  %v1350_v37 = vld [vmem:[%s13066_s2 + $0x470] sm:$0xff] }
  0xfa   : > { %6476 = vmatprep.subr.bf16.mxu0 %v13608_v9  ;;  %v6483_v36 = vpack.c.bf16 %v1351_v46, %v1350_v37  ;;  %v1355_v37 = vld [vmem:[%s13066_s2 + $0x498] sm:$0xff] }
  0xfc   : > { %2261 = vmatmul.mubr.f32.gmra.mrb[10].mxu0 %v8154_v20 }
  0xfd   : > { %5921 = vmatprep.mubr.msk.f32.mxu0 %vm8014_vm2, %v8177_v38  ;;  %6478 = vmatpush1.bf16.msra.mxu0 %v6477_v28  ;;  %v1352_v28 = vld [vmem:[%s13066_s2 + $0x480] sm:$0xff] }
  0xfe   : > { %6479 = vmatprep.subr.bf16.mxu0 %v13608_v9  ;;  %v6486_v53 = vpack.c.bf16 %v1353_v54, %v1352_v28  ;;  %v1357_v28 = vld [vmem:[%s13066_s2 + $0x4a8] sm:$0xff] }
 0x100   : > { %5923 = vmatmul.mubr.msk.f32.gmra.mrb[12].mxu0 %vm8014_vm2, %v8189_v48  ;;  %v760_v48 = vrot.slane %v8072_v35, 1 }
 0x101   : > { %2270 = vmatprep.mubr.f32.mxu0 %v8204_v62  ;;  %6481 = vmatpush1.bf16.msra.mxu0 %v6480_v30  ;;  %v1354_v30 = vld [vmem:[%s13066_s2 + $0x490] sm:$0xff] }
 0x102   : > { %6482 = vmatprep.subr.bf16.mxu0 %v13608_v9  ;;  %v6489_v46 = vpack.c.bf16 %v1355_v37, %v1354_v30  ;;  %v1359_v30 = vld [vmem:[%s13066_s2 + $0x4b8] sm:$0xff] }
 0x104   : > { %2271 = vmatmul.mubr.f32.gmra.mrb[14].mxu0 %v8220_v17 }
 0x105   : > { %5925 = vmatprep.mubr.msk.f32.mxu0 %vm8014_vm2, %v8243_v31  ;;  %6484 = vmatpush1.bf16.msra.mxu0 %v6483_v36  ;;  %v1356_v36 = vld [vmem:[%s13066_s2 + $0x4a0] sm:$0xff] }
 0x106   : > { %6485 = vmatprep.subr.bf16.mxu0 %v13608_v9  ;;  %v6492_v54 = vpack.c.bf16 %v1357_v28, %v1356_v36  ;;  %v1361_v36 = vld [vmem:[%s13066_s2 + $0x4c8] sm:$0xff] }
 0x108   : > { %5927 = vmatmul.mubr.msk.f32.gmra.mrb[16].mxu0 %vm8014_vm2, %v8255_v39  ;;  %v13749_v39 = vld [vmem:[#allocation19_spill] sm:$0xff] }
 0x109   : > { %2280 = vmatprep.mubr.f32.mxu0 %v8270_v25  ;;  %6487 = vmatpush1.bf16.msra.mxu0 %v6486_v53  ;;  %v1358_v53 = vld [vmem:[%s13066_s2 + $0x4b0] sm:$0xff]  ;;  %v759_v31 = vrot.slane %v13749_v39, 1 }
 0x10a   : > { %6488 = vmatprep.subr.bf16.mxu0 %v13608_v9  ;;  %v6495_v37 = vpack.c.bf16 %v1359_v30, %v1358_v53  ;;  %v1363_v53 = vld [vmem:[%s13066_s2 + $0x4d8] sm:$0xff] }
 0x10c   : > { %2281 = vmatmul.mubr.f32.gmra.mrb[18].mxu0 %v8286_v16 }
 0x10d   : > { %5929 = vmatprep.mubr.msk.f32.mxu0 %vm8014_vm2, %v8309_v34  ;;  %6490 = vmatpush1.bf16.msra.mxu0 %v6489_v46  ;;  %v1360_v46 = vld [vmem:[%s13066_s2 + $0x4c0] sm:$0xff] }
 0x10e   : > { %6491 = vmatprep.subr.bf16.mxu0 %v13608_v9  ;;  %v6498_v28 = vpack.c.bf16 %v1361_v36, %v1360_v46  ;;  %v1365_v46 = vld [vmem:[%s13066_s2 + $0x4e8] sm:$0xff] }
 0x110   : > { %5931 = vmatmul.mubr.msk.f32.gmra.mrb[20].mxu0 %vm8014_vm2, %v8321_v55 }
 0x111   : > { %2290 = vmatprep.mubr.f32.mxu0 %v8336_v59  ;;  %6493 = vmatpush1.bf16.msra.mxu0 %v6492_v54  ;;  %v1362_v54 = vld [vmem:[%s13066_s2 + $0x4d0] sm:$0xff] }
 0x112   : > { %6494 = vmatprep.subr.bf16.mxu0 %v13608_v9  ;;  %v6501_v30 = vpack.c.bf16 %v1363_v53, %v1362_v54  ;;  %v1367_v54 = vld [vmem:[%s13066_s2 + $0x4f8] sm:$0xff] }
 0x114   : > { %2291 = vmatmul.mubr.f32.gmra.mrb[22].mxu0 %v8352_v43 }
 0x115   : > { %5933 = vmatprep.mubr.msk.f32.mxu0 %vm8014_vm2, %v8375_v45  ;;  %6496 = vmatpush1.bf16.msra.mxu0 %v6495_v37  ;;  %v1364_v37 = vld [vmem:[%s13066_s2 + $0x4e0] sm:$0xff] }
 0x116   : > { %6497 = vmatprep.subr.bf16.mxu0 %v13608_v9  ;;  %v6504_v36 = vpack.c.bf16 %v1365_v46, %v1364_v37  ;;  %v13725_v37 = vld [vmem:[#allocation108_spill] sm:$0xff]  ;;  %v13726_v46 = vld [vmem:[#allocation111_spill] sm:$0xff] }
 0x118   : > { %5935 = vmatmul.mubr.msk.f32.gmra.mrb[24].mxu0 %vm8014_vm2, %v8387_v15 }
 0x119   : > { %2300 = vmatprep.mubr.f32.mxu0 %v8402_v2  ;;  %6499 = vmatpush1.bf16.msra.mxu0 %v6498_v28  ;;  %v1366_v28 = vld [vmem:[%s13066_s2 + $0x4f0] sm:$0xff] }
 0x11a   : > { %6500 = vmatprep.subr.bf16.mxu0 %v13608_v9  ;;  %v6507_v53 = vpack.c.bf16 %v1367_v54, %v1366_v28  ;;  %v13728_v28 = vld [vmem:[#allocation117_spill] sm:$0xff]  ;;  %v13729_v54 = vld [vmem:[#allocation119_spill] sm:$0xff] }
 0x11c   : > { %2301 = vmatmul.mubr.f32.gmra.mrb[26].mxu0 %v8418_v61 }
 0x11d   : > { %5937 = vmatprep.mubr.msk.f32.mxu0 %vm8014_vm2, %v8441_v3  ;;  %6502 = vmatpush1.bf16.msra.mxu0 %v6501_v30  ;;  %v13724_v30 = vld [vmem:[#allocation105_spill] sm:$0xff]  ;;  %v13745_v3 = vld [vmem:[#allocation16_spill] sm:$0xff] }
 0x11e   : > { %6503 = vmatprep.subr.bf16.mxu0 %v13608_v9  ;;  %v754_v15 = vrot.slane %v13745_v3, 1  ;;  %v1370_v3 = vld [vmem:[%s13066_s2 + $0x510] sm:$0xff] }
 0x120   : > { %5939 = vmatmul.mubr.msk.f32.gmra.mrb[28].mxu0 %vm8014_vm2, %v8453_v33  ;;  %v1368_v33 = vld [vmem:[%s13066_s2 + $0x500] sm:$0xff] }
 0x121   : > { %2310 = vmatprep.mubr.f32.mxu0 %v8468_v13  ;;  %6505 = vmatpush1.bf16.msra.mxu0 %v6504_v36  ;;  %v13727_v36 = vld [vmem:[#allocation114_spill] sm:$0xff] }
 0x122   : > { %6506 = vmatprep.subr.bf16.mxu0 %v13608_v9 }
 0x124   : > { %2311 = vmatmul.mubr.f32.gmra.mrb[30].mxu0 %v8484_v49 }
 0x125   : > { %5941 = vmatprep.mubr.msk.f32.mxu0 %vm8014_vm2, %v8507_v44  ;;  %6508 = vmatpush1.bf16.msra.mxu0 %v6507_v53  ;;  %v13730_v53 = vld [vmem:[#allocation124_spill] sm:$0xff] }
 0x126   : > { %6509 = vmatprep.subr.bf16.mxu0 %v13608_v9 }
 0x128   : > { %5943 = vmatmul.mubr.msk.f32.gmra.mrb[32].mxu0 %vm8014_vm2, %v8519_v6 }
 0x129   : > { %2320 = vmatprep.mubr.f32.mxu0 %v8528_v24 }
 0x12c   : > { %2321 = vmatmul.mubr.f32.gmra.mrb[34].mxu0 %v8544_v32 }
 0x12d   : > { %5945 = vmatprep.mubr.msk.f32.mxu0 %vm8014_vm2, %v8561_v40  ;;  %v750_v40 = vrot.slane %v8005_v4, 1 }
 0x12f   : > { %v9184_v34 = vsel %vm740_vm3, %v750_v40, %v754_v15 }
 0x130   : > { %5947 = vmatmul.mubr.msk.f32.gmra.mrb[36].mxu0 %vm8014_vm2, %v8574_v23 }
 0x131   : > { %2330 = vmatprep.mubr.f32.mxu0 %v8581_v0 }
 0x134   : > { %2331 = vmatmul.mubr.f32.gmra.mrb[38].mxu0 %v8600_v63 }
 0x135   : > { %5949 = vmatprep.mubr.msk.f32.mxu0 %vm8014_vm2, %v8611_v18 }
 0x138   : > { %5951 = vmatmul.mubr.msk.f32.gmra.mrb[40].mxu0 %vm8014_vm2, %v13724_v30  ;;  %v9138_v30 = vld [vmem:[%s7976_s28 + $0xf8] sm:$0xff] }
 0x139   : > { %2340 = vmatprep.mubr.f32.mxu0 %v13725_v37 }
 0x13c   : > { %2341 = vmatmul.mubr.f32.gmra.mrb[42].mxu0 %v13726_v46 }
 0x13d   : > { %5953 = vmatprep.mubr.msk.f32.mxu0 %vm8014_vm2, %v13727_v36 }
 0x140   : > { %5955 = vmatmul.mubr.msk.f32.gmra.mrb[44].mxu0 %vm8014_vm2, %v13728_v28  ;;  %v13737_v28 = vld [vmem:[#allocation144_spill] sm:$0xff] }
 0x141   : > { %2350 = vmatprep.mubr.f32.mxu0 %v13729_v54 }
 0x144   : > { %2351 = vmatmul.mubr.f32.gmra.mrb[46].mxu0 %v13730_v53 }
 0x145   : > { %5957 = vmatprep.mubr.msk.f32.mxu0 %vm8014_vm2, %v13731_v51  ;;  %v9127_v51 = vld [vmem:[%s7962_s15 + $0xf8] sm:$0xff] }
 0x146   : > { %v13296_v36 = vrot.slane %v9127_v51, 7 }
 0x148   : > { %5959 = vmatmul.mubr.msk.f32.gmra.mrb[48].mxu0 %vm8014_vm2, %v13732_v56  ;;  %v348_v56 = vld [vmem:[%s7962_s15 + $0xf0] sm:$0xff]  ;;  %s7674_s15 = sshll.u32 %s7741_s9, 4  ;;  %s7675_s15 = int_to_ptr.vmem [resolvable:$false] %s7674_s15 }
 0x149   : > { %2360 = vmatprep.mubr.f32.mxu0 %v13733_v27  ;;  %p7677_p13 = scmp.lt.s32.totalorder %s13007_s18, %s7675_s15 }
 0x14c   : > { %2361 = vmatmul.mubr.f32.gmra.mrb[50].mxu0 %v13734_v41 }
 0x14d   : > { %5961 = vmatprep.mubr.msk.f32.mxu0 %vm8014_vm2, %v13735_v26  ;;  %v9133_v26 = vrot.slane %v348_v56, 7 }
 0x14f   : > { %13738 = vst [vmem:[#allocation111_spill] sm:$0xff] %v9133_v26  ;;  %v9151_v56 = vsel %vm415_vm0, %v9133_v26, %v13296_v36  ;;  %v747_v36 = vrot.slane %v8037_v10, 1 }
 0x150   : > { %5963 = vmatmul.mubr.msk.f32.gmra.mrb[52].mxu0 %vm8014_vm2, %v13736_v14  ;;  %v316_v14 = vld [vmem:[%s7976_s28 + $0xf0] sm:$0xff]  ;;  %13740 = vst [vmem:[#allocation144_spill] sm:$0xff] %v9151_v56  ;;  %s3593_s28 = sand.u32 2147483647, %s3521_s20  ;;  %s13005_s20 = scalar_lea.hbm %s13070_s6, %s6140_s17 }
 0x151   : > { %2370 = vmatprep.mubr.f32.mxu0 %v13737_v28  ;;  %v9141_v18 = vrot.slane %v316_v14, 7  ;;  %v13742_v14 = vld [vmem:[#allocation15_spill] sm:$0xff] }
 0x152   : > { %v746_v6 = vrot.slane %v13742_v14, 1  ;;  %v1369_v14 = vld [vmem:[%s13066_s2 + $0x508] sm:$0xff] }
 0x153   : > { %13739 = vst [vmem:[#allocation124_spill] sm:$0xff] %v9141_v18  ;;  %v6510_v45 = vpack.c.bf16 %v1369_v14, %v1368_v33  ;;  %v757_v33 = vrot.slane %v8098_v47, 1  ;;  %v9202_v14 = vsel %vm740_vm3, %v759_v31, %v760_v48  ;;  %v13755_v31 = vld [vmem:[#allocation25_spill] sm:$0xff] }
 0x154   : > { %2371 = vmatmul.mubr.f32.gmra.mrb[54].mxu0 %v8810_v21 }
 0x155   : > { %5965 = vmatprep.mubr.msk.f32.mxu0 %vm8014_vm2, %v8819_v12  ;;  %v13303_v12 = vrot.slane %v9138_v30, 7 }
 0x157   : > { %v9164_v44 = vsel %vm415_vm0, %v9141_v18, %v13303_v12  ;;  %v9180_v12 = vsel %vm740_vm3, %v746_v6, %v747_v36 }
 0x158   : > { %5967 = vmatmul.mubr.msk.f32.gmra.mrb[56].mxu0 %vm8014_vm2, %v8837_v42  ;;  %v13741_v42 = vld [vmem:[#allocation12_spill] sm:$0xff]  ;;  %13746 = vst [vmem:[#allocation16_spill] sm:$0xff] %v9180_v12 }
 0x159   : > { %2380 = vmatprep.mubr.f32.mxu0 %v8841_v58  ;;  %v749_v23 = vrot.slane %v13741_v42, 1  ;;  %13743 = vst [vmem:[#allocation12_spill] sm:$0xff] %v9164_v44 }
 0x15b   : > { %v9168_v42 = vsel %vm740_vm3, %v749_v23, %v750_v40  ;;  %v13747_v23 = vld [vmem:[#allocation17_spill] sm:$0xff] }
 0x15c   : > { %2381 = vmatmul.mubr.f32.gmra.mrb[58].mxu0 %v8860_v19  ;;  %13744 = vst [vmem:[#allocation15_spill] sm:$0xff] %v9168_v42  ;;  %v752_v55 = vrot.slane %v13747_v23, 1  ;;  %13748 = vst [vmem:[#allocation17_spill] sm:$0xff] %v9184_v34  ;;  %v13751_v40 = vld [vmem:[#allocation21_spill] sm:$0xff]  ;;  %v13753_v23 = vld [vmem:[#allocation23_spill] sm:$0xff] }
 0x15d   : > { %5969 = vmatprep.mubr.msk.f32.mxu0 %vm8014_vm2, %v9133_v26  ;;  %v756_v39 = vrot.slane %v13751_v40, 1  ;;  %13752 = vst [vmem:[#allocation21_spill] sm:$0xff] %v9202_v14  ;;  %v764_v38 = vrot.slane %v13753_v23, 1  ;;  %v13757_v23 = vld [vmem:[#allocation27_spill] sm:$0xff] }
 0x15e   : > { %v9197_v15 = vsel %vm740_vm3, %v747_v36, %v752_v55  ;;  %v1373_v55 = vld [vmem:[%s13066_s2 + $0x528] sm:$0xff] }
 0x15f   : > { %13750 = vst [vmem:[#allocation19_spill] sm:$0xff] %v9197_v15  ;;  %v9215_v36 = vsel %vm740_vm3, %v756_v39, %v757_v33  ;;  %v9219_v40 = vsel %vm740_vm3, %v760_v48, %v764_v38  ;;  %v1375_v39 = vld [vmem:[%s13066_s2 + $0x538] sm:$0xff]  ;;  %v13759_v48 = vld [vmem:[#allocation29_spill] sm:$0xff] }
 0x160   : > { %5971 = vmatmul.mubr.msk.f32.gmra.mrb[60].mxu0 %vm8014_vm2, %v9141_v18  ;;  %13754 = vst [vmem:[#allocation23_spill] sm:$0xff] %v9215_v36  ;;  %13756 = vst [vmem:[#allocation25_spill] sm:$0xff] %v9219_v40 }
 0x161   : > { %2390 = vmatprep.mubr.f32.mxu0 %v9151_v56 }
 0x164   : > { %2391 = vmatmul.mubr.f32.gmra.mrb[62].mxu0 %v9164_v44 }
 0x165   : > { %2460 = vmatprep.mubr.f32.mxu0 %v9168_v42  ;;  %v1371_v42 = vld [vmem:[%s13066_s2 + $0x518] sm:$0xff] }
 0x166   : > { %v6513_v6 = vpack.c.bf16 %v1371_v42, %v1370_v3  ;;  %v762_v42 = vrot.slane %v13755_v31, 1 }
 0x168   : > { %2461 = vmatmul.mubr.f32.vlgmr.msra.gmra.mrb[0].mxu0 %v9180_v12  ;;  %v770_v12 = vrot.slane %v8138_v8, 1  ;;  %v9233_v38 = vsel %vm740_vm3, %v757_v33, %v762_v42  ;;  %v1377_v33 = vld [vmem:[%s13066_s2 + $0x548] sm:$0xff] }
 0x169   : > { %6511 = vmatpush1.bf16.msra.mxu0 %v6510_v45  ;;  %2465 = vmatprep.mubr.f32.mxu0 %v9184_v34  ;;  %v1372_v45 = vld [vmem:[%s13066_s2 + $0x520] sm:$0xff]  ;;  %v769_v34 = vrot.slane %v13757_v23, 1  ;;  %13758 = vst [vmem:[#allocation27_spill] sm:$0xff] %v9233_v38  ;;  %v13761_v23 = vld [vmem:[#allocation31_spill] sm:$0xff] }
 0x16a   : > { %6512 = vmatprep.subr.bf16.mxu0 %v13608_v9  ;;  %v6516_v3 = vpack.c.bf16 %v1373_v55, %v1372_v45  ;;  %v767_v45 = vrot.slane %v8154_v20, 1 }
 0x16b   : > { %v9238_v31 = vsel %vm740_vm3, %v769_v34, %v770_v12  ;;  %v13763_v34 = vld [vmem:[#allocation34_spill] sm:$0xff] }
 0x16c   : > { %2466 = vmatmul.mubr.f32.gmra.mrb[2].mxu0 %v9197_v15  ;;  %13760 = vst [vmem:[#allocation29_spill] sm:$0xff] %v9238_v31  ;;  %v774_v15 = vrot.slane %v13761_v23, 1  ;;  %v772_v42 = vrot.slane %v13763_v34, 1 }
 0x16d   : > { %2470 = vmatprep.mubr.f32.mxu0 %v9202_v14  ;;  %6514 = vmatpush1.bf16.msra.mxu0 %v6513_v6  ;;  %v1374_v14 = vld [vmem:[%s13066_s2 + $0x530] sm:$0xff]  ;;  %v766_v6 = vrot.slane %v13759_v48, 1  ;;  %v13765_v48 = vld [vmem:[#allocation37_spill] sm:$0xff] }
 0x16e   : > { %6515 = vmatprep.subr.bf16.mxu0 %v13608_v9  ;;  %v6519_v55 = vpack.c.bf16 %v1375_v39, %v1374_v14  ;;  %v9255_v39 = vsel %vm740_vm3, %v770_v12, %v774_v15  ;;  %v779_v23 = vrot.slane %v13765_v48, 1  ;;  %v9269_v12 = vsel %vm740_vm3, %v767_v45, %v772_v42  ;;  %v13767_v15 = vld [vmem:[#allocation39_spill] sm:$0xff]  ;;  %v13769_v48 = vld [vmem:[#allocation41_spill] sm:$0xff]  ;;  %v13771_v42 = vld [vmem:[#allocation44_spill] sm:$0xff] }
 0x16f   : > { %v9251_v14 = vsel %vm740_vm3, %v766_v6, %v767_v45  ;;  %13764 = vst [vmem:[#allocation34_spill] sm:$0xff] %v9255_v39  ;;  %v1379_v6 = vld [vmem:[%s13066_s2 + $0x558] sm:$0xff]  ;;  %13766 = vst [vmem:[#allocation37_spill] sm:$0xff] %v9269_v12  ;;  %v1381_v45 = vld [vmem:[%s13066_s2 + $0x568] sm:$0xff] }
 0x170   : > { %2471 = vmatmul.mubr.f32.gmra.mrb[4].mxu0 %v9215_v36  ;;  %13762 = vst [vmem:[#allocation31_spill] sm:$0xff] %v9251_v14  ;;  %v780_v36 = vrot.slane %v8204_v62, 1 }
 0x171   : > { %2475 = vmatprep.mubr.f32.mxu0 %v9219_v40  ;;  %6517 = vmatpush1.bf16.msra.mxu0 %v6516_v3  ;;  %v1376_v40 = vld [vmem:[%s13066_s2 + $0x540] sm:$0xff] }
 0x172   : > { %6518 = vmatprep.subr.bf16.mxu0 %v13608_v9  ;;  %v6522_v3 = vpack.c.bf16 %v1377_v33, %v1376_v40  ;;  %v776_v40 = vrot.slane %v13767_v15, 1  ;;  %v9274_v34 = vsel %vm740_vm3, %v779_v23, %v780_v36  ;;  %v13773_v15 = vld [vmem:[#allocation47_spill] sm:$0xff] }
 0x173   : > { %13768 = vst [vmem:[#allocation39_spill] sm:$0xff] %v9274_v34 }
 0x174   : > { %2476 = vmatmul.mubr.f32.gmra.mrb[6].mxu0 %v9233_v38  ;;  %v784_v38 = vrot.slane %v13769_v48, 1  ;;  %v789_v48 = vrot.slane %v13773_v15, 1  ;;  %v13777_v15 = vld [vmem:[#allocation51_spill] sm:$0xff] }
 0x175   : > { %2480 = vmatprep.mubr.f32.mxu0 %v9238_v31  ;;  %6520 = vmatpush1.bf16.msra.mxu0 %v6519_v55  ;;  %v1378_v31 = vld [vmem:[%s13066_s2 + $0x550] sm:$0xff]  ;;  %v777_v55 = vrot.slane %v8220_v17, 1 }
 0x176   : > { %6521 = vmatprep.subr.bf16.mxu0 %v13608_v9  ;;  %v6525_v33 = vpack.c.bf16 %v1379_v6, %v1378_v31  ;;  %v9291_v6 = vsel %vm740_vm3, %v780_v36, %v784_v38  ;;  %v13775_v38 = vld [vmem:[#allocation49_spill] sm:$0xff] }
 0x177   : > { %v9287_v31 = vsel %vm740_vm3, %v776_v40, %v777_v55  ;;  %13772 = vst [vmem:[#allocation44_spill] sm:$0xff] %v9291_v6  ;;  %v1383_v40 = vld [vmem:[%s13066_s2 + $0x578] sm:$0xff] }
 0x178   : > { %2481 = vmatmul.mubr.f32.gmra.mrb[8].mxu0 %v9251_v14  ;;  %13770 = vst [vmem:[#allocation41_spill] sm:$0xff] %v9287_v31  ;;  %v790_v14 = vrot.slane %v8270_v25, 1 }
 0x179   : > { %2485 = vmatprep.mubr.f32.mxu0 %v9255_v39  ;;  %6523 = vmatpush1.bf16.msra.mxu0 %v6522_v3  ;;  %v1380_v39 = vld [vmem:[%s13066_s2 + $0x560] sm:$0xff]  ;;  %v782_v3 = vrot.slane %v13771_v42, 1 }
 0x17a   : > { %6524 = vmatprep.subr.bf16.mxu0 %v13608_v9  ;;  %v6528_v23 = vpack.c.bf16 %v1381_v45, %v1380_v39  ;;  %v786_v39 = vrot.slane %v13775_v38, 1  ;;  %v9310_v42 = vsel %vm740_vm3, %v789_v48, %v790_v14  ;;  %v13781_v38 = vld [vmem:[#allocation57_spill] sm:$0xff] }
 0x17b   : > { %v9305_v36 = vsel %vm740_vm3, %v777_v55, %v782_v3  ;;  %13776 = vst [vmem:[#allocation49_spill] sm:$0xff] %v9310_v42  ;;  %v1385_v55 = vld [vmem:[%s13066_s2 + $0x588] sm:$0xff]  ;;  %v13779_v3 = vld [vmem:[#allocation54_spill] sm:$0xff] }
 0x17c   : > { %2486 = vmatmul.mubr.f32.gmra.mrb[10].mxu0 %v9269_v12  ;;  %13774 = vst [vmem:[#allocation47_spill] sm:$0xff] %v9305_v36  ;;  %v794_v12 = vrot.slane %v13777_v15, 1  ;;  %v799_v15 = vrot.slane %v13781_v38, 1  ;;  %v13785_v38 = vld [vmem:[#allocation61_spill] sm:$0xff] }
 0x17d   : > { %2490 = vmatprep.mubr.f32.mxu0 %v9274_v34  ;;  %6526 = vmatpush1.bf16.msra.mxu0 %v6525_v33  ;;  %v1382_v34 = vld [vmem:[%s13066_s2 + $0x570] sm:$0xff]  ;;  %v787_v33 = vrot.slane %v8286_v16, 1 }
 0x17e   : > { %6527 = vmatprep.subr.bf16.mxu0 %v13608_v9  ;;  %v6531_v45 = vpack.c.bf16 %v1383_v40, %v1382_v34  ;;  %v9327_v40 = vsel %vm740_vm3, %v790_v14, %v794_v12  ;;  %v13783_v12 = vld [vmem:[#allocation59_spill] sm:$0xff] }
 0x17f   : > { %v9323_v34 = vsel %vm740_vm3, %v786_v39, %v787_v33  ;;  %13780 = vst [vmem:[#allocation54_spill] sm:$0xff] %v9327_v40  ;;  %v1387_v39 = vld [vmem:[%s13066_s2 + $0x598] sm:$0xff] }
 0x180   : > { %2491 = vmatmul.mubr.f32.gmra.mrb[12].mxu0 %v9287_v31  ;;  %13778 = vst [vmem:[#allocation51_spill] sm:$0xff] %v9323_v34  ;;  %v800_v31 = vrot.slane %v8336_v59, 1 }
 0x181   : > { %2495 = vmatprep.mubr.f32.mxu0 %v9291_v6  ;;  %6529 = vmatpush1.bf16.msra.mxu0 %v6528_v23  ;;  %v1384_v6 = vld [vmem:[%s13066_s2 + $0x580] sm:$0xff]  ;;  %v792_v23 = vrot.slane %v13779_v3, 1 }
 0x182   : > { %6530 = vmatprep.subr.bf16.mxu0 %v13608_v9  ;;  %v6534_v48 = vpack.c.bf16 %v1385_v55, %v1384_v6  ;;  %v796_v6 = vrot.slane %v13783_v12, 1  ;;  %v9346_v3 = vsel %vm740_vm3, %v799_v15, %v800_v31  ;;  %v13789_v12 = vld [vmem:[#allocation67_spill] sm:$0xff] }
 0x183   : > { %v9341_v14 = vsel %vm740_vm3, %v787_v33, %v792_v23  ;;  %13784 = vst [vmem:[#allocation59_spill] sm:$0xff] %v9346_v3  ;;  %v1389_v33 = vld [vmem:[%s13066_s2 + $0x5a8] sm:$0xff]  ;;  %v13787_v23 = vld [vmem:[#allocation64_spill] sm:$0xff] }
 0x184   : > { %2496 = vmatmul.mubr.f32.gmra.mrb[14].mxu0 %v9305_v36  ;;  %13782 = vst [vmem:[#allocation57_spill] sm:$0xff] %v9341_v14  ;;  %v804_v36 = vrot.slane %v13785_v38, 1  ;;  %v809_v38 = vrot.slane %v13789_v12, 1  ;;  %v13793_v12 = vld [vmem:[#allocation71_spill] sm:$0xff] }
 0x185   : > { %2500 = vmatprep.mubr.f32.mxu0 %v9310_v42  ;;  %6532 = vmatpush1.bf16.msra.mxu0 %v6531_v45  ;;  %v1386_v42 = vld [vmem:[%s13066_s2 + $0x590] sm:$0xff]  ;;  %v797_v45 = vrot.slane %v8352_v43, 1 }
 0x186   : > { %6533 = vmatprep.subr.bf16.mxu0 %v13608_v9  ;;  %v6537_v55 = vpack.c.bf16 %v1387_v39, %v1386_v42  ;;  %v9363_v39 = vsel %vm740_vm3, %v800_v31, %v804_v36  ;;  %v13791_v36 = vld [vmem:[#allocation69_spill] sm:$0xff] }
 0x187   : > { %v9359_v42 = vsel %vm740_vm3, %v796_v6, %v797_v45  ;;  %13788 = vst [vmem:[#allocation64_spill] sm:$0xff] %v9363_v39  ;;  %v1391_v6 = vld [vmem:[%s13066_s2 + $0x5b8] sm:$0xff] }
 0x188   : > { %2501 = vmatmul.mubr.f32.gmra.mrb[16].mxu0 %v9323_v34  ;;  %13786 = vst [vmem:[#allocation61_spill] sm:$0xff] %v9359_v42  ;;  %v810_v34 = vrot.slane %v8402_v2, 1 }
 0x189   : > { %2505 = vmatprep.mubr.f32.mxu0 %v9327_v40  ;;  %6535 = vmatpush1.bf16.msra.mxu0 %v6534_v48  ;;  %v1388_v40 = vld [vmem:[%s13066_s2 + $0x5a0] sm:$0xff]  ;;  %v802_v48 = vrot.slane %v13787_v23, 1 }
 0x18a   : > { %6536 = vmatprep.subr.bf16.mxu0 %v13608_v9  ;;  %v6540_v15 = vpack.c.bf16 %v1389_v33, %v1388_v40  ;;  %v806_v40 = vrot.slane %v13791_v36, 1  ;;  %v9382_v23 = vsel %vm740_vm3, %v809_v38, %v810_v34  ;;  %v13797_v36 = vld [vmem:[#allocation77_spill] sm:$0xff] }
 0x18b   : > { %v9377_v31 = vsel %vm740_vm3, %v797_v45, %v802_v48  ;;  %13792 = vst [vmem:[#allocation69_spill] sm:$0xff] %v9382_v23  ;;  %v1393_v45 = vld [vmem:[%s13066_s2 + $0x5c8] sm:$0xff]  ;;  %v13795_v48 = vld [vmem:[#allocation74_spill] sm:$0xff] }
 0x18c   : > { %2506 = vmatmul.mubr.f32.gmra.mrb[18].mxu0 %v9341_v14  ;;  %13790 = vst [vmem:[#allocation67_spill] sm:$0xff] %v9377_v31  ;;  %v814_v14 = vrot.slane %v13793_v12, 1  ;;  %v819_v12 = vrot.slane %v13797_v36, 1  ;;  %v13801_v36 = vld [vmem:[#allocation81_spill] sm:$0xff] }
 0x18d   : > { %2510 = vmatprep.mubr.f32.mxu0 %v9346_v3  ;;  %6538 = vmatpush1.bf16.msra.mxu0 %v6537_v55  ;;  %v1390_v3 = vld [vmem:[%s13066_s2 + $0x5b0] sm:$0xff]  ;;  %v807_v55 = vrot.slane %v8418_v61, 1 }
 0x18e   : > { %6539 = vmatprep.subr.bf16.mxu0 %v13608_v9  ;;  %v6543_v33 = vpack.c.bf16 %v1391_v6, %v1390_v3  ;;  %v9399_v6 = vsel %vm740_vm3, %v810_v34, %v814_v14  ;;  %v13799_v14 = vld [vmem:[#allocation79_spill] sm:$0xff] }
 0x18f   : > { %v9395_v3 = vsel %vm740_vm3, %v806_v40, %v807_v55  ;;  %13796 = vst [vmem:[#allocation74_spill] sm:$0xff] %v9399_v6  ;;  %v1395_v40 = vld [vmem:[%s13066_s2 + $0x5d8] sm:$0xff] }
 0x190   : > { %2511 = vmatmul.mubr.f32.gmra.mrb[20].mxu0 %v9359_v42  ;;  %13794 = vst [vmem:[#allocation71_spill] sm:$0xff] %v9395_v3  ;;  %v820_v42 = vrot.slane %v8468_v13, 1 }
 0x191   : > { %2515 = vmatprep.mubr.f32.mxu0 %v9363_v39  ;;  %6541 = vmatpush1.bf16.msra.mxu0 %v6540_v15  ;;  %v1392_v39 = vld [vmem:[%s13066_s2 + $0x5c0] sm:$0xff]  ;;  %v812_v15 = vrot.slane %v13795_v48, 1 }
 0x192   : > { %6542 = vmatprep.subr.bf16.mxu0 %v13608_v9  ;;  %v6546_v38 = vpack.c.bf16 %v1393_v45, %v1392_v39  ;;  %v816_v39 = vrot.slane %v13799_v14, 1  ;;  %v9418_v48 = vsel %vm740_vm3, %v819_v12, %v820_v42  ;;  %v13804_v14 = vld [vmem:[#allocation87_spill] sm:$0xff] }
 0x193   : > { %v9413_v34 = vsel %vm740_vm3, %v807_v55, %v812_v15  ;;  %13800 = vst [vmem:[#allocation79_spill] sm:$0xff] %v9418_v48  ;;  %v1397_v55 = vld [vmem:[%s13066_s2 + $0x5e8] sm:$0xff]  ;;  %v13802_v15 = vld [vmem:[#allocation84_spill] sm:$0xff] }
 0x194   : > { %2516 = vmatmul.mubr.f32.gmra.mrb[22].mxu0 %v9377_v31  ;;  %13798 = vst [vmem:[#allocation77_spill] sm:$0xff] %v9413_v34  ;;  %v824_v31 = vrot.slane %v13801_v36, 1  ;;  %v829_v36 = vrot.slane %v13804_v14, 1  ;;  %v13808_v14 = vld [vmem:[#allocation91_spill] sm:$0xff] }
 0x195   : > { %2520 = vmatprep.mubr.f32.mxu0 %v9382_v23  ;;  %6544 = vmatpush1.bf16.msra.mxu0 %v6543_v33  ;;  %v1394_v23 = vld [vmem:[%s13066_s2 + $0x5d0] sm:$0xff]  ;;  %v817_v33 = vrot.slane %v8484_v49, 1 }
 0x196   : > { %6545 = vmatprep.subr.bf16.mxu0 %v13608_v9  ;;  %v6549_v45 = vpack.c.bf16 %v1395_v40, %v1394_v23  ;;  %v9435_v40 = vsel %vm740_vm3, %v820_v42, %v824_v31  ;;  %v13806_v31 = vld [vmem:[#allocation89_spill] sm:$0xff] }
 0x197   : > { %v9431_v23 = vsel %vm740_vm3, %v816_v39, %v817_v33  ;;  %13803 = vst [vmem:[#allocation81_spill] sm:$0xff] %v9435_v40  ;;  %v1399_v39 = vld [vmem:[%s13066_s2 + $0x5f8] sm:$0xff] }
 0x198   : > { %2521 = vmatmul.mubr.f32.gmra.mrb[24].mxu0 %v9395_v3  ;;  %v830_v3 = vrot.slane %v8528_v24, 1 }
 0x199   : > { %2525 = vmatprep.mubr.f32.mxu0 %v9399_v6  ;;  %6547 = vmatpush1.bf16.msra.mxu0 %v6546_v38  ;;  %v1396_v6 = vld [vmem:[%s13066_s2 + $0x5e0] sm:$0xff]  ;;  %v822_v38 = vrot.slane %v13802_v15, 1 }
 0x19a   : > { %6548 = vmatprep.subr.bf16.mxu0 %v13608_v9  ;;  %v6552_v12 = vpack.c.bf16 %v1397_v55, %v1396_v6  ;;  %v826_v6 = vrot.slane %v13806_v31, 1  ;;  %v9454_v15 = vsel %vm740_vm3, %v829_v36, %v830_v3 }
 0x19b   : > { %v9449_v42 = vsel %vm740_vm3, %v817_v33, %v822_v38  ;;  %13807 = vst [vmem:[#allocation87_spill] sm:$0xff] %v9454_v15  ;;  %v13810_v38 = vld [vmem:[#allocation94_spill] sm:$0xff] }
 0x19c   : > { %2526 = vmatmul.mubr.f32.gmra.mrb[26].mxu0 %v9413_v34  ;;  %13805 = vst [vmem:[#allocation84_spill] sm:$0xff] %v9449_v42  ;;  %v834_v34 = vrot.slane %v13808_v14, 1  ;;  %v832_v31 = vrot.slane %v13810_v38, 1  ;;  %v13814_v38 = vld [vmem:[#allocation100_spill] sm:$0xff] }
 0x19d   : > { %2530 = vmatprep.mubr.f32.mxu0 %v9418_v48  ;;  %6550 = vmatpush1.bf16.msra.mxu0 %v6549_v45  ;;  %v1398_v48 = vld [vmem:[%s13066_s2 + $0x5f0] sm:$0xff]  ;;  %v827_v45 = vrot.slane %v8544_v32, 1 }
 0x19e   : > { %6551 = vmatprep.subr.bf16.mxu0 %v13608_v9  ;;  %v6555_v55 = vpack.c.bf16 %v1399_v39, %v1398_v48  ;;  %v1208_v48 = vld [vmem:[%s13066_s2] sm:$0xff]  ;;  %v9471_v36 = vsel %vm740_vm3, %v830_v3, %v834_v34  ;;  %v13812_v39 = vld [vmem:[#allocation97_spill] sm:$0xff]  ;;  %v837_v3 = vrot.slane %v8600_v63, 1  ;;  %v1210_v34 = vld [vmem:[%s13066_s2 + $0x10] sm:$0xff] }
 0x19f   : > { %v9461_v33 = vsel %vm740_vm3, %v826_v6, %v827_v45  ;;  %13811 = vst [vmem:[#allocation91_spill] sm:$0xff] %v9471_v36  ;;  %v839_v14 = vrot.slane %v13812_v39, 1  ;;  %v13816_v39 = vld [vmem:[#allocation101_spill] sm:$0xff] }
 0x1a0   : > { %2531 = vmatmul.mubr.f32.gmra.mrb[28].mxu0 %v9431_v23  ;;  %13809 = vst [vmem:[#allocation89_spill] sm:$0xff] %v9461_v33 }
 0x1a1   : > { %2535 = vmatprep.mubr.f32.mxu0 %v9435_v40  ;;  %6553 = vmatpush1.bf16.msra.mxu0 %v6552_v12  ;;  %v1209_v12 = vld [vmem:[%s13066_s2 + $0x8] sm:$0xff]  ;;  %v847_v40 = vrot.slane %v13726_v46, 1 }
 0x1a2   : > { %6554 = vmatprep.subr.bf16.mxu0 %v13608_v9  ;;  %v6270_v6 = vpack.c.bf16 %v1209_v12, %v1208_v48  ;;  %v1211_v48 = vld [vmem:[%s13066_s2 + $0x18] sm:$0xff] }
 0x1a4   : > { %2536 = vmatmul.mubr.f32.gmra.mrb[30].mxu0 %v9449_v42  ;;  %6271 = vmatpush1.bf16.msra.mxu1 %v6270_v6  ;;  %v836_v42 = vrot.slane %v13814_v38, 1  ;;  %v13818_v38 = vld [vmem:[#allocation104_spill] sm:$0xff] }
 0x1a5   : > { %2540 = vmatprep.mubr.f32.mxu0 %v9454_v15  ;;  %6556 = vmatpush1.bf16.msra.mxu0 %v6555_v55  ;;  %v840_v15 = vrot.slane %v8581_v0, 1  ;;  %v9479_v55 = vsel %vm740_vm3, %v827_v45, %v832_v31  ;;  %v844_v45 = vrot.slane %v13816_v39, 1  ;;  %v6273_v31 = vpack.c.bf16 %v1211_v48, %v1210_v34  ;;  %v1213_v34 = vld [vmem:[%s13066_s2 + $0x28] sm:$0xff]  ;;  %v13820_v39 = vld [vmem:[#allocation107_spill] sm:$0xff] }
 0x1a6   : > { %6557 = vmatprep.subr.bf16.mxu0 %v13608_v9  ;;  %13813 = vst [vmem:[#allocation94_spill] sm:$0xff] %v9479_v55  ;;  %6272 = vmatprep.subr.bf16.mxu1 %v13608_v9  ;;  %v9497_v6 = vsel %vm740_vm3, %v836_v42, %v837_v3  ;;  %v850_v42 = vrot.slane %v13725_v37, 1 }
 0x1a7   : > { %v9491_v12 = vsel %vm740_vm3, %v839_v14, %v840_v15  ;;  %13817 = vst [vmem:[#allocation100_spill] sm:$0xff] %v9497_v6  ;;  %v1212_v14 = vld [vmem:[%s13066_s2 + $0x20] sm:$0xff]  ;;  %v9508_v48 = vsel %vm740_vm3, %v840_v15, %v844_v45  ;;  %v1214_v15 = vld [vmem:[%s13066_s2 + $0x30] sm:$0xff]  ;;  %v1215_v45 = vld [vmem:[%s13066_s2 + $0x38] sm:$0xff] }
 0x1a8   : > { %2541 = vmatmul.mubr.f32.gmra.mrb[32].mxu0 %v9461_v33  ;;  %13815 = vst [vmem:[#allocation97_spill] sm:$0xff] %v9491_v12  ;;  %6274 = vmatpush1.bf16.msra.mxu1 %v6273_v31  ;;  %13819 = vst [vmem:[#allocation101_spill] sm:$0xff] %v9508_v48  ;;  %v849_v31 = vrot.slane %v13820_v39, 1 }
 0x1a9   : > { %2545 = vmatprep.mubr.f32.mxu0 %v9471_v36  ;;  %v842_v36 = vrot.slane %v13818_v38, 1  ;;  %6275 = vmatprep.subr.bf16.mxu1 %v13608_v9 }
 0x1ab   : > { %v9515_v38 = vsel %vm740_vm3, %v837_v3, %v842_v36  ;;  %v6279_v3 = vpack.c.bf16 %v1215_v45, %v1214_v15  ;;  %v1217_v15 = vld [vmem:[%s13066_s2 + $0x48] sm:$0xff] }
 0x1ac   : > { %2546 = vmatmul.mubr.f32.gmra.mrb[34].mxu0 %v9479_v55  ;;  %13821 = vst [vmem:[#allocation104_spill] sm:$0xff] %v9515_v38  ;;  %v13822_v55 = vld [vmem:[#allocation112_spill] sm:$0xff] }
 0x1ad   : > { %2550 = vmatprep.mubr.f32.mxu0 %v9491_v12  ;;  %v6276_v12 = vpack.c.bf16 %v1213_v34, %v1212_v14  ;;  %v846_v33 = vrot.slane %v13822_v55, 1  ;;  %v13824_v14 = vld [vmem:[#allocation113_spill] sm:$0xff]  ;;  %v13826_v34 = vld [vmem:[#allocation116_spill] sm:$0xff] }
 0x1ae   : > { %v854_v36 = vrot.slane %v13824_v14, 1  ;;  %v852_v39 = vrot.slane %v13826_v34, 1  ;;  %v13828_v14 = vld [vmem:[#allocation120_spill] sm:$0xff] }
 0x1af   : > { %6277 = vmatpush1.bf16.msra.mxu1 %v6276_v12  ;;  %v9527_v12 = vsel %vm740_vm3, %v849_v31, %v850_v42  ;;  %v9533_v55 = vsel %vm740_vm3, %v846_v33, %v847_v40  ;;  %v1216_v31 = vld [vmem:[%s13066_s2 + $0x40] sm:$0xff]  ;;  %v860_v33 = vrot.slane %v13729_v54, 1 }
 0x1b0   : > { %2551 = vmatmul.mubr.f32.gmra.mrb[36].mxu0 %v9497_v6  ;;  %6278 = vmatprep.subr.bf16.mxu1 %v13608_v9  ;;  %13823 = vst [vmem:[#allocation107_spill] sm:$0xff] %v9527_v12  ;;  %13825 = vst [vmem:[#allocation112_spill] sm:$0xff] %v9533_v55  ;;  %v9544_v45 = vsel %vm740_vm3, %v850_v42, %v854_v36  ;;  %v9551_v34 = vsel %vm740_vm3, %v847_v40, %v852_v39  ;;  %v857_v6 = vrot.slane %v13730_v53, 1  ;;  %v1218_v42 = vld [vmem:[%s13066_s2 + $0x50] sm:$0xff]  ;;  %v1219_v36 = vld [vmem:[%s13066_s2 + $0x58] sm:$0xff] }
 0x1b1   : > { %2555 = vmatprep.mubr.f32.mxu0 %v9508_v48  ;;  %13827 = vst [vmem:[#allocation113_spill] sm:$0xff] %v9544_v45  ;;  %13829 = vst [vmem:[#allocation116_spill] sm:$0xff] %v9551_v34  ;;  %v6285_v39 = vpack.c.bf16 %v1219_v36, %v1218_v42  ;;  %v1221_v42 = vld [vmem:[%s13066_s2 + $0x68] sm:$0xff] }
 0x1b3   : > { %6280 = vmatpush1.bf16.msra.mxu1 %v6279_v3  ;;  %v859_v3 = vrot.slane %v13828_v14, 1 }
 0x1b4   : > { %2556 = vmatmul.mubr.f32.gmra.mrb[38].mxu0 %v9515_v38  ;;  %6281 = vmatprep.subr.bf16.mxu1 %v13608_v9  ;;  %v13830_v38 = vld [vmem:[#allocation123_spill] sm:$0xff] }
 0x1b5   : > { %2560 = vmatprep.mubr.f32.mxu0 %v9527_v12  ;;  %v6282_v12 = vpack.c.bf16 %v1217_v15, %v1216_v31  ;;  %v856_v48 = vrot.slane %v13830_v38, 1  ;;  %v13832_v31 = vld [vmem:[#allocation125_spill] sm:$0xff] }
 0x1b6   : > { %v864_v40 = vrot.slane %v13832_v31, 1  ;;  %v13834_v15 = vld [vmem:[#allocation129_spill] sm:$0xff]  ;;  %v13836_v31 = vld [vmem:[#allocation131_spill] sm:$0xff] }
 0x1b7   : > { %6283 = vmatpush1.bf16.msra.mxu1 %v6282_v12  ;;  %v9563_v12 = vsel %vm740_vm3, %v859_v3, %v860_v33  ;;  %v9569_v38 = vsel %vm740_vm3, %v856_v48, %v857_v6  ;;  %v862_v14 = vrot.slane %v13834_v15, 1  ;;  %v1220_v3 = vld [vmem:[%s13066_s2 + $0x60] sm:$0xff]  ;;  %v870_v48 = vrot.slane %v13733_v27, 1 }
 0x1b8   : > { %2561 = vmatmul.mubr.f32.gmra.mrb[40].mxu0 %v9533_v55  ;;  %6284 = vmatprep.subr.bf16.mxu1 %v13608_v9  ;;  %13831 = vst [vmem:[#allocation120_spill] sm:$0xff] %v9563_v12  ;;  %13833 = vst [vmem:[#allocation123_spill] sm:$0xff] %v9569_v38  ;;  %v9580_v36 = vsel %vm740_vm3, %v860_v33, %v864_v40  ;;  %v867_v55 = vrot.slane %v13734_v41, 1  ;;  %v1222_v33 = vld [vmem:[%s13066_s2 + $0x70] sm:$0xff]  ;;  %v1223_v40 = vld [vmem:[%s13066_s2 + $0x78] sm:$0xff] }
 0x1b9   : > { %2565 = vmatprep.mubr.f32.mxu0 %v9544_v45  ;;  %13835 = vst [vmem:[#allocation125_spill] sm:$0xff] %v9580_v36  ;;  %v9587_v15 = vsel %vm740_vm3, %v857_v6, %v862_v14  ;;  %v6291_v14 = vpack.c.bf16 %v1223_v40, %v1222_v33  ;;  %v1225_v33 = vld [vmem:[%s13066_s2 + $0x88] sm:$0xff] }
 0x1ba   : > { %13837 = vst [vmem:[#allocation129_spill] sm:$0xff] %v9587_v15 }
 0x1bb   : > { %6286 = vmatpush1.bf16.msra.mxu1 %v6285_v39  ;;  %v869_v39 = vrot.slane %v13836_v31, 1 }
 0x1bc   : > { %2566 = vmatmul.mubr.f32.gmra.mrb[42].mxu0 %v9551_v34  ;;  %6287 = vmatprep.subr.bf16.mxu1 %v13608_v9  ;;  %v13838_v34 = vld [vmem:[#allocation136_spill] sm:$0xff] }
 0x1bd   : > { %2570 = vmatprep.mubr.f32.mxu0 %v9563_v12  ;;  %v6288_v12 = vpack.c.bf16 %v1221_v42, %v1220_v3  ;;  %v866_v45 = vrot.slane %v13838_v34, 1  ;;  %v13840_v3 = vld [vmem:[#allocation137_spill] sm:$0xff]  ;;  %v13842_v42 = vld [vmem:[#allocation140_spill] sm:$0xff] }
 0x1be   : > { %v874_v6 = vrot.slane %v13840_v3, 1  ;;  %v872_v31 = vrot.slane %v13842_v42, 1  ;;  %v13844_v3 = vld [vmem:[#allocation142_spill] sm:$0xff] }
 0x1bf   : > { %6289 = vmatpush1.bf16.msra.mxu1 %v6288_v12  ;;  %v9599_v12 = vsel %vm740_vm3, %v869_v39, %v870_v48  ;;  %v9605_v34 = vsel %vm740_vm3, %v866_v45, %v867_v55  ;;  %v1224_v39 = vld [vmem:[%s13066_s2 + $0x80] sm:$0xff]  ;;  %v880_v45 = vrot.slane %v13737_v28, 1 }
 0x1c0   : > { %2571 = vmatmul.mubr.f32.gmra.mrb[44].mxu0 %v9569_v38  ;;  %6290 = vmatprep.subr.bf16.mxu1 %v13608_v9  ;;  %13839 = vst [vmem:[#allocation131_spill] sm:$0xff] %v9599_v12  ;;  %13841 = vst [vmem:[#allocation136_spill] sm:$0xff] %v9605_v34  ;;  %v9616_v40 = vsel %vm740_vm3, %v870_v48, %v874_v6  ;;  %v9623_v42 = vsel %vm740_vm3, %v867_v55, %v872_v31  ;;  %v877_v38 = vrot.slane %v8810_v21, 1  ;;  %v1226_v48 = vld [vmem:[%s13066_s2 + $0x90] sm:$0xff]  ;;  %v1227_v6 = vld [vmem:[%s13066_s2 + $0x98] sm:$0xff] }
 0x1c1   : > { %2575 = vmatprep.mubr.f32.mxu0 %v9580_v36  ;;  %13843 = vst [vmem:[#allocation137_spill] sm:$0xff] %v9616_v40  ;;  %13845 = vst [vmem:[#allocation140_spill] sm:$0xff] %v9623_v42  ;;  %v6297_v31 = vpack.c.bf16 %v1227_v6, %v1226_v48  ;;  %v1229_v48 = vld [vmem:[%s13066_s2 + $0xa8] sm:$0xff] }
 0x1c3   : > { %6292 = vmatpush1.bf16.msra.mxu1 %v6291_v14  ;;  %v879_v14 = vrot.slane %v13844_v3, 1 }
 0x1c4   : > { %2576 = vmatmul.mubr.f32.gmra.mrb[46].mxu0 %v9587_v15  ;;  %6293 = vmatprep.subr.bf16.mxu1 %v13608_v9  ;;  %v13846_v15 = vld [vmem:[#allocation147_spill] sm:$0xff] }
 0x1c5   : > { %2580 = vmatprep.mubr.f32.mxu0 %v9599_v12  ;;  %v6294_v12 = vpack.c.bf16 %v1225_v33, %v1224_v39  ;;  %v876_v36 = vrot.slane %v13846_v15, 1  ;;  %v13848_v39 = vld [vmem:[#allocation148_spill] sm:$0xff] }
 0x1c6   : > { %v884_v55 = vrot.slane %v13848_v39, 1  ;;  %v13850_v33 = vld [vmem:[#allocation152_spill] sm:$0xff]  ;;  %v13852_v39 = vld [vmem:[#allocation154_spill] sm:$0xff] }
 0x1c7   : > { %6295 = vmatpush1.bf16.msra.mxu1 %v6294_v12  ;;  %v9635_v12 = vsel %vm740_vm3, %v879_v14, %v880_v45  ;;  %v9641_v15 = vsel %vm740_vm3, %v876_v36, %v877_v38  ;;  %v882_v3 = vrot.slane %v13850_v33, 1  ;;  %v1228_v14 = vld [vmem:[%s13066_s2 + $0xa0] sm:$0xff]  ;;  %v890_v36 = vrot.slane %v8841_v58, 1 }
 0x1c8   : > { %2581 = vmatmul.mubr.f32.gmra.mrb[48].mxu0 %v9605_v34  ;;  %6296 = vmatprep.subr.bf16.mxu1 %v13608_v9  ;;  %13847 = vst [vmem:[#allocation142_spill] sm:$0xff] %v9635_v12  ;;  %13849 = vst [vmem:[#allocation147_spill] sm:$0xff] %v9641_v15  ;;  %v9652_v6 = vsel %vm740_vm3, %v880_v45, %v884_v55  ;;  %v894_v45 = vrot.slane %v8867_v50, 1  ;;  %v1230_v55 = vld [vmem:[%s13066_s2 + $0xb0] sm:$0xff]  ;;  %v1253_v34 = vld [vmem:[%s13066_s2 + $0x168] sm:$0xff] }
 0x1c9   : > { %2585 = vmatprep.mubr.f32.mxu0 %v9616_v40  ;;  %13851 = vst [vmem:[#allocation148_spill] sm:$0xff] %v9652_v6  ;;  %v9659_v33 = vsel %vm740_vm3, %v877_v38, %v882_v3  ;;  %v887_v40 = vrot.slane %v8860_v19, 1 }
 0x1ca   : > { %13853 = vst [vmem:[#allocation152_spill] sm:$0xff] %v9659_v33  ;;  %v9684_v3 = vsel %vm740_vm3, %v890_v36, %v894_v45 }
 0x1cb   : > { %6298 = vmatpush1.bf16.msra.mxu1 %v6297_v31  ;;  %v889_v31 = vrot.slane %v13852_v39, 1  ;;  %13856 = vst [vmem:[#allocation163_spill] sm:$0xff] %v9684_v3  ;;  %v1232_v39 = vld [vmem:[%s13066_s2 + $0xc0] sm:$0xff] }
 0x1cc   : > { %2586 = vmatmul.mubr.f32.gmra.mrb[50].mxu0 %v9623_v42  ;;  %6299 = vmatprep.subr.bf16.mxu1 %v13608_v9  ;;  %v886_v42 = vrot.slane %v8864_v7, 1  ;;  %v9676_v7 = vsel %vm415_vm0, 0.0, %v9133_v26  ;;  %v1251_v26 = vld [vmem:[%s13066_s2 + $0x158] sm:$0xff] }
 0x1cd   : > { %2590 = vmatprep.mubr.f32.mxu0 %v9635_v12  ;;  %v6300_v12 = vpack.c.bf16 %v1229_v48, %v1228_v14  ;;  %v9672_v14 = vsel %vm740_vm3, %v889_v31, %v890_v36  ;;  %v892_v48 = vrot.slane %v8881_v5, 1  ;;  %v1233_v31 = vld [vmem:[%s13066_s2 + $0xc8] sm:$0xff]  ;;  %v9698_v36 = vsel %vm415_vm0, 0.0, %v9141_v18  ;;  %v1247_v18 = vld [vmem:[%s13066_s2 + $0x138] sm:$0xff] }
 0x1ce   : > { %13854 = vst [vmem:[#allocation154_spill] sm:$0xff] %v9672_v14  ;;  %v9681_v50 = vsel %vm740_vm3, %v886_v42, %v887_v40  ;;  %v1184_v42 = vrot.slane %v9151_v56, 1  ;;  %v6306_v45 = vpack.c.bf16 %v1233_v31, %v1232_v39  ;;  %v13857_v5 = vrot.slane %v9127_v51, 7  ;;  %v1234_v51 = vld [vmem:[%s13066_s2 + $0xd0] sm:$0xff]  ;;  %v1235_v39 = vld [vmem:[%s13066_s2 + $0xd8] sm:$0xff] }
 0x1cf   : > { %6301 = vmatpush1.bf16.msra.mxu1 %v6300_v12  ;;  %v1231_v12 = vld [vmem:[%s13066_s2 + $0xb8] sm:$0xff]  ;;  %13855 = vst [vmem:[#allocation162_spill] sm:$0xff] %v9681_v50 }
 0x1d0   : > { %2591 = vmatmul.mubr.f32.gmra.mrb[52].mxu0 %v9641_v15  ;;  %6302 = vmatprep.subr.bf16.mxu1 %v13608_v9  ;;  %v6303_v38 = vpack.c.bf16 %v1231_v12, %v1230_v55  ;;  %v1183_v55 = vrot.slane %v9676_v7, 1  ;;  %v9703_v12 = vsel %vm415_vm0, %v13857_v5, 0.0  ;;  %v6309_v5 = vpack.c.bf16 %v1235_v39, %v1234_v51  ;;  %v1249_v15 = vld [vmem:[%s13066_s2 + $0x148] sm:$0xff] }
 0x1d1   : > { %2595 = vmatprep.mubr.f32.mxu0 %v9652_v6  ;;  %v1245_v6 = vld [vmem:[%s13066_s2 + $0x128] sm:$0xff] }
 0x1d2   : > { %v9720_v31 = vsel %vm740_vm3, %v1183_v55, %v1184_v42  ;;  %v1237_v55 = vld [vmem:[%s13066_s2 + $0xe8] sm:$0xff] }
 0x1d3   : > { %6304 = vmatpush1.bf16.msra.mxu1 %v6303_v38  ;;  %v9708_v38 = vsel %vm740_vm3, %v887_v40, %v892_v48  ;;  %13859 = vst [vmem:[#allocation165_spill] sm:$0xff] %v9720_v31  ;;  %v1188_v40 = vrot.slane %v9703_v12, 1  ;;  %v13860_v48 = vrot.slane %v9138_v30, 7  ;;  %v1236_v30 = vld [vmem:[%s13066_s2 + $0xe0] sm:$0xff] }
 0x1d4   : > { %2596 = vmatmul.mubr.f32.gmra.mrb[54].mxu0 %v9659_v33  ;;  %6305 = vmatprep.subr.bf16.mxu1 %v13608_v9  ;;  %13858 = vst [vmem:[#allocation164_spill] sm:$0xff] %v9708_v38  ;;  %v1181_v33 = vrot.slane %v9164_v44, 1  ;;  %v6312_v39 = vpack.c.bf16 %v1237_v55, %v1236_v30  ;;  %v1402_v55 = vld [vmem:[%s13066_s2 + $0x610] sm:$0xff] }
 0x1d5   : > { %2600 = vmatprep.mubr.f32.mxu0 %v9672_v14  ;;  %v1180_v14 = vrot.slane %v9698_v36, 1  ;;  %v9742_v51 = vsel %vm740_vm3, %v1184_v42, %v1188_v40  ;;  %v1239_v42 = vld [vmem:[%s13066_s2 + $0xf8] sm:$0xff]  ;;  %v1400_v40 = vld [vmem:[%s13066_s2 + $0x600] sm:$0xff] }
 0x1d6   : > { %13862 = vst [vmem:[#allocation167_spill] sm:$0xff] %v9742_v51 }
 0x1d7   : > { %6307 = vmatpush1.bf16.msra.mxu1 %v6306_v45  ;;  %v9726_v45 = vsel %vm415_vm0, %v13860_v48, 0.0  ;;  %v1238_v48 = vld [vmem:[%s13066_s2 + $0xf0] sm:$0xff] }
 0x1d8   : > { %2601 = vmatmul.mubr.f32.gmra.mrb[56].mxu0 %v9681_v50  ;;  %6308 = vmatprep.subr.bf16.mxu1 %v13608_v9  ;;  %v1186_v50 = vrot.slane %v9726_v45, 1 }
 0x1d9   : > { %2605 = vmatprep.mubr.f32.mxu0 %v9684_v3  ;;  %v9731_v3 = vsel %vm740_vm3, %v1180_v14, %v1181_v33 }
 0x1da   : > { %13861 = vst [vmem:[#allocation166_spill] sm:$0xff] %v9731_v3  ;;  %v9747_v14 = vsel %vm740_vm3, %v1181_v33, %v1186_v50  ;;  %v6315_v33 = vpack.c.bf16 %v1239_v42, %v1238_v48  ;;  %v13864_v50 = vld [vmem:[#allocation18_spill] sm:$0xff]  ;;  %v13866_v48 = vld [vmem:[#allocation20_spill] sm:$0xff] }
 0x1db   : > { %6310 = vmatpush1.bf16.msra.mxu1 %v6309_v5  ;;  %13863 = vst [vmem:[#allocation168_spill] sm:$0xff] %v9747_v14  ;;  %v1401_v5 = vld [vmem:[%s13066_s2 + $0x608] sm:$0xff]  ;;  %v13867_v42 = vld [vmem:[#allocation22_spill] sm:$0xff] }
 0x1dc   : > { %2606 = vmatmul.mubr.f32.gmra.mrb[58].mxu0 %v9708_v38  ;;  %6311 = vmatprep.subr.bf16.mxu1 %v13608_v9  ;;  %v6558_v30 = vpack.c.bf16 %v1401_v5, %v1400_v40  ;;  %v1404_v5 = vld [vmem:[%s13066_s2 + $0x620] sm:$0xff] }
 0x1dd   : > { %2610 = vmatprep.mubr.f32.mxu0 %v9720_v31  ;;  %v13901_v31 = vld [vmem:[#allocation65_spill] sm:$0xff]  ;;  %v13906_v38 = vld [vmem:[#allocation96_spill] sm:$0xff] }
 0x1df   : > { %6313 = vmatpush1.bf16.msra.mxu1 %v6312_v39  ;;  %v1403_v39 = vld [vmem:[%s13066_s2 + $0x618] sm:$0xff] }
 0x1e0   : > { %2611 = vmatmul.mubr.f32.gmra.mrb[60].mxu0 %v9731_v3  ;;  %6314 = vmatprep.subr.bf16.mxu1 %v13608_v9  ;;  %v6561_v40 = vpack.c.bf16 %v1403_v39, %v1402_v55  ;;  %v1406_v39 = vld [vmem:[%s13066_s2 + $0x630] sm:$0xff]  ;;  %v13898_v3 = vld [vmem:[#allocation83_spill] sm:$0xff] }
 0x1e1   : > { %2615 = vmatprep.mubr.f32.mxu0 %v9742_v51  ;;  %v13865_v51 = vld [vmem:[#allocation8_spill] sm:$0xff] }
 0x1e3   : > { %6316 = vmatpush1.bf16.msra.mxu1 %v6315_v33  ;;  %v1405_v33 = vld [vmem:[%s13066_s2 + $0x628] sm:$0xff] }
 0x1e4   : > { %2616 = vmatmul.mubr.f32.gmra.mrb[62].mxu0 %v9747_v14  ;;  %6317 = vmatprep.subr.bf16.mxu1 %v13608_v9  ;;  %v6564_v55 = vpack.c.bf16 %v1405_v33, %v1404_v5  ;;  %v1408_v5 = vld [vmem:[%s13066_s2 + $0x640] sm:$0xff]  ;;  %v1409_v33 = vld [vmem:[%s13066_s2 + $0x648] sm:$0xff]  ;;  %v13895_v14 = vld [vmem:[#allocation55_spill] sm:$0xff] }
 0x1e5   : > { %2685 = vmatprep.mubr.f32.mxu0 %v13864_v50  ;;  %v13868_v50 = vld [vmem:[#allocation24_spill] sm:$0xff] }
 0x1e6   : > { %5847 = vmatmul.mubr.msk.f32.vlgmr.msra.gmra.mrb[0].mxu1 %vm8014_vm2, %v13865_v51 }
 0x1e7   : > { %1565 = vmatprep.mubr.f32.mxu1 %v13865_v51 }
 0x1e8   : > { %2686 = vmatmul.mubr.f32.vlgmr.msra.gmra.mrb[0].mxu0 %v13866_v48  ;;  %v1407_v48 = vld [vmem:[%s13066_s2 + $0x638] sm:$0xff] }
 0x1e9   : > { %6559 = vmatpush1.bf16.msra.mxu0 %v6558_v30  ;;  %2690 = vmatprep.mubr.f32.mxu0 %v13867_v42  ;;  %v13869_v30 = vld [vmem:[#allocation26_spill] sm:$0xff]  ;;  %v13870_v42 = vld [vmem:[#allocation28_spill] sm:$0xff] }
 0x1ea   : > { %6560 = vmatprep.subr.bf16.mxu0 %v13608_v9  ;;  %1566 = vmatmul.mubr.f32.gmra.mrb[2].mxu1 %v13865_v51 }
 0x1eb   : > { %5849 = vmatprep.mubr.msk.f32.mxu1 %vm8014_vm2, %v7989_v57  ;;  %v13871_v57 = vld [vmem:[#allocation30_spill] sm:$0xff] }
 0x1ec   : > { %2691 = vmatmul.mubr.f32.gmra.mrb[2].mxu0 %v13868_v50  ;;  %v6570_v50 = vpack.c.bf16 %v1409_v33, %v1408_v5  ;;  %v1412_v5 = vld [vmem:[%s13066_s2 + $0x660] sm:$0xff]  ;;  %v1413_v33 = vld [vmem:[%s13066_s2 + $0x668] sm:$0xff] }
 0x1ed   : > { %2695 = vmatprep.mubr.f32.mxu0 %v13869_v30  ;;  %6562 = vmatpush1.bf16.msra.mxu0 %v6561_v40  ;;  %v6567_v40 = vpack.c.bf16 %v1407_v48, %v1406_v39  ;;  %v13874_v39 = vld [vmem:[#allocation38_spill] sm:$0xff]  ;;  %v13875_v48 = vld [vmem:[#allocation40_spill] sm:$0xff]  ;;  %v13892_v30 = vld [vmem:[#allocation73_spill] sm:$0xff] }
 0x1ee   : > { %6563 = vmatprep.subr.bf16.mxu0 %v13608_v9  ;;  %5851 = vmatmul.mubr.msk.f32.gmra.mrb[4].mxu1 %vm8014_vm2, %v8001_v1  ;;  %v13872_v1 = vld [vmem:[#allocation33_spill] sm:$0xff] }
 0x1ef   : > { %1575 = vmatprep.mubr.f32.mxu1 %v8005_v4  ;;  %v13873_v4 = vld [vmem:[#allocation36_spill] sm:$0xff] }
 0x1f0   : > { %2696 = vmatmul.mubr.f32.gmra.mrb[4].mxu0 %v13870_v42  ;;  %v13889_v42 = vld [vmem:[#allocation45_spill] sm:$0xff] }
 0x1f1   : > { %2700 = vmatprep.mubr.f32.mxu0 %v13871_v57  ;;  %6565 = vmatpush1.bf16.msra.mxu0 %v6564_v55  ;;  %v1410_v55 = vld [vmem:[%s13066_s2 + $0x650] sm:$0xff]  ;;  %v13886_v57 = vld [vmem:[#allocation63_spill] sm:$0xff] }
 0x1f2   : > { %6566 = vmatprep.subr.bf16.mxu0 %v13608_v9  ;;  %1576 = vmatmul.mubr.f32.gmra.mrb[6].mxu1 %v8037_v10  ;;  %v1411_v10 = vld [vmem:[%s13066_s2 + $0x658] sm:$0xff] }
 0x1f3   : > { %5853 = vmatprep.mubr.msk.f32.mxu1 %vm8014_vm2, %v8047_v22 }
 0x1f4   : > { %2701 = vmatmul.mubr.f32.gmra.mrb[6].mxu0 %v13872_v1  ;;  %v13883_v1 = vld [vmem:[#allocation35_spill] sm:$0xff] }
 0x1f5   : > { %2705 = vmatprep.mubr.f32.mxu0 %v13873_v4  ;;  %6568 = vmatpush1.bf16.msra.mxu0 %v6567_v40  ;;  %v6573_v40 = vpack.c.bf16 %v1411_v10, %v1410_v55  ;;  %v13876_v4 = vld [vmem:[#allocation43_spill] sm:$0xff]  ;;  %v6576_v55 = vpack.c.bf16 %v1413_v33, %v1412_v5  ;;  %v1414_v10 = vld [vmem:[%s13066_s2 + $0x670] sm:$0xff]  ;;  %v1416_v33 = vld [vmem:[%s13066_s2 + $0x680] sm:$0xff] }
 0x1f6   : > { %6569 = vmatprep.subr.bf16.mxu0 %v13608_v9  ;;  %5855 = vmatmul.mubr.msk.f32.gmra.mrb[8].mxu1 %vm8014_vm2, %v8057_v29 }
 0x1f7   : > { %1585 = vmatprep.mubr.f32.mxu1 %v8072_v35 }
 0x1f8   : > { %2706 = vmatmul.mubr.f32.gmra.mrb[8].mxu0 %v13874_v39  ;;  %v13880_v39 = vld [vmem:[#allocation53_spill] sm:$0xff] }
 0x1f9   : > { %2710 = vmatprep.mubr.f32.mxu0 %v13875_v48  ;;  %6571 = vmatpush1.bf16.msra.mxu0 %v6570_v50  ;;  %v13877_v50 = vld [vmem:[#allocation46_spill] sm:$0xff]  ;;  %v1415_v48 = vld [vmem:[%s13066_s2 + $0x678] sm:$0xff] }
 0x1fa   : > { %6572 = vmatprep.subr.bf16.mxu0 %v13608_v9  ;;  %1586 = vmatmul.mubr.f32.gmra.mrb[10].mxu1 %v8098_v47  ;;  %v6579_v5 = vpack.c.bf16 %v1415_v48, %v1414_v10  ;;  %v1418_v10 = vld [vmem:[%s13066_s2 + $0x690] sm:$0xff] }
 0x1fb   : > { %5857 = vmatprep.mubr.msk.f32.mxu1 %vm8014_vm2, %v8111_v52 }
 0x1fc   : > { %2711 = vmatmul.mubr.f32.gmra.mrb[10].mxu0 %v13876_v4  ;;  %v13878_v4 = vld [vmem:[#allocation48_spill] sm:$0xff] }
 0x1fd   : > { %2715 = vmatprep.mubr.f32.mxu0 %v13877_v50  ;;  %6574 = vmatpush1.bf16.msra.mxu0 %v6573_v40  ;;  %v13879_v40 = vld [vmem:[#allocation50_spill] sm:$0xff]  ;;  %v1417_v50 = vld [vmem:[%s13066_s2 + $0x688] sm:$0xff] }
 0x1fe   : > { %6575 = vmatprep.subr.bf16.mxu0 %v13608_v9  ;;  %5859 = vmatmul.mubr.msk.f32.gmra.mrb[12].mxu1 %vm8014_vm2, %v8123_v60  ;;  %v6582_v48 = vpack.c.bf16 %v1417_v50, %v1416_v33  ;;  %v1420_v33 = vld [vmem:[%s13066_s2 + $0x6a0] sm:$0xff] }
 0x1ff   : > { %1595 = vmatprep.mubr.f32.mxu1 %v8138_v8 }
 0x200   : > { %2716 = vmatmul.mubr.f32.gmra.mrb[12].mxu0 %v13878_v4  ;;  %v13881_v4 = vld [vmem:[#allocation32_spill] sm:$0xff] }
 0x201   : > { %2720 = vmatprep.mubr.f32.mxu0 %v13879_v40  ;;  %6577 = vmatpush1.bf16.msra.mxu0 %v6576_v55  ;;  %v13882_v55 = vld [vmem:[#allocation56_spill] sm:$0xff]  ;;  %v1419_v40 = vld [vmem:[%s13066_s2 + $0x698] sm:$0xff] }
 0x202   : > { %6578 = vmatprep.subr.bf16.mxu0 %v13608_v9  ;;  %1596 = vmatmul.mubr.f32.gmra.mrb[14].mxu1 %v8154_v20  ;;  %v6585_v50 = vpack.c.bf16 %v1419_v40, %v1418_v10  ;;  %v1422_v10 = vld [vmem:[%s13066_s2 + $0x6b0] sm:$0xff] }
 0x203   : > { %5861 = vmatprep.mubr.msk.f32.mxu1 %vm8014_vm2, %v13881_v4 }
 0x204   : > { %2721 = vmatmul.mubr.f32.gmra.mrb[14].mxu0 %v13880_v39  ;;  %v13884_v39 = vld [vmem:[#allocation58_spill] sm:$0xff] }
 0x205   : > { %2725 = vmatprep.mubr.f32.mxu0 %v13882_v55  ;;  %6580 = vmatpush1.bf16.msra.mxu0 %v6579_v5  ;;  %v13885_v5 = vld [vmem:[#allocation60_spill] sm:$0xff]  ;;  %v1421_v55 = vld [vmem:[%s13066_s2 + $0x6a8] sm:$0xff] }
 0x206   : > { %6581 = vmatprep.subr.bf16.mxu0 %v13608_v9  ;;  %5863 = vmatmul.mubr.msk.f32.gmra.mrb[16].mxu1 %vm8014_vm2, %v13883_v1  ;;  %v6588_v40 = vpack.c.bf16 %v1421_v55, %v1420_v33  ;;  %v1424_v33 = vld [vmem:[%s13066_s2 + $0x6c0] sm:$0xff] }
 0x207   : > { %1605 = vmatprep.mubr.f32.mxu1 %v8204_v62 }
 0x208   : > { %2726 = vmatmul.mubr.f32.gmra.mrb[16].mxu0 %v13884_v39  ;;  %v13887_v39 = vld [vmem:[#allocation42_spill] sm:$0xff] }
 0x209   : > { %2730 = vmatprep.mubr.f32.mxu0 %v13885_v5  ;;  %6583 = vmatpush1.bf16.msra.mxu0 %v6582_v48  ;;  %v13888_v48 = vld [vmem:[#allocation66_spill] sm:$0xff]  ;;  %v1423_v5 = vld [vmem:[%s13066_s2 + $0x6b8] sm:$0xff] }
 0x20a   : > { %6584 = vmatprep.subr.bf16.mxu0 %v13608_v9  ;;  %1606 = vmatmul.mubr.f32.gmra.mrb[18].mxu1 %v8220_v17  ;;  %v6591_v55 = vpack.c.bf16 %v1423_v5, %v1422_v10  ;;  %v1426_v10 = vld [vmem:[%s13066_s2 + $0x6d0] sm:$0xff] }
 0x20b   : > { %5865 = vmatprep.mubr.msk.f32.mxu1 %vm8014_vm2, %v13887_v39 }
 0x20c   : > { %2731 = vmatmul.mubr.f32.gmra.mrb[18].mxu0 %v13886_v57  ;;  %v13890_v57 = vld [vmem:[#allocation68_spill] sm:$0xff] }
 0x20d   : > { %2735 = vmatprep.mubr.f32.mxu0 %v13888_v48  ;;  %6586 = vmatpush1.bf16.msra.mxu0 %v6585_v50  ;;  %v13891_v50 = vld [vmem:[#allocation70_spill] sm:$0xff]  ;;  %v1425_v48 = vld [vmem:[%s13066_s2 + $0x6c8] sm:$0xff] }
 0x20e   : > { %6587 = vmatprep.subr.bf16.mxu0 %v13608_v9  ;;  %5867 = vmatmul.mubr.msk.f32.gmra.mrb[20].mxu1 %vm8014_vm2, %v13889_v42  ;;  %v6594_v5 = vpack.c.bf16 %v1425_v48, %v1424_v33  ;;  %v1428_v33 = vld [vmem:[%s13066_s2 + $0x6e0] sm:$0xff] }
 0x20f   : > { %1615 = vmatprep.mubr.f32.mxu1 %v8270_v25 }
 0x210   : > { %2736 = vmatmul.mubr.f32.gmra.mrb[20].mxu0 %v13890_v57  ;;  %v13893_v57 = vld [vmem:[#allocation52_spill] sm:$0xff] }
 0x211   : > { %2740 = vmatprep.mubr.f32.mxu0 %v13891_v50  ;;  %6589 = vmatpush1.bf16.msra.mxu0 %v6588_v40  ;;  %v13894_v40 = vld [vmem:[#allocation76_spill] sm:$0xff]  ;;  %v1427_v50 = vld [vmem:[%s13066_s2 + $0x6d8] sm:$0xff] }
 0x212   : > { %6590 = vmatprep.subr.bf16.mxu0 %v13608_v9  ;;  %1616 = vmatmul.mubr.f32.gmra.mrb[22].mxu1 %v8286_v16  ;;  %v6597_v48 = vpack.c.bf16 %v1427_v50, %v1426_v10  ;;  %v1430_v10 = vld [vmem:[%s13066_s2 + $0x6f0] sm:$0xff] }
 0x213   : > { %5869 = vmatprep.mubr.msk.f32.mxu1 %vm8014_vm2, %v13893_v57 }
 0x214   : > { %2741 = vmatmul.mubr.f32.gmra.mrb[22].mxu0 %v13892_v30  ;;  %v13896_v30 = vld [vmem:[#allocation78_spill] sm:$0xff] }
 0x215   : > { %2745 = vmatprep.mubr.f32.mxu0 %v13894_v40  ;;  %6592 = vmatpush1.bf16.msra.mxu0 %v6591_v55  ;;  %v13897_v55 = vld [vmem:[#allocation80_spill] sm:$0xff]  ;;  %v1429_v40 = vld [vmem:[%s13066_s2 + $0x6e8] sm:$0xff] }
 0x216   : > { %6593 = vmatprep.subr.bf16.mxu0 %v13608_v9  ;;  %5871 = vmatmul.mubr.msk.f32.gmra.mrb[24].mxu1 %vm8014_vm2, %v13895_v14  ;;  %v6600_v50 = vpack.c.bf16 %v1429_v40, %v1428_v33  ;;  %v13904_v33 = vld [vmem:[#allocation93_spill] sm:$0xff] }
 0x217   : > { %1625 = vmatprep.mubr.f32.mxu1 %v8336_v59 }
 0x218   : > { %2746 = vmatmul.mubr.f32.gmra.mrb[24].mxu0 %v13896_v30  ;;  %v13899_v30 = vld [vmem:[#allocation62_spill] sm:$0xff] }
 0x219   : > { %2750 = vmatprep.mubr.f32.mxu0 %v13897_v55  ;;  %6595 = vmatpush1.bf16.msra.mxu0 %v6594_v5  ;;  %v13900_v5 = vld [vmem:[#allocation86_spill] sm:$0xff]  ;;  %v1431_v55 = vld [vmem:[%s13066_s2 + $0x6f8] sm:$0xff] }
 0x21a   : > { %6596 = vmatprep.subr.bf16.mxu0 %v13608_v9  ;;  %1626 = vmatmul.mubr.f32.gmra.mrb[26].mxu1 %v8352_v43  ;;  %v6603_v40 = vpack.c.bf16 %v1431_v55, %v1430_v10  ;;  %v1241_v55 = vld [vmem:[%s13066_s2 + $0x108] sm:$0xff]  ;;  %v13907_v10 = vld [vmem:[#allocation75_spill] sm:$0xff] }
 0x21b   : > { %5873 = vmatprep.mubr.msk.f32.mxu1 %vm8014_vm2, %v13899_v30 }
 0x21c   : > { %2751 = vmatmul.mubr.f32.gmra.mrb[26].mxu0 %v13898_v3  ;;  %v13902_v3 = vld [vmem:[#allocation88_spill] sm:$0xff] }
 0x21d   : > { %2755 = vmatprep.mubr.f32.mxu0 %v13900_v5  ;;  %6598 = vmatpush1.bf16.msra.mxu0 %v6597_v48  ;;  %v13903_v48 = vld [vmem:[#allocation90_spill] sm:$0xff]  ;;  %v13905_v5 = vld [vmem:[#allocation72_spill] sm:$0xff] }
 0x21e   : > { %6599 = vmatprep.subr.bf16.mxu0 %v13608_v9  ;;  %5875 = vmatmul.mubr.msk.f32.gmra.mrb[28].mxu1 %vm8014_vm2, %v13901_v31 }
 0x21f   : > { %1635 = vmatprep.mubr.f32.mxu1 %v8402_v2 }
 0x220   : > { %2756 = vmatmul.mubr.f32.gmra.mrb[28].mxu0 %v13902_v3  ;;  %v1240_v3 = vld [vmem:[%s13066_s2 + $0x100] sm:$0xff] }
 0x221   : > { %2760 = vmatprep.mubr.f32.mxu0 %v13903_v48  ;;  %6601 = vmatpush1.bf16.msra.mxu0 %v6600_v50  ;;  %v6318_v50 = vpack.c.bf16 %v1241_v55, %v1240_v3  ;;  %v1243_v48 = vld [vmem:[%s13066_s2 + $0x118] sm:$0xff] }
 0x222   : > { %6602 = vmatprep.subr.bf16.mxu0 %v13608_v9  ;;  %1636 = vmatmul.mubr.f32.gmra.mrb[30].mxu1 %v8418_v61  ;;  %v13910_v55 = vld [vmem:[#allocation103_spill] sm:$0xff] }
 0x223   : > { %5877 = vmatprep.mubr.msk.f32.mxu1 %vm8014_vm2, %v13905_v5  ;;  %6319 = vmatpush1.bf16.msra.mxu1 %v6318_v50  ;;  %v13911_v50 = vld [vmem:[#allocation106_spill] sm:$0xff] }
 0x224   : > { %2761 = vmatmul.mubr.f32.gmra.mrb[30].mxu0 %v13904_v33  ;;  %v13908_v33 = vld [vmem:[#allocation98_spill] sm:$0xff]  ;;  %6320 = vmatprep.subr.bf16.mxu1 %v13608_v9 }
 0x225   : > { %2765 = vmatprep.mubr.f32.mxu0 %v13906_v38  ;;  %6604 = vmatpush1.bf16.msra.mxu0 %v6603_v40  ;;  %v13909_v38 = vld [vmem:[#allocation99_spill] sm:$0xff]  ;;  %v1242_v40 = vld [vmem:[%s13066_s2 + $0x110] sm:$0xff] }
 0x226   : > { %6605 = vmatprep.subr.bf16.mxu0 %v13608_v9  ;;  %5879 = vmatmul.mubr.msk.f32.gmra.mrb[32].mxu1 %vm8014_vm2, %v13907_v10  ;;  %v6321_v3 = vpack.c.bf16 %v1243_v48, %v1242_v40  ;;  %v13913_v40 = vld [vmem:[#allocation85_spill] sm:$0xff] }
 0x227   : > { %1645 = vmatprep.mubr.f32.mxu1 %v8468_v13 }
 0x228   : > { %2766 = vmatmul.mubr.f32.gmra.mrb[32].mxu0 %v13908_v33  ;;  %6322 = vmatpush1.bf16.msra.mxu1 %v6321_v3  ;;  %v1244_v33 = vld [vmem:[%s13066_s2 + $0x120] sm:$0xff]  ;;  %v13914_v3 = vld [vmem:[#allocation109_spill] sm:$0xff] }
 0x229   : > { %2770 = vmatprep.mubr.f32.mxu0 %v13909_v38  ;;  %v13912_v38 = vld [vmem:[#allocation82_spill] sm:$0xff]  ;;  %6323 = vmatprep.subr.bf16.mxu1 %v13608_v9  ;;  %v6324_v48 = vpack.c.bf16 %v1245_v6, %v1244_v33  ;;  %v13916_v33 = vld [vmem:[#allocation115_spill] sm:$0xff] }
 0x22a   : > { %1646 = vmatmul.mubr.f32.gmra.mrb[34].mxu1 %v8484_v49 }
 0x22b   : > { %5881 = vmatprep.mubr.msk.f32.mxu1 %vm8014_vm2, %v13912_v38 }
 0x22c   : > { %2771 = vmatmul.mubr.f32.gmra.mrb[34].mxu0 %v13910_v55  ;;  %6325 = vmatpush1.bf16.msra.mxu1 %v6324_v48  ;;  %v1246_v55 = vld [vmem:[%s13066_s2 + $0x130] sm:$0xff] }
 0x22d   : > { %2775 = vmatprep.mubr.f32.mxu0 %v13911_v50  ;;  %v13915_v50 = vld [vmem:[#allocation110_spill] sm:$0xff]  ;;  %6326 = vmatprep.subr.bf16.mxu1 %v13608_v9  ;;  %v6327_v6 = vpack.c.bf16 %v1247_v18, %v1246_v55  ;;  %v13919_v55 = vld [vmem:[#allocation95_spill] sm:$0xff] }
 0x22e   : > { %5883 = vmatmul.mubr.msk.f32.gmra.mrb[36].mxu1 %vm8014_vm2, %v13913_v40  ;;  %v13917_v48 = vld [vmem:[#allocation118_spill] sm:$0xff] }
 0x22f   : > { %1655 = vmatprep.mubr.f32.mxu1 %v8528_v24 }
 0x230   : > { %2776 = vmatmul.mubr.f32.gmra.mrb[36].mxu0 %v13914_v3  ;;  %6328 = vmatpush1.bf16.msra.mxu1 %v6327_v6  ;;  %v1248_v3 = vld [vmem:[%s13066_s2 + $0x140] sm:$0xff]  ;;  %v13920_v6 = vld [vmem:[#allocation121_spill] sm:$0xff] }
 0x231   : > { %2780 = vmatprep.mubr.f32.mxu0 %v13915_v50  ;;  %v13918_v50 = vld [vmem:[#allocation92_spill] sm:$0xff]  ;;  %6329 = vmatprep.subr.bf16.mxu1 %v13608_v9  ;;  %v6330_v18 = vpack.c.bf16 %v1249_v15, %v1248_v3  ;;  %v13922_v3 = vld [vmem:[#allocation127_spill] sm:$0xff] }
 0x232   : > { %1656 = vmatmul.mubr.f32.gmra.mrb[38].mxu1 %v8544_v32 }
 0x233   : > { %5885 = vmatprep.mubr.msk.f32.mxu1 %vm8014_vm2, %v13918_v50 }
 0x234   : > { %2781 = vmatmul.mubr.f32.gmra.mrb[38].mxu0 %v13916_v33  ;;  %6331 = vmatpush1.bf16.msra.mxu1 %v6330_v18  ;;  %v1250_v33 = vld [vmem:[%s13066_s2 + $0x150] sm:$0xff]  ;;  %v13923_v18 = vld [vmem:[#allocation128_spill] sm:$0xff] }
 0x235   : > { %2785 = vmatprep.mubr.f32.mxu0 %v13917_v48  ;;  %v13921_v48 = vld [vmem:[#allocation122_spill] sm:$0xff]  ;;  %6332 = vmatprep.subr.bf16.mxu1 %v13608_v9  ;;  %v6333_v15 = vpack.c.bf16 %v1251_v26, %v1250_v33  ;;  %v13925_v33 = vld [vmem:[#allocation105_spill] sm:$0xff] }
 0x236   : > { %5887 = vmatmul.mubr.msk.f32.gmra.mrb[40].mxu1 %vm8014_vm2, %v13919_v55 }
 0x237   : > { %1665 = vmatprep.mubr.f32.mxu1 %v8581_v0 }
 0x238   : > { %2786 = vmatmul.mubr.f32.gmra.mrb[40].mxu0 %v13920_v6  ;;  %6334 = vmatpush1.bf16.msra.mxu1 %v6333_v15  ;;  %v1252_v6 = vld [vmem:[%s13066_s2 + $0x160] sm:$0xff]  ;;  %v13926_v15 = vld [vmem:[#allocation133_spill] sm:$0xff] }
 0x239   : > { %2790 = vmatprep.mubr.f32.mxu0 %v13921_v48  ;;  %v13924_v48 = vld [vmem:[#allocation102_spill] sm:$0xff]  ;;  %6335 = vmatprep.subr.bf16.mxu1 %v13608_v9  ;;  %v6336_v26 = vpack.c.bf16 %v1253_v34, %v1252_v6  ;;  %v13928_v6 = vld [vmem:[#allocation139_spill] sm:$0xff] }
 0x23a   : > { %1666 = vmatmul.mubr.f32.gmra.mrb[42].mxu1 %v8600_v63 }
 0x23b   : > { %5889 = vmatprep.mubr.msk.f32.mxu1 %vm8014_vm2, %v13924_v48  ;;  %v1255_v48 = vld [vmem:[%s13066_s2 + $0x178] sm:$0xff] }
 0x23c   : > { %2791 = vmatmul.mubr.f32.gmra.mrb[42].mxu0 %v13922_v3  ;;  %6337 = vmatpush1.bf16.msra.mxu1 %v6336_v26  ;;  %v1254_v3 = vld [vmem:[%s13066_s2 + $0x170] sm:$0xff]  ;;  %v13929_v26 = vld [vmem:[#allocation141_spill] sm:$0xff] }
 0x23d   : > { %2795 = vmatprep.mubr.f32.mxu0 %v13923_v18  ;;  %v13927_v18 = vld [vmem:[#allocation134_spill] sm:$0xff]  ;;  %6338 = vmatprep.subr.bf16.mxu1 %v13608_v9  ;;  %v6339_v34 = vpack.c.bf16 %v1255_v48, %v1254_v3  ;;  %v13931_v3 = vld [vmem:[#allocation117_spill] sm:$0xff] }
 0x23e   : > { %5891 = vmatmul.mubr.msk.f32.gmra.mrb[44].mxu1 %vm8014_vm2, %v13925_v33 }
 0x23f   : > { %1675 = vmatprep.mubr.f32.mxu1 %v13725_v37  ;;  %v1257_v37 = vld [vmem:[%s13066_s2 + $0x188] sm:$0xff] }
 0x240   : > { %2796 = vmatmul.mubr.f32.gmra.mrb[44].mxu0 %v13926_v15  ;;  %6340 = vmatpush1.bf16.msra.mxu1 %v6339_v34  ;;  %v1256_v15 = vld [vmem:[%s13066_s2 + $0x180] sm:$0xff]  ;;  %v13932_v34 = vld [vmem:[#allocation145_spill] sm:$0xff] }
 0x241   : > { %2800 = vmatprep.mubr.f32.mxu0 %v13927_v18  ;;  %v13930_v18 = vld [vmem:[#allocation114_spill] sm:$0xff]  ;;  %6341 = vmatprep.subr.bf16.mxu1 %v13608_v9  ;;  %v6342_v48 = vpack.c.bf16 %v1257_v37, %v1256_v15 }
 0x242   : > { %1676 = vmatmul.mubr.f32.gmra.mrb[46].mxu1 %v13726_v46  ;;  %v13934_v15 = vld [vmem:[#allocation150_spill] sm:$0xff] }
 0x243   : > { %5893 = vmatprep.mubr.msk.f32.mxu1 %vm8014_vm2, %v13930_v18  ;;  %v1259_v18 = vld [vmem:[%s13066_s2 + $0x198] sm:$0xff] }
 0x244   : > { %2801 = vmatmul.mubr.f32.gmra.mrb[46].mxu0 %v13928_v6  ;;  %6343 = vmatpush1.bf16.msra.mxu1 %v6342_v48  ;;  %v1258_v6 = vld [vmem:[%s13066_s2 + $0x190] sm:$0xff]  ;;  %v13935_v48 = vld [vmem:[#allocation151_spill] sm:$0xff] }
 0x245   : > { %2805 = vmatprep.mubr.f32.mxu0 %v13929_v26  ;;  %v13933_v26 = vld [vmem:[#allocation146_spill] sm:$0xff]  ;;  %6344 = vmatprep.subr.bf16.mxu1 %v13608_v9  ;;  %v6345_v37 = vpack.c.bf16 %v1259_v18, %v1258_v6  ;;  %v13937_v6 = vld [vmem:[#allocation132_spill] sm:$0xff] }
 0x246   : > { %5895 = vmatmul.mubr.msk.f32.gmra.mrb[48].mxu1 %vm8014_vm2, %v13931_v3 }
 0x247   : > { %1685 = vmatprep.mubr.f32.mxu1 %v13729_v54  ;;  %v1261_v54 = vld [vmem:[%s13066_s2 + $0x1a8] sm:$0xff] }
 0x248   : > { %2806 = vmatmul.mubr.f32.gmra.mrb[48].mxu0 %v13932_v34  ;;  %6346 = vmatpush1.bf16.msra.mxu1 %v6345_v37  ;;  %v1260_v34 = vld [vmem:[%s13066_s2 + $0x1a0] sm:$0xff]  ;;  %v13938_v37 = vld [vmem:[#allocation155_spill] sm:$0xff] }
 0x249   : > { %2810 = vmatprep.mubr.f32.mxu0 %v13933_v26  ;;  %v13936_v26 = vld [vmem:[#allocation126_spill] sm:$0xff]  ;;  %6347 = vmatprep.subr.bf16.mxu1 %v13608_v9  ;;  %v6348_v18 = vpack.c.bf16 %v1261_v54, %v1260_v34  ;;  %v13940_v34 = vld [vmem:[#allocation157_spill] sm:$0xff] }
 0x24a   : > { %1686 = vmatmul.mubr.f32.gmra.mrb[50].mxu1 %v13730_v53 }
 0x24b   : > { %5897 = vmatprep.mubr.msk.f32.mxu1 %vm8014_vm2, %v13936_v26  ;;  %v1263_v26 = vld [vmem:[%s13066_s2 + $0x1b8] sm:$0xff] }
 0x24c   : > { %2811 = vmatmul.mubr.f32.gmra.mrb[50].mxu0 %v13934_v15  ;;  %6349 = vmatpush1.bf16.msra.mxu1 %v6348_v18  ;;  %v1262_v15 = vld [vmem:[%s13066_s2 + $0x1b0] sm:$0xff] }
 0x24d   : > { %2815 = vmatprep.mubr.f32.mxu0 %v13935_v48  ;;  %v13939_v48 = vld [vmem:[#allocation156_spill] sm:$0xff]  ;;  %6350 = vmatprep.subr.bf16.mxu1 %v13608_v9  ;;  %v6351_v54 = vpack.c.bf16 %v1263_v26, %v1262_v15  ;;  %v13941_v18 = vld [vmem:[#allocation158_spill] sm:$0xff]  ;;  %v1197_v26 = vrot.slane %v9676_v7, 2  ;;  %v1198_v15 = vrot.slane %v9151_v56, 2  ;;  %v13949_v56 = vld [vmem:[#allocation149_spill] sm:$0xff] }
 0x24e   : > { %5899 = vmatmul.mubr.msk.f32.gmra.mrb[52].mxu1 %vm8014_vm2, %v13937_v6  ;;  %v1195_v6 = vrot.slane %v9164_v44, 2  ;;  %v1266_v7 = vld [vmem:[%s13066_s2 + $0x1d0] sm:$0xff]  ;;  %v1200_v44 = vrot.slane %v9726_v45, 2 }
 0x24f   : > { %1695 = vmatprep.mubr.f32.mxu1 %v13733_v27  ;;  %v1265_v27 = vld [vmem:[%s13066_s2 + $0x1c8] sm:$0xff] }
 0x250   : > { %2816 = vmatmul.mubr.f32.gmra.mrb[52].mxu0 %v13938_v37  ;;  %6352 = vmatpush1.bf16.msra.mxu1 %v6351_v54  ;;  %v1264_v37 = vld [vmem:[%s13066_s2 + $0x1c0] sm:$0xff]  ;;  %v10176_v45 = vsel %vm958_vm1, %v1195_v6, %v1200_v44 }
 0x251   : > { %2820 = vmatprep.mubr.f32.mxu0 %v13939_v48  ;;  %v13942_v48 = vld [vmem:[#allocation138_spill] sm:$0xff]  ;;  %6353 = vmatprep.subr.bf16.mxu1 %v13608_v9  ;;  %v6354_v54 = vpack.c.bf16 %v1265_v27, %v1264_v37  ;;  %v1267_v27 = vld [vmem:[%s13066_s2 + $0x1d8] sm:$0xff]  ;;  %v10146_v37 = vsel %vm958_vm1, %v1197_v26, %v1198_v15  ;;  %v1269_v26 = vld [vmem:[%s13066_s2 + $0x1e8] sm:$0xff]  ;;  %13952 = vst [vmem:[#allocation24_spill] sm:$0xff] %v10176_v45 }
 0x252   : > { %1696 = vmatmul.mubr.f32.gmra.mrb[54].mxu1 %v13734_v41  ;;  %v1194_v41 = vrot.slane %v9698_v36, 2  ;;  %13946 = vst [vmem:[#allocation18_spill] sm:$0xff] %v10146_v37  ;;  %v6357_v36 = vpack.c.bf16 %v1267_v27, %v1266_v7  ;;  %v13951_v27 = vld [vmem:[#allocation153_spill] sm:$0xff] }
 0x253   : > { %5901 = vmatprep.mubr.msk.f32.mxu1 %vm8014_vm2, %v13942_v48  ;;  %v13945_v48 = vld [vmem:[#allocation160_spill] sm:$0xff] }
 0x254   : > { %2821 = vmatmul.mubr.f32.gmra.mrb[54].mxu0 %v13940_v34  ;;  %v13944_v34 = vld [vmem:[#allocation159_spill] sm:$0xff]  ;;  %6355 = vmatpush1.bf16.msra.mxu1 %v6354_v54  ;;  %v1202_v54 = vrot.slane %v9703_v12, 2  ;;  %v1268_v12 = vld [vmem:[%s13066_s2 + $0x1e0] sm:$0xff] }
 0x255   : > { %2825 = vmatprep.mubr.f32.mxu0 %v13941_v18  ;;  %v13943_v18 = vld [vmem:[#allocation143_spill] sm:$0xff]  ;;  %6356 = vmatprep.subr.bf16.mxu1 %v13608_v9 }
 0x256   : > { %5903 = vmatmul.mubr.msk.f32.gmra.mrb[56].mxu1 %vm8014_vm2, %v13943_v18  ;;  %v10167_v7 = vsel %vm958_vm1, %v1198_v15, %v1202_v54  ;;  %v1270_v15 = vld [vmem:[%s13066_s2 + $0x1f0] sm:$0xff]  ;;  %v1271_v54 = vld [vmem:[%s13066_s2 + $0x1f8] sm:$0xff] }
 0x257   : > { %1705 = vmatprep.mubr.f32.mxu1 %v13737_v28  ;;  %13950 = vst [vmem:[#allocation22_spill] sm:$0xff] %v10167_v7  ;;  %v6363_v44 = vpack.c.bf16 %v1271_v54, %v1270_v15  ;;  %v1434_v15 = vld [vmem:[%s13066_s2 + $0x710] sm:$0xff]  ;;  %v1435_v54 = vld [vmem:[%s13066_s2 + $0x718] sm:$0xff] }
 0x258   : > { %2826 = vmatmul.mubr.f32.gmra.mrb[56].mxu0 %v13944_v34  ;;  %6358 = vmatpush1.bf16.msra.mxu1 %v6357_v36  ;;  %v10154_v34 = vsel %vm958_vm1, %v1194_v41, %v1195_v6  ;;  %v6360_v41 = vpack.c.bf16 %v1269_v26, %v1268_v12  ;;  %v1432_v36 = vld [vmem:[%s13066_s2 + $0x700] sm:$0xff]  ;;  %v1433_v12 = vld [vmem:[%s13066_s2 + $0x708] sm:$0xff] }
 0x259   : > { %2830 = vmatprep.mubr.f32.mxu0 %v13945_v48  ;;  %v13947_v48 = vld [vmem:[#allocation161_spill] sm:$0xff]  ;;  %13948 = vst [vmem:[#allocation20_spill] sm:$0xff] %v10154_v34  ;;  %6359 = vmatprep.subr.bf16.mxu1 %v13608_v9 }
 0x25a   : > { %1706 = vmatmul.mubr.f32.gmra.mrb[58].mxu1 %v8810_v21  ;;  %v13953_v6 = vld [vmem:[#allocation9_spill] sm:$0xff] }
 0x25b   : > { %5905 = vmatprep.mubr.msk.f32.mxu1 %vm8014_vm2, %v13949_v56  ;;  %v741_v26 = vrot.slane %v13953_v6, 1  ;;  %v1436_v6 = vld [vmem:[%s13066_s2 + $0x720] sm:$0xff] }
 0x25c   : > { %2831 = vmatmul.mubr.f32.gmra.mrb[58].mxu0 %v13947_v48  ;;  %6361 = vmatpush1.bf16.msra.mxu1 %v6360_v41  ;;  %v742_v41 = vrot.slane %v13865_v51, 1  ;;  %v1466_v48 = vld [vmem:[%s13066_s2 + $0x810] sm:$0xff] }
 0x25d   : > { %2835 = vmatprep.mubr.f32.mxu0 %v10146_v37  ;;  %6362 = vmatprep.subr.bf16.mxu1 %v13608_v9  ;;  %v14028_v37 = vld [vmem:[#allocation164_spill] sm:$0xff] }
 0x25e   : > { %5907 = vmatmul.mubr.msk.f32.gmra.mrb[60].mxu1 %vm8014_vm2, %v13951_v27 }
 0x25f   : > { %1715 = vmatprep.mubr.f32.mxu1 %v8841_v58 }
 0x260   : > { %2836 = vmatmul.mubr.f32.gmra.mrb[60].mxu0 %v10154_v34  ;;  %6364 = vmatpush1.bf16.msra.mxu1 %v6363_v44  ;;  %v10200_v34 = vsel %vm740_vm3, %v741_v26, %v742_v41  ;;  %v13955_v44 = vld [vmem:[#allocation11_spill] sm:$0xff]  ;;  %v1437_v26 = vld [vmem:[%s13066_s2 + $0x728] sm:$0xff] }
 0x261   : > { %2840 = vmatprep.mubr.f32.mxu0 %v10167_v7  ;;  %v6606_v7 = vpack.c.bf16 %v1433_v12, %v1432_v36  ;;  %13954 = vst [vmem:[#allocation32_spill] sm:$0xff] %v10200_v34  ;;  %6701 = vmatprep.subr.bf16.mxu1 %v13608_v9  ;;  %v6609_v36 = vpack.c.bf16 %v1435_v54, %v1434_v15  ;;  %v13958_v15 = vld [vmem:[#allocation16_spill] sm:$0xff] }
 0x262   : > { %1716 = vmatmul.mubr.f32.gmra.mrb[62].mxu1 %v8860_v19  ;;  %v1440_v54 = vld [vmem:[%s13066_s2 + $0x740] sm:$0xff] }
 0x263   : > { %1785 = vmatprep.mubr.f32.mxu1 %v10200_v34 }
 0x264   : > { %2841 = vmatmul.mubr.f32.gmra.mrb[62].mxu0 %v10176_v45  ;;  %v14024_v45 = vld [vmem:[#allocation12_spill] sm:$0xff] }
 0x265   : > { %5973 = vmatprep.mubr.msk.f32.mxu0 %vm8014_vm2, %v8047_v22  ;;  %v744_v22 = vrot.slane %v13955_v44, 1  ;;  %v1441_v44 = vld [vmem:[%s13066_s2 + $0x748] sm:$0xff] }
 0x266   : > { %1786 = vmatmul.mubr.f32.vlgmr.msra.gmra.mrb[0].mxu1 %v10200_v34 }
 0x267   : > { %v10217_v12 = vsel %vm740_vm3, %v742_v41, %v744_v22  ;;  %v1439_v41 = vld [vmem:[%s13066_s2 + $0x738] sm:$0xff] }
 0x268   : > { %5975 = vmatmul.mubr.msk.f32.vlgmr.msra.gmra.mrb[0].mxu0 %vm8014_vm2, %v8057_v29  ;;  %13956 = vst [vmem:[#allocation35_spill] sm:$0xff] %v10217_v12  ;;  %1790 = vmatprep.mubr.f32.mxu1 %v10217_v12  ;;  %v13957_v29 = vld [vmem:[#allocation15_spill] sm:$0xff] }
 0x269   : > { %6607 = vmatpush1.bf16.msra.mxu0 %v6606_v7  ;;  %2915 = vmatprep.mubr.f32.mxu0 %v8072_v35  ;;  %v6612_v35 = vpack.c.bf16 %v1437_v26, %v1436_v6  ;;  %v1438_v7 = vld [vmem:[%s13066_s2 + $0x730] sm:$0xff]  ;;  %v13960_v22 = vld [vmem:[#allocation19_spill] sm:$0xff] }
 0x26a   : > { %6608 = vmatprep.subr.bf16.mxu0 %v13608_v9  ;;  %1791 = vmatmul.mubr.f32.gmra.mrb[2].mxu1 %v10217_v12  ;;  %v1443_v6 = vld [vmem:[%s13066_s2 + $0x758] sm:$0xff] }
 0x26b   : > { %1795 = vmatprep.mubr.f32.mxu1 %v13957_v29  ;;  %v13962_v26 = vld [vmem:[#allocation23_spill] sm:$0xff]  ;;  %v1444_v29 = vld [vmem:[%s13066_s2 + $0x760] sm:$0xff] }
 0x26c   : > { %2916 = vmatmul.mubr.f32.gmra.mrb[2].mxu0 %v8098_v47  ;;  %v13959_v47 = vld [vmem:[#allocation17_spill] sm:$0xff]  ;;  %v1467_v12 = vld [vmem:[%s13066_s2 + $0x818] sm:$0xff] }
 0x26d   : > { %5977 = vmatprep.mubr.msk.f32.mxu0 %vm8014_vm2, %v8111_v52  ;;  %6610 = vmatpush1.bf16.msra.mxu0 %v6609_v36  ;;  %v6615_v52 = vpack.c.bf16 %v1439_v41, %v1438_v7  ;;  %v1442_v36 = vld [vmem:[%s13066_s2 + $0x750] sm:$0xff]  ;;  %v13964_v7 = vld [vmem:[#allocation27_spill] sm:$0xff] }
 0x26e   : > { %6611 = vmatprep.subr.bf16.mxu0 %v13608_v9  ;;  %1796 = vmatmul.mubr.f32.gmra.mrb[4].mxu1 %v13958_v15  ;;  %v1446_v41 = vld [vmem:[%s13066_s2 + $0x770] sm:$0xff]  ;;  %v1447_v15 = vld [vmem:[%s13066_s2 + $0x778] sm:$0xff] }
 0x26f   : > { %1800 = vmatprep.mubr.f32.mxu1 %v13959_v47  ;;  %v13966_v47 = vld [vmem:[#allocation31_spill] sm:$0xff] }
 0x270   : > { %5979 = vmatmul.mubr.msk.f32.gmra.mrb[4].mxu0 %vm8014_vm2, %v8123_v60  ;;  %v13961_v60 = vld [vmem:[#allocation21_spill] sm:$0xff] }
 0x271   : > { %2925 = vmatprep.mubr.f32.mxu0 %v8138_v8  ;;  %6613 = vmatpush1.bf16.msra.mxu0 %v6612_v35  ;;  %v6618_v8 = vpack.c.bf16 %v1441_v44, %v1440_v54  ;;  %v1445_v35 = vld [vmem:[%s13066_s2 + $0x768] sm:$0xff] }
 0x272   : > { %6614 = vmatprep.subr.bf16.mxu0 %v13608_v9  ;;  %1801 = vmatmul.mubr.f32.gmra.mrb[6].mxu1 %v13960_v22  ;;  %v1449_v54 = vld [vmem:[%s13066_s2 + $0x788] sm:$0xff]  ;;  %v1450_v22 = vld [vmem:[%s13066_s2 + $0x790] sm:$0xff] }
 0x273   : > { %1805 = vmatprep.mubr.f32.mxu1 %v13961_v60  ;;  %v13968_v44 = vld [vmem:[#allocation37_spill] sm:$0xff] }
 0x274   : > { %2926 = vmatmul.mubr.f32.gmra.mrb[6].mxu0 %v8154_v20  ;;  %v13963_v20 = vld [vmem:[#allocation25_spill] sm:$0xff] }
 0x275   : > { %5981 = vmatprep.mubr.msk.f32.mxu0 %vm8014_vm2, %v13881_v4  ;;  %6616 = vmatpush1.bf16.msra.mxu0 %v6615_v52  ;;  %v6621_v4 = vpack.c.bf16 %v1443_v6, %v1442_v36  ;;  %v1448_v52 = vld [vmem:[%s13066_s2 + $0x780] sm:$0xff]  ;;  %v13970_v36 = vld [vmem:[#allocation41_spill] sm:$0xff] }
 0x276   : > { %6617 = vmatprep.subr.bf16.mxu0 %v13608_v9  ;;  %1806 = vmatmul.mubr.f32.gmra.mrb[8].mxu1 %v13962_v26  ;;  %v1452_v6 = vld [vmem:[%s13066_s2 + $0x7a0] sm:$0xff] }
 0x277   : > { %1810 = vmatprep.mubr.f32.mxu1 %v13963_v20 }
 0x278   : > { %5983 = vmatmul.mubr.msk.f32.gmra.mrb[8].mxu0 %vm8014_vm2, %v13883_v1  ;;  %v13965_v1 = vld [vmem:[#allocation29_spill] sm:$0xff] }
 0x279   : > { %2935 = vmatprep.mubr.f32.mxu0 %v8204_v62  ;;  %6619 = vmatpush1.bf16.msra.mxu0 %v6618_v8  ;;  %v6624_v62 = vpack.c.bf16 %v1445_v35, %v1444_v29  ;;  %v1451_v8 = vld [vmem:[%s13066_s2 + $0x798] sm:$0xff]  ;;  %v1454_v35 = vld [vmem:[%s13066_s2 + $0x7b0] sm:$0xff] }
 0x27a   : > { %6620 = vmatprep.subr.bf16.mxu0 %v13608_v9  ;;  %1811 = vmatmul.mubr.f32.gmra.mrb[10].mxu1 %v13964_v7  ;;  %v13972_v29 = vld [vmem:[#allocation47_spill] sm:$0xff] }
 0x27b   : > { %1815 = vmatprep.mubr.f32.mxu1 %v13965_v1 }
 0x27c   : > { %2936 = vmatmul.mubr.f32.gmra.mrb[10].mxu0 %v8220_v17  ;;  %v13967_v17 = vld [vmem:[#allocation34_spill] sm:$0xff] }
 0x27d   : > { %5985 = vmatprep.mubr.msk.f32.mxu0 %vm8014_vm2, %v13887_v39  ;;  %6622 = vmatpush1.bf16.msra.mxu0 %v6621_v4  ;;  %v6627_v39 = vpack.c.bf16 %v1447_v15, %v1446_v41  ;;  %v1453_v4 = vld [vmem:[%s13066_s2 + $0x7a8] sm:$0xff]  ;;  %v13974_v41 = vld [vmem:[#allocation51_spill] sm:$0xff]  ;;  %v1456_v15 = vld [vmem:[%s13066_s2 + $0x7c0] sm:$0xff] }
 0x27e   : > { %6623 = vmatprep.subr.bf16.mxu0 %v13608_v9  ;;  %1816 = vmatmul.mubr.f32.gmra.mrb[12].mxu1 %v13966_v47 }
 0x27f   : > { %1820 = vmatprep.mubr.f32.mxu1 %v13967_v17 }
 0x280   : > { %5987 = vmatmul.mubr.msk.f32.gmra.mrb[12].mxu0 %vm8014_vm2, %v13889_v42  ;;  %v13969_v42 = vld [vmem:[#allocation39_spill] sm:$0xff] }
 0x281   : > { %2945 = vmatprep.mubr.f32.mxu0 %v8270_v25  ;;  %6625 = vmatpush1.bf16.msra.mxu0 %v6624_v62  ;;  %v6630_v25 = vpack.c.bf16 %v1449_v54, %v1448_v52  ;;  %v1455_v62 = vld [vmem:[%s13066_s2 + $0x7b8] sm:$0xff]  ;;  %v13976_v52 = vld [vmem:[#allocation57_spill] sm:$0xff]  ;;  %v1458_v54 = vld [vmem:[%s13066_s2 + $0x7d0] sm:$0xff] }
 0x282   : > { %6626 = vmatprep.subr.bf16.mxu0 %v13608_v9  ;;  %1821 = vmatmul.mubr.f32.gmra.mrb[14].mxu1 %v13968_v44 }
 0x283   : > { %1825 = vmatprep.mubr.f32.mxu1 %v13969_v42 }
 0x284   : > { %2946 = vmatmul.mubr.f32.gmra.mrb[14].mxu0 %v8286_v16  ;;  %v13971_v16 = vld [vmem:[#allocation44_spill] sm:$0xff] }
 0x285   : > { %5989 = vmatprep.mubr.msk.f32.mxu0 %vm8014_vm2, %v13893_v57  ;;  %6628 = vmatpush1.bf16.msra.mxu0 %v6627_v39  ;;  %v6633_v57 = vpack.c.bf16 %v1451_v8, %v1450_v22  ;;  %v1457_v39 = vld [vmem:[%s13066_s2 + $0x7c8] sm:$0xff]  ;;  %v1460_v8 = vld [vmem:[%s13066_s2 + $0x7e0] sm:$0xff] }
 0x286   : > { %6629 = vmatprep.subr.bf16.mxu0 %v13608_v9  ;;  %1826 = vmatmul.mubr.f32.gmra.mrb[16].mxu1 %v13970_v36  ;;  %v13978_v22 = vld [vmem:[#allocation61_spill] sm:$0xff] }
 0x287   : > { %1830 = vmatprep.mubr.f32.mxu1 %v13971_v16 }
 0x288   : > { %5991 = vmatmul.mubr.msk.f32.gmra.mrb[16].mxu0 %vm8014_vm2, %v13895_v14  ;;  %v13973_v14 = vld [vmem:[#allocation49_spill] sm:$0xff] }
 0x289   : > { %2955 = vmatprep.mubr.f32.mxu0 %v8336_v59  ;;  %6631 = vmatpush1.bf16.msra.mxu0 %v6630_v25  ;;  %v6636_v59 = vpack.c.bf16 %v1453_v4, %v1452_v6  ;;  %v1459_v25 = vld [vmem:[%s13066_s2 + $0x7d8] sm:$0xff]  ;;  %v1462_v4 = vld [vmem:[%s13066_s2 + $0x7f0] sm:$0xff] }
 0x28a   : > { %6632 = vmatprep.subr.bf16.mxu0 %v13608_v9  ;;  %1831 = vmatmul.mubr.f32.gmra.mrb[18].mxu1 %v13972_v29  ;;  %v13980_v6 = vld [vmem:[#allocation67_spill] sm:$0xff] }
 0x28b   : > { %1835 = vmatprep.mubr.f32.mxu1 %v13973_v14 }
 0x28c   : > { %2956 = vmatmul.mubr.f32.gmra.mrb[18].mxu0 %v8352_v43  ;;  %v13975_v43 = vld [vmem:[#allocation54_spill] sm:$0xff] }
 0x28d   : > { %5993 = vmatprep.mubr.msk.f32.mxu0 %vm8014_vm2, %v13899_v30  ;;  %6634 = vmatpush1.bf16.msra.mxu0 %v6633_v57  ;;  %v6639_v30 = vpack.c.bf16 %v1455_v62, %v1454_v35  ;;  %v1461_v57 = vld [vmem:[%s13066_s2 + $0x7e8] sm:$0xff]  ;;  %v13982_v35 = vld [vmem:[#allocation71_spill] sm:$0xff] }
 0x28e   : > { %6635 = vmatprep.subr.bf16.mxu0 %v13608_v9  ;;  %1836 = vmatmul.mubr.f32.gmra.mrb[20].mxu1 %v13974_v41  ;;  %v13984_v62 = vld [vmem:[#allocation77_spill] sm:$0xff] }
 0x28f   : > { %1840 = vmatprep.mubr.f32.mxu1 %v13975_v43 }
 0x290   : > { %5995 = vmatmul.mubr.msk.f32.gmra.mrb[20].mxu0 %vm8014_vm2, %v13901_v31  ;;  %v13977_v31 = vld [vmem:[#allocation59_spill] sm:$0xff] }
 0x291   : > { %2965 = vmatprep.mubr.f32.mxu0 %v8402_v2  ;;  %6637 = vmatpush1.bf16.msra.mxu0 %v6636_v59  ;;  %v6642_v2 = vpack.c.bf16 %v1457_v39, %v1456_v15  ;;  %v1463_v59 = vld [vmem:[%s13066_s2 + $0x7f8] sm:$0xff]  ;;  %v13990_v15 = vld [vmem:[#allocation89_spill] sm:$0xff]  ;;  %v13992_v39 = vld [vmem:[#allocation108_spill] sm:$0xff] }
 0x292   : > { %6638 = vmatprep.subr.bf16.mxu0 %v13608_v9  ;;  %1841 = vmatmul.mubr.f32.gmra.mrb[22].mxu1 %v13976_v52 }
 0x293   : > { %1845 = vmatprep.mubr.f32.mxu1 %v13977_v31 }
 0x294   : > { %2966 = vmatmul.mubr.f32.gmra.mrb[22].mxu0 %v8418_v61  ;;  %v13979_v61 = vld [vmem:[#allocation64_spill] sm:$0xff] }
 0x295   : > { %5997 = vmatprep.mubr.msk.f32.mxu0 %vm8014_vm2, %v13905_v5  ;;  %6640 = vmatpush1.bf16.msra.mxu0 %v6639_v30  ;;  %v6645_v5 = vpack.c.bf16 %v1459_v25, %v1458_v54  ;;  %v13985_v30 = vld [vmem:[#allocation79_spill] sm:$0xff]  ;;  %v13996_v54 = vld [vmem:[#allocation100_spill] sm:$0xff] }
 0x296   : > { %6641 = vmatprep.subr.bf16.mxu0 %v13608_v9  ;;  %1846 = vmatmul.mubr.f32.gmra.mrb[24].mxu1 %v13978_v22  ;;  %v13998_v25 = vld [vmem:[#allocation119_spill] sm:$0xff] }
 0x297   : > { %1850 = vmatprep.mubr.f32.mxu1 %v13979_v61 }
 0x298   : > { %5999 = vmatmul.mubr.msk.f32.gmra.mrb[24].mxu0 %vm8014_vm2, %v13907_v10  ;;  %v13981_v10 = vld [vmem:[#allocation69_spill] sm:$0xff] }
 0x299   : > { %2975 = vmatprep.mubr.f32.mxu0 %v8468_v13  ;;  %6643 = vmatpush1.bf16.msra.mxu0 %v6642_v2  ;;  %v6648_v13 = vpack.c.bf16 %v1461_v57, %v1460_v8  ;;  %v13995_v2 = vld [vmem:[#allocation114_spill] sm:$0xff]  ;;  %v14002_v57 = vld [vmem:[#allocation112_spill] sm:$0xff] }
 0x29a   : > { %6644 = vmatprep.subr.bf16.mxu0 %v13608_v9  ;;  %1851 = vmatmul.mubr.f32.gmra.mrb[26].mxu1 %v13980_v6  ;;  %v14001_v8 = vld [vmem:[#allocation126_spill] sm:$0xff] }
 0x29b   : > { %1855 = vmatprep.mubr.f32.mxu1 %v13981_v10 }
 0x29c   : > { %2976 = vmatmul.mubr.f32.gmra.mrb[26].mxu0 %v8484_v49  ;;  %v13983_v49 = vld [vmem:[#allocation74_spill] sm:$0xff] }
 0x29d   : > { %6001 = vmatprep.mubr.msk.f32.mxu0 %vm8014_vm2, %v13912_v38  ;;  %6646 = vmatpush1.bf16.msra.mxu0 %v6645_v5  ;;  %v6651_v38 = vpack.c.bf16 %v1463_v59, %v1462_v4  ;;  %v13999_v5 = vld [vmem:[#allocation104_spill] sm:$0xff]  ;;  %v14005_v4 = vld [vmem:[#allocation130_spill] sm:$0xff] }
 0x29e   : > { %6647 = vmatprep.subr.bf16.mxu0 %v13608_v9  ;;  %1856 = vmatmul.mubr.f32.gmra.mrb[28].mxu1 %v13982_v35  ;;  %v14006_v59 = vld [vmem:[#allocation116_spill] sm:$0xff] }
 0x29f   : > { %1860 = vmatprep.mubr.f32.mxu1 %v13983_v49 }
 0x2a0   : > { %6003 = vmatmul.mubr.msk.f32.gmra.mrb[28].mxu0 %vm8014_vm2, %v13913_v40  ;;  %v13988_v40 = vld [vmem:[#allocation87_spill] sm:$0xff] }
 0x2a1   : > { %2985 = vmatprep.mubr.f32.mxu0 %v8528_v24  ;;  %6649 = vmatpush1.bf16.msra.mxu0 %v6648_v13  ;;  %v13986_v24 = vld [vmem:[#allocation81_spill] sm:$0xff]  ;;  %v14003_v13 = vld [vmem:[#allocation132_spill] sm:$0xff] }
 0x2a2   : > { %6650 = vmatprep.subr.bf16.mxu0 %v13608_v9  ;;  %1861 = vmatmul.mubr.f32.gmra.mrb[30].mxu1 %v13984_v62 }
 0x2a3   : > { %1865 = vmatprep.mubr.f32.mxu1 %v13985_v30 }
 0x2a4   : > { %2986 = vmatmul.mubr.f32.gmra.mrb[30].mxu0 %v8544_v32  ;;  %v13987_v32 = vld [vmem:[#allocation84_spill] sm:$0xff] }
 0x2a5   : > { %6005 = vmatprep.mubr.msk.f32.mxu0 %vm8014_vm2, %v13918_v50  ;;  %6652 = vmatpush1.bf16.msra.mxu0 %v6651_v38  ;;  %v13989_v50 = vld [vmem:[#allocation102_spill] sm:$0xff]  ;;  %v14007_v38 = vld [vmem:[#allocation135_spill] sm:$0xff] }
 0x2a6   : > { %6653 = vmatprep.subr.bf16.mxu0 %v13608_v9  ;;  %1866 = vmatmul.mubr.f32.gmra.mrb[32].mxu1 %v9431_v23 }
 0x2a7   : > { %1870 = vmatprep.mubr.f32.mxu1 %v13986_v24 }
 0x2a8   : > { %6007 = vmatmul.mubr.msk.f32.gmra.mrb[32].mxu0 %vm8014_vm2, %v13919_v55  ;;  %v13991_v55 = vld [vmem:[#allocation91_spill] sm:$0xff] }
 0x2a9   : > { %2995 = vmatprep.mubr.f32.mxu0 %v8581_v0  ;;  %v13993_v0 = vld [vmem:[#allocation94_spill] sm:$0xff] }
 0x2aa   : > { %1871 = vmatmul.mubr.f32.gmra.mrb[34].mxu1 %v13987_v32 }
 0x2ab   : > { %1875 = vmatprep.mubr.f32.mxu1 %v13988_v40 }
 0x2ac   : > { %2996 = vmatmul.mubr.f32.gmra.mrb[34].mxu0 %v8600_v63  ;;  %v13994_v63 = vld [vmem:[#allocation97_spill] sm:$0xff] }
 0x2ad   : > { %6009 = vmatprep.mubr.msk.f32.mxu0 %vm8014_vm2, %v13989_v50  ;;  %v14009_v50 = vld [vmem:[#allocation138_spill] sm:$0xff] }
 0x2ae   : > { %1876 = vmatmul.mubr.f32.gmra.mrb[36].mxu1 %v13990_v15 }
 0x2af   : > { %1880 = vmatprep.mubr.f32.mxu1 %v13991_v55 }
 0x2b0   : > { %6011 = vmatmul.mubr.msk.f32.gmra.mrb[36].mxu0 %vm8014_vm2, %v13925_v33  ;;  %v13997_v33 = vld [vmem:[#allocation101_spill] sm:$0xff] }
 0x2b1   : > { %3005 = vmatprep.mubr.f32.mxu0 %v13992_v39  ;;  %v14010_v39 = vld [vmem:[#allocation123_spill] sm:$0xff] }
 0x2b2   : > { %1881 = vmatmul.mubr.f32.gmra.mrb[38].mxu1 %v13993_v0 }
 0x2b3   : > { %1885 = vmatprep.mubr.f32.mxu1 %v13994_v63 }
 0x2b4   : > { %3006 = vmatmul.mubr.f32.gmra.mrb[38].mxu0 %v13726_v46  ;;  %v14000_v46 = vld [vmem:[#allocation107_spill] sm:$0xff] }
 0x2b5   : > { %6013 = vmatprep.mubr.msk.f32.mxu0 %vm8014_vm2, %v13995_v2  ;;  %v14011_v2 = vld [vmem:[#allocation125_spill] sm:$0xff] }
 0x2b6   : > { %1886 = vmatmul.mubr.f32.gmra.mrb[40].mxu1 %v13996_v54 }
 0x2b7   : > { %1890 = vmatprep.mubr.f32.mxu1 %v13997_v33 }
 0x2b8   : > { %6015 = vmatmul.mubr.msk.f32.gmra.mrb[40].mxu0 %vm8014_vm2, %v13931_v3  ;;  %v14004_v3 = vld [vmem:[#allocation113_spill] sm:$0xff] }
 0x2b9   : > { %3015 = vmatprep.mubr.f32.mxu0 %v13998_v25  ;;  %v14012_v25 = vld [vmem:[#allocation129_spill] sm:$0xff] }
 0x2ba   : > { %1891 = vmatmul.mubr.f32.gmra.mrb[42].mxu1 %v13999_v5 }
 0x2bb   : > { %1895 = vmatprep.mubr.f32.mxu1 %v14000_v46 }
 0x2bc   : > { %3016 = vmatmul.mubr.f32.gmra.mrb[42].mxu0 %v13730_v53  ;;  %v14008_v53 = vld [vmem:[#allocation120_spill] sm:$0xff] }
 0x2bd   : > { %6017 = vmatprep.mubr.msk.f32.mxu0 %vm8014_vm2, %v14001_v8  ;;  %v14013_v8 = vld [vmem:[#allocation131_spill] sm:$0xff] }
 0x2be   : > { %1896 = vmatmul.mubr.f32.gmra.mrb[44].mxu1 %v14002_v57 }
 0x2bf   : > { %1900 = vmatprep.mubr.f32.mxu1 %v14004_v3 }
 0x2c0   : > { %6019 = vmatmul.mubr.msk.f32.gmra.mrb[44].mxu0 %vm8014_vm2, %v14003_v13  ;;  %v14014_v13 = vld [vmem:[#allocation136_spill] sm:$0xff] }
 0x2c1   : > { %3025 = vmatprep.mubr.f32.mxu0 %v14005_v4  ;;  %v14018_v4 = vld [vmem:[#allocation111_spill] sm:$0xff] }
 0x2c2   : > { %1901 = vmatmul.mubr.f32.gmra.mrb[46].mxu1 %v14006_v59 }
 0x2c3   : > { %1905 = vmatprep.mubr.f32.mxu1 %v14008_v53 }
 0x2c4   : > { %3026 = vmatmul.mubr.f32.gmra.mrb[46].mxu0 %v14007_v38  ;;  %v14020_v38 = vld [vmem:[#allocation124_spill] sm:$0xff] }
 0x2c5   : > { %6021 = vmatprep.mubr.msk.f32.mxu0 %vm8014_vm2, %v14009_v50  ;;  %v14022_v50 = vld [vmem:[#allocation144_spill] sm:$0xff] }
 0x2c6   : > { %1906 = vmatmul.mubr.f32.gmra.mrb[48].mxu1 %v14010_v39 }
 0x2c7   : > { %1910 = vmatprep.mubr.f32.mxu1 %v14011_v2 }
 0x2c8   : > { %6023 = vmatmul.mubr.msk.f32.gmra.mrb[48].mxu0 %vm8014_vm2, %v13943_v18  ;;  %v14015_v18 = vld [vmem:[#allocation137_spill] sm:$0xff] }
 0x2c9   : > { %3035 = vmatprep.mubr.f32.mxu0 %v13737_v28  ;;  %v14016_v28 = vld [vmem:[#allocation140_spill] sm:$0xff] }
 0x2ca   : > { %1911 = vmatmul.mubr.f32.gmra.mrb[50].mxu1 %v14012_v25 }
 0x2cb   : > { %1915 = vmatprep.mubr.f32.mxu1 %v14013_v8 }
 0x2cc   : > { %3036 = vmatmul.mubr.f32.gmra.mrb[50].mxu0 %v8810_v21  ;;  %v14017_v21 = vld [vmem:[#allocation142_spill] sm:$0xff] }
 0x2cd   : > { %6025 = vmatprep.mubr.msk.f32.mxu0 %vm8014_vm2, %v13949_v56  ;;  %v14019_v56 = vld [vmem:[#allocation147_spill] sm:$0xff] }
 0x2ce   : > { %1916 = vmatmul.mubr.f32.gmra.mrb[52].mxu1 %v14014_v13 }
 0x2cf   : > { %1920 = vmatprep.mubr.f32.mxu1 %v14015_v18 }
 0x2d0   : > { %6027 = vmatmul.mubr.msk.f32.gmra.mrb[52].mxu0 %vm8014_vm2, %v13951_v27  ;;  %v14021_v27 = vld [vmem:[#allocation148_spill] sm:$0xff] }
 0x2d1   : > { %3045 = vmatprep.mubr.f32.mxu0 %v8841_v58  ;;  %v14023_v58 = vld [vmem:[#allocation152_spill] sm:$0xff] }
 0x2d2   : > { %1921 = vmatmul.mubr.f32.gmra.mrb[54].mxu1 %v14016_v28 }
 0x2d3   : > { %1925 = vmatprep.mubr.f32.mxu1 %v14017_v21 }
 0x2d4   : > { %3046 = vmatmul.mubr.f32.gmra.mrb[54].mxu0 %v8860_v19  ;;  %v14025_v19 = vld [vmem:[#allocation154_spill] sm:$0xff] }
 0x2d5   : > { %6029 = vmatprep.mubr.msk.f32.mxu0 %vm8014_vm2, %v14018_v4  ;;  %v14026_v4 = vld [vmem:[#allocation162_spill] sm:$0xff] }
 0x2d6   : > { %1926 = vmatmul.mubr.f32.gmra.mrb[56].mxu1 %v14019_v56 }
 0x2d7   : > { %1930 = vmatprep.mubr.f32.mxu1 %v14021_v27 }
 0x2d8   : > { %6031 = vmatmul.mubr.msk.f32.gmra.mrb[56].mxu0 %vm8014_vm2, %v14020_v38  ;;  %v14027_v38 = vld [vmem:[#allocation163_spill] sm:$0xff] }
 0x2d9   : > { %3055 = vmatprep.mubr.f32.mxu0 %v14022_v50  ;;  %v1465_v50 = vld [vmem:[%s13066_s2 + $0x808] sm:$0xff] }
 0x2da   : > { %1931 = vmatmul.mubr.f32.gmra.mrb[58].mxu1 %v14023_v58 }
 0x2db   : > { %1935 = vmatprep.mubr.f32.mxu1 %v14025_v19 }
 0x2dc   : > { %3056 = vmatmul.mubr.f32.gmra.mrb[58].mxu0 %v14024_v45  ;;  %v1464_v45 = vld [vmem:[%s13066_s2 + $0x800] sm:$0xff] }
 0x2dd   : > { %6033 = vmatprep.mubr.msk.f32.mxu0 %vm8014_vm2, %v13865_v51  ;;  %v6654_v11 = vpack.c.bf16 %v1465_v50, %v1464_v45  ;;  %v1469_v45 = vld [vmem:[%s13066_s2 + $0x828] sm:$0xff]  ;;  %v1479_v50 = vld [vmem:[%s13066_s2 + $0x878] sm:$0xff] }
 0x2de   : > { %1936 = vmatmul.mubr.f32.gmra.mrb[60].mxu1 %v14026_v4 }
 0x2df   : > { %1940 = vmatprep.mubr.f32.mxu1 %v14027_v38 }
 0x2e0   : > { %6035 = vmatmul.mubr.msk.f32.gmra.mrb[60].mxu0 %vm8014_vm2, %v13865_v51 }
 0x2e1   : > { %3065 = vmatprep.mubr.f32.mxu0 %v13865_v51 }
 0x2e2   : > { %1941 = vmatmul.mubr.f32.gmra.mrb[62].mxu1 %v14028_v37  ;;  %v6657_v37 = vpack.c.bf16 %v1467_v12, %v1466_v48  ;;  %v1471_v48 = vld [vmem:[%s13066_s2 + $0x838] sm:$0xff] }
 0x2e3   : > { %4393 = vmatprep.mubr.f32.mxu1 %v10200_v34 }
 0x2e4   : > { %3066 = vmatmul.mubr.f32.gmra.mrb[62].mxu0 %v13865_v51 }
 0x2e5   : > { %3135 = vmatprep.mubr.f32.mxu0 %v13961_v60  ;;  %v1468_v60 = vld [vmem:[%s13066_s2 + $0x820] sm:$0xff] }
 0x2e8   : > { %3136 = vmatmul.mubr.f32.vlgmr.msra.gmra.mrb[0].mxu0 %v13962_v26  ;;  %v6660_v26 = vpack.c.bf16 %v1469_v45, %v1468_v60  ;;  %v1481_v60 = vld [vmem:[%s13066_s2 + $0x888] sm:$0xff]  ;;  %v1483_v45 = vld [vmem:[%s13066_s2 + $0x898] sm:$0xff] }
 0x2e9   : > { %6655 = vmatpush1.bf16.msra.mxu0 %v6654_v11  ;;  %3140 = vmatprep.mubr.f32.mxu0 %v13963_v20  ;;  %v1470_v11 = vld [vmem:[%s13066_s2 + $0x830] sm:$0xff]  ;;  %v1473_v20 = vld [vmem:[%s13066_s2 + $0x848] sm:$0xff] }
 0x2ea   : > { %6656 = vmatprep.subr.bf16.mxu0 %v13608_v9  ;;  %v6663_v12 = vpack.c.bf16 %v1471_v48, %v1470_v11  ;;  %v1487_v11 = vld [vmem:[%s13066_s2 + $0x8b8] sm:$0xff]  ;;  %v1489_v48 = vld [vmem:[%s13066_s2 + $0x8c8] sm:$0xff] }
 0x2ec   : > { %3141 = vmatmul.mubr.f32.gmra.mrb[2].mxu0 %v13964_v7 }
 0x2ed   : > { %3145 = vmatprep.mubr.f32.mxu0 %v13965_v1  ;;  %6658 = vmatpush1.bf16.msra.mxu0 %v6657_v37  ;;  %v1472_v37 = vld [vmem:[%s13066_s2 + $0x840] sm:$0xff]  ;;  %v1474_v1 = vld [vmem:[%s13066_s2 + $0x850] sm:$0xff] }
 0x2ee   : > { %6659 = vmatprep.subr.bf16.mxu0 %v13608_v9  ;;  %v6666_v7 = vpack.c.bf16 %v1473_v20, %v1472_v37  ;;  %v1493_v37 = vld [vmem:[%s13066_s2 + $0x8e8] sm:$0xff]  ;;  %v1495_v20 = vld [vmem:[%s13066_s2 + $0x8f8] sm:$0xff] }
 0x2f0   : > { %3146 = vmatmul.mubr.f32.gmra.mrb[4].mxu0 %v13966_v47  ;;  %v1475_v47 = vld [vmem:[%s13066_s2 + $0x858] sm:$0xff] }
 0x2f1   : > { %3150 = vmatprep.mubr.f32.mxu0 %v13967_v17  ;;  %6661 = vmatpush1.bf16.msra.mxu0 %v6660_v26  ;;  %v6669_v17 = vpack.c.bf16 %v1475_v47, %v1474_v1  ;;  %v1485_v26 = vld [vmem:[%s13066_s2 + $0x8a8] sm:$0xff]  ;;  %v14035_v1 = vld [vmem:[#allocation26_spill] sm:$0xff] }
 0x2f2   : > { %6662 = vmatprep.subr.bf16.mxu0 %v13608_v9 }
 0x2f4   : > { %3151 = vmatmul.mubr.f32.gmra.mrb[6].mxu0 %v13968_v44  ;;  %v1476_v44 = vld [vmem:[%s13066_s2 + $0x860] sm:$0xff] }
 0x2f5   : > { %3155 = vmatprep.mubr.f32.mxu0 %v13969_v42  ;;  %6664 = vmatpush1.bf16.msra.mxu0 %v6663_v12  ;;  %v1477_v42 = vld [vmem:[%s13066_s2 + $0x868] sm:$0xff]  ;;  %v1491_v12 = vld [vmem:[%s13066_s2 + $0x8d8] sm:$0xff] }
 0x2f6   : > { %6665 = vmatprep.subr.bf16.mxu0 %v13608_v9 }
 0x2f8   : > { %3156 = vmatmul.mubr.f32.gmra.mrb[8].mxu0 %v13970_v36  ;;  %v6672_v36 = vpack.c.bf16 %v1477_v42, %v1476_v44  ;;  %v14036_v44 = vld [vmem:[#allocation28_spill] sm:$0xff]  ;;  %v14037_v42 = vld [vmem:[#allocation30_spill] sm:$0xff] }
 0x2f9   : > { %3160 = vmatprep.mubr.f32.mxu0 %v13971_v16  ;;  %6667 = vmatpush1.bf16.msra.mxu0 %v6666_v7  ;;  %v1478_v16 = vld [vmem:[%s13066_s2 + $0x870] sm:$0xff] }
 0x2fa   : > { %6668 = vmatprep.subr.bf16.mxu0 %v13608_v9 }
 0x2fc   : > { %3161 = vmatmul.mubr.f32.gmra.mrb[10].mxu0 %v13972_v29  ;;  %v6675_v29 = vpack.c.bf16 %v1479_v50, %v1478_v16  ;;  %v14038_v50 = vld [vmem:[#allocation33_spill] sm:$0xff] }
 0x2fd   : > { %3165 = vmatprep.mubr.f32.mxu0 %v13973_v14  ;;  %6670 = vmatpush1.bf16.msra.mxu0 %v6669_v17  ;;  %v1480_v14 = vld [vmem:[%s13066_s2 + $0x880] sm:$0xff] }
 0x2fe   : > { %6671 = vmatprep.subr.bf16.mxu0 %v13608_v9 }
 0x300   : > { %3166 = vmatmul.mubr.f32.gmra.mrb[12].mxu0 %v13974_v41  ;;  %v6678_v41 = vpack.c.bf16 %v1481_v60, %v1480_v14 }
 0x301   : > { %3170 = vmatprep.mubr.f32.mxu0 %v13975_v43  ;;  %6673 = vmatpush1.bf16.msra.mxu0 %v6672_v36  ;;  %v1482_v43 = vld [vmem:[%s13066_s2 + $0x890] sm:$0xff] }
 0x302   : > { %6674 = vmatprep.subr.bf16.mxu0 %v13608_v9 }
 0x304   : > { %3171 = vmatmul.mubr.f32.gmra.mrb[14].mxu0 %v13976_v52  ;;  %v6681_v52 = vpack.c.bf16 %v1483_v45, %v1482_v43  ;;  %v14041_v43 = vld [vmem:[#allocation40_spill] sm:$0xff] }
 0x305   : > { %3175 = vmatprep.mubr.f32.mxu0 %v13977_v31  ;;  %6676 = vmatpush1.bf16.msra.mxu0 %v6675_v29  ;;  %v1484_v31 = vld [vmem:[%s13066_s2 + $0x8a0] sm:$0xff] }
 0x306   : > { %6677 = vmatprep.subr.bf16.mxu0 %v13608_v9  ;;  %v14039_v29 = vld [vmem:[#allocation36_spill] sm:$0xff] }
 0x308   : > { %3176 = vmatmul.mubr.f32.gmra.mrb[16].mxu0 %v13978_v22  ;;  %v6684_v22 = vpack.c.bf16 %v1485_v26, %v1484_v31  ;;  %v14042_v31 = vld [vmem:[#allocation43_spill] sm:$0xff]  ;;  %v14043_v26 = vld [vmem:[#allocation46_spill] sm:$0xff] }
 0x309   : > { %3180 = vmatprep.mubr.f32.mxu0 %v13979_v61  ;;  %6679 = vmatpush1.bf16.msra.mxu0 %v6678_v41  ;;  %v1486_v61 = vld [vmem:[%s13066_s2 + $0x8b0] sm:$0xff] }
 0x30a   : > { %6680 = vmatprep.subr.bf16.mxu0 %v13608_v9  ;;  %v14040_v41 = vld [vmem:[#allocation38_spill] sm:$0xff] }
 0x30c   : > { %3181 = vmatmul.mubr.f32.gmra.mrb[18].mxu0 %v13980_v6  ;;  %v6687_v6 = vpack.c.bf16 %v1487_v11, %v1486_v61  ;;  %v14044_v11 = vld [vmem:[#allocation48_spill] sm:$0xff] }
 0x30d   : > { %3185 = vmatprep.mubr.f32.mxu0 %v13981_v10  ;;  %6682 = vmatpush1.bf16.msra.mxu0 %v6681_v52  ;;  %v1488_v10 = vld [vmem:[%s13066_s2 + $0x8c0] sm:$0xff] }
 0x30e   : > { %6683 = vmatprep.subr.bf16.mxu0 %v13608_v9 }
 0x310   : > { %3186 = vmatmul.mubr.f32.gmra.mrb[20].mxu0 %v13982_v35  ;;  %v6690_v35 = vpack.c.bf16 %v1489_v48, %v1488_v10 }
 0x311   : > { %3190 = vmatprep.mubr.f32.mxu0 %v13983_v49  ;;  %6685 = vmatpush1.bf16.msra.mxu0 %v6684_v22  ;;  %v1490_v49 = vld [vmem:[%s13066_s2 + $0x8d0] sm:$0xff] }
 0x312   : > { %6686 = vmatprep.subr.bf16.mxu0 %v13608_v9 }
 0x314   : > { %3191 = vmatmul.mubr.f32.gmra.mrb[22].mxu0 %v13984_v62  ;;  %v6693_v62 = vpack.c.bf16 %v1491_v12, %v1490_v49  ;;  %v14047_v49 = vld [vmem:[#allocation56_spill] sm:$0xff] }
 0x315   : > { %3195 = vmatprep.mubr.f32.mxu0 %v13985_v30  ;;  %6688 = vmatpush1.bf16.msra.mxu0 %v6687_v6  ;;  %v1492_v30 = vld [vmem:[%s13066_s2 + $0x8e0] sm:$0xff]  ;;  %v14045_v6 = vld [vmem:[#allocation50_spill] sm:$0xff] }
 0x316   : > { %6689 = vmatprep.subr.bf16.mxu0 %v13608_v9 }
 0x318   : > { %3196 = vmatmul.mubr.f32.gmra.mrb[24].mxu0 %v9431_v23  ;;  %v6696_v23 = vpack.c.bf16 %v1493_v37, %v1492_v30  ;;  %v14048_v30 = vld [vmem:[#allocation58_spill] sm:$0xff]  ;;  %v14049_v37 = vld [vmem:[#allocation60_spill] sm:$0xff] }
 0x319   : > { %3200 = vmatprep.mubr.f32.mxu0 %v13986_v24  ;;  %6691 = vmatpush1.bf16.msra.mxu0 %v6690_v35  ;;  %v1494_v24 = vld [vmem:[%s13066_s2 + $0x8f0] sm:$0xff]  ;;  %v14046_v35 = vld [vmem:[#allocation53_spill] sm:$0xff] }
 0x31a   : > { %6692 = vmatprep.subr.bf16.mxu0 %v13608_v9 }
 0x31c   : > { %3201 = vmatmul.mubr.f32.gmra.mrb[26].mxu0 %v13987_v32  ;;  %v6699_v32 = vpack.c.bf16 %v1495_v20, %v1494_v24  ;;  %v14050_v20 = vld [vmem:[#allocation63_spill] sm:$0xff] }
 0x31d   : > { %3205 = vmatprep.mubr.f32.mxu0 %v13988_v40  ;;  %6694 = vmatpush1.bf16.msra.mxu0 %v6693_v62 }
 0x31e   : > { %6695 = vmatprep.subr.bf16.mxu0 %v13608_v9 }
 0x320   : > { %3206 = vmatmul.mubr.f32.gmra.mrb[28].mxu0 %v13990_v15 }
 0x321   : > { %3210 = vmatprep.mubr.f32.mxu0 %v13991_v55  ;;  %6697 = vmatpush1.bf16.msra.mxu0 %v6696_v23 }
 0x322   : > { %6698 = vmatprep.subr.bf16.mxu0 %v13608_v9 }
 0x324   : > { %3211 = vmatmul.mubr.f32.gmra.mrb[30].mxu0 %v13993_v0 }
 0x325   : > { %3215 = vmatprep.mubr.f32.mxu0 %v13994_v63  ;;  %6700 = vmatpush1.bf16.msra.mxu0 %v6699_v32  ;;  %v14051_v32 = vld [vmem:[#allocation66_spill] sm:$0xff] }
 0x328   : > { %3216 = vmatmul.mubr.f32.gmra.mrb[32].mxu0 %v13996_v54 }
 0x329   : > { %3220 = vmatprep.mubr.f32.mxu0 %v13997_v33 }
 0x32c   : > { %3221 = vmatmul.mubr.f32.gmra.mrb[34].mxu0 %v13999_v5 }
 0x32d   : > { %3225 = vmatprep.mubr.f32.mxu0 %v14000_v46 }
 0x330   : > { %3226 = vmatmul.mubr.f32.gmra.mrb[36].mxu0 %v14002_v57 }
 0x331   : > { %3230 = vmatprep.mubr.f32.mxu0 %v14004_v3 }
 0x334   : > { %3231 = vmatmul.mubr.f32.gmra.mrb[38].mxu0 %v14006_v59 }
 0x335   : > { %3235 = vmatprep.mubr.f32.mxu0 %v14008_v53 }
 0x338   : > { %3236 = vmatmul.mubr.f32.gmra.mrb[40].mxu0 %v14010_v39 }
 0x339   : > { %3240 = vmatprep.mubr.f32.mxu0 %v14011_v2  ;;  %v10657_v40 = vpop.f32.mrb[0].mxu1  ;;  %v14029_v2 = vld [vmem:[#allocation164_spill] sm:$0xff] }
 0x33a   : > { %v1789_v15 = vpop.f32.mrb[1].mxu1 }
 0x33c   : > { %3241 = vmatmul.mubr.f32.gmra.mrb[42].mxu0 %v14012_v25  ;;  %v14030_v25 = vld [vmem:[#allocation165_spill] sm:$0xff] }
 0x33d   : > { %3245 = vmatprep.mubr.f32.mxu0 %v14013_v8  ;;  %v10661_v55 = vpop.f32.mrb[2].mxu1 }
 0x33e   : > { %v1794_v0 = vpop.f32.mrb[3].mxu1 }
 0x340   : > { %3246 = vmatmul.mubr.f32.gmra.mrb[44].mxu0 %v14014_v13 }
 0x341   : > { %3250 = vmatprep.mubr.f32.mxu0 %v14015_v18  ;;  %v10665_v63 = vpop.f32.mrb[4].mxu1  ;;  %v14031_v18 = vld [vmem:[#allocation166_spill] sm:$0xff] }
 0x342   : > { %v1799_v54 = vpop.f32.mrb[5].mxu1 }
 0x343   : > { %v14052_v54 = vld [vmem:[#allocation68_spill] sm:$0xff] }
 0x344   : > { %3251 = vmatmul.mubr.f32.gmra.mrb[46].mxu0 %v14016_v28  ;;  %v14032_v28 = vld [vmem:[#allocation167_spill] sm:$0xff] }
 0x345   : > { %3255 = vmatprep.mubr.f32.mxu0 %v14017_v21  ;;  %v10669_v33 = vpop.f32.mrb[6].mxu1 }
 0x346   : > { %v1804_v5 = vpop.f32.mrb[7].mxu1 }
 0x347   : > { %v14053_v5 = vld [vmem:[#allocation70_spill] sm:$0xff] }
 0x348   : > { %3256 = vmatmul.mubr.f32.gmra.mrb[48].mxu0 %v14019_v56 }
 0x349   : > { %3260 = vmatprep.mubr.f32.mxu0 %v14021_v27  ;;  %v10673_v46 = vpop.f32.mrb[8].mxu1  ;;  %v14033_v27 = vld [vmem:[#allocation168_spill] sm:$0xff] }
 0x34a   : > { %v1809_v57 = vpop.f32.mrb[9].mxu1 }
 0x34c   : > { %3261 = vmatmul.mubr.f32.gmra.mrb[50].mxu0 %v14023_v58 }
 0x34d   : > { %3265 = vmatprep.mubr.f32.mxu0 %v14025_v19  ;;  %v10677_v3 = vpop.f32.mrb[10].mxu1 }
 0x34e   : > { %v1814_v59 = vpop.f32.mrb[11].mxu1 }
 0x350   : > { %3266 = vmatmul.mubr.f32.gmra.mrb[52].mxu0 %v14026_v4  ;;  %v14034_v4 = vld [vmem:[#allocation35_spill] sm:$0xff] }
 0x351   : > { %3270 = vmatprep.mubr.f32.mxu0 %v14027_v38  ;;  %v10681_v53 = vpop.f32.mrb[12].mxu1 }
 0x352   : > { %v1819_v39 = vpop.f32.mrb[13].mxu1 }
 0x353   : > { %v14054_v39 = vld [vmem:[#allocation73_spill] sm:$0xff] }
 0x354   : > { %3271 = vmatmul.mubr.f32.gmra.mrb[54].mxu0 %v14029_v2  ;;  %v14055_v2 = vld [vmem:[#allocation76_spill] sm:$0xff] }
 0x355   : > { %3275 = vmatprep.mubr.f32.mxu0 %v14030_v25  ;;  %v10685_v8 = vpop.f32.mrb[14].mxu1 }
 0x356   : > { %v1824_v13 = vpop.f32.mrb[15].mxu1 }
 0x358   : > { %3276 = vmatmul.mubr.f32.gmra.mrb[56].mxu0 %v14031_v18  ;;  %v14056_v18 = vld [vmem:[#allocation78_spill] sm:$0xff] }
 0x359   : > { %3280 = vmatprep.mubr.f32.mxu0 %v14032_v28  ;;  %v10689_v21 = vpop.f32.mrb[16].mxu1  ;;  %v14057_v28 = vld [vmem:[#allocation80_spill] sm:$0xff] }
 0x35a   : > { %v1829_v56 = vpop.f32.mrb[17].mxu1 }
 0x35c   : > { %3281 = vmatmul.mubr.f32.gmra.mrb[58].mxu0 %v14033_v27 }
 0x35d   : > { %3285 = vmatprep.mubr.f32.mxu0 %v10200_v34  ;;  %v10693_v58 = vpop.f32.mrb[18].mxu1 }
 0x35e   : > { %v1834_v19 = vpop.f32.mrb[19].mxu1 }
 0x35f   : > { %v14058_v19 = vld [vmem:[#allocation83_spill] sm:$0xff] }
 0x360   : > { %3286 = vmatmul.mubr.f32.gmra.mrb[60].mxu0 %v10200_v34 }
 0x361   : > { %3290 = vmatprep.mubr.f32.mxu0 %v14034_v4  ;;  %v10697_v38 = vpop.f32.mrb[20].mxu1 }
 0x362   : > { %v1839_v7 = vpop.f32.mrb[21].mxu1 }
 0x363   : > { %v14059_v7 = vld [vmem:[#allocation86_spill] sm:$0xff] }
 0x364   : > { %3291 = vmatmul.mubr.f32.gmra.mrb[62].mxu0 %v14034_v4 }
 0x365   : > { %3360 = vmatprep.mubr.f32.mxu0 %v14035_v1  ;;  %v10701_v47 = vpop.f32.mrb[22].mxu1 }
 0x366   : > { %v1844_v17 = vpop.f32.mrb[23].mxu1 }
 0x368   : > { %3361 = vmatmul.mubr.f32.vlgmr.msra.gmra.mrb[0].mxu0 %v14036_v44  ;;  %v14060_v44 = vld [vmem:[#allocation88_spill] sm:$0xff] }
 0x369   : > { %3365 = vmatprep.mubr.f32.mxu0 %v14037_v42  ;;  %v10705_v36 = vpop.f32.mrb[24].mxu1  ;;  %v14061_v42 = vld [vmem:[#allocation90_spill] sm:$0xff] }
 0x36a   : > { %v1849_v16 = vpop.f32.mrb[25].mxu1 }
 0x36c   : > { %3366 = vmatmul.mubr.f32.gmra.mrb[2].mxu0 %v14038_v50 }
 0x36d   : > { %3370 = vmatprep.mubr.f32.mxu0 %v14039_v29  ;;  %v10709_v14 = vpop.f32.mrb[26].mxu1  ;;  %v14062_v29 = vld [vmem:[#allocation93_spill] sm:$0xff] }
 0x36e   : > { %v1854_v60 = vpop.f32.mrb[27].mxu1 }
 0x36f   : > { %v14063_v60 = vld [vmem:[#allocation96_spill] sm:$0xff] }
 0x370   : > { %3371 = vmatmul.mubr.f32.gmra.mrb[4].mxu0 %v14040_v41 }
 0x371   : > { %3375 = vmatprep.mubr.f32.mxu0 %v14041_v43  ;;  %v10713_v45 = vpop.f32.mrb[28].mxu1 }
 0x372   : > { %v1859_v52 = vpop.f32.mrb[29].mxu1 }
 0x373   : > { %v14064_v52 = vld [vmem:[#allocation98_spill] sm:$0xff] }
 0x374   : > { %3376 = vmatmul.mubr.f32.gmra.mrb[6].mxu0 %v14042_v31  ;;  %v14065_v31 = vld [vmem:[#allocation99_spill] sm:$0xff] }
 0x375   : > { %3380 = vmatprep.mubr.f32.mxu0 %v14043_v26  ;;  %v10717_v22 = vpop.f32.mrb[30].mxu1 }
 0x376   : > { %v1864_v61 = vpop.f32.mrb[31].mxu1 }
 0x378   : > { %3381 = vmatmul.mubr.f32.gmra.mrb[8].mxu0 %v14044_v11  ;;  %v14066_v11 = vld [vmem:[#allocation103_spill] sm:$0xff] }
 0x379   : > { %3385 = vmatprep.mubr.f32.mxu0 %v14045_v6  ;;  %v10721_v10 = vpop.f32.mrb[32].mxu1  ;;  %v14067_v6 = vld [vmem:[#allocation106_spill] sm:$0xff] }
 0x37a   : > { %v1869_v48 = vpop.f32.mrb[33].mxu1 }
 0x37c   : > { %3386 = vmatmul.mubr.f32.gmra.mrb[10].mxu0 %v14046_v35 }
 0x37d   : > { %3390 = vmatprep.mubr.f32.mxu0 %v14047_v49  ;;  %v10725_v12 = vpop.f32.mrb[34].mxu1  ;;  %v14068_v49 = vld [vmem:[#allocation109_spill] sm:$0xff] }
 0x37e   : > { %v1874_v62 = vpop.f32.mrb[35].mxu1 }
 0x37f   : > { %v14069_v62 = vld [vmem:[#allocation110_spill] sm:$0xff] }
 0x380   : > { %3391 = vmatmul.mubr.f32.gmra.mrb[12].mxu0 %v14048_v30 }
 0x381   : > { %3395 = vmatprep.mubr.f32.mxu0 %v14049_v37  ;;  %v10729_v23 = vpop.f32.mrb[36].mxu1 }
 0x382   : > { %v1879_v24 = vpop.f32.mrb[37].mxu1 }
 0x383   : > { %v14070_v24 = vld [vmem:[#allocation115_spill] sm:$0xff] }
 0x384   : > { %3396 = vmatmul.mubr.f32.gmra.mrb[14].mxu0 %v14050_v20  ;;  %v14071_v20 = vld [vmem:[#allocation118_spill] sm:$0xff] }
 0x385   : > { %3400 = vmatprep.mubr.f32.mxu0 %v14051_v32  ;;  %v10733_v15 = vpop.f32.mrb[38].mxu1 }
 0x386   : > { %v1884_v0 = vpop.f32.mrb[39].mxu1 }
 0x388   : > { %3401 = vmatmul.mubr.f32.gmra.mrb[16].mxu0 %v14052_v54  ;;  %v14072_v54 = vld [vmem:[#allocation121_spill] sm:$0xff] }
 0x389   : > { %3405 = vmatprep.mubr.f32.mxu0 %v14053_v5  ;;  %v10737_v57 = vpop.f32.mrb[40].mxu1  ;;  %v14073_v5 = vld [vmem:[#allocation122_spill] sm:$0xff] }
 0x38a   : > { %v1889_v59 = vpop.f32.mrb[41].mxu1 }
 0x38c   : > { %3406 = vmatmul.mubr.f32.gmra.mrb[18].mxu0 %v14054_v39 }
 0x38d   : > { %3410 = vmatprep.mubr.f32.mxu0 %v14055_v2  ;;  %v10741_v25 = vpop.f32.mrb[42].mxu1  ;;  %v14074_v2 = vld [vmem:[#allocation127_spill] sm:$0xff] }
 0x38e   : > { %v1894_v13 = vpop.f32.mrb[43].mxu1 }
 0x38f   : > { %v14075_v13 = vld [vmem:[#allocation128_spill] sm:$0xff] }
 0x390   : > { %3411 = vmatmul.mubr.f32.gmra.mrb[20].mxu0 %v14056_v18 }
 0x391   : > { %3415 = vmatprep.mubr.f32.mxu0 %v14057_v28  ;;  %v10745_v56 = vpop.f32.mrb[44].mxu1 }
 0x392   : > { %v1899_v27 = vpop.f32.mrb[45].mxu1 }
 0x393   : > { %v14076_v27 = vld [vmem:[#allocation133_spill] sm:$0xff] }
 0x394   : > { %3416 = vmatmul.mubr.f32.gmra.mrb[22].mxu0 %v14058_v19  ;;  %v14077_v19 = vld [vmem:[#allocation134_spill] sm:$0xff] }
 0x395   : > { %3420 = vmatprep.mubr.f32.mxu0 %v14059_v7  ;;  %v10749_v1 = vpop.f32.mrb[46].mxu1  ;;  %v14078_v7 = vld [vmem:[#allocation139_spill] sm:$0xff] }
 0x396   : > { %v1904_v17 = vpop.f32.mrb[47].mxu1 }
 0x397   : > { %v14079_v17 = vld [vmem:[#allocation141_spill] sm:$0xff] }
 0x398   : > { %3421 = vmatmul.mubr.f32.gmra.mrb[24].mxu0 %v14060_v44  ;;  %v14080_v44 = vld [vmem:[#allocation145_spill] sm:$0xff] }
 0x399   : > { %3425 = vmatprep.mubr.f32.mxu0 %v14061_v42  ;;  %v10753_v16 = vpop.f32.mrb[48].mxu1  ;;  %v14081_v42 = vld [vmem:[#allocation146_spill] sm:$0xff] }
 0x39a   : > { %v1909_v50 = vpop.f32.mrb[49].mxu1 }
 0x39b   : > { %v14082_v50 = vld [vmem:[#allocation150_spill] sm:$0xff] }
 0x39c   : > { %3426 = vmatmul.mubr.f32.gmra.mrb[26].mxu0 %v14062_v29  ;;  %v14083_v29 = vld [vmem:[#allocation151_spill] sm:$0xff] }
 0x39d   : > { %3430 = vmatprep.mubr.f32.mxu0 %v14063_v60  ;;  %v10757_v41 = vpop.f32.mrb[50].mxu1  ;;  %v14084_v60 = vld [vmem:[#allocation155_spill] sm:$0xff] }
 0x39e   : > { %v1914_v43 = vpop.f32.mrb[51].mxu1 }
 0x39f   : > { %v14085_v43 = vld [vmem:[#allocation156_spill] sm:$0xff] }
 0x3a0   : > { %3431 = vmatmul.mubr.f32.gmra.mrb[28].mxu0 %v14064_v52  ;;  %v14086_v52 = vld [vmem:[#allocation157_spill] sm:$0xff] }
 0x3a1   : > { %3435 = vmatprep.mubr.f32.mxu0 %v14065_v31  ;;  %v10761_v26 = vpop.f32.mrb[52].mxu1  ;;  %v14087_v31 = vld [vmem:[#allocation158_spill] sm:$0xff] }
 0x3a2   : > { %v1919_v61 = vpop.f32.mrb[53].mxu1 }
 0x3a3   : > { %v14088_v61 = vld [vmem:[#allocation159_spill] sm:$0xff] }
 0x3a4   : > { %3436 = vmatmul.mubr.f32.gmra.mrb[30].mxu0 %v14066_v11  ;;  %v14089_v11 = vld [vmem:[#allocation160_spill] sm:$0xff] }
 0x3a5   : > { %3440 = vmatprep.mubr.f32.mxu0 %v14067_v6  ;;  %v10765_v48 = vpop.f32.mrb[54].mxu1  ;;  %v14090_v6 = vld [vmem:[#allocation161_spill] sm:$0xff] }
 0x3a6   : > { %v1924_v35 = vpop.f32.mrb[55].mxu1 }
 0x3a7   : > { %v14091_v35 = vld [vmem:[#allocation18_spill] sm:$0xff] }
 0x3a8   : > { %3441 = vmatmul.mubr.f32.gmra.mrb[32].mxu0 %v14068_v49  ;;  %v14092_v49 = vld [vmem:[#allocation20_spill] sm:$0xff] }
 0x3a9   : > { %3445 = vmatprep.mubr.f32.mxu0 %v14069_v62  ;;  %v10769_v30 = vpop.f32.mrb[56].mxu1  ;;  %v14093_v62 = vld [vmem:[#allocation22_spill] sm:$0xff] }
 0x3aa   : > { %v1929_v37 = vpop.f32.mrb[57].mxu1 }
 0x3ab   : > { %v14094_v37 = vld [vmem:[#allocation24_spill] sm:$0xff] }
 0x3ac   : > { %3446 = vmatmul.mubr.f32.gmra.mrb[34].mxu0 %v14070_v24  ;;  %v14095_v24 = vld [vmem:[#allocation10_spill] sm:$0xff] }
 0x3ad   : > { %3450 = vmatprep.mubr.f32.mxu0 %v14071_v20  ;;  %v10773_v32 = vpop.f32.mrb[58].mxu1  ;;  %v14096_v20 = vld [vmem:[#allocation14_spill] sm:$0xff] }
 0x3ae   : > { %v1934_v0 = vpop.f32.mrb[59].mxu1 }
 0x3af   : > { %v4185_v0 = vld [vmem:[%s13067_s3] sm:$0xff] }
 0x3b0   : > { %3451 = vmatmul.mubr.f32.gmra.mrb[36].mxu0 %v14072_v54  ;;  %v4186_v54 = vld [vmem:[%s13067_s3 + $0x8] sm:$0xff] }
 0x3b1   : > { %3455 = vmatprep.mubr.f32.mxu0 %v14073_v5  ;;  %v10777_v59 = vpop.f32.mrb[60].mxu1  ;;  %v6702_v5 = vpack.c.bf16 %v4186_v54, %v4185_v0  ;;  %v4203_v54 = vld [vmem:[%s13067_s3 + $0x90] sm:$0xff] }
 0x3b2   : > { %v1939_v39 = vpop.f32.mrb[61].mxu1 }
 0x3b3   : > { %6703 = vmatpush1.bf16.msra.mxu1 %v6702_v5  ;;  %v4187_v39 = vld [vmem:[%s13067_s3 + $0x10] sm:$0xff]  ;;  %v4204_v5 = vld [vmem:[%s13067_s3 + $0x98] sm:$0xff] }
 0x3b4   : > { %3456 = vmatmul.mubr.f32.gmra.mrb[38].mxu0 %v14074_v2  ;;  %6704 = vmatprep.subr.bf16.mxu1 %v13608_v9  ;;  %v4188_v2 = vld [vmem:[%s13067_s3 + $0x18] sm:$0xff] }
 0x3b5   : > { %3460 = vmatprep.mubr.f32.mxu0 %v14075_v13  ;;  %v10781_v18 = vpop.f32.mrb[62].mxu1  ;;  %v6705_v13 = vpack.c.bf16 %v4188_v2, %v4187_v39  ;;  %v6729_v39 = vpack.c.bf16 %v4204_v5, %v4203_v54  ;;  %v4205_v2 = vld [vmem:[%s13067_s3 + $0xa0] sm:$0xff] }
 0x3b6   : > { %v1944_v28 = vpop.f32.mrb[63].mxu1 }
 0x3b7   : > { %6706 = vmatpush1.bf16.msra.mxu1 %v6705_v13  ;;  %v4189_v28 = vld [vmem:[%s13067_s3 + $0x20] sm:$0xff]  ;;  %v4206_v13 = vld [vmem:[%s13067_s3 + $0xa8] sm:$0xff] }
 0x3b8   : > { %3461 = vmatmul.mubr.f32.gmra.mrb[40].mxu0 %v14076_v27  ;;  %6707 = vmatprep.subr.bf16.mxu1 %v13608_v9  ;;  %v4190_v27 = vld [vmem:[%s13067_s3 + $0x28] sm:$0xff] }
 0x3b9   : > { %3465 = vmatprep.mubr.f32.mxu0 %v14077_v19  ;;  %v6708_v19 = vpack.c.bf16 %v4190_v27, %v4189_v28  ;;  %v6732_v28 = vpack.c.bf16 %v4206_v13, %v4205_v2 }
 0x3bb   : > { %6709 = vmatpush1.bf16.msra.mxu1 %v6708_v19 }
 0x3bc   : > { %3466 = vmatmul.mubr.f32.gmra.mrb[42].mxu0 %v14078_v7  ;;  %6710 = vmatprep.subr.bf16.mxu1 %v13608_v9  ;;  %v4191_v7 = vld [vmem:[%s13067_s3 + $0x30] sm:$0xff] }
 0x3bd   : > { %3470 = vmatprep.mubr.f32.mxu0 %v14079_v17  ;;  %v4192_v17 = vld [vmem:[%s13067_s3 + $0x38] sm:$0xff] }
 0x3c0   : > { %3471 = vmatmul.mubr.f32.gmra.mrb[44].mxu0 %v14080_v44  ;;  %v6711_v44 = vpack.c.bf16 %v4192_v17, %v4191_v7 }
 0x3c1   : > { %3475 = vmatprep.mubr.f32.mxu0 %v14081_v42  ;;  %v4193_v42 = vld [vmem:[%s13067_s3 + $0x40] sm:$0xff] }
 0x3c2   : > { %6712 = vmatpush1.bf16.msra.mxu1 %v6711_v44 }
 0x3c3   : > { %6713 = vmatprep.subr.bf16.mxu1 %v13608_v9 }
 0x3c4   : > { %3476 = vmatmul.mubr.f32.gmra.mrb[46].mxu0 %v14082_v50  ;;  %v4194_v50 = vld [vmem:[%s13067_s3 + $0x48] sm:$0xff] }
 0x3c5   : > { %3480 = vmatprep.mubr.f32.mxu0 %v14083_v29  ;;  %v6714_v29 = vpack.c.bf16 %v4194_v50, %v4193_v42 }
 0x3c7   : > { %6715 = vmatpush1.bf16.msra.mxu1 %v6714_v29 }
 0x3c8   : > { %3481 = vmatmul.mubr.f32.gmra.mrb[48].mxu0 %v14084_v60  ;;  %6716 = vmatprep.subr.bf16.mxu1 %v13608_v9  ;;  %v4195_v60 = vld [vmem:[%s13067_s3 + $0x50] sm:$0xff] }
 0x3c9   : > { %3485 = vmatprep.mubr.f32.mxu0 %v14085_v43  ;;  %v4196_v43 = vld [vmem:[%s13067_s3 + $0x58] sm:$0xff] }
 0x3cc   : > { %3486 = vmatmul.mubr.f32.gmra.mrb[50].mxu0 %v14086_v52  ;;  %v6717_v52 = vpack.c.bf16 %v4196_v43, %v4195_v60 }
 0x3cd   : > { %3490 = vmatprep.mubr.f32.mxu0 %v14087_v31  ;;  %v4197_v31 = vld [vmem:[%s13067_s3 + $0x60] sm:$0xff] }
 0x3ce   : > { %6718 = vmatpush1.bf16.msra.mxu1 %v6717_v52 }
 0x3cf   : > { %6719 = vmatprep.subr.bf16.mxu1 %v13608_v9 }
 0x3d0   : > { %3491 = vmatmul.mubr.f32.gmra.mrb[52].mxu0 %v14088_v61  ;;  %v4198_v61 = vld [vmem:[%s13067_s3 + $0x68] sm:$0xff] }
 0x3d1   : > { %3495 = vmatprep.mubr.f32.mxu0 %v14089_v11  ;;  %v6720_v11 = vpack.c.bf16 %v4198_v61, %v4197_v31 }
 0x3d3   : > { %6721 = vmatpush1.bf16.msra.mxu1 %v6720_v11 }
 0x3d4   : > { %3496 = vmatmul.mubr.f32.gmra.mrb[54].mxu0 %v14090_v6  ;;  %6722 = vmatprep.subr.bf16.mxu1 %v13608_v9  ;;  %v4199_v6 = vld [vmem:[%s13067_s3 + $0x70] sm:$0xff] }
 0x3d5   : > { %3500 = vmatprep.mubr.f32.mxu0 %v14091_v35  ;;  %v4200_v35 = vld [vmem:[%s13067_s3 + $0x78] sm:$0xff] }
 0x3d8   : > { %3501 = vmatmul.mubr.f32.gmra.mrb[56].mxu0 %v14092_v49  ;;  %v6723_v49 = vpack.c.bf16 %v4200_v35, %v4199_v6 }
 0x3d9   : > { %3505 = vmatprep.mubr.f32.mxu0 %v14093_v62  ;;  %v4201_v62 = vld [vmem:[%s13067_s3 + $0x80] sm:$0xff] }
 0x3da   : > { %6724 = vmatpush1.bf16.msra.mxu1 %v6723_v49 }
 0x3db   : > { %6725 = vmatprep.subr.bf16.mxu1 %v13608_v9 }
 0x3dc   : > { %3506 = vmatmul.mubr.f32.gmra.mrb[58].mxu0 %v14094_v37  ;;  %v4202_v37 = vld [vmem:[%s13067_s3 + $0x88] sm:$0xff] }
 0x3dd   : > { %3510 = vmatprep.mubr.f32.mxu0 %v14095_v24  ;;  %v6726_v0 = vpack.c.bf16 %v4202_v37, %v4201_v62 }
 0x3df   : > { %6727 = vmatpush1.bf16.msra.mxu1 %v6726_v0 }
 0x3e0   : > { %3511 = vmatmul.mubr.f32.gmra.mrb[60].mxu0 %v14095_v24  ;;  %6728 = vmatprep.subr.bf16.mxu1 %v13608_v9 }
 0x3e1   : > { %3515 = vmatprep.mubr.f32.mxu0 %v14096_v20 }
 0x3e3   : > { %6730 = vmatpush1.bf16.msra.mxu1 %v6729_v39 }
 0x3e4   : > { %3516 = vmatmul.mubr.f32.gmra.mrb[62].mxu0 %v14096_v20  ;;  %6731 = vmatprep.subr.bf16.mxu1 %v13608_v9 }
 0x3e7   : > { %6733 = vmatpush1.bf16.msra.mxu1 %v6732_v28 }
 0x3e8   : > { %6734 = vmatprep.subr.bf16.mxu1 %v13608_v9 }
 0x43b   : > { %v3362_v27 = vpop.f32.mrb[0].mxu0 }
 0x43c   : > { %v10883_v19 = vadd.f32 %v3362_v27, %v10657_v40  ;;  %v3364_v7 = vpop.f32.mrb[1].mxu0 }
 0x43f   : > { %v3367_v17 = vpop.f32.mrb[2].mxu0 }
 0x440   : > { %v10887_v44 = vadd.f32 %v3367_v17, %v10661_v55  ;;  %v3369_v42 = vpop.f32.mrb[3].mxu0 }
 0x443   : > { %v3372_v50 = vpop.f32.mrb[4].mxu0 }
 0x444   : > { %v10890_v29 = vadd.f32 %v3372_v50, %v10665_v63  ;;  %v3374_v60 = vpop.f32.mrb[5].mxu0 }
 0x447   : > { %v3377_v43 = vpop.f32.mrb[6].mxu0 }
 0x448   : > { %v10893_v52 = vadd.f32 %v3377_v43, %v10669_v33  ;;  %v3379_v31 = vpop.f32.mrb[7].mxu0 }
 0x449   : > { %v3523_v31 = vmul.f32 %v10887_v44, %v10887_v44 }
 0x44b   : > { %v3382_v40 = vpop.f32.mrb[8].mxu0 }
 0x44c   : > { %v10896_v61 = vadd.f32 %v3382_v40, %v10673_v46  ;;  %v3384_v11 = vpop.f32.mrb[9].mxu0  ;;  %v3522_v40 = vmul.f32 %v10883_v19, %v10883_v19 }
 0x44f   : > { %v3387_v6 = vpop.f32.mrb[10].mxu0 }
 0x450   : > { %v10899_v55 = vadd.f32 %v3387_v6, %v10677_v3  ;;  %v3389_v35 = vpop.f32.mrb[11].mxu0 }
 0x451   : > { %v4209_v35 = vld [vmem:[%s13067_s3 + $0xc0] sm:$0xff] }
 0x453   : > { %v3392_v49 = vpop.f32.mrb[12].mxu0 }
 0x454   : > { %v10902_v63 = vadd.f32 %v3392_v49, %v10681_v53  ;;  %v3394_v62 = vpop.f32.mrb[13].mxu0  ;;  %v4210_v49 = vld [vmem:[%s13067_s3 + $0xc8] sm:$0xff] }
 0x455   : > { %v6738_v62 = vpack.c.bf16 %v4210_v49, %v4209_v35 }
 0x457   : > { %v3397_v37 = vpop.f32.mrb[14].mxu0 }
 0x458   : > { %v10905_v33 = vadd.f32 %v3397_v37, %v10685_v8  ;;  %v3399_v0 = vpop.f32.mrb[15].mxu0  ;;  %v3554_v37 = vadd.f32 %v3523_v31, %v3522_v40 }
 0x459   : > { %v3525_v0 = vmul.f32 %v10893_v52, %v10893_v52 }
 0x45a   : > { %v3529_v40 = vmul.f32 %v10905_v33, %v10905_v33 }
 0x45b   : > { %v3402_v54 = vpop.f32.mrb[16].mxu0 }
 0x45c   : > { %v10908_v46 = vadd.f32 %v3402_v54, %v10689_v21  ;;  %v3404_v5 = vpop.f32.mrb[17].mxu0 }
 0x45d   : > { %v3526_v5 = vmul.f32 %v10896_v61, %v10896_v61 }
 0x45f   : > { %v3407_v39 = vpop.f32.mrb[18].mxu0 }
 0x460   : > { %v10911_v3 = vadd.f32 %v3407_v39, %v10693_v58  ;;  %v3409_v2 = vpop.f32.mrb[19].mxu0 }
 0x463   : > { %v3412_v13 = vpop.f32.mrb[20].mxu0 }
 0x464   : > { %v10914_v53 = vadd.f32 %v3412_v13, %v10697_v38  ;;  %v3414_v28 = vpop.f32.mrb[21].mxu0  ;;  %v4207_v38 = vld [vmem:[%s13067_s3 + $0xb0] sm:$0xff] }
 0x465   : > { %v4211_v13 = vld [vmem:[%s13067_s3 + $0xd0] sm:$0xff]  ;;  %v4212_v28 = vld [vmem:[%s13067_s3 + $0xd8] sm:$0xff] }
 0x467   : > { %v3417_v27 = vpop.f32.mrb[22].mxu0 }
 0x468   : > { %v10917_v8 = vadd.f32 %v3417_v27, %v10701_v47  ;;  %v3419_v7 = vpop.f32.mrb[23].mxu0  ;;  %v4208_v47 = vld [vmem:[%s13067_s3 + $0xb8] sm:$0xff]  ;;  %v6741_v27 = vpack.c.bf16 %v4212_v28, %v4211_v13 }
 0x469   : > { %v6735_v43 = vpack.c.bf16 %v4208_v47, %v4207_v38  ;;  %v4213_v47 = vld [vmem:[%s13067_s3 + $0xe0] sm:$0xff] }
 0x46b   : > { %v3422_v17 = vpop.f32.mrb[24].mxu0  ;;  %6736 = vmatpush1.bf16.msra.mxu1 %v6735_v43  ;;  %v4214_v43 = vld [vmem:[%s13067_s3 + $0xe8] sm:$0xff] }
 0x46c   : > { %v10920_v21 = vadd.f32 %v3422_v17, %v10705_v36  ;;  %v3424_v42 = vpop.f32.mrb[25].mxu0  ;;  %6737 = vmatprep.subr.bf16.mxu1 %v13608_v9  ;;  %v3527_v17 = vmul.f32 %v10899_v55, %v10899_v55  ;;  %v6744_v31 = vpack.c.bf16 %v4214_v43, %v4213_v47 }
 0x46f   : > { %v3427_v50 = vpop.f32.mrb[26].mxu0  ;;  %6739 = vmatpush1.bf16.msra.mxu1 %v6738_v62  ;;  %v4215_v62 = vld [vmem:[%s13067_s3 + $0xf0] sm:$0xff] }
 0x470   : > { %v10923_v58 = vadd.f32 %v3427_v50, %v10709_v14  ;;  %v3429_v60 = vpop.f32.mrb[27].mxu0  ;;  %v3524_v14 = vmul.f32 %v10890_v29, %v10890_v29  ;;  %6740 = vmatprep.subr.bf16.mxu1 %v13608_v9  ;;  %v3528_v50 = vmul.f32 %v10902_v63, %v10902_v63 }
 0x473   : > { %v3432_v36 = vpop.f32.mrb[28].mxu0  ;;  %6742 = vmatpush1.bf16.msra.mxu1 %v6741_v27 }
 0x474   : > { %v10938_v11 = vadd.f32 %v3432_v36, %v10713_v45  ;;  %v3434_v6 = vpop.f32.mrb[29].mxu0  ;;  %v3555_v45 = vadd.f32 %v3554_v37, %v3524_v14  ;;  %6743 = vmatprep.subr.bf16.mxu1 %v13608_v9  ;;  %v4216_v37 = vld [vmem:[%s13067_s3 + $0xf8] sm:$0xff] }
 0x475   : > { %v3530_v6 = vmul.f32 %v10908_v46, %v10908_v46 }
 0x476   : > { %v3556_v7 = vadd.f32 %v3555_v45, %v3525_v0  ;;  %v6747_v0 = vpack.c.bf16 %v4216_v37, %v4215_v62  ;;  %v3531_v45 = vmul.f32 %v10911_v3, %v10911_v3 }
 0x477   : > { %v3437_v54 = vpop.f32.mrb[30].mxu0  ;;  %6745 = vmatpush1.bf16.msra.mxu1 %v6744_v31 }
 0x478   : > { %v10952_v39 = vadd.f32 %v3437_v54, %v10717_v22  ;;  %v3439_v2 = vpop.f32.mrb[31].mxu0  ;;  %v3557_v22 = vadd.f32 %v3556_v7, %v3526_v5  ;;  %6746 = vmatprep.subr.bf16.mxu1 %v13608_v9  ;;  %v3533_v7 = vmul.f32 %v10917_v8, %v10917_v8 }
 0x479   : > { %v3532_v2 = vmul.f32 %v10914_v53, %v10914_v53 }
 0x47a   : > { %v3558_v36 = vadd.f32 %v3557_v22, %v3527_v17  ;;  %v4217_v22 = vld [vmem:[%s13067_s3 + $0x100] sm:$0xff]  ;;  %v3537_v37 = vmul.f32 %v10952_v39, %v10952_v39 }
 0x47b   : > { %v3442_v42 = vpop.f32.mrb[32].mxu0  ;;  %6748 = vmatpush1.bf16.msra.mxu1 %v6747_v0  ;;  %v4219_v0 = vld [vmem:[%s13067_s3 + $0x110] sm:$0xff] }
 0x47c   : > { %v10966_v60 = vadd.f32 %v3442_v42, %v10721_v10  ;;  %v3444_v38 = vpop.f32.mrb[33].mxu0  ;;  %v3559_v10 = vadd.f32 %v3558_v36, %v3528_v50  ;;  %6749 = vmatprep.subr.bf16.mxu1 %v13608_v9 }
 0x47d   : > { %v3534_v38 = vmul.f32 %v10920_v21, %v10920_v21 }
 0x47e   : > { %v3560_v54 = vadd.f32 %v3559_v10, %v3529_v40  ;;  %6037 = vmatmul.mubr.msk.f32.vlgmr.msra.gmra.mrb[64].mxu1 %vm8014_vm2, %v13865_v51  ;;  %v3535_v40 = vmul.f32 %v10923_v58, %v10923_v58 }
 0x47f   : > { %v3447_v14 = vpop.f32.mrb[34].mxu0  ;;  %4398 = vmatprep.mubr.f32.mxu1 %v14034_v4 }
 0x480   : > { %v10980_v35 = vadd.f32 %v3447_v14, %v10725_v12  ;;  %v3449_v49 = vpop.f32.mrb[35].mxu0  ;;  %v3561_v12 = vadd.f32 %v3560_v54, %v3530_v6  ;;  %v3536_v6 = vmul.f32 %v10938_v11, %v10938_v11  ;;  %v4220_v54 = vld [vmem:[%s13067_s3 + $0x118] sm:$0xff] }
 0x482   : > { %v3562_v27 = vadd.f32 %v3561_v12, %v3531_v45  ;;  %4399 = vmatmul.mubr.f32.gmra.mrb[66].mxu1 %v13865_v51 }
 0x483   : > { %v3452_v5 = vpop.f32.mrb[36].mxu0 }
 0x484   : > { %v10994_v13 = vadd.f32 %v3452_v5, %v10729_v23  ;;  %v3454_v28 = vpop.f32.mrb[37].mxu0  ;;  %v4218_v23 = vld [vmem:[%s13067_s3 + $0x108] sm:$0xff]  ;;  %v3563_v50 = vadd.f32 %v3562_v27, %v3532_v2  ;;  %v6753_v5 = vpack.c.bf16 %v4220_v54, %v4219_v0 }
 0x485   : > { %v6750_v31 = vpack.c.bf16 %v4218_v23, %v4217_v22 }
 0x486   : > { %v3564_v36 = vadd.f32 %v3563_v50, %v3533_v7  ;;  %v3539_v7 = vmul.f32 %v10980_v35, %v10980_v35  ;;  %v3540_v23 = vmul.f32 %v10994_v13, %v10994_v13 }
 0x487   : > { %v3457_v42 = vpop.f32.mrb[38].mxu0  ;;  %6751 = vmatpush1.bf16.msra.mxu1 %v6750_v31  ;;  %v4221_v31 = vld [vmem:[%s13067_s3 + $0x120] sm:$0xff] }
 0x488   : > { %v11012_v47 = vadd.f32 %v3457_v42, %v10733_v15  ;;  %v3459_v43 = vpop.f32.mrb[39].mxu0  ;;  %6752 = vmatprep.subr.bf16.mxu1 %v13608_v9  ;;  %v3565_v10 = vadd.f32 %v3564_v36, %v3534_v38  ;;  %v4222_v36 = vld [vmem:[%s13067_s3 + $0x128] sm:$0xff] }
 0x48a   : > { %v3566_v62 = vadd.f32 %v3565_v10, %v3535_v40 }
 0x48b   : > { %v3462_v14 = vpop.f32.mrb[40].mxu0  ;;  %6754 = vmatpush1.bf16.msra.mxu1 %v6753_v5 }
 0x48c   : > { %v11021_v49 = vadd.f32 %v3462_v14, %v10737_v57  ;;  %v3464_v15 = vpop.f32.mrb[41].mxu0  ;;  %v3567_v12 = vadd.f32 %v3566_v62, %v3536_v6  ;;  %v3538_v57 = vmul.f32 %v10966_v60, %v10966_v60  ;;  %6755 = vmatprep.subr.bf16.mxu1 %v13608_v9  ;;  %v6756_v14 = vpack.c.bf16 %v4222_v36, %v4221_v31 }
 0x48e   : > { %v3568_v27 = vadd.f32 %v3567_v12, %v3537_v37 }
 0x48f   : > { %v3467_v45 = vpop.f32.mrb[42].mxu0  ;;  %6757 = vmatpush1.bf16.msra.mxu1 %v6756_v14 }
 0x490   : > { %v11034_v2 = vadd.f32 %v3467_v45, %v10741_v25  ;;  %v3469_v28 = vpop.f32.mrb[43].mxu0  ;;  %v3569_v22 = vadd.f32 %v3568_v27, %v3538_v57  ;;  %v3541_v25 = vmul.f32 %v11012_v47, %v11012_v47  ;;  %6758 = vmatprep.subr.bf16.mxu1 %v13608_v9  ;;  %v4224_v27 = vld [vmem:[%s13067_s3 + $0x138] sm:$0xff] }
 0x491   : > { %v4223_v28 = vld [vmem:[%s13067_s3 + $0x130] sm:$0xff] }
 0x492   : > { %v3570_v43 = vadd.f32 %v3569_v22, %v3539_v7  ;;  %v3543_v37 = vmul.f32 %v11034_v2, %v11034_v2 }
 0x493   : > { %v3472_v42 = vpop.f32.mrb[44].mxu0 }
 0x494   : > { %v11042_v50 = vadd.f32 %v3472_v42, %v10745_v56  ;;  %v3474_v38 = vpop.f32.mrb[45].mxu0  ;;  %v3571_v10 = vadd.f32 %v3570_v43, %v3540_v23  ;;  %v3542_v56 = vmul.f32 %v11021_v49, %v11021_v49  ;;  %v6759_v42 = vpack.c.bf16 %v4224_v27, %v4223_v28 }
 0x496   : > { %v3572_v62 = vadd.f32 %v3571_v10, %v3541_v25  ;;  %v3544_v45 = vmul.f32 %v11042_v50, %v11042_v50  ;;  %6760 = vmatpush1.bf16.msra.mxu1 %v6759_v42 }
 0x497   : > { %v3477_v40 = vpop.f32.mrb[46].mxu0  ;;  %6761 = vmatprep.subr.bf16.mxu1 %v13608_v9 }
 0x498   : > { %v11055_v6 = vadd.f32 %v3477_v40, %v10749_v1  ;;  %v3479_v15 = vpop.f32.mrb[47].mxu0  ;;  %v3573_v54 = vadd.f32 %v3572_v62, %v3542_v56 }
 0x499   : > { %v4226_v15 = vld [vmem:[%s13067_s3 + $0x148] sm:$0xff] }
 0x49a   : > { %v3574_v57 = vadd.f32 %v3573_v54, %v3543_v37  ;;  %v3545_v1 = vmul.f32 %v11055_v6, %v11055_v6 }
 0x49b   : > { %v3482_v0 = vpop.f32.mrb[48].mxu0 }
 0x49c   : > { %v11063_v5 = vadd.f32 %v3482_v0, %v10753_v16  ;;  %v3484_v12 = vpop.f32.mrb[49].mxu0  ;;  %v3575_v22 = vadd.f32 %v3574_v57, %v3544_v45 }
 0x49e   : > { %v3546_v16 = vmul.f32 %v11063_v5, %v11063_v5  ;;  %v3576_v43 = vadd.f32 %v3575_v22, %v3545_v1 }
 0x49f   : > { %v3487_v7 = vpop.f32.mrb[50].mxu0 }
 0x4a0   : > { %v11076_v23 = vadd.f32 %v3487_v7, %v10757_v41  ;;  %v3489_v38 = vpop.f32.mrb[51].mxu0  ;;  %v3577_v36 = vadd.f32 %v3576_v43, %v3546_v16  ;;  %v4225_v41 = vld [vmem:[%s13067_s3 + $0x140] sm:$0xff]  ;;  %v4228_v7 = vld [vmem:[%s13067_s3 + $0x158] sm:$0xff] }
 0x4a1   : > { %v6762_v37 = vpack.c.bf16 %v4226_v15, %v4225_v41 }
 0x4a2   : > { %v3547_v25 = vmul.f32 %v11076_v23, %v11076_v23 }
 0x4a3   : > { %v3492_v31 = vpop.f32.mrb[52].mxu0  ;;  %6763 = vmatpush1.bf16.msra.mxu1 %v6762_v37 }
 0x4a4   : > { %v11082_v40 = vadd.f32 %v3492_v31, %v10761_v26  ;;  %v3494_v14 = vpop.f32.mrb[53].mxu0  ;;  %v3578_v10 = vadd.f32 %v3577_v36, %v3547_v25  ;;  %6764 = vmatprep.subr.bf16.mxu1 %v13608_v9 }
 0x4a6   : > { %v3548_v56 = vmul.f32 %v11082_v40, %v11082_v40 }
 0x4a7   : > { %v3497_v62 = vpop.f32.mrb[54].mxu0 }
 0x4a8   : > { %v3579_v0 = vadd.f32 %v3578_v10, %v3548_v56  ;;  %v11093_v54 = vadd.f32 %v3497_v62, %v10765_v48  ;;  %v3499_v26 = vpop.f32.mrb[55].mxu0  ;;  %v4227_v48 = vld [vmem:[%s13067_s3 + $0x150] sm:$0xff]  ;;  %v4229_v56 = vld [vmem:[%s13067_s3 + $0x160] sm:$0xff] }
 0x4a9   : > { %v6765_v22 = vpack.c.bf16 %v4228_v7, %v4227_v48 }
 0x4aa   : > { %v3549_v45 = vmul.f32 %v11093_v54, %v11093_v54 }
 0x4ab   : > { %v3502_v12 = vpop.f32.mrb[56].mxu0  ;;  %6766 = vmatpush1.bf16.msra.mxu1 %v6765_v22  ;;  %v4234_v22 = vld [vmem:[%s13067_s3 + $0x188] sm:$0xff] }
 0x4ac   : > { %v3580_v57 = vadd.f32 %v3579_v0, %v3549_v45  ;;  %v11099_v1 = vadd.f32 %v3502_v12, %v10769_v30  ;;  %v3504_v28 = vpop.f32.mrb[57].mxu0  ;;  %6767 = vmatprep.subr.bf16.mxu1 %v13608_v9  ;;  %v4231_v12 = vld [vmem:[%s13067_s3 + $0x170] sm:$0xff] }
 0x4ae   : > { %v3550_v27 = vmul.f32 %v11099_v1, %v11099_v1 }
 0x4af   : > { %v3507_v42 = vpop.f32.mrb[58].mxu0 }
 0x4b0   : > { %v3581_v16 = vadd.f32 %v3580_v57, %v3550_v27  ;;  %v11110_v38 = vadd.f32 %v3507_v42, %v10773_v32  ;;  %v3509_v30 = vpop.f32.mrb[59].mxu0  ;;  %v4230_v32 = vld [vmem:[%s13067_s3 + $0x168] sm:$0xff]  ;;  %v4232_v57 = vld [vmem:[%s13067_s3 + $0x178] sm:$0xff]  ;;  %v4233_v42 = vld [vmem:[%s13067_s3 + $0x180] sm:$0xff] }
 0x4b1   : > { %v6768_v15 = vpack.c.bf16 %v4230_v32, %v4229_v56  ;;  %v6771_v28 = vpack.c.bf16 %v4232_v57, %v4231_v12  ;;  %v4236_v56 = vld [vmem:[%s13067_s3 + $0x198] sm:$0xff] }
 0x4b2   : > { %v3551_v43 = vmul.f32 %v11110_v38, %v11110_v38 }
 0x4b3   : > { %v3512_v25 = vpop.f32.mrb[60].mxu0  ;;  %6769 = vmatpush1.bf16.msra.mxu1 %v6768_v15 }
 0x4b4   : > { %v3582_v31 = vadd.f32 %v3581_v16, %v3551_v43  ;;  %v6955_v36 = vadd.f32 %v3512_v25, %v10777_v59  ;;  %v3514_v14 = vpop.f32.mrb[61].mxu0  ;;  %6770 = vmatprep.subr.bf16.mxu1 %v13608_v9  ;;  %v6774_v16 = vpack.c.bf16 %v4234_v22, %v4233_v42  ;;  %v3594_v43 = vstv %s3593_s28  ;;  %s6132_s28 = sld [smem:[#allocation2 + $0x1]] }
 0x4b6   : > { %v3552_v10 = vmul.f32 %v6955_v36, %v6955_v36 }
 0x4b7   : > { %v3517_v41 = vpop.f32.mrb[62].mxu0  ;;  %6772 = vmatpush1.bf16.msra.mxu1 %v6771_v28 }
 0x4b8   : > { %v3583_v62 = vadd.f32 %v3582_v31, %v3552_v10  ;;  %v6956_v37 = vadd.f32 %v3517_v41, %v10781_v18  ;;  %v3519_v0 = vpop.f32.mrb[63].mxu0  ;;  %6773 = vmatprep.subr.bf16.mxu1 %v13608_v9  ;;  %v3629_v31 = vlaneseq  ;;  %v4235_v10 = vld [vmem:[%s13067_s3 + $0x190] sm:$0xff] }
 0x4b9   : > { %v6777_v41 = vpack.c.bf16 %v4236_v56, %v4235_v10 }
 0x4ba   : > { %v3553_v26 = vmul.f32 %v6956_v37, %v6956_v37  ;;  %v11144_v32 = vshrl.u32 %v3629_v31, 7  ;;  %s5525_s10 = sand.u32 2147483647, %s6132_s28  ;;  %s7676_s28 = scalar_lea.vmem %s7675_s15, 8192 }
 0x4bb   : > { %6775 = vmatpush1.bf16.msra.mxu1 %v6774_v16  ;;  %p7678_p0 = scmp.lt.s32.totalorder %s7676_s28, %s7670_s29 }
 0x4bc   : > { %v3584_v59 = vadd.f32 %v3583_v62, %v3553_v26  ;;  %6776 = vmatprep.subr.bf16.mxu1 %v13608_v9  ;;  %14098 = vst [vmem:[#allocation42_spill] sm:$0xff] %v11144_v32  ;;  %v13454_v15 = vsub.s32 0, %v11144_v32  ;;  %v284_v62 = vld [vmem:[%s13068_s4] sm:$0x7]  ;;  %v13453_v0 = vsub.s32 1, %v11144_v32 }
 0x4bd   : > { %v4237_v26 = vld [vmem:[%s13067_s3 + $0x1a0] sm:$0xff]  ;;  %p7679_p1 = por %p7678_p0, %p7677_p13 }
 0x4be   : > { %v3585_v45 = vrot.slane %v3584_v59, 4  ;;  %v11166_v28 = vrot.slane %v284_v62, %v13453_v0 }
 0x4bf   : > { %6778 = vmatpush1.bf16.msra.mxu1 %v6777_v41  ;;  %p7680_p2 = pnand %p7679_p1, %p7673_p12 }
 0x4c0   : > { %v3586_v27 = vadd.f32 %v3585_v45, %v3584_v59  ;;  %6779 = vmatprep.subr.bf16.mxu1 %v13608_v9  ;;  %v4238_v59 = vld [vmem:[%s13067_s3 + $0x1a8] sm:$0xff]  ;;  %v11160_v45 = vrot.slane %v284_v62, %v13454_v15 }
 0x4c1   : > { %v6780_v12 = vpack.c.bf16 %v4238_v59, %v4237_v26 }
 0x4c2   : > { %v3587_v18 = vrot.slane %v3586_v27, 2 }
 0x4c3   : > { %6781 = vmatpush1.bf16.msra.mxu1 %v6780_v12 }
 0x4c4   : > { %v3588_v48 = vadd.f32 %v3587_v18, %v3586_v27  ;;  %6782 = vmatprep.subr.bf16.mxu1 %v13608_v9 }
 0x4c6   : > { %v3589_v7 = vrot.slane %v3588_v48, 1 }
 0x4c8   : > { %v3590_v30 = vadd.f32 %v3589_v7, %v3588_v48 }
 0x4ca   : > { %v3592_v25 = vmul.f32 0.00390625, %v3590_v30 }
 0x4cc   : > { %v3595_v14 = vadd.f32 %v3594_v43, %v3592_v25 }
 0x4ce   : > { %7651 = vrsqrt.f32 %v3595_v14 }
 0x4d8   : > { %v11162_v57 = vpop.eup %7651 }
 0x4d9   : > { %v3628_v27 = vmul.f32 %v11162_v57, %v6956_v37  ;;  %v3622_v7 = vmul.f32 %v11162_v57, %v11076_v23  ;;  %v3623_v42 = vmul.f32 %v11162_v57, %v11082_v40  ;;  %v3624_v22 = vmul.f32 %v11162_v57, %v11093_v54 }
 0x4da   : > { %v3625_v37 = vmul.f32 %v11162_v57, %v11099_v1  ;;  %v3626_v16 = vmul.f32 %v11162_v57, %v11110_v38  ;;  %v3627_v30 = vmul.f32 %v11162_v57, %v6955_v36  ;;  %v3615_v43 = vmul.f32 %v11162_v57, %v10994_v13 }
 0x4db   : > { %v3664_v18 = vmul.f32 %v11160_v45, %v3628_v27  ;;  %v3616_v23 = vmul.f32 %v11162_v57, %v11012_v47  ;;  %v3617_v40 = vmul.f32 %v11162_v57, %v11021_v49  ;;  %v3618_v54 = vmul.f32 %v11162_v57, %v11034_v2 }
 0x4dc   : > { %v3619_v1 = vmul.f32 %v11162_v57, %v11042_v50  ;;  %v3620_v38 = vmul.f32 %v11162_v57, %v11055_v6  ;;  %v3621_v36 = vmul.f32 %v11162_v57, %v11063_v5  ;;  %v3651_v13 = vmul.f32 %v11160_v45, %v3615_v43 }
 0x4dd   : > { %v11172_v48 = vadd.f32 %v11166_v28, %v3664_v18  ;;  %v3652_v25 = vmul.f32 %v11160_v45, %v3616_v23  ;;  %v3653_v47 = vmul.f32 %v11160_v45, %v3617_v40  ;;  %v3654_v49 = vmul.f32 %v11160_v45, %v3618_v54 }
 0x4de   : > { %v3655_v31 = vmul.f32 %v11160_v45, %v3619_v1  ;;  %v3656_v2 = vmul.f32 %v11160_v45, %v3620_v38  ;;  %v3657_v50 = vmul.f32 %v11160_v45, %v3621_v36  ;;  %v3658_v14 = vmul.f32 %v11160_v45, %v3622_v7 }
 0x4df   : > { %14099 = vst [vmem:[#allocation45_spill] sm:$0xff] %v11172_v48  ;;  %v3659_v6 = vmul.f32 %v11160_v45, %v3623_v42  ;;  %v3660_v5 = vmul.f32 %v11160_v45, %v3624_v22  ;;  %v3661_v10 = vmul.f32 %v11160_v45, %v3625_v37  ;;  %v3662_v56 = vmul.f32 %v11160_v45, %v3626_v16 }
 0x4e0   : > { %v3663_v41 = vmul.f32 %v11160_v45, %v3627_v30  ;;  %v3597_v26 = vmul.f32 %v11162_v57, %v10883_v19  ;;  %v3598_v59 = vmul.f32 %v11162_v57, %v10887_v44  ;;  %v11217_v12 = vadd.f32 %v11166_v28, %v3651_v13 }
 0x4e1   : > { %v11220_v27 = vadd.f32 %v11166_v28, %v3652_v25  ;;  %v11223_v18 = vadd.f32 %v11166_v28, %v3653_v47  ;;  %v11226_v7 = vadd.f32 %v11166_v28, %v3654_v49  ;;  %v11229_v42 = vadd.f32 %v11166_v28, %v3655_v31 }
 0x4e2   : > { %v11232_v19 = vadd.f32 %v11166_v28, %v3656_v2  ;;  %v11235_v44 = vadd.f32 %v11166_v28, %v3657_v50  ;;  %v11238_v22 = vadd.f32 %v11166_v28, %v3658_v14  ;;  %v11241_v37 = vadd.f32 %v11166_v28, %v3659_v6 }
 0x4e3   : > { %v11244_v16 = vadd.f32 %v11166_v28, %v3660_v5  ;;  %v11247_v30 = vadd.f32 %v11166_v28, %v3661_v10  ;;  %v11250_v43 = vadd.f32 %v11166_v28, %v3662_v56  ;;  %v11253_v23 = vadd.f32 %v11166_v28, %v3663_v41 }
 0x4e4   : > { %v3599_v40 = vmul.f32 %v11162_v57, %v10890_v29  ;;  %v3600_v54 = vmul.f32 %v11162_v57, %v10893_v52  ;;  %v13452_v1 = vsub.s32 2, %v11144_v32  ;;  %v3633_v38 = vmul.f32 %v11160_v45, %v3597_v26 }
 0x4e5   : > { %14100 = vst [vmem:[#allocation52_spill] sm:$0xff] %v11253_v23  ;;  %v3634_v36 = vmul.f32 %v11160_v45, %v3598_v59  ;;  %v3601_v52 = vmul.f32 %v11162_v57, %v10896_v61  ;;  %v3602_v31 = vmul.f32 %v11162_v57, %v10899_v55  ;;  %v3603_v55 = vmul.f32 %v11162_v57, %v10902_v63 }
 0x4e6   : > { %v3635_v13 = vmul.f32 %v11160_v45, %v3599_v40  ;;  %v3636_v25 = vmul.f32 %v11160_v45, %v3600_v54  ;;  %v11266_v47 = vrot.slane %v284_v62, %v13452_v1  ;;  %v3669_v49 = vadd.f32 %v11166_v28, %v3633_v38 }
 0x4e7   : > { %v3670_v29 = vadd.f32 %v11166_v28, %v3634_v36  ;;  %v3637_v62 = vmul.f32 %v11160_v45, %v3601_v52  ;;  %v3638_v5 = vmul.f32 %v11160_v45, %v3602_v31  ;;  %v3604_v26 = vmul.f32 %v11162_v57, %v10905_v33 }
 0x4e8   : > { %v3671_v2 = vadd.f32 %v11166_v28, %v3635_v13  ;;  %v3672_v50 = vadd.f32 %v11166_v28, %v3636_v25  ;;  %v3705_v14 = vmax.f32 %v3669_v49, %v11266_v47  ;;  %v3639_v25 = vmul.f32 %v11160_v45, %v3603_v55 }
 0x4e9   : > { %v3706_v6 = vmax.f32 %v3670_v29, %v11266_v47  ;;  %v3673_v59 = vadd.f32 %v11166_v28, %v3637_v62  ;;  %v3674_v40 = vadd.f32 %v11166_v28, %v3638_v5  ;;  %v3640_v49 = vmul.f32 %v11160_v45, %v3604_v26 }
 0x4ea   : > { %v3707_v10 = vmax.f32 %v3671_v2, %v11266_v47  ;;  %v3708_v56 = vmax.f32 %v3672_v50, %v11266_v47  ;;  %v3737_v61 = vmax.f32 %v3705_v14, 0.0  ;;  %v3605_v31 = vmul.f32 %v11162_v57, %v10908_v46 }
 0x4eb   : > { %v3738_v41 = vmax.f32 %v3706_v6, 0.0  ;;  %v3709_v29 = vmax.f32 %v3673_v59, %v11266_v47  ;;  %v3710_v63 = vmax.f32 %v3674_v40, %v11266_v47  ;;  %v3606_v50 = vmul.f32 %v11162_v57, %v10911_v3 }
 0x4ec   : > { %v3739_v54 = vmax.f32 %v3707_v10, 0.0  ;;  %v3740_v38 = vmax.f32 %v3708_v56, 0.0  ;;  %v11288_v36 = vrot.slane %v3737_v61, 7  ;;  %v3675_v5 = vadd.f32 %v11166_v28, %v3639_v25 }
 0x4ed   : > { %v3802_v13 = vrot.slane %v3738_v41, 7  ;;  %v3676_v46 = vadd.f32 %v11166_v28, %v3640_v49  ;;  %v3741_v61 = vmax.f32 %v3709_v29, 0.0  ;;  %v3742_v41 = vmax.f32 %v3710_v63, 0.0 }
 0x4ee   : > { %v11294_v52 = vrot.slane %v3739_v54, 7  ;;  %v3805_v33 = vrot.slane %v3740_v38, 7  ;;  %v11306_v14 = vsel %vm415_vm0, 0.0, %v11288_v36  ;;  %v3641_v59 = vmul.f32 %v11160_v45, %v3605_v31 }
 0x4ef   : > { %v11300_v2 = vsel %vm415_vm0, %v11288_v36, %v3802_v13  ;;  %v11310_v62 = vsel %vm415_vm0, %v3802_v13, 0.0  ;;  %v3959_v10 = vrot.slane %v11306_v14, 1  ;;  %v3642_v40 = vmul.f32 %v11160_v45, %v3606_v50 }
 0x4f0   : > { %v3960_v6 = vrot.slane %v11300_v2, 1  ;;  %v3962_v56 = vrot.slane %v11310_v62, 1  ;;  %v11318_v3 = vsel %vm415_vm0, %v11294_v52, %v3805_v33  ;;  %v11322_v55 = vsel %vm415_vm0, 0.0, %v11294_v52 }
 0x4f1   : > { %v3711_v54 = vmax.f32 %v3675_v5, %v11266_v47  ;;  %v3964_v13 = vrot.slane %v11322_v55, 1  ;;  %v3965_v25 = vrot.slane %v11318_v3, 1  ;;  %v3712_v49 = vmax.f32 %v3676_v46, %v11266_v47 }
 0x4f2   : > { %v11325_v26 = vsel %vm740_vm3, %v3959_v10, %v3960_v6  ;;  %v11335_v38 = vsel %vm740_vm3, %v3960_v6, %v3962_v56  ;;  %v11340_v29 = vrot.slane %v3741_v61, 7  ;;  %v3808_v63 = vrot.slane %v3742_v41, 7 }
 0x4f3   : > { %14101 = vst [vmem:[#allocation55_spill] sm:$0xff] %v11325_v26  ;;  %4403 = vmatprep.mubr.f32.mxu1 %v11325_v26  ;;  %14102 = vst [vmem:[#allocation62_spill] sm:$0xff] %v11335_v38  ;;  %v11344_v31 = vsel %vm415_vm0, %v3805_v33, 0.0  ;;  %v3607_v50 = vmul.f32 %v11162_v57, %v10914_v53  ;;  %v3608_v6 = vmul.f32 %v11162_v57, %v10917_v8  ;;  %v3743_v61 = vmax.f32 %v3711_v54, 0.0 }
 0x4f4   : > { %6039 = vmatmul.mubr.msk.f32.gmra.mrb[68].mxu1 %vm8014_vm2, %v11288_v36  ;;  %v3677_v5 = vadd.f32 %v11166_v28, %v3641_v59  ;;  %v3678_v10 = vadd.f32 %v11166_v28, %v3642_v40  ;;  %v11354_v46 = vsel %vm740_vm3, %v3964_v13, %v3965_v25  ;;  %v3967_v56 = vrot.slane %v11344_v31, 1 }
 0x4f5   : > { %4408 = vmatprep.mubr.f32.mxu1 %v11335_v38  ;;  %14103 = vst [vmem:[#allocation65_spill] sm:$0xff] %v11354_v46  ;;  %v3744_v33 = vmax.f32 %v3712_v49, 0.0  ;;  %v11360_v53 = vsel %vm415_vm0, %v11340_v29, %v3808_v63  ;;  %v11364_v8 = vsel %vm415_vm0, 0.0, %v11340_v29  ;;  %v3643_v41 = vmul.f32 %v11160_v45, %v3607_v50 }
 0x4f6   : > { %v3644_v59 = vmul.f32 %v11160_v45, %v3608_v6  ;;  %v3713_v40 = vmax.f32 %v3677_v5, %v11266_v47  ;;  %v11373_v54 = vsel %vm740_vm3, %v3965_v25, %v3967_v56  ;;  %v3969_v13 = vrot.slane %v11364_v8, 1 }
 0x4f7   : > { %14104 = vst [vmem:[#allocation72_spill] sm:$0xff] %v11373_v54  ;;  %v3970_v49 = vrot.slane %v11360_v53, 1  ;;  %v3714_v1 = vmax.f32 %v3678_v10, %v11266_v47  ;;  %v11378_v0 = vrot.slane %v3743_v61, 7  ;;  %v3811_v50 = vrot.slane %v3744_v33, 7 }
 0x4f8   : > { %4409 = vmatmul.mubr.f32.gmra.mrb[70].mxu1 %v11300_v2  ;;  %v11382_v6 = vsel %vm415_vm0, %v3808_v63, 0.0  ;;  %v3609_v5 = vmul.f32 %v11162_v57, %v10920_v21  ;;  %v3610_v25 = vmul.f32 %v11162_v57, %v10923_v58  ;;  %v3679_v56 = vadd.f32 %v11166_v28, %v3643_v41  ;;  %v4239_v63 = vld [vmem:[%s13067_s3 + $0x1b0] sm:$0xff]  ;;  %v4240_v21 = vld [vmem:[%s13067_s3 + $0x1b8] sm:$0xff] }
 0x4f9   : > { %4413 = vmatprep.mubr.f32.mxu1 %v11354_v46  ;;  %v3680_v15 = vadd.f32 %v11166_v28, %v3644_v59  ;;  %v11392_v10 = vsel %vm740_vm3, %v3969_v13, %v3970_v49  ;;  %v3972_v61 = vrot.slane %v11382_v6, 1  ;;  %v3745_v58 = vmax.f32 %v3713_v40, 0.0  ;;  %v4241_v40 = vld [vmem:[%s13067_s3 + $0x1c0] sm:$0xff] }
 0x4fa   : > { %14105 = vst [vmem:[#allocation75_spill] sm:$0xff] %v11392_v10  ;;  %v3746_v33 = vmax.f32 %v3714_v1, 0.0  ;;  %v11404_v41 = vsel %vm415_vm0, %v11378_v0, %v3811_v50  ;;  %v11408_v59 = vsel %vm415_vm0, 0.0, %v11378_v0  ;;  %v3645_v13 = vmul.f32 %v11160_v45, %v3609_v5  ;;  %v4242_v1 = vld [vmem:[%s13067_s3 + $0x1c8] sm:$0xff] }
 0x4fb   : > { %v3646_v32 = vmul.f32 %v11160_v45, %v3610_v25  ;;  %v6783_v4 = vpack.c.bf16 %v4240_v21, %v4239_v63  ;;  %v3715_v51 = vmax.f32 %v3679_v56, %v11266_v47  ;;  %v11423_v34 = vsel %vm740_vm3, %v3970_v49, %v3972_v61  ;;  %v4243_v49 = vld [vmem:[%s13067_s3 + $0x1d0] sm:$0xff] }
 0x4fc   : > { %6041 = vmatmul.mubr.msk.f32.gmra.mrb[72].mxu1 %vm8014_vm2, %v11294_v52  ;;  %14106 = vst [vmem:[#allocation82_spill] sm:$0xff] %v11423_v34  ;;  %v3974_v5 = vrot.slane %v11408_v59, 1  ;;  %v3975_v25 = vrot.slane %v11404_v41, 1  ;;  %v3716_v63 = vmax.f32 %v3680_v15, %v11266_v47  ;;  %v11428_v21 = vrot.slane %v3745_v58, 7  ;;  %v4244_v15 = vld [vmem:[%s13067_s3 + $0x1d8] sm:$0xff] }
 0x4fd   : > { %4418 = vmatprep.mubr.f32.mxu1 %v11373_v54  ;;  %v11432_v56 = vsel %vm415_vm0, %v3811_v50, 0.0  ;;  %6784 = vmatpush1.bf16.msra.mxu1 %v6783_v4  ;;  %v6786_v54 = vpack.c.bf16 %v4242_v1, %v4241_v40  ;;  %v3611_v61 = vmul.f32 %v11162_v57, %v10938_v11  ;;  %v3612_v58 = vmul.f32 %v11162_v57, %v10952_v39 }
 0x4fe   : > { %6785 = vmatprep.subr.bf16.mxu1 %v13608_v9  ;;  %v3681_v50 = vadd.f32 %v11166_v28, %v3645_v13  ;;  %v3682_v4 = vadd.f32 %v11166_v28, %v3646_v32  ;;  %v11449_v40 = vsel %vm740_vm3, %v3974_v5, %v3975_v25  ;;  %v3977_v1 = vrot.slane %v11432_v56, 1  ;;  %v4245_v32 = vld [vmem:[%s13067_s3 + $0x1e0] sm:$0xff]  ;;  %v4246_v13 = vld [vmem:[%s13067_s3 + $0x1e8] sm:$0xff] }
 0x4ff   : > { %14107 = vst [vmem:[#allocation85_spill] sm:$0xff] %v11449_v40  ;;  %v11459_v39 = vsel %vm415_vm0, 0.0, %v11428_v21  ;;  %v3647_v5 = vmul.f32 %v11160_v45, %v3611_v61 }
 0x500   : > { %4419 = vmatmul.mubr.f32.gmra.mrb[74].mxu1 %v11318_v3  ;;  %v3718_v46 = vmax.f32 %v3682_v4, %v11266_v47  ;;  %v4248_v4 = vld [vmem:[%s13067_s3 + $0x1f8] sm:$0xff] }
 0x501   : > { %4423 = vmatprep.mubr.f32.mxu1 %v11392_v10  ;;  %v3814_v10 = vrot.slane %v3746_v33, 7  ;;  %v3747_v33 = vmax.f32 %v3715_v51, 0.0  ;;  %6787 = vmatpush1.bf16.msra.mxu1 %v6786_v54  ;;  %v6789_v51 = vpack.c.bf16 %v4244_v15, %v4243_v49  ;;  %v11476_v54 = vsel %vm740_vm3, %v3975_v25, %v3977_v1  ;;  %v4247_v25 = vld [vmem:[%s13067_s3 + $0x1f0] sm:$0xff] }
 0x502   : > { %6788 = vmatprep.subr.bf16.mxu1 %v13608_v9  ;;  %14108 = vst [vmem:[#allocation92_spill] sm:$0xff] %v11476_v54  ;;  %v3979_v49 = vrot.slane %v11459_v39, 1 }
 0x503   : > { %v11455_v11 = vsel %vm415_vm0, %v11428_v21, %v3814_v10  ;;  %v11480_v38 = vrot.slane %v3747_v33, 7  ;;  %v3614_v33 = vmul.f32 %v11162_v57, %v10980_v35 }
 0x504   : > { %6043 = vmatmul.mubr.msk.f32.gmra.mrb[76].mxu1 %vm8014_vm2, %v11340_v29  ;;  %v3980_v15 = vrot.slane %v11455_v11, 1 }
 0x505   : > { %4428 = vmatprep.mubr.f32.mxu1 %v11423_v34  ;;  %v3748_v34 = vmax.f32 %v3716_v63, 0.0  ;;  %v3648_v63 = vmul.f32 %v11160_v45, %v3612_v58  ;;  %v11484_v58 = vsel %vm415_vm0, %v3814_v10, 0.0  ;;  %6790 = vmatpush1.bf16.msra.mxu1 %v6789_v51  ;;  %v3683_v10 = vadd.f32 %v11166_v28, %v3647_v5 }
 0x506   : > { %6791 = vmatprep.subr.bf16.mxu1 %v13608_v9  ;;  %v11511_v35 = vsel %vm415_vm0, 0.0, %v11480_v38  ;;  %v3650_v5 = vmul.f32 %v11160_v45, %v3614_v33 }
 0x507   : > { %v3817_v61 = vrot.slane %v3748_v34, 7  ;;  %v3613_v34 = vmul.f32 %v11162_v57, %v10966_v60  ;;  %v3684_v1 = vadd.f32 %v11166_v28, %v3648_v63  ;;  %v6795_v57 = vpack.c.bf16 %v4248_v4, %v4247_v25 }
 0x508   : > { %4429 = vmatmul.mubr.f32.gmra.mrb[78].mxu1 %v11360_v53  ;;  %v3686_v33 = vadd.f32 %v11166_v28, %v3650_v5 }
 0x509   : > { %4433 = vmatprep.mubr.f32.mxu1 %v11449_v40  ;;  %v3717_v40 = vmax.f32 %v3681_v50, %v11266_v47  ;;  %v6792_v50 = vpack.c.bf16 %v4246_v13, %v4245_v32  ;;  %v11501_v32 = vsel %vm740_vm3, %v3979_v49, %v3980_v15  ;;  %v3982_v13 = vrot.slane %v11484_v58, 1 }
 0x50a   : > { %14109 = vst [vmem:[#allocation95_spill] sm:$0xff] %v11501_v32  ;;  %v11507_v60 = vsel %vm415_vm0, %v11480_v38, %v3817_v61  ;;  %v3984_v49 = vrot.slane %v11511_v35, 1  ;;  %v3720_v25 = vmax.f32 %v3684_v1, %v11266_v47 }
 0x50b   : > { %v3749_v51 = vmax.f32 %v3717_v40, 0.0  ;;  %6793 = vmatpush1.bf16.msra.mxu1 %v6792_v50  ;;  %v3649_v40 = vmul.f32 %v11160_v45, %v3613_v34  ;;  %v11521_v63 = vsel %vm740_vm3, %v3980_v15, %v3982_v13  ;;  %v3985_v50 = vrot.slane %v11507_v60, 1 }
 0x50c   : > { %6045 = vmatmul.mubr.msk.f32.gmra.mrb[80].mxu1 %vm8014_vm2, %v11378_v0  ;;  %6794 = vmatprep.subr.bf16.mxu1 %v13608_v9  ;;  %14110 = vst [vmem:[#allocation105_spill] sm:$0xff] %v11521_v63  ;;  %v11530_v45 = vsel %vm415_vm0, %v3817_v61, 0.0 }
 0x50d   : > { %4438 = vmatprep.mubr.f32.mxu1 %v11476_v54  ;;  %v3750_v54 = vmax.f32 %v3718_v46, 0.0  ;;  %v3719_v46 = vmax.f32 %v3683_v10, %v11266_v47  ;;  %v11526_v4 = vrot.slane %v3749_v51, 7  ;;  %v3685_v15 = vadd.f32 %v11166_v28, %v3649_v40 }
 0x50e   : > { %v11537_v10 = vsel %vm740_vm3, %v3984_v49, %v3985_v50  ;;  %v3987_v1 = vrot.slane %v11530_v45, 1  ;;  %v3752_v51 = vmax.f32 %v3720_v25, 0.0 }
 0x50f   : > { %v3820_v34 = vrot.slane %v3750_v54, 7  ;;  %6796 = vmatpush1.bf16.msra.mxu1 %v6795_v57  ;;  %14111 = vst [vmem:[#allocation117_spill] sm:$0xff] %v11537_v10  ;;  %v3751_v54 = vmax.f32 %v3719_v46, 0.0  ;;  %v11547_v13 = vsel %vm415_vm0, 0.0, %v11526_v4  ;;  %v3721_v28 = vmax.f32 %v3685_v15, %v11266_v47 }
 0x510   : > { %4439 = vmatmul.mubr.f32.gmra.mrb[82].mxu1 %v11404_v41  ;;  %6797 = vmatprep.subr.bf16.mxu1 %v13608_v9  ;;  %v11554_v57 = vsel %vm740_vm3, %v3985_v50, %v3987_v1  ;;  %v3989_v40 = vrot.slane %v11547_v13, 1  ;;  %v3722_v46 = vmax.f32 %v3686_v33, %v11266_v47  ;;  %v3823_v25 = vrot.slane %v3752_v51, 7 }
 0x511   : > { %4443 = vmatprep.mubr.f32.mxu1 %v11501_v32  ;;  %v11543_v61 = vsel %vm415_vm0, %v11526_v4, %v3820_v34  ;;  %14112 = vst [vmem:[#allocation143_spill] sm:$0xff] %v11554_v57  ;;  %v11559_v49 = vrot.slane %v3751_v54, 7  ;;  %v11563_v15 = vsel %vm415_vm0, %v3820_v34, 0.0  ;;  %v3753_v1 = vmax.f32 %v3721_v28, 0.0 }
 0x512   : > { %v3990_v5 = vrot.slane %v11543_v61, 1  ;;  %v3992_v50 = vrot.slane %v11563_v15, 1  ;;  %v3723_v34 = vmax.f32 %v11217_v12, %v11266_v47  ;;  %v11595_v12 = vsel %vm415_vm0, %v3823_v25, 0.0 }
 0x513   : > { %v11573_v33 = vsel %vm415_vm0, %v11559_v49, %v3823_v25  ;;  %v11577_v54 = vsel %vm415_vm0, 0.0, %v11559_v49  ;;  %v3725_v25 = vmax.f32 %v11223_v18, %v11266_v47 }
 0x514   : > { %6047 = vmatmul.mubr.msk.f32.gmra.mrb[84].mxu1 %vm8014_vm2, %v11428_v21  ;;  %v11585_v51 = vsel %vm740_vm3, %v3990_v5, %v3992_v50  ;;  %v3994_v28 = vrot.slane %v11577_v54, 1  ;;  %v3997_v50 = vrot.slane %v11595_v12, 1  ;;  %v3755_v32 = vmax.f32 %v3723_v34, 0.0 }
 0x515   : > { %4448 = vmatprep.mubr.f32.mxu1 %v11521_v63  ;;  %v3754_v63 = vmax.f32 %v3722_v46, 0.0  ;;  %14114 = vst [vmem:[#allocation153_spill] sm:$0xff] %v11585_v51  ;;  %v3724_v46 = vmax.f32 %v11220_v27, %v11266_v47  ;;  %v3757_v48 = vmax.f32 %v3725_v25, 0.0 }
 0x517   : > { %v3756_v26 = vmax.f32 %v3724_v46, 0.0  ;;  %v3726_v46 = vmax.f32 %v11226_v7, %v11266_v47 }
 0x518   : > { %4449 = vmatmul.mubr.f32.gmra.mrb[86].mxu1 %v11455_v11 }
 0x519   : > { %4453 = vmatprep.mubr.f32.mxu1 %v11537_v10  ;;  %v11567_v10 = vsel %vm740_vm3, %v3989_v40, %v3990_v5  ;;  %v3995_v40 = vrot.slane %v11573_v33, 1  ;;  %v3758_v23 = vmax.f32 %v3726_v46, 0.0  ;;  %v3728_v46 = vmax.f32 %v11232_v19, %v11266_v47 }
 0x51a   : > { %14113 = vst [vmem:[#allocation149_spill] sm:$0xff] %v11567_v10 }
 0x51b   : > { %v11599_v5 = vsel %vm740_vm3, %v3994_v28, %v3995_v40 }
 0x51c   : > { %6049 = vmatmul.mubr.msk.f32.gmra.mrb[88].mxu1 %vm8014_vm2, %v11480_v38  ;;  %14115 = vst [vmem:[#allocation9_spill] sm:$0xff] %v11599_v5 }
 0x51d   : > { %4458 = vmatprep.mubr.f32.mxu1 %v11554_v57  ;;  %v3826_v57 = vrot.slane %v3754_v63, 7 }
 0x51f   : > { %v11627_v18 = vsel %vm415_vm0, %v3826_v57, 0.0 }
 0x520   : > { %4459 = vmatmul.mubr.f32.gmra.mrb[90].mxu1 %v11507_v60  ;;  %14117 = vst [vmem:[#allocation15_spill] sm:$0xff] %v11627_v18 }
 0x521   : > { %4463 = vmatprep.mubr.f32.mxu1 %v11567_v10  ;;  %v11591_v10 = vrot.slane %v3753_v1, 7  ;;  %v11617_v1 = vsel %vm740_vm3, %v3995_v40, %v3997_v50  ;;  %v4002_v50 = vrot.slane %v11627_v18, 1  ;;  %v3760_v18 = vmax.f32 %v3728_v46, 0.0 }
 0x522   : > { %14116 = vst [vmem:[#allocation11_spill] sm:$0xff] %v11617_v1  ;;  %v3730_v46 = vmax.f32 %v11238_v22, %v11266_v47 }
 0x523   : > { %v11605_v27 = vsel %vm415_vm0, %v11591_v10, %v3826_v57  ;;  %v11609_v63 = vsel %vm415_vm0, 0.0, %v11591_v10 }
 0x524   : > { %6051 = vmatmul.mubr.msk.f32.gmra.mrb[92].mxu1 %vm8014_vm2, %v11526_v4  ;;  %v3999_v34 = vrot.slane %v11609_v63, 1  ;;  %v4000_v28 = vrot.slane %v11605_v27, 1 }
 0x525   : > { %4468 = vmatprep.mubr.f32.mxu1 %v11585_v51  ;;  %v3829_v51 = vrot.slane %v3756_v26, 7 }
 0x526   : > { %v11631_v40 = vsel %vm740_vm3, %v3999_v34, %v4000_v28  ;;  %v11649_v57 = vsel %vm740_vm3, %v4000_v28, %v4002_v50 }
 0x527   : > { %14118 = vst [vmem:[#allocation16_spill] sm:$0xff] %v11631_v40  ;;  %14120 = vst [vmem:[#allocation19_spill] sm:$0xff] %v11649_v57 }
 0x528   : > { %4469 = vmatmul.mubr.f32.gmra.mrb[94].mxu1 %v11543_v61 }
 0x529   : > { %4473 = vmatprep.mubr.f32.mxu1 %v11599_v5  ;;  %v11623_v5 = vrot.slane %v3755_v32, 7  ;;  %v3727_v32 = vmax.f32 %v11229_v42, %v11266_v47  ;;  %v11659_v42 = vsel %vm415_vm0, %v3829_v51, 0.0 }
 0x52a   : > { %14121 = vst [vmem:[#allocation21_spill] sm:$0xff] %v11659_v42  ;;  %v4007_v50 = vrot.slane %v11659_v42, 1  ;;  %v3762_v42 = vmax.f32 %v3730_v46, 0.0  ;;  %v3732_v46 = vmax.f32 %v11244_v16, %v11266_v47 }
 0x52b   : > { %v11637_v7 = vsel %vm415_vm0, %v11623_v5, %v3829_v51  ;;  %v11641_v26 = vsel %vm415_vm0, 0.0, %v11623_v5 }
 0x52c   : > { %6053 = vmatmul.mubr.msk.f32.gmra.mrb[96].mxu1 %vm8014_vm2, %v11559_v49  ;;  %14119 = vst [vmem:[#allocation17_spill] sm:$0xff] %v11641_v26  ;;  %v4004_v25 = vrot.slane %v11641_v26, 1  ;;  %v4005_v34 = vrot.slane %v11637_v7, 1  ;;  %v3759_v26 = vmax.f32 %v3727_v32, 0.0 }
 0x52d   : > { %4478 = vmatprep.mubr.f32.mxu1 %v11617_v1  ;;  %v3832_v1 = vrot.slane %v3758_v23, 7  ;;  %v3729_v23 = vmax.f32 %v11235_v44, %v11266_v47 }
 0x52e   : > { %v11663_v28 = vsel %vm740_vm3, %v4004_v25, %v4005_v34  ;;  %v11681_v51 = vsel %vm740_vm3, %v4005_v34, %v4007_v50 }
 0x52f   : > { %14122 = vst [vmem:[#allocation23_spill] sm:$0xff] %v11663_v28  ;;  %14125 = vst [vmem:[#allocation29_spill] sm:$0xff] %v11681_v51  ;;  %v11691_v44 = vsel %vm415_vm0, %v3832_v1, 0.0 }
 0x530   : > { %4479 = vmatmul.mubr.f32.gmra.mrb[98].mxu1 %v11573_v33  ;;  %14127 = vst [vmem:[#allocation34_spill] sm:$0xff] %v11691_v44  ;;  %v4012_v50 = vrot.slane %v11691_v44, 1  ;;  %v3764_v44 = vmax.f32 %v3732_v46, 0.0  ;;  %v3734_v46 = vmax.f32 %v11250_v43, %v11266_v47 }
 0x531   : > { %4483 = vmatprep.mubr.f32.mxu1 %v11631_v40  ;;  %v11655_v40 = vrot.slane %v3757_v48, 7 }
 0x533   : > { %v11669_v48 = vsel %vm415_vm0, %v11655_v40, %v3832_v1  ;;  %v11673_v19 = vsel %vm415_vm0, 0.0, %v11655_v40  ;;  %v3731_v1 = vmax.f32 %v11241_v37, %v11266_v47 }
 0x534   : > { %6055 = vmatmul.mubr.msk.f32.gmra.mrb[100].mxu1 %vm8014_vm2, %v11591_v10  ;;  %14123 = vst [vmem:[#allocation25_spill] sm:$0xff] %v11669_v48  ;;  %14124 = vst [vmem:[#allocation27_spill] sm:$0xff] %v11673_v19  ;;  %v4009_v32 = vrot.slane %v11673_v19, 1  ;;  %v4010_v25 = vrot.slane %v11669_v48, 1  ;;  %v3761_v19 = vmax.f32 %v3729_v23, 0.0 }
 0x535   : > { %4488 = vmatprep.mubr.f32.mxu1 %v11649_v57  ;;  %v3835_v57 = vrot.slane %v3760_v18, 7 }
 0x536   : > { %v11695_v34 = vsel %vm740_vm3, %v4009_v32, %v4010_v25 }
 0x537   : > { %14128 = vst [vmem:[#allocation37_spill] sm:$0xff] %v11695_v34  ;;  %v11723_v37 = vsel %vm415_vm0, %v3835_v57, 0.0 }
 0x538   : > { %4489 = vmatmul.mubr.f32.gmra.mrb[102].mxu1 %v11605_v27  ;;  %14133 = vst [vmem:[#allocation49_spill] sm:$0xff] %v11723_v37 }
 0x539   : > { %4493 = vmatprep.mubr.f32.mxu1 %v11663_v28  ;;  %v11687_v28 = vrot.slane %v3759_v26, 7  ;;  %v11713_v26 = vsel %vm740_vm3, %v4010_v25, %v4012_v50  ;;  %v4017_v50 = vrot.slane %v11723_v37, 1  ;;  %v3766_v37 = vmax.f32 %v3734_v46, 0.0 }
 0x53a   : > { %14131 = vst [vmem:[#allocation44_spill] sm:$0xff] %v11713_v26 }
 0x53b   : > { %14126 = vst [vmem:[#allocation31_spill] sm:$0xff] %v11687_v28  ;;  %v11701_v22 = vsel %vm415_vm0, %v11687_v28, %v3835_v57  ;;  %v11705_v18 = vsel %vm415_vm0, 0.0, %v11687_v28  ;;  %v3733_v57 = vmax.f32 %v11247_v30, %v11266_v47  ;;  %v3844_v46 = vrot.slane %v3766_v37, 7 }
 0x53c   : > { %6057 = vmatmul.mubr.msk.f32.gmra.mrb[104].mxu1 %vm8014_vm2, %v11623_v5  ;;  %14129 = vst [vmem:[#allocation39_spill] sm:$0xff] %v11701_v22  ;;  %14130 = vst [vmem:[#allocation41_spill] sm:$0xff] %v11705_v18  ;;  %v4014_v23 = vrot.slane %v11705_v18, 1  ;;  %v4015_v32 = vrot.slane %v11701_v22, 1  ;;  %v3763_v18 = vmax.f32 %v3731_v1, 0.0 }
 0x53d   : > { %4498 = vmatprep.mubr.f32.mxu1 %v11681_v51  ;;  %v3838_v51 = vrot.slane %v3762_v42, 7 }
 0x53e   : > { %v11727_v25 = vsel %vm740_vm3, %v4014_v23, %v4015_v32 }
 0x53f   : > { %14134 = vst [vmem:[#allocation51_spill] sm:$0xff] %v11727_v25  ;;  %v11755_v30 = vsel %vm415_vm0, %v3838_v51, 0.0 }
 0x540   : > { %4499 = vmatmul.mubr.f32.gmra.mrb[106].mxu1 %v11637_v7 }
 0x541   : > { %4503 = vmatprep.mubr.f32.mxu1 %v11695_v34  ;;  %v11719_v34 = vrot.slane %v3761_v19, 7  ;;  %v11745_v19 = vsel %vm740_vm3, %v4015_v32, %v4017_v50  ;;  %v4022_v50 = vrot.slane %v11755_v30, 1 }
 0x542   : > { %14137 = vst [vmem:[#allocation59_spill] sm:$0xff] %v11745_v19 }
 0x543   : > { %14132 = vst [vmem:[#allocation47_spill] sm:$0xff] %v11719_v34  ;;  %v11733_v16 = vsel %vm415_vm0, %v11719_v34, %v3838_v51  ;;  %v11737_v42 = vsel %vm415_vm0, 0.0, %v11719_v34 }
 0x544   : > { %6059 = vmatmul.mubr.msk.f32.gmra.mrb[108].mxu1 %vm8014_vm2, %v11655_v40  ;;  %14135 = vst [vmem:[#allocation54_spill] sm:$0xff] %v11733_v16  ;;  %14136 = vst [vmem:[#allocation57_spill] sm:$0xff] %v11737_v42  ;;  %v4019_v1 = vrot.slane %v11737_v42, 1  ;;  %v4020_v23 = vrot.slane %v11733_v16, 1  ;;  %v3765_v42 = vmax.f32 %v3733_v57, 0.0 }
 0x545   : > { %4508 = vmatprep.mubr.f32.mxu1 %v11713_v26  ;;  %v3841_v26 = vrot.slane %v3764_v44, 7 }
 0x546   : > { %v11759_v32 = vsel %vm740_vm3, %v4019_v1, %v4020_v23  ;;  %v11775_v51 = vsel %vm740_vm3, %v4020_v23, %v4022_v50  ;;  %v11779_v1 = vrot.slane %v3765_v42, 7 }
 0x547   : > { %14139 = vst [vmem:[#allocation64_spill] sm:$0xff] %v11759_v32  ;;  %14141 = vst [vmem:[#allocation69_spill] sm:$0xff] %v11775_v51 }
 0x548   : > { %4509 = vmatmul.mubr.f32.gmra.mrb[110].mxu1 %v11669_v48  ;;  %14142 = vst [vmem:[#allocation71_spill] sm:$0xff] %v11779_v1  ;;  %v11793_v50 = vsel %vm415_vm0, %v11779_v1, %v3844_v46  ;;  %v11797_v37 = vsel %vm415_vm0, 0.0, %v11779_v1 }
 0x549   : > { %4513 = vmatprep.mubr.f32.mxu1 %v11727_v25  ;;  %v11751_v25 = vrot.slane %v3763_v18, 7  ;;  %v4029_v42 = vrot.slane %v11797_v37, 1 }
 0x54b   : > { %14138 = vst [vmem:[#allocation61_spill] sm:$0xff] %v11751_v25  ;;  %v11765_v43 = vsel %vm415_vm0, %v11751_v25, %v3841_v26  ;;  %v11769_v44 = vsel %vm415_vm0, 0.0, %v11751_v25 }
 0x54c   : > { %6061 = vmatmul.mubr.msk.f32.gmra.mrb[112].mxu1 %vm8014_vm2, %v11687_v28  ;;  %14140 = vst [vmem:[#allocation67_spill] sm:$0xff] %v11765_v43  ;;  %v4024_v18 = vrot.slane %v11769_v44, 1  ;;  %v4025_v57 = vrot.slane %v11765_v43, 1 }
 0x54d   : > { %4518 = vmatprep.mubr.f32.mxu1 %v11745_v19 }
 0x54e   : > { %v11787_v19 = vsel %vm740_vm3, %v4024_v18, %v4025_v57  ;;  %v4030_v18 = vrot.slane %v11793_v50, 1 }
 0x54f   : > { %14144 = vst [vmem:[#allocation77_spill] sm:$0xff] %v11787_v19 }
 0x550   : > { %4519 = vmatmul.mubr.f32.gmra.mrb[114].mxu1 %v11701_v22 }
 0x551   : > { %4523 = vmatprep.mubr.f32.mxu1 %v11759_v32  ;;  %v11783_v32 = vsel %vm415_vm0, %v3841_v26, 0.0 }
 0x552   : > { %14143 = vst [vmem:[#allocation74_spill] sm:$0xff] %v11783_v32  ;;  %v4027_v23 = vrot.slane %v11783_v32, 1 }
 0x554   : > { %6063 = vmatmul.mubr.msk.f32.gmra.mrb[116].mxu1 %vm8014_vm2, %v11719_v34  ;;  %v11803_v26 = vsel %vm740_vm3, %v4025_v57, %v4027_v23  ;;  %v4250_v23 = vld [vmem:[%s13067_s3 + $0x208] sm:$0xff] }
 0x555   : > { %4528 = vmatprep.mubr.f32.mxu1 %v11775_v51  ;;  %v11813_v51 = vsel %vm740_vm3, %v4029_v42, %v4030_v18 }
 0x556   : > { %14145 = vst [vmem:[#allocation79_spill] sm:$0xff] %v11813_v51 }
 0x558   : > { %4529 = vmatmul.mubr.f32.gmra.mrb[118].mxu1 %v11733_v16 }
 0x559   : > { %4533 = vmatprep.mubr.f32.mxu1 %v11787_v19  ;;  %v11809_v19 = vsel %vm415_vm0, %v3844_v46, 0.0  ;;  %v4249_v46 = vld [vmem:[%s13067_s3 + $0x200] sm:$0xff] }
 0x55a   : > { %v4032_v32 = vrot.slane %v11809_v19, 1  ;;  %v6798_v42 = vpack.c.bf16 %v4250_v23, %v4249_v46  ;;  %v4254_v46 = vld [vmem:[%s13067_s3 + $0x228] sm:$0xff]  ;;  %v4064_v23 = vrot.slane %v11306_v14, 2  ;;  %v4256_v14 = vld [vmem:[%s13067_s3 + $0x238] sm:$0xff] }
 0x55c   : > { %6065 = vmatmul.mubr.msk.f32.gmra.mrb[120].mxu1 %vm8014_vm2, %v11751_v25  ;;  %v11821_v57 = vsel %vm740_vm3, %v4030_v18, %v4032_v32  ;;  %v4251_v32 = vld [vmem:[%s13067_s3 + $0x210] sm:$0xff]  ;;  %v4252_v18 = vld [vmem:[%s13067_s3 + $0x218] sm:$0xff] }
 0x55d   : > { %4538 = vmatprep.mubr.f32.mxu1 %v11803_v26  ;;  %14146 = vst [vmem:[#allocation81_spill] sm:$0xff] %v11821_v57 }
 0x560   : > { %4539 = vmatmul.mubr.f32.gmra.mrb[122].mxu1 %v11765_v43 }
 0x561   : > { %4543 = vmatprep.mubr.f32.mxu1 %v11813_v51  ;;  %v4065_v51 = vrot.slane %v11300_v2, 2 }
 0x564   : > { %6067 = vmatmul.mubr.msk.f32.gmra.mrb[124].mxu1 %vm8014_vm2, %v11779_v1 }
 0x565   : > { %4548 = vmatprep.mubr.f32.mxu1 %v11821_v57  ;;  %v6801_v57 = vpack.c.bf16 %v4252_v18, %v4251_v32  ;;  %v4255_v32 = vld [vmem:[%s13067_s3 + $0x230] sm:$0xff]  ;;  %v4067_v18 = vrot.slane %v11310_v62, 2  ;;  %v4069_v62 = vrot.slane %v11322_v55, 2  ;;  %v4260_v55 = vld [vmem:[%s13067_s3 + $0x258] sm:$0xff] }
 0x568   : > { %4549 = vmatmul.mubr.f32.gmra.mrb[126].mxu1 %v11793_v50 }
 0x569   : > { %6069 = vmatprep.mubr.msk.f32.mxu1 %vm8014_vm2, %v11288_v36  ;;  %v4253_v36 = vld [vmem:[%s13067_s3 + $0x220] sm:$0xff] }
 0x56c   : > { %4619 = vmatmul.mubr.f32.vlgmr.msra.gmra.mrb[64].mxu1 %v14095_v24 }
 0x56d   : > { %4623 = vmatprep.mubr.f32.mxu1 %v11300_v2  ;;  %6799 = vmatpush1.bf16.msra.mxu1 %v6798_v42  ;;  %v6804_v42 = vpack.c.bf16 %v4254_v46, %v4253_v36  ;;  %v11863_v2 = vsel %vm958_vm1, %v4064_v23, %v4065_v51  ;;  %v4257_v36 = vld [vmem:[%s13067_s3 + $0x240] sm:$0xff]  ;;  %v4258_v46 = vld [vmem:[%s13067_s3 + $0x248] sm:$0xff]  ;;  %v11876_v23 = vsel %vm958_vm1, %v4065_v51, %v4067_v18 }
 0x56e   : > { %6800 = vmatprep.subr.bf16.mxu1 %v13608_v9 }
 0x570   : > { %4624 = vmatmul.mubr.f32.gmra.mrb[66].mxu1 %v14096_v20  ;;  %v4070_v20 = vrot.slane %v11318_v3, 2 }
 0x571   : > { %6071 = vmatprep.mubr.msk.f32.mxu1 %vm8014_vm2, %v11294_v52  ;;  %6802 = vmatpush1.bf16.msra.mxu1 %v6801_v57  ;;  %v6807_v57 = vpack.c.bf16 %v4256_v14, %v4255_v32  ;;  %v4259_v32 = vld [vmem:[%s13067_s3 + $0x250] sm:$0xff]  ;;  %v4072_v14 = vrot.slane %v11344_v31, 2  ;;  %v4074_v31 = vrot.slane %v11364_v8, 2 }
 0x572   : > { %6803 = vmatprep.subr.bf16.mxu1 %v13608_v9  ;;  %v11892_v51 = vsel %vm958_vm1, %v4069_v62, %v4070_v20  ;;  %v6813_v18 = vpack.c.bf16 %v4260_v55, %v4259_v32  ;;  %v4075_v62 = vrot.slane %v11360_v53, 2  ;;  %v4263_v32 = vld [vmem:[%s13067_s3 + $0x270] sm:$0xff]  ;;  %v4077_v55 = vrot.slane %v11382_v6, 2 }
 0x573   : > { %14147 = vst [vmem:[#allocation84_spill] sm:$0xff] %v11892_v51  ;;  %v4079_v6 = vrot.slane %v11408_v59, 2  ;;  %v4268_v59 = vld [vmem:[%s13067_s3 + $0x298] sm:$0xff] }
 0x574   : > { %4629 = vmatmul.mubr.f32.gmra.mrb[68].mxu1 %v11863_v2  ;;  %v11921_v8 = vsel %vm958_vm1, %v4074_v31, %v4075_v62  ;;  %v4080_v31 = vrot.slane %v11404_v41, 2 }
 0x575   : > { %4633 = vmatprep.mubr.f32.mxu1 %v11318_v3  ;;  %6805 = vmatpush1.bf16.msra.mxu1 %v6804_v42  ;;  %v6810_v42 = vpack.c.bf16 %v4258_v46, %v4257_v36  ;;  %v4262_v36 = vld [vmem:[%s13067_s3 + $0x268] sm:$0xff]  ;;  %v11905_v46 = vsel %vm958_vm1, %v4070_v20, %v4072_v14  ;;  %v4264_v20 = vld [vmem:[%s13067_s3 + $0x278] sm:$0xff]  ;;  %14149 = vst [vmem:[#allocation102_spill] sm:$0xff] %v11921_v8 }
 0x576   : > { %6806 = vmatprep.subr.bf16.mxu1 %v13608_v9  ;;  %14148 = vst [vmem:[#allocation87_spill] sm:$0xff] %v11905_v46  ;;  %v6819_v14 = vpack.c.bf16 %v4264_v20, %v4263_v32  ;;  %v4267_v32 = vld [vmem:[%s13067_s3 + $0x290] sm:$0xff]  ;;  %v4082_v20 = vrot.slane %v11432_v56, 2  ;;  %v4084_v56 = vrot.slane %v11459_v39, 2  ;;  %v4272_v39 = vld [vmem:[%s13067_s3 + $0x2b8] sm:$0xff] }
 0x578   : > { %4634 = vmatmul.mubr.f32.gmra.mrb[70].mxu1 %v11876_v23 }
 0x579   : > { %6073 = vmatprep.mubr.msk.f32.mxu1 %vm8014_vm2, %v11340_v29  ;;  %6808 = vmatpush1.bf16.msra.mxu1 %v6807_v57  ;;  %v4261_v57 = vld [vmem:[%s13067_s3 + $0x260] sm:$0xff] }
 0x57a   : > { %6809 = vmatprep.subr.bf16.mxu1 %v13608_v9 }
 0x57c   : > { %4639 = vmatmul.mubr.f32.gmra.mrb[72].mxu1 %v11892_v51 }
 0x57d   : > { %4643 = vmatprep.mubr.f32.mxu1 %v11360_v53  ;;  %6811 = vmatpush1.bf16.msra.mxu1 %v6810_v42  ;;  %v6816_v42 = vpack.c.bf16 %v4262_v36, %v4261_v57  ;;  %v4266_v57 = vld [vmem:[%s13067_s3 + $0x288] sm:$0xff]  ;;  %v11934_v36 = vsel %vm958_vm1, %v4075_v62, %v4077_v55  ;;  %v11950_v62 = vsel %vm958_vm1, %v4079_v6, %v4080_v31  ;;  %v4085_v6 = vrot.slane %v11455_v11, 2 }
 0x57e   : > { %6812 = vmatprep.subr.bf16.mxu1 %v13608_v9  ;;  %14150 = vst [vmem:[#allocation89_spill] sm:$0xff] %v11934_v36  ;;  %14151 = vst [vmem:[#allocation91_spill] sm:$0xff] %v11950_v62  ;;  %v6825_v55 = vpack.c.bf16 %v4268_v59, %v4267_v32  ;;  %v4271_v32 = vld [vmem:[%s13067_s3 + $0x2b0] sm:$0xff]  ;;  %v4087_v59 = vrot.slane %v11484_v58, 2  ;;  %v4089_v58 = vrot.slane %v11511_v35, 2  ;;  %v4276_v35 = vld [vmem:[%s13067_s3 + $0x2d8] sm:$0xff] }
 0x580   : > { %4644 = vmatmul.mubr.f32.gmra.mrb[74].mxu1 %v11905_v46 }
 0x581   : > { %6075 = vmatprep.mubr.msk.f32.mxu1 %vm8014_vm2, %v11378_v0  ;;  %6814 = vmatpush1.bf16.msra.mxu1 %v6813_v18  ;;  %v4265_v18 = vld [vmem:[%s13067_s3 + $0x280] sm:$0xff] }
 0x582   : > { %6815 = vmatprep.subr.bf16.mxu1 %v13608_v9 }
 0x584   : > { %4649 = vmatmul.mubr.f32.gmra.mrb[76].mxu1 %v11921_v8 }
 0x585   : > { %4653 = vmatprep.mubr.f32.mxu1 %v11404_v41  ;;  %6817 = vmatpush1.bf16.msra.mxu1 %v6816_v42  ;;  %v6822_v42 = vpack.c.bf16 %v4266_v57, %v4265_v18  ;;  %v4270_v18 = vld [vmem:[%s13067_s3 + $0x2a8] sm:$0xff]  ;;  %v11963_v57 = vsel %vm958_vm1, %v4080_v31, %v4082_v20  ;;  %v11979_v31 = vsel %vm958_vm1, %v4084_v56, %v4085_v6  ;;  %v4090_v56 = vrot.slane %v11507_v60, 2 }
 0x586   : > { %6818 = vmatprep.subr.bf16.mxu1 %v13608_v9  ;;  %14152 = vst [vmem:[#allocation108_spill] sm:$0xff] %v11963_v57  ;;  %14153 = vst [vmem:[#allocation94_spill] sm:$0xff] %v11979_v31  ;;  %v6831_v20 = vpack.c.bf16 %v4272_v39, %v4271_v32  ;;  %v4275_v32 = vld [vmem:[%s13067_s3 + $0x2d0] sm:$0xff]  ;;  %v4092_v39 = vrot.slane %v11530_v45, 2  ;;  %v4094_v45 = vrot.slane %v11547_v13, 2  ;;  %v4280_v13 = vld [vmem:[%s13067_s3 + $0x2f8] sm:$0xff] }
 0x588   : > { %4654 = vmatmul.mubr.f32.gmra.mrb[78].mxu1 %v11934_v36 }
 0x589   : > { %6077 = vmatprep.mubr.msk.f32.mxu1 %vm8014_vm2, %v11428_v21  ;;  %6820 = vmatpush1.bf16.msra.mxu1 %v6819_v14  ;;  %v4269_v14 = vld [vmem:[%s13067_s3 + $0x2a0] sm:$0xff] }
 0x58a   : > { %6821 = vmatprep.subr.bf16.mxu1 %v13608_v9 }
 0x58c   : > { %4659 = vmatmul.mubr.f32.gmra.mrb[80].mxu1 %v11950_v62 }
 0x58d   : > { %4663 = vmatprep.mubr.f32.mxu1 %v11455_v11  ;;  %6823 = vmatpush1.bf16.msra.mxu1 %v6822_v42  ;;  %v6828_v42 = vpack.c.bf16 %v4270_v18, %v4269_v14  ;;  %v4274_v14 = vld [vmem:[%s13067_s3 + $0x2c8] sm:$0xff]  ;;  %v11992_v18 = vsel %vm958_vm1, %v4085_v6, %v4087_v59  ;;  %v12008_v6 = vsel %vm958_vm1, %v4089_v58, %v4090_v56  ;;  %v4095_v58 = vrot.slane %v11543_v61, 2 }
 0x58e   : > { %6824 = vmatprep.subr.bf16.mxu1 %v13608_v9  ;;  %14154 = vst [vmem:[#allocation97_spill] sm:$0xff] %v11992_v18  ;;  %14155 = vst [vmem:[#allocation114_spill] sm:$0xff] %v12008_v6  ;;  %v6837_v59 = vpack.c.bf16 %v4276_v35, %v4275_v32  ;;  %v4279_v32 = vld [vmem:[%s13067_s3 + $0x2f0] sm:$0xff]  ;;  %v4097_v35 = vrot.slane %v11563_v15, 2 }
 0x590   : > { %4664 = vmatmul.mubr.f32.gmra.mrb[82].mxu1 %v11963_v57 }
 0x591   : > { %6079 = vmatprep.mubr.msk.f32.mxu1 %vm8014_vm2, %v11480_v38  ;;  %6826 = vmatpush1.bf16.msra.mxu1 %v6825_v55  ;;  %v4273_v55 = vld [vmem:[%s13067_s3 + $0x2c0] sm:$0xff] }
 0x592   : > { %6827 = vmatprep.subr.bf16.mxu1 %v13608_v9 }
 0x594   : > { %4669 = vmatmul.mubr.f32.gmra.mrb[84].mxu1 %v11979_v31 }
 0x595   : > { %4673 = vmatprep.mubr.f32.mxu1 %v11507_v60  ;;  %6829 = vmatpush1.bf16.msra.mxu1 %v6828_v42  ;;  %v6834_v42 = vpack.c.bf16 %v4274_v14, %v4273_v55  ;;  %v4278_v55 = vld [vmem:[%s13067_s3 + $0x2e8] sm:$0xff]  ;;  %v12021_v14 = vsel %vm958_vm1, %v4090_v56, %v4092_v39  ;;  %v12037_v56 = vsel %vm958_vm1, %v4094_v45, %v4095_v58  ;;  %v4102_v45 = vrot.slane %v11595_v12, 2  ;;  %v14162_v12 = vld [vmem:[#allocation15_spill] sm:$0xff] }
 0x596   : > { %6830 = vmatprep.subr.bf16.mxu1 %v13608_v9  ;;  %14156 = vst [vmem:[#allocation100_spill] sm:$0xff] %v12021_v14  ;;  %14157 = vst [vmem:[#allocation101_spill] sm:$0xff] %v12037_v56  ;;  %v6843_v39 = vpack.c.bf16 %v4280_v13, %v4279_v32  ;;  %v4107_v13 = vrot.slane %v14162_v12, 2  ;;  %v14168_v12 = vld [vmem:[#allocation27_spill] sm:$0xff]  ;;  %v14235_v17 = vld [vmem:[#allocation97_spill] sm:$0xff] }
 0x598   : > { %4674 = vmatmul.mubr.f32.gmra.mrb[86].mxu1 %v11992_v18 }
 0x599   : > { %6081 = vmatprep.mubr.msk.f32.mxu1 %vm8014_vm2, %v11526_v4  ;;  %6832 = vmatpush1.bf16.msra.mxu1 %v6831_v20  ;;  %v4277_v20 = vld [vmem:[%s13067_s3 + $0x2e0] sm:$0xff] }
 0x59a   : > { %6833 = vmatprep.subr.bf16.mxu1 %v13608_v9 }
 0x59c   : > { %4679 = vmatmul.mubr.f32.gmra.mrb[88].mxu1 %v12008_v6 }
 0x59d   : > { %4683 = vmatprep.mubr.f32.mxu1 %v11543_v61  ;;  %6835 = vmatpush1.bf16.msra.mxu1 %v6834_v42  ;;  %v6840_v42 = vpack.c.bf16 %v4278_v55, %v4277_v20  ;;  %v4099_v20 = vrot.slane %v11577_v54, 2  ;;  %v4100_v55 = vrot.slane %v11573_v33, 2 }
 0x59e   : > { %6836 = vmatprep.subr.bf16.mxu1 %v13608_v9 }
 0x59f   : > { %v12054_v15 = vsel %vm958_vm1, %v4099_v20, %v4100_v55  ;;  %v12060_v54 = vsel %vm958_vm1, %v4100_v55, %v4102_v45  ;;  %v4110_v20 = vrot.slane %v11637_v7, 2  ;;  %v14166_v45 = vld [vmem:[#allocation21_spill] sm:$0xff] }
 0x5a0   : > { %4684 = vmatmul.mubr.f32.gmra.mrb[90].mxu1 %v12021_v14  ;;  %14159 = vst [vmem:[#allocation104_spill] sm:$0xff] %v12054_v15  ;;  %14160 = vst [vmem:[#allocation107_spill] sm:$0xff] %v12060_v54 }
 0x5a1   : > { %6083 = vmatprep.mubr.msk.f32.mxu1 %vm8014_vm2, %v11559_v49  ;;  %6838 = vmatpush1.bf16.msra.mxu1 %v6837_v59  ;;  %v12044_v59 = vsel %vm958_vm1, %v4095_v58, %v4097_v35  ;;  %v4104_v58 = vrot.slane %v11609_v63, 2  ;;  %v14164_v63 = vld [vmem:[#allocation17_spill] sm:$0xff] }
 0x5a2   : > { %6839 = vmatprep.subr.bf16.mxu1 %v13608_v9  ;;  %14158 = vst [vmem:[#allocation119_spill] sm:$0xff] %v12044_v59 }
 0x5a4   : > { %4689 = vmatmul.mubr.f32.gmra.mrb[92].mxu1 %v12037_v56 }
 0x5a5   : > { %4693 = vmatprep.mubr.f32.mxu1 %v11573_v33  ;;  %6841 = vmatpush1.bf16.msra.mxu1 %v6840_v42  ;;  %v4105_v42 = vrot.slane %v11605_v27, 2 }
 0x5a6   : > { %6842 = vmatprep.subr.bf16.mxu1 %v13608_v9 }
 0x5a7   : > { %v12069_v32 = vsel %vm958_vm1, %v4104_v58, %v4105_v42  ;;  %v12075_v35 = vsel %vm958_vm1, %v4105_v42, %v4107_v13  ;;  %v4112_v58 = vrot.slane %v14166_v45, 2  ;;  %v4114_v13 = vrot.slane %v14168_v12, 2  ;;  %v14170_v45 = vld [vmem:[#allocation34_spill] sm:$0xff] }
 0x5a8   : > { %4694 = vmatmul.mubr.f32.gmra.mrb[94].mxu1 %v12044_v59  ;;  %14161 = vst [vmem:[#allocation126_spill] sm:$0xff] %v12069_v32  ;;  %14163 = vst [vmem:[#allocation112_spill] sm:$0xff] %v12075_v35  ;;  %v4117_v24 = vrot.slane %v14170_v45, 2  ;;  %v14174_v45 = vld [vmem:[#allocation49_spill] sm:$0xff] }
 0x5a9   : > { %6085 = vmatprep.mubr.msk.f32.mxu1 %vm8014_vm2, %v11591_v10  ;;  %6844 = vmatpush1.bf16.msra.mxu1 %v6843_v39  ;;  %v4109_v39 = vrot.slane %v14164_v63, 2  ;;  %v12090_v42 = vsel %vm958_vm1, %v4110_v20, %v4112_v58  ;;  %v4115_v63 = vrot.slane %v11669_v48, 2  ;;  %v14172_v58 = vld [vmem:[#allocation41_spill] sm:$0xff] }
 0x5aa   : > { %6845 = vmatprep.subr.bf16.mxu1 %v13608_v9  ;;  %14167 = vst [vmem:[#allocation113_spill] sm:$0xff] %v12090_v42  ;;  %v4119_v12 = vrot.slane %v14172_v58, 2 }
 0x5ab   : > { %v12084_v55 = vsel %vm958_vm1, %v4109_v39, %v4110_v20  ;;  %v12099_v39 = vsel %vm958_vm1, %v4114_v13, %v4115_v63  ;;  %v12105_v20 = vsel %vm958_vm1, %v4115_v63, %v4117_v24  ;;  %v14176_v63 = vld [vmem:[#allocation57_spill] sm:$0xff] }
 0x5ac   : > { %4699 = vmatmul.mubr.f32.gmra.mrb[96].mxu1 %v12054_v15  ;;  %14165 = vst [vmem:[#allocation132_spill] sm:$0xff] %v12084_v55  ;;  %14169 = vst [vmem:[#allocation130_spill] sm:$0xff] %v12099_v39  ;;  %v4124_v58 = vrot.slane %v14176_v63, 2  ;;  %v4130_v63 = vrot.slane %v11765_v43, 2 }
 0x5ad   : > { %4703 = vmatprep.mubr.f32.mxu1 %v11605_v27  ;;  %14171 = vst [vmem:[#allocation116_spill] sm:$0xff] %v12105_v20 }
 0x5b0   : > { %4704 = vmatmul.mubr.f32.gmra.mrb[98].mxu1 %v12060_v54 }
 0x5b1   : > { %6087 = vmatprep.mubr.msk.f32.mxu1 %vm8014_vm2, %v11623_v5 }
 0x5b4   : > { %4709 = vmatmul.mubr.f32.gmra.mrb[100].mxu1 %v12069_v32 }
 0x5b5   : > { %4713 = vmatprep.mubr.f32.mxu1 %v11637_v7 }
 0x5b8   : > { %4714 = vmatmul.mubr.f32.gmra.mrb[102].mxu1 %v12075_v35 }
 0x5b9   : > { %6089 = vmatprep.mubr.msk.f32.mxu1 %vm8014_vm2, %v11655_v40 }
 0x5bc   : > { %4719 = vmatmul.mubr.f32.gmra.mrb[104].mxu1 %v12084_v55 }
 0x5bd   : > { %4723 = vmatprep.mubr.f32.mxu1 %v11669_v48  ;;  %v4120_v48 = vrot.slane %v11701_v22, 2 }
 0x5bf   : > { %v12114_v13 = vsel %vm958_vm1, %v4119_v12, %v4120_v48 }
 0x5c0   : > { %4724 = vmatmul.mubr.f32.gmra.mrb[106].mxu1 %v12090_v42  ;;  %14173 = vst [vmem:[#allocation135_spill] sm:$0xff] %v12114_v13 }
 0x5c1   : > { %6091 = vmatprep.mubr.msk.f32.mxu1 %vm8014_vm2, %v11687_v28  ;;  %v4122_v28 = vrot.slane %v14174_v45, 2  ;;  %v4127_v45 = vrot.slane %v11755_v30, 2 }
 0x5c3   : > { %v12120_v24 = vsel %vm958_vm1, %v4120_v48, %v4122_v28  ;;  %v4129_v48 = vrot.slane %v11769_v44, 2 }
 0x5c4   : > { %4729 = vmatmul.mubr.f32.gmra.mrb[108].mxu1 %v12099_v39  ;;  %14175 = vst [vmem:[#allocation120_spill] sm:$0xff] %v12120_v24 }
 0x5c5   : > { %4733 = vmatprep.mubr.f32.mxu1 %v11701_v22  ;;  %v4125_v22 = vrot.slane %v11733_v16, 2  ;;  %v12148_v30 = vsel %vm958_vm1, %v4129_v48, %v4130_v63 }
 0x5c6   : > { %14181 = vst [vmem:[#allocation125_spill] sm:$0xff] %v12148_v30 }
 0x5c7   : > { %v12129_v12 = vsel %vm958_vm1, %v4124_v58, %v4125_v22  ;;  %v12135_v28 = vsel %vm958_vm1, %v4125_v22, %v4127_v45  ;;  %v14182_v22 = vld [vmem:[#allocation74_spill] sm:$0xff] }
 0x5c8   : > { %4734 = vmatmul.mubr.f32.gmra.mrb[110].mxu1 %v12105_v20  ;;  %14177 = vst [vmem:[#allocation138_spill] sm:$0xff] %v12129_v12  ;;  %14178 = vst [vmem:[#allocation123_spill] sm:$0xff] %v12135_v28  ;;  %v4132_v45 = vrot.slane %v14182_v22, 2  ;;  %v4282_v22 = vld [vmem:[%s13067_s3 + $0x308] sm:$0xff] }
 0x5c9   : > { %6093 = vmatprep.mubr.msk.f32.mxu1 %vm8014_vm2, %v11719_v34 }
 0x5cc   : > { %4739 = vmatmul.mubr.f32.gmra.mrb[112].mxu1 %v12114_v13 }
 0x5cd   : > { %4743 = vmatprep.mubr.f32.mxu1 %v11733_v16  ;;  %v14179_v16 = vld [vmem:[#allocation52_spill] sm:$0xff] }
 0x5ce   : > { %v3735_v34 = vmax.f32 %v14179_v16, %v11266_v47  ;;  %v4134_v16 = vrot.slane %v11797_v37, 2 }
 0x5d0   : > { %4744 = vmatmul.mubr.f32.gmra.mrb[114].mxu1 %v12120_v24  ;;  %v3767_v44 = vmax.f32 %v3735_v34, 0.0 }
 0x5d1   : > { %6095 = vmatprep.mubr.msk.f32.mxu1 %vm8014_vm2, %v11751_v25  ;;  %v14180_v25 = vld [vmem:[#allocation45_spill] sm:$0xff] }
 0x5d2   : > { %v3736_v58 = vmax.f32 %v14180_v25, %v11266_v47  ;;  %v12156_v47 = vsel %vm958_vm1, %v4130_v63, %v4132_v45  ;;  %v12158_v25 = vrot.slane %v3767_v44, 7  ;;  %v4137_v63 = vrot.slane %v11809_v19, 2  ;;  %v4283_v44 = vld [vmem:[%s13067_s3 + $0x310] sm:$0xff] }
 0x5d3   : > { %14183 = vst [vmem:[#allocation129_spill] sm:$0xff] %v12156_v47 }
 0x5d4   : > { %4749 = vmatmul.mubr.f32.gmra.mrb[116].mxu1 %v12129_v12  ;;  %14184 = vst [vmem:[#allocation131_spill] sm:$0xff] %v12158_v25 }
 0x5d5   : > { %4753 = vmatprep.mubr.f32.mxu1 %v11765_v43  ;;  %v12152_v43 = vmax.f32 %v3736_v58, 0.0  ;;  %v4281_v58 = vld [vmem:[%s13067_s3 + $0x300] sm:$0xff] }
 0x5d6   : > { %v6846_v45 = vpack.c.bf16 %v4282_v22, %v4281_v58  ;;  %v14187_v58 = vld [vmem:[#allocation62_spill] sm:$0xff]  ;;  %v4288_v22 = vld [vmem:[%s13067_s3 + $0x338] sm:$0xff] }
 0x5d7   : > { %v13535_v48 = vrot.slane %v12152_v43, 7 }
 0x5d8   : > { %4754 = vmatmul.mubr.f32.gmra.mrb[118].mxu1 %v12135_v28 }
 0x5d9   : > { %6097 = vmatprep.mubr.msk.f32.mxu1 %vm8014_vm2, %v11779_v1  ;;  %v4135_v1 = vrot.slane %v11793_v50, 2  ;;  %v12176_v37 = vsel %vm415_vm0, %v12158_v25, %v13535_v48  ;;  %v14186_v48 = vld [vmem:[#allocation55_spill] sm:$0xff] }
 0x5db   : > { %v12168_v34 = vsel %vm958_vm1, %v4134_v16, %v4135_v1  ;;  %v12186_v19 = vsel %vm958_vm1, %v4135_v1, %v4137_v63  ;;  %v4284_v16 = vld [vmem:[%s13067_s3 + $0x318] sm:$0xff]  ;;  %v4286_v63 = vld [vmem:[%s13067_s3 + $0x328] sm:$0xff] }
 0x5dc   : > { %4759 = vmatmul.mubr.f32.gmra.mrb[120].mxu1 %v12148_v30  ;;  %14185 = vst [vmem:[#allocation136_spill] sm:$0xff] %v12168_v34  ;;  %v6849_v1 = vpack.c.bf16 %v4284_v16, %v4283_v44  ;;  %v4289_v16 = vld [vmem:[%s13067_s3 + $0x340] sm:$0xff] }
 0x5dd   : > { %4763 = vmatprep.mubr.f32.mxu1 %v11793_v50 }
 0x5e0   : > { %4764 = vmatmul.mubr.f32.gmra.mrb[122].mxu1 %v12156_v47 }
 0x5e1   : > { %6099 = vmatprep.mubr.msk.f32.mxu1 %vm8014_vm2, %v12158_v25 }
 0x5e4   : > { %4769 = vmatmul.mubr.f32.gmra.mrb[124].mxu1 %v12168_v34 }
 0x5e5   : > { %4773 = vmatprep.mubr.f32.mxu1 %v12176_v37 }
 0x5e8   : > { %4774 = vmatmul.mubr.f32.gmra.mrb[126].mxu1 %v12186_v19 }
 0x5e9   : > { %4843 = vmatprep.mubr.f32.mxu1 %v11863_v2  ;;  %v4285_v2 = vld [vmem:[%s13067_s3 + $0x320] sm:$0xff] }
 0x5ec   : > { %4844 = vmatmul.mubr.f32.vlgmr.msra.gmra.mrb[64].mxu1 %v14186_v48  ;;  %v6852_v48 = vpack.c.bf16 %v4286_v63, %v4285_v2  ;;  %v14189_v2 = vld [vmem:[#allocation72_spill] sm:$0xff] }
 0x5ed   : > { %4848 = vmatprep.mubr.f32.mxu1 %v11876_v23  ;;  %6847 = vmatpush1.bf16.msra.mxu1 %v6846_v45  ;;  %v4287_v23 = vld [vmem:[%s13067_s3 + $0x330] sm:$0xff]  ;;  %v14188_v45 = vld [vmem:[#allocation65_spill] sm:$0xff] }
 0x5ee   : > { %6848 = vmatprep.subr.bf16.mxu1 %v13608_v9  ;;  %v6855_v44 = vpack.c.bf16 %v4288_v22, %v4287_v23  ;;  %v14190_v23 = vld [vmem:[#allocation75_spill] sm:$0xff] }
 0x5f0   : > { %4849 = vmatmul.mubr.f32.gmra.mrb[66].mxu1 %v14187_v58  ;;  %v4291_v58 = vld [vmem:[%s13067_s3 + $0x350] sm:$0xff] }
 0x5f1   : > { %4853 = vmatprep.mubr.f32.mxu1 %v11892_v51  ;;  %6850 = vmatpush1.bf16.msra.mxu1 %v6849_v1  ;;  %v4290_v1 = vld [vmem:[%s13067_s3 + $0x348] sm:$0xff]  ;;  %v14203_v51 = vld [vmem:[#allocation19_spill] sm:$0xff] }
 0x5f2   : > { %6851 = vmatprep.subr.bf16.mxu1 %v13608_v9  ;;  %v6858_v63 = vpack.c.bf16 %v4290_v1, %v4289_v16  ;;  %v4294_v16 = vld [vmem:[%s13067_s3 + $0x368] sm:$0xff]  ;;  %v14191_v1 = vld [vmem:[#allocation82_spill] sm:$0xff] }
 0x5f4   : > { %4854 = vmatmul.mubr.f32.gmra.mrb[68].mxu1 %v14188_v45 }
 0x5f5   : > { %4858 = vmatprep.mubr.f32.mxu1 %v11905_v46  ;;  %6853 = vmatpush1.bf16.msra.mxu1 %v6852_v48  ;;  %v4292_v48 = vld [vmem:[%s13067_s3 + $0x358] sm:$0xff]  ;;  %v14202_v46 = vld [vmem:[#allocation16_spill] sm:$0xff] }
 0x5f6   : > { %6854 = vmatprep.subr.bf16.mxu1 %v13608_v9  ;;  %v6861_v22 = vpack.c.bf16 %v4292_v48, %v4291_v58  ;;  %v4296_v58 = vld [vmem:[%s13067_s3 + $0x378] sm:$0xff]  ;;  %v14192_v48 = vld [vmem:[#allocation85_spill] sm:$0xff] }
 0x5f8   : > { %4859 = vmatmul.mubr.f32.gmra.mrb[70].mxu1 %v14189_v2 }
 0x5f9   : > { %4863 = vmatprep.mubr.f32.mxu1 %v11921_v8  ;;  %6856 = vmatpush1.bf16.msra.mxu1 %v6855_v44  ;;  %v4293_v44 = vld [vmem:[%s13067_s3 + $0x360] sm:$0xff] }
 0x5fa   : > { %6857 = vmatprep.subr.bf16.mxu1 %v13608_v9  ;;  %v6864_v8 = vpack.c.bf16 %v4294_v16, %v4293_v44  ;;  %v4298_v44 = vld [vmem:[%s13067_s3 + $0x388] sm:$0xff]  ;;  %v14193_v16 = vld [vmem:[#allocation92_spill] sm:$0xff] }
 0x5fc   : > { %4864 = vmatmul.mubr.f32.gmra.mrb[72].mxu1 %v14190_v23 }
 0x5fd   : > { %4868 = vmatprep.mubr.f32.mxu1 %v11934_v36  ;;  %6859 = vmatpush1.bf16.msra.mxu1 %v6858_v63  ;;  %v4295_v63 = vld [vmem:[%s13067_s3 + $0x370] sm:$0xff] }
 0x5fe   : > { %6860 = vmatprep.subr.bf16.mxu1 %v13608_v9  ;;  %v6867_v36 = vpack.c.bf16 %v4296_v58, %v4295_v63  ;;  %v4300_v63 = vld [vmem:[%s13067_s3 + $0x398] sm:$0xff] }
 0x5ff   : > { %v14194_v58 = vld [vmem:[#allocation95_spill] sm:$0xff] }
 0x600   : > { %4869 = vmatmul.mubr.f32.gmra.mrb[74].mxu1 %v14191_v1 }
 0x601   : > { %4873 = vmatprep.mubr.f32.mxu1 %v11950_v62  ;;  %6862 = vmatpush1.bf16.msra.mxu1 %v6861_v22  ;;  %v4297_v22 = vld [vmem:[%s13067_s3 + $0x380] sm:$0xff] }
 0x602   : > { %6863 = vmatprep.subr.bf16.mxu1 %v13608_v9  ;;  %v6870_v62 = vpack.c.bf16 %v4298_v44, %v4297_v22  ;;  %v4302_v22 = vld [vmem:[%s13067_s3 + $0x3a8] sm:$0xff] }
 0x603   : > { %v14195_v44 = vld [vmem:[#allocation105_spill] sm:$0xff] }
 0x604   : > { %4874 = vmatmul.mubr.f32.gmra.mrb[76].mxu1 %v14192_v48 }
 0x605   : > { %4878 = vmatprep.mubr.f32.mxu1 %v11963_v57  ;;  %6865 = vmatpush1.bf16.msra.mxu1 %v6864_v8  ;;  %v4299_v8 = vld [vmem:[%s13067_s3 + $0x390] sm:$0xff] }
 0x606   : > { %6866 = vmatprep.subr.bf16.mxu1 %v13608_v9  ;;  %v6873_v57 = vpack.c.bf16 %v4300_v63, %v4299_v8  ;;  %v4304_v8 = vld [vmem:[%s13067_s3 + $0x3b8] sm:$0xff]  ;;  %v14196_v63 = vld [vmem:[#allocation117_spill] sm:$0xff] }
 0x608   : > { %4879 = vmatmul.mubr.f32.gmra.mrb[78].mxu1 %v14193_v16 }
 0x609   : > { %4883 = vmatprep.mubr.f32.mxu1 %v11979_v31  ;;  %6868 = vmatpush1.bf16.msra.mxu1 %v6867_v36  ;;  %v4301_v36 = vld [vmem:[%s13067_s3 + $0x3a0] sm:$0xff] }
 0x60a   : > { %6869 = vmatprep.subr.bf16.mxu1 %v13608_v9  ;;  %v6876_v31 = vpack.c.bf16 %v4302_v22, %v4301_v36  ;;  %v4306_v36 = vld [vmem:[%s13067_s3 + $0x3c8] sm:$0xff]  ;;  %v14197_v22 = vld [vmem:[#allocation143_spill] sm:$0xff] }
 0x60c   : > { %4884 = vmatmul.mubr.f32.gmra.mrb[80].mxu1 %v14194_v58 }
 0x60d   : > { %4888 = vmatprep.mubr.f32.mxu1 %v11992_v18  ;;  %6871 = vmatpush1.bf16.msra.mxu1 %v6870_v62  ;;  %v4303_v62 = vld [vmem:[%s13067_s3 + $0x3b0] sm:$0xff] }
 0x60e   : > { %6872 = vmatprep.subr.bf16.mxu1 %v13608_v9  ;;  %v6879_v18 = vpack.c.bf16 %v4304_v8, %v4303_v62  ;;  %v4308_v62 = vld [vmem:[%s13067_s3 + $0x3d8] sm:$0xff]  ;;  %v14198_v8 = vld [vmem:[#allocation149_spill] sm:$0xff] }
 0x610   : > { %4889 = vmatmul.mubr.f32.gmra.mrb[82].mxu1 %v14195_v44 }
 0x611   : > { %4893 = vmatprep.mubr.f32.mxu1 %v12008_v6  ;;  %6874 = vmatpush1.bf16.msra.mxu1 %v6873_v57  ;;  %v4305_v57 = vld [vmem:[%s13067_s3 + $0x3c0] sm:$0xff] }
 0x612   : > { %6875 = vmatprep.subr.bf16.mxu1 %v13608_v9  ;;  %v6882_v6 = vpack.c.bf16 %v4306_v36, %v4305_v57  ;;  %v4310_v57 = vld [vmem:[%s13067_s3 + $0x3e8] sm:$0xff] }
 0x613   : > { %v14199_v36 = vld [vmem:[#allocation153_spill] sm:$0xff] }
 0x614   : > { %4894 = vmatmul.mubr.f32.gmra.mrb[84].mxu1 %v14196_v63 }
 0x615   : > { %4898 = vmatprep.mubr.f32.mxu1 %v12021_v14  ;;  %6877 = vmatpush1.bf16.msra.mxu1 %v6876_v31  ;;  %v4307_v31 = vld [vmem:[%s13067_s3 + $0x3d0] sm:$0xff] }
 0x616   : > { %6878 = vmatprep.subr.bf16.mxu1 %v13608_v9  ;;  %v6885_v14 = vpack.c.bf16 %v4308_v62, %v4307_v31  ;;  %v4312_v31 = vld [vmem:[%s13067_s3 + $0x3f8] sm:$0xff]  ;;  %v4313_v62 = vld [vmem:[%s13067_s3 + $0x400] sm:$0xff] }
 0x618   : > { %4899 = vmatmul.mubr.f32.gmra.mrb[86].mxu1 %v14197_v22 }
 0x619   : > { %4903 = vmatprep.mubr.f32.mxu1 %v12037_v56  ;;  %6880 = vmatpush1.bf16.msra.mxu1 %v6879_v18  ;;  %v4309_v18 = vld [vmem:[%s13067_s3 + $0x3e0] sm:$0xff] }
 0x61a   : > { %6881 = vmatprep.subr.bf16.mxu1 %v13608_v9  ;;  %v6888_v56 = vpack.c.bf16 %v4310_v57, %v4309_v18 }
 0x61c   : > { %4904 = vmatmul.mubr.f32.gmra.mrb[88].mxu1 %v14198_v8 }
 0x61d   : > { %4908 = vmatprep.mubr.f32.mxu1 %v12044_v59  ;;  %6883 = vmatpush1.bf16.msra.mxu1 %v6882_v6  ;;  %v4311_v6 = vld [vmem:[%s13067_s3 + $0x3f0] sm:$0xff]  ;;  %v14201_v59 = vld [vmem:[#allocation11_spill] sm:$0xff] }
 0x61e   : > { %6884 = vmatprep.subr.bf16.mxu1 %v13608_v9  ;;  %v6891_v18 = vpack.c.bf16 %v4312_v31, %v4311_v6  ;;  %v14208_v6 = vld [vmem:[#allocation51_spill] sm:$0xff] }
 0x61f   : > { %v14209_v31 = vld [vmem:[#allocation59_spill] sm:$0xff] }
 0x620   : > { %4909 = vmatmul.mubr.f32.gmra.mrb[90].mxu1 %v14199_v36 }
 0x621   : > { %4913 = vmatprep.mubr.f32.mxu1 %v12054_v15  ;;  %6886 = vmatpush1.bf16.msra.mxu1 %v6885_v14  ;;  %v4314_v15 = vld [vmem:[%s13067_s3 + $0x408] sm:$0xff] }
 0x622   : > { %6887 = vmatprep.subr.bf16.mxu1 %v13608_v9  ;;  %v14200_v14 = vld [vmem:[#allocation9_spill] sm:$0xff]  ;;  %v6893_v57 = vpack.c.bf16 %v4314_v15, %v4313_v62  ;;  %v14207_v15 = vld [vmem:[#allocation44_spill] sm:$0xff] }
 0x623   : > { %v14210_v62 = vld [vmem:[#allocation64_spill] sm:$0xff] }
 0x624   : > { %4914 = vmatmul.mubr.f32.gmra.mrb[92].mxu1 %v14200_v14 }
 0x625   : > { %4918 = vmatprep.mubr.f32.mxu1 %v12060_v54  ;;  %6889 = vmatpush1.bf16.msra.mxu1 %v6888_v56  ;;  %v14204_v54 = vld [vmem:[#allocation23_spill] sm:$0xff]  ;;  %v14206_v56 = vld [vmem:[#allocation37_spill] sm:$0xff] }
 0x626   : > { %6890 = vmatprep.subr.bf16.mxu1 %v13608_v9  ;;  %v14205_v9 = vld [vmem:[#allocation29_spill] sm:$0xff] }
 0x628   : > { %4919 = vmatmul.mubr.f32.gmra.mrb[94].mxu1 %v14201_v59 }
 0x629   : > { %4923 = vmatprep.mubr.f32.mxu1 %v12069_v32  ;;  %6892 = vmatpush1.bf16.msra.mxu1 %v6891_v18  ;;  %v14211_v18 = vld [vmem:[#allocation69_spill] sm:$0xff] }
 0x62a   : > { %6894 = vmatprep.subr.bf16.mxu1 %v6893_v57 }
 0x62c   : > { %4924 = vmatmul.mubr.f32.gmra.mrb[96].mxu1 %v14202_v46 }
 0x62d   : > { %4928 = vmatprep.mubr.f32.mxu1 %v12075_v35 }
 0x630   : > { %4929 = vmatmul.mubr.f32.gmra.mrb[98].mxu1 %v14203_v51 }
 0x631   : > { %4933 = vmatprep.mubr.f32.mxu1 %v12084_v55  ;;  %v14215_v55 = vld [vmem:[#allocation81_spill] sm:$0xff] }
 0x634   : > { %4934 = vmatmul.mubr.f32.gmra.mrb[100].mxu1 %v14204_v54 }
 0x635   : > { %4938 = vmatprep.mubr.f32.mxu1 %v12090_v42 }
 0x638   : > { %4939 = vmatmul.mubr.f32.gmra.mrb[102].mxu1 %v14205_v9 }
 0x639   : > { %4943 = vmatprep.mubr.f32.mxu1 %v12099_v39 }
 0x63c   : > { %4944 = vmatmul.mubr.f32.gmra.mrb[104].mxu1 %v14206_v56 }
 0x63d   : > { %4948 = vmatprep.mubr.f32.mxu1 %v12105_v20  ;;  %v14212_v20 = vld [vmem:[#allocation77_spill] sm:$0xff] }
 0x640   : > { %4949 = vmatmul.mubr.f32.gmra.mrb[106].mxu1 %v14207_v15 }
 0x641   : > { %4953 = vmatprep.mubr.f32.mxu1 %v12114_v13 }
 0x644   : > { %4954 = vmatmul.mubr.f32.gmra.mrb[108].mxu1 %v14208_v6 }
 0x645   : > { %4958 = vmatprep.mubr.f32.mxu1 %v12120_v24  ;;  %v3912_v24 = vsel %vm415_vm0, 0.0, %v12158_v25 }
 0x646   : > { %v4178_v13 = vrot.slane %v3912_v24, 2  ;;  %v4171_v42 = vrot.slane %v3912_v24, 1 }
 0x648   : > { %4959 = vmatmul.mubr.f32.gmra.mrb[110].mxu1 %v14209_v31 }
 0x649   : > { %4963 = vmatprep.mubr.f32.mxu1 %v12129_v12  ;;  %v14213_v12 = vld [vmem:[#allocation79_spill] sm:$0xff] }
 0x64c   : > { %4964 = vmatmul.mubr.f32.gmra.mrb[112].mxu1 %v14210_v62 }
 0x64d   : > { %4968 = vmatprep.mubr.f32.mxu1 %v12135_v28  ;;  %v4179_v28 = vrot.slane %v12176_v37, 2 }
 0x650   : > { %4969 = vmatmul.mubr.f32.gmra.mrb[114].mxu1 %v14211_v18 }
 0x651   : > { %4973 = vmatprep.mubr.f32.mxu1 %v12148_v30  ;;  %v14214_v30 = vrot.slane %v12152_v43, 7 }
 0x653   : > { %v3928_v39 = vsel %vm415_vm0, %v14214_v30, 0.0 }
 0x654   : > { %4974 = vmatmul.mubr.f32.gmra.mrb[116].mxu1 %v14212_v20  ;;  %v4181_v35 = vrot.slane %v3928_v39, 2  ;;  %v4174_v25 = vrot.slane %v3928_v39, 1 }
 0x655   : > { %4978 = vmatprep.mubr.f32.mxu1 %v12156_v47  ;;  %v4172_v47 = vrot.slane %v12176_v37, 1 }
 0x656   : > { %v12376_v43 = vsel %vm958_vm1, %v4179_v28, %v4181_v35  ;;  %v4317_v35 = vld [vmem:[%s13067_s3 + $0x420] sm:$0xff] }
 0x657   : > { %v12372_v32 = vsel %vm740_vm3, %v4171_v42, %v4172_v47  ;;  %v12380_v24 = vsel %vm740_vm3, %v4172_v47, %v4174_v25  ;;  %v4316_v42 = vld [vmem:[%s13067_s3 + $0x418] sm:$0xff]  ;;  %v4319_v47 = vld [vmem:[%s13067_s3 + $0x430] sm:$0xff] }
 0x658   : > { %4979 = vmatmul.mubr.f32.gmra.mrb[118].mxu1 %v11803_v26  ;;  %v4320_v25 = vld [vmem:[%s13067_s3 + $0x438] sm:$0xff] }
 0x659   : > { %4983 = vmatprep.mubr.f32.mxu1 %v12168_v34  ;;  %v12368_v34 = vsel %vm958_vm1, %v4178_v13, %v4179_v28  ;;  %v4315_v13 = vld [vmem:[%s13067_s3 + $0x410] sm:$0xff]  ;;  %v4318_v28 = vld [vmem:[%s13067_s3 + $0x428] sm:$0xff] }
 0x65a   : > { %v6897_v39 = vpack.c.bf16 %v4316_v42, %v4315_v13  ;;  %v6901_v30 = vpack.c.bf16 %v4318_v28, %v4317_v35  ;;  %v4326_v13 = vld [vmem:[%s13067_s3 + $0x468] sm:$0xff]  ;;  %v4328_v42 = vld [vmem:[%s13067_s3 + $0x478] sm:$0xff] }
 0x65c   : > { %4984 = vmatmul.mubr.f32.gmra.mrb[120].mxu1 %v14213_v12 }
 0x65d   : > { %4988 = vmatprep.mubr.f32.mxu1 %v12186_v19 }
 0x660   : > { %4989 = vmatmul.mubr.f32.gmra.mrb[122].mxu1 %v14215_v55 }
 0x661   : > { %4993 = vmatprep.mubr.f32.mxu1 %v12368_v34 }
 0x664   : > { %4994 = vmatmul.mubr.f32.gmra.mrb[124].mxu1 %v12372_v32 }
 0x665   : > { %4998 = vmatprep.mubr.f32.mxu1 %v12376_v43 }
 0x668   : > { %4999 = vmatmul.mubr.f32.gmra.mrb[126].mxu1 %v12380_v24 }
 0x669   : > { %5068 = vmatprep.mubr.f32.mxu1 %v14188_v45  ;;  %v4321_v45 = vld [vmem:[%s13067_s3 + $0x440] sm:$0xff] }
 0x66c   : > { %6101 = vmatmul.mubr.msk.f32.vlgmr.msra.gmra.mrb[64].mxu1 %vm8014_vm2, %v11294_v52  ;;  %v6905_v52 = vpack.c.bf16 %v4320_v25, %v4319_v47 }
 0x66d   : > { %5073 = vmatprep.mubr.f32.mxu1 %v14189_v2  ;;  %6896 = vmatpush3.bf16.msra.mxu1 %v6893_v57  ;;  %v4322_v2 = vld [vmem:[%s13067_s3 + $0x448] sm:$0xff]  ;;  %v4324_v57 = vld [vmem:[%s13067_s3 + $0x458] sm:$0xff] }
 0x66e   : > { %6898 = vmatprep.subr.bf16.mxu1 %v6897_v39 }
 0x670   : > { %5074 = vmatmul.mubr.f32.gmra.mrb[66].mxu1 %v11318_v3  ;;  %v6909_v3 = vpack.c.bf16 %v4322_v2, %v4321_v45 }
 0x671   : > { %5078 = vmatprep.mubr.f32.mxu1 %v14190_v23  ;;  %6900 = vmatpush3.bf16.msra.mxu1 %v6897_v39  ;;  %v4323_v23 = vld [vmem:[%s13067_s3 + $0x450] sm:$0xff] }
 0x672   : > { %6902 = vmatprep.subr.bf16.mxu1 %v6901_v30 }
 0x674   : > { %6103 = vmatmul.mubr.msk.f32.gmra.mrb[68].mxu1 %vm8014_vm2, %v11340_v29  ;;  %v6913_v29 = vpack.c.bf16 %v4324_v57, %v4323_v23 }
 0x675   : > { %5083 = vmatprep.mubr.f32.mxu1 %v14191_v1  ;;  %6904 = vmatpush3.bf16.msra.mxu1 %v6901_v30  ;;  %v4325_v1 = vld [vmem:[%s13067_s3 + $0x460] sm:$0xff] }
 0x676   : > { %6906 = vmatprep.subr.bf16.mxu1 %v6905_v52 }
 0x678   : > { %5084 = vmatmul.mubr.f32.gmra.mrb[70].mxu1 %v11360_v53  ;;  %v6917_v53 = vpack.c.bf16 %v4326_v13, %v4325_v1 }
 0x679   : > { %5088 = vmatprep.mubr.f32.mxu1 %v14192_v48  ;;  %6908 = vmatpush3.bf16.msra.mxu1 %v6905_v52  ;;  %v4327_v48 = vld [vmem:[%s13067_s3 + $0x470] sm:$0xff] }
 0x67a   : > { %6910 = vmatprep.subr.bf16.mxu1 %v6909_v3 }
 0x67c   : > { %6105 = vmatmul.mubr.msk.f32.gmra.mrb[72].mxu1 %vm8014_vm2, %v11378_v0  ;;  %v6921_v0 = vpack.c.bf16 %v4328_v42, %v4327_v48 }
 0x67d   : > { %5093 = vmatprep.mubr.f32.mxu1 %v14193_v16  ;;  %6912 = vmatpush3.bf16.msra.mxu1 %v6909_v3  ;;  %v14242_v16 = vld [vmem:[#allocation126_spill] sm:$0xff] }
 0x67e   : > { %6914 = vmatprep.subr.bf16.mxu1 %v6913_v29 }
 0x680   : > { %5094 = vmatmul.mubr.f32.gmra.mrb[74].mxu1 %v11404_v41  ;;  %v14217_v41 = vld [vmem:[#allocation31_spill] sm:$0xff] }
 0x681   : > { %5098 = vmatprep.mubr.f32.mxu1 %v14194_v58  ;;  %6916 = vmatpush3.bf16.msra.mxu1 %v6913_v29  ;;  %v14243_v58 = vld [vmem:[#allocation112_spill] sm:$0xff] }
 0x682   : > { %6918 = vmatprep.subr.bf16.mxu1 %v6917_v53 }
 0x684   : > { %6107 = vmatmul.mubr.msk.f32.gmra.mrb[76].mxu1 %vm8014_vm2, %v11428_v21  ;;  %v14218_v21 = vld [vmem:[#allocation39_spill] sm:$0xff] }
 0x685   : > { %5103 = vmatprep.mubr.f32.mxu1 %v14195_v44  ;;  %6920 = vmatpush3.bf16.msra.mxu1 %v6917_v53  ;;  %v14244_v44 = vld [vmem:[#allocation132_spill] sm:$0xff] }
 0x686   : > { %6922 = vmatprep.subr.bf16.mxu1 %v6921_v0 }
 0x688   : > { %5104 = vmatmul.mubr.f32.gmra.mrb[78].mxu1 %v11455_v11  ;;  %v14219_v11 = vld [vmem:[#allocation47_spill] sm:$0xff] }
 0x689   : > { %5108 = vmatprep.mubr.f32.mxu1 %v14196_v63  ;;  %6924 = vmatpush3.bf16.msra.mxu1 %v6921_v0  ;;  %v14245_v63 = vld [vmem:[#allocation113_spill] sm:$0xff] }
 0x68c   : > { %6109 = vmatmul.mubr.msk.f32.gmra.mrb[80].mxu1 %vm8014_vm2, %v11480_v38  ;;  %v14216_v38 = vld [vmem:[#allocation25_spill] sm:$0xff] }
 0x68d   : > { %5113 = vmatprep.mubr.f32.mxu1 %v14197_v22  ;;  %v14246_v22 = vld [vmem:[#allocation130_spill] sm:$0xff] }
 0x690   : > { %5114 = vmatmul.mubr.f32.gmra.mrb[82].mxu1 %v11507_v60  ;;  %v14220_v60 = vld [vmem:[#allocation54_spill] sm:$0xff] }
 0x691   : > { %5118 = vmatprep.mubr.f32.mxu1 %v14198_v8  ;;  %v14247_v8 = vld [vmem:[#allocation116_spill] sm:$0xff] }
 0x694   : > { %6111 = vmatmul.mubr.msk.f32.gmra.mrb[84].mxu1 %vm8014_vm2, %v11526_v4  ;;  %v14221_v4 = vld [vmem:[#allocation61_spill] sm:$0xff] }
 0x695   : > { %5123 = vmatprep.mubr.f32.mxu1 %v14199_v36  ;;  %v14248_v36 = vld [vmem:[#allocation135_spill] sm:$0xff] }
 0x698   : > { %5124 = vmatmul.mubr.f32.gmra.mrb[86].mxu1 %v11543_v61  ;;  %v14223_v61 = vld [vmem:[#allocation71_spill] sm:$0xff] }
 0x699   : > { %5128 = vmatprep.mubr.f32.mxu1 %v14200_v14  ;;  %v14249_v14 = vld [vmem:[#allocation120_spill] sm:$0xff] }
 0x69c   : > { %6113 = vmatmul.mubr.msk.f32.gmra.mrb[88].mxu1 %vm8014_vm2, %v11559_v49  ;;  %v14224_v49 = vld [vmem:[#allocation131_spill] sm:$0xff] }
 0x69d   : > { %5133 = vmatprep.mubr.f32.mxu1 %v14201_v59  ;;  %v14234_v59 = vld [vmem:[#allocation94_spill] sm:$0xff] }
 0x6a0   : > { %5134 = vmatmul.mubr.f32.gmra.mrb[90].mxu1 %v11573_v33  ;;  %v14225_v33 = vld [vmem:[#allocation32_spill] sm:$0xff] }
 0x6a1   : > { %5138 = vmatprep.mubr.f32.mxu1 %v14202_v46  ;;  %v14233_v46 = vld [vmem:[#allocation108_spill] sm:$0xff] }
 0x6a4   : > { %6115 = vmatmul.mubr.msk.f32.gmra.mrb[92].mxu1 %vm8014_vm2, %v11591_v10  ;;  %v14222_v10 = vld [vmem:[#allocation67_spill] sm:$0xff] }
 0x6a5   : > { %5143 = vmatprep.mubr.f32.mxu1 %v14203_v51  ;;  %v14232_v51 = vld [vmem:[#allocation91_spill] sm:$0xff] }
 0x6a8   : > { %5144 = vmatmul.mubr.f32.gmra.mrb[94].mxu1 %v11605_v27  ;;  %v14227_v27 = vld [vmem:[#allocation35_spill] sm:$0xff] }
 0x6a9   : > { %5148 = vmatprep.mubr.f32.mxu1 %v14204_v54  ;;  %v14236_v54 = vld [vmem:[#allocation114_spill] sm:$0xff] }
 0x6ac   : > { %6117 = vmatmul.mubr.msk.f32.gmra.mrb[96].mxu1 %vm8014_vm2, %v11623_v5  ;;  %v14226_v5 = vld [vmem:[#allocation8_spill] sm:$0xff] }
 0x6ad   : > { %5153 = vmatprep.mubr.f32.mxu1 %v14205_v9  ;;  %v14250_v9 = vld [vmem:[#allocation138_spill] sm:$0xff] }
 0x6b0   : > { %5154 = vmatmul.mubr.f32.gmra.mrb[98].mxu1 %v11637_v7  ;;  %v14229_v7 = vld [vmem:[#allocation87_spill] sm:$0xff] }
 0x6b1   : > { %5158 = vmatprep.mubr.f32.mxu1 %v14206_v56  ;;  %v14251_v56 = vld [vmem:[#allocation123_spill] sm:$0xff] }
 0x6b4   : > { %6119 = vmatmul.mubr.msk.f32.gmra.mrb[100].mxu1 %vm8014_vm2, %v11655_v40  ;;  %v14228_v40 = vld [vmem:[#allocation84_spill] sm:$0xff] }
 0x6b5   : > { %5163 = vmatprep.mubr.f32.mxu1 %v14207_v15  ;;  %v14252_v15 = vld [vmem:[#allocation125_spill] sm:$0xff] }
 0x6b8   : > { %5164 = vmatmul.mubr.f32.gmra.mrb[102].mxu1 %v14216_v38 }
 0x6b9   : > { %5168 = vmatprep.mubr.f32.mxu1 %v14208_v6  ;;  %v14253_v6 = vld [vmem:[#allocation129_spill] sm:$0xff] }
 0x6bc   : > { %6121 = vmatmul.mubr.msk.f32.gmra.mrb[104].mxu1 %vm8014_vm2, %v14217_v41 }
 0x6bd   : > { %5173 = vmatprep.mubr.f32.mxu1 %v14209_v31  ;;  %v14254_v31 = vld [vmem:[#allocation136_spill] sm:$0xff] }
 0x6c0   : > { %5174 = vmatmul.mubr.f32.gmra.mrb[106].mxu1 %v14218_v21 }
 0x6c1   : > { %5178 = vmatprep.mubr.f32.mxu1 %v14210_v62  ;;  %v14255_v62 = vld [vmem:[#allocation10_spill] sm:$0xff] }
 0x6c4   : > { %6123 = vmatmul.mubr.msk.f32.gmra.mrb[108].mxu1 %vm8014_vm2, %v14219_v11 }
 0x6c5   : > { %5183 = vmatprep.mubr.f32.mxu1 %v14211_v18  ;;  %v14256_v18 = vld [vmem:[#allocation14_spill] sm:$0xff] }
 0x6c8   : > { %5184 = vmatmul.mubr.f32.gmra.mrb[110].mxu1 %v14220_v60 }
 0x6c9   : > { %5188 = vmatprep.mubr.f32.mxu1 %v14212_v20  ;;  %v14239_v20 = vld [vmem:[#allocation119_spill] sm:$0xff] }
 0x6cc   : > { %6125 = vmatmul.mubr.msk.f32.gmra.mrb[112].mxu1 %vm8014_vm2, %v14221_v4 }
 0x6cd   : > { %5193 = vmatprep.mubr.f32.mxu1 %v11803_v26  ;;  %v14231_v26 = vld [vmem:[#allocation89_spill] sm:$0xff] }
 0x6d0   : > { %5194 = vmatmul.mubr.f32.gmra.mrb[114].mxu1 %v14222_v10 }
 0x6d1   : > { %5198 = vmatprep.mubr.f32.mxu1 %v14213_v12  ;;  %v14240_v12 = vld [vmem:[#allocation104_spill] sm:$0xff] }
 0x6d4   : > { %6127 = vmatmul.mubr.msk.f32.gmra.mrb[116].mxu1 %vm8014_vm2, %v14223_v61 }
 0x6d5   : > { %5203 = vmatprep.mubr.f32.mxu1 %v14215_v55  ;;  %v14238_v55 = vld [vmem:[#allocation101_spill] sm:$0xff] }
 0x6d8   : > { %5204 = vmatmul.mubr.f32.gmra.mrb[118].mxu1 %v11793_v50  ;;  %v14230_v50 = vld [vmem:[#allocation102_spill] sm:$0xff] }
 0x6d9   : > { %5208 = vmatprep.mubr.f32.mxu1 %v12372_v32  ;;  %v14237_v32 = vld [vmem:[#allocation100_spill] sm:$0xff] }
 0x6dc   : > { %6129 = vmatmul.mubr.msk.f32.gmra.mrb[120].mxu1 %vm8014_vm2, %v14224_v49 }
 0x6dd   : > { %5213 = vmatprep.mubr.f32.mxu1 %v12380_v24 }
 0x6e0   : > { %5214 = vmatmul.mubr.f32.gmra.mrb[122].mxu1 %v12176_v37  ;;  %v14241_v37 = vld [vmem:[#allocation107_spill] sm:$0xff] }
 0x6e1   : > { %5218 = vmatprep.mubr.f32.mxu1 %v14225_v33 }
 0x6e4   : > { %6131 = vmatmul.mubr.msk.f32.gmra.mrb[124].mxu1 %vm8014_vm2, %v14226_v5 }
 0x6e5   : > { %5223 = vmatprep.mubr.f32.mxu1 %v14227_v27 }
 0x6e8   : > { %5224 = vmatmul.mubr.f32.gmra.mrb[126].mxu1 %v14226_v5 }
 0x6e9   : > { %6221 = vmatprep.mubr.f32.mxu1 %v14228_v40 }
 0x6ec   : > { %6222 = vmatmul.mubr.f32.vlgmr.msra.gmra.mrb[128].mxu1 %v14229_v7 }
 0x6ed   : > { %6224 = vmatprep.mubr.f32.mxu1 %v14230_v50 }
 0x6f0   : > { %6225 = vmatmul.mubr.f32.gmra.mrb[130].mxu1 %v14231_v26 }
 0x6f1   : > { %6227 = vmatprep.mubr.f32.mxu1 %v14232_v51 }
 0x6f4   : > { %6228 = vmatmul.mubr.f32.gmra.mrb[132].mxu1 %v14233_v46 }
 0x6f5   : > { %6230 = vmatprep.mubr.f32.mxu1 %v14234_v59 }
 0x6f8   : > { %6231 = vmatmul.mubr.f32.gmra.mrb[134].mxu1 %v14235_v17 }
 0x6f9   : > { %6233 = vmatprep.mubr.f32.mxu1 %v14236_v54 }
 0x6fc   : > { %6234 = vmatmul.mubr.f32.gmra.mrb[136].mxu1 %v14237_v32 }
 0x6fd   : > { %6236 = vmatprep.mubr.f32.mxu1 %v14238_v55 }
 0x700   : > { %6237 = vmatmul.mubr.f32.gmra.mrb[138].mxu1 %v14239_v20 }
 0x701   : > { %6239 = vmatprep.mubr.f32.mxu1 %v14240_v12 }
 0x704   : > { %6240 = vmatmul.mubr.f32.gmra.mrb[140].mxu1 %v14241_v37 }
 0x705   : > { %6242 = vmatprep.mubr.f32.mxu1 %v14242_v16 }
 0x708   : > { %6243 = vmatmul.mubr.f32.gmra.mrb[142].mxu1 %v14243_v58 }
 0x709   : > { %6245 = vmatprep.mubr.f32.mxu1 %v14244_v44 }
 0x70c   : > { %6246 = vmatmul.mubr.f32.gmra.mrb[144].mxu1 %v14245_v63 }
 0x70d   : > { %6248 = vmatprep.mubr.f32.mxu1 %v14246_v22 }
 0x710   : > { %6249 = vmatmul.mubr.f32.gmra.mrb[146].mxu1 %v14247_v8 }
 0x711   : > { %6251 = vmatprep.mubr.f32.mxu1 %v14248_v36 }
 0x714   : > { %6252 = vmatmul.mubr.f32.gmra.mrb[148].mxu1 %v14249_v14 }
 0x715   : > { %6254 = vmatprep.mubr.f32.mxu1 %v14250_v9 }
 0x718   : > { %6255 = vmatmul.mubr.f32.gmra.mrb[150].mxu1 %v14251_v56 }
 0x719   : > { %6257 = vmatprep.mubr.f32.mxu1 %v14252_v15 }
 0x71c   : > { %6258 = vmatmul.mubr.f32.gmra.mrb[152].mxu1 %v14253_v6 }
 0x71d   : > { %6260 = vmatprep.mubr.f32.mxu1 %v14254_v31 }
 0x720   : > { %6261 = vmatmul.mubr.f32.gmra.mrb[154].mxu1 %v12186_v19 }
 0x721   : > { %6263 = vmatprep.mubr.f32.mxu1 %v12368_v34 }
 0x724   : > { %6264 = vmatmul.mubr.f32.gmra.mrb[156].mxu1 %v12376_v43 }
 0x725   : > { %6266 = vmatprep.mubr.f32.mxu1 %v14255_v62 }
 0x728   : > { %6267 = vmatmul.mubr.f32.gmra.mrb[158].mxu1 %v14256_v18 }
 0x73f   : > { %v12553_v24 = vpop.f32.mrb[64].mxu1 }
 0x740   : > { %v5072_v39 = vpop.f32.mrb[65].mxu1 }
 0x743   : > { %v12555_v35 = vpop.f32.mrb[66].mxu1 }
 0x744   : > { %v5077_v28 = vpop.f32.mrb[67].mxu1 }
 0x747   : > { %v12557_v30 = vpop.f32.mrb[68].mxu1 }
 0x748   : > { %v5082_v47 = vpop.f32.mrb[69].mxu1 }
 0x74b   : > { %v12559_v25 = vpop.f32.mrb[70].mxu1 }
 0x74c   : > { %v5087_v19 = vpop.f32.mrb[71].mxu1 }
 0x74f   : > { %v12561_v52 = vpop.f32.mrb[72].mxu1 }
 0x750   : > { %v5092_v34 = vpop.f32.mrb[73].mxu1 }
 0x753   : > { %v12563_v43 = vpop.f32.mrb[74].mxu1 }
 0x754   : > { %v5097_v45 = vpop.f32.mrb[75].mxu1 }
 0x757   : > { %v12565_v2 = vpop.f32.mrb[76].mxu1 }
 0x758   : > { %v5102_v3 = vpop.f32.mrb[77].mxu1 }
 0x75b   : > { %v12567_v23 = vpop.f32.mrb[78].mxu1 }
 0x75c   : > { %v5107_v57 = vpop.f32.mrb[79].mxu1 }
 0x75f   : > { %v12569_v29 = vpop.f32.mrb[80].mxu1 }
 0x760   : > { %v5112_v1 = vpop.f32.mrb[81].mxu1 }
 0x763   : > { %v12571_v13 = vpop.f32.mrb[82].mxu1 }
 0x764   : > { %v5117_v53 = vpop.f32.mrb[83].mxu1 }
 0x767   : > { %v12573_v48 = vpop.f32.mrb[84].mxu1 }
 0x768   : > { %v5122_v42 = vpop.f32.mrb[85].mxu1 }
 0x76b   : > { %v12575_v0 = vpop.f32.mrb[86].mxu1 }
 0x76c   : > { %v5127_v38 = vpop.f32.mrb[87].mxu1 }
 0x76f   : > { %v12577_v41 = vpop.f32.mrb[88].mxu1 }
 0x770   : > { %v5132_v21 = vpop.f32.mrb[89].mxu1 }
 0x773   : > { %v12579_v11 = vpop.f32.mrb[90].mxu1 }
 0x774   : > { %v5137_v60 = vpop.f32.mrb[91].mxu1 }
 0x777   : > { %v12581_v4 = vpop.f32.mrb[92].mxu1 }
 0x778   : > { %v5142_v10 = vpop.f32.mrb[93].mxu1 }
 0x77b   : > { %v12583_v61 = vpop.f32.mrb[94].mxu1 }
 0x77c   : > { %v5147_v49 = vpop.f32.mrb[95].mxu1 }
 0x77f   : > { %v12585_v33 = vpop.f32.mrb[96].mxu1 }
 0x780   : > { %v5152_v5 = vpop.f32.mrb[97].mxu1 }
 0x783   : > { %v12587_v27 = vpop.f32.mrb[98].mxu1 }
 0x784   : > { %v5157_v40 = vpop.f32.mrb[99].mxu1 }
 0x787   : > { %v12589_v7 = vpop.f32.mrb[100].mxu1 }
 0x788   : > { %v5162_v50 = vpop.f32.mrb[101].mxu1 }
 0x78b   : > { %v12591_v26 = vpop.f32.mrb[102].mxu1 }
 0x78c   : > { %v5167_v51 = vpop.f32.mrb[103].mxu1 }
 0x78f   : > { %v12593_v46 = vpop.f32.mrb[104].mxu1 }
 0x790   : > { %v5172_v59 = vpop.f32.mrb[105].mxu1 }
 0x793   : > { %v12595_v17 = vpop.f32.mrb[106].mxu1 }
 0x794   : > { %v5177_v54 = vpop.f32.mrb[107].mxu1 }
 0x797   : > { %v12597_v32 = vpop.f32.mrb[108].mxu1 }
 0x798   : > { %v5182_v55 = vpop.f32.mrb[109].mxu1 }
 0x79b   : > { %v12599_v20 = vpop.f32.mrb[110].mxu1 }
 0x79c   : > { %v5187_v12 = vpop.f32.mrb[111].mxu1 }
 0x79f   : > { %v12601_v37 = vpop.f32.mrb[112].mxu1 }
 0x7a0   : > { %v5192_v16 = vpop.f32.mrb[113].mxu1 }
 0x7a3   : > { %v12603_v58 = vpop.f32.mrb[114].mxu1 }
 0x7a4   : > { %v5197_v44 = vpop.f32.mrb[115].mxu1 }
 0x7a7   : > { %v12605_v63 = vpop.f32.mrb[116].mxu1 }
 0x7a8   : > { %v5202_v22 = vpop.f32.mrb[117].mxu1 }
 0x7ab   : > { %v12607_v8 = vpop.f32.mrb[118].mxu1 }
 0x7ac   : > { %v5207_v36 = vpop.f32.mrb[119].mxu1 }
 0x7af   : > { %v12609_v14 = vpop.f32.mrb[120].mxu1 }
 0x7b0   : > { %v5212_v9 = vpop.f32.mrb[121].mxu1 }
 0x7b3   : > { %v12611_v56 = vpop.f32.mrb[122].mxu1 }
 0x7b4   : > { %v5217_v15 = vpop.f32.mrb[123].mxu1 }
 0x7b7   : > { %v12613_v6 = vpop.f32.mrb[124].mxu1 }
 0x7b8   : > { %v5222_v31 = vpop.f32.mrb[125].mxu1 }
 0x7bb   : > { %v12615_v62 = vpop.f32.mrb[126].mxu1 }
 0x7bc   : > { %v5227_v18 = vpop.f32.mrb[127].mxu1 }
 0x7bf   : > { %v6223_v39 = vpop.f32.mrb[128].mxu1 }
 0x7c0   : > { %v12618_v28 = vadd.f32 %v6223_v39, %v12555_v35  ;;  %v5295_v47 = vpop.f32.mrb[129].mxu1 }
 0x7c1   : > { %v12621_v19 = vadd.f32 %v5295_v47, %v12553_v24 }
 0x7c2   : > { %v5456_v34 = vmul.f32 %v12618_v28, %v12618_v28 }
 0x7c3   : > { %v5455_v45 = vmul.f32 %v12621_v19, %v12621_v19  ;;  %v6226_v3 = vpop.f32.mrb[130].mxu1 }
 0x7c4   : > { %v12628_v57 = vadd.f32 %v6226_v3, %v12559_v25  ;;  %v5305_v1 = vpop.f32.mrb[131].mxu1 }
 0x7c5   : > { %v12631_v53 = vadd.f32 %v5305_v1, %v12557_v30  ;;  %v5487_v35 = vadd.f32 %v5456_v34, %v5455_v45 }
 0x7c6   : > { %v5458_v60 = vmul.f32 %v12628_v57, %v12628_v57 }
 0x7c7   : > { %v5457_v42 = vmul.f32 %v12631_v53, %v12631_v53  ;;  %v6229_v24 = vpop.f32.mrb[132].mxu1 }
 0x7c8   : > { %v12636_v38 = vadd.f32 %v6229_v24, %v12563_v43  ;;  %v5315_v21 = vpop.f32.mrb[133].mxu1 }
 0x7c9   : > { %v5488_v10 = vadd.f32 %v5487_v35, %v5457_v42  ;;  %v12641_v25 = vadd.f32 %v5315_v21, %v12561_v52 }
 0x7ca   : > { %v5460_v43 = vmul.f32 %v12636_v38, %v12636_v38 }
 0x7cb   : > { %v5459_v30 = vmul.f32 %v12641_v25, %v12641_v25  ;;  %v5489_v49 = vadd.f32 %v5488_v10, %v5458_v60  ;;  %v6232_v5 = vpop.f32.mrb[134].mxu1 }
 0x7cc   : > { %v12646_v40 = vadd.f32 %v6232_v5, %v12567_v23  ;;  %v5325_v50 = vpop.f32.mrb[135].mxu1 }
 0x7cd   : > { %v5490_v51 = vadd.f32 %v5489_v49, %v5459_v30  ;;  %v12651_v59 = vadd.f32 %v5325_v50, %v12565_v2 }
 0x7ce   : > { %v5462_v23 = vmul.f32 %v12646_v40, %v12646_v40 }
 0x7cf   : > { %v5461_v52 = vmul.f32 %v12651_v59, %v12651_v59  ;;  %v5491_v54 = vadd.f32 %v5490_v51, %v5460_v43  ;;  %v6235_v55 = vpop.f32.mrb[136].mxu1 }
 0x7d0   : > { %v12656_v12 = vadd.f32 %v6235_v55, %v12571_v13  ;;  %v5335_v16 = vpop.f32.mrb[137].mxu1 }
 0x7d1   : > { %v5492_v44 = vadd.f32 %v5491_v54, %v5461_v52  ;;  %v12661_v22 = vadd.f32 %v5335_v16, %v12569_v29 }
 0x7d2   : > { %v5464_v13 = vmul.f32 %v12656_v12, %v12656_v12 }
 0x7d3   : > { %v5463_v2 = vmul.f32 %v12661_v22, %v12661_v22  ;;  %v5493_v36 = vadd.f32 %v5492_v44, %v5462_v23  ;;  %v6238_v9 = vpop.f32.mrb[138].mxu1 }
 0x7d4   : > { %v12666_v15 = vadd.f32 %v6238_v9, %v12575_v0  ;;  %v5345_v31 = vpop.f32.mrb[139].mxu1 }
 0x7d5   : > { %v5494_v18 = vadd.f32 %v5493_v36, %v5463_v2  ;;  %v12671_v39 = vadd.f32 %v5345_v31, %v12573_v48 }
 0x7d6   : > { %v5466_v0 = vmul.f32 %v12666_v15, %v12666_v15 }
 0x7d7   : > { %v5465_v29 = vmul.f32 %v12671_v39, %v12671_v39  ;;  %v5495_v47 = vadd.f32 %v5494_v18, %v5464_v13  ;;  %v6241_v34 = vpop.f32.mrb[140].mxu1 }
 0x7d8   : > { %v12676_v45 = vadd.f32 %v6241_v34, %v12579_v11  ;;  %v5355_v3 = vpop.f32.mrb[141].mxu1 }
 0x7d9   : > { %v5496_v1 = vadd.f32 %v5495_v47, %v5465_v29  ;;  %v12681_v35 = vadd.f32 %v5355_v3, %v12577_v41 }
 0x7da   : > { %v5468_v11 = vmul.f32 %v12676_v45, %v12676_v45 }
 0x7db   : > { %v5467_v48 = vmul.f32 %v12681_v35, %v12681_v35  ;;  %v5497_v42 = vadd.f32 %v5496_v1, %v5466_v0  ;;  %v6244_v24 = vpop.f32.mrb[142].mxu1 }
 0x7dc   : > { %v12686_v21 = vadd.f32 %v6244_v24, %v12583_v61  ;;  %v5365_v60 = vpop.f32.mrb[143].mxu1 }
 0x7dd   : > { %v5498_v10 = vadd.f32 %v5497_v42, %v5467_v48  ;;  %v12691_v30 = vadd.f32 %v5365_v60, %v12581_v4 }
 0x7de   : > { %v5470_v61 = vmul.f32 %v12686_v21, %v12686_v21 }
 0x7df   : > { %v5469_v41 = vmul.f32 %v12691_v30, %v12691_v30  ;;  %v5499_v49 = vadd.f32 %v5498_v10, %v5468_v11  ;;  %v6247_v5 = vpop.f32.mrb[144].mxu1 }
 0x7e0   : > { %v12696_v50 = vadd.f32 %v6247_v5, %v12587_v27  ;;  %v5375_v43 = vpop.f32.mrb[145].mxu1 }
 0x7e1   : > { %v5500_v51 = vadd.f32 %v5499_v49, %v5469_v41  ;;  %v12701_v52 = vadd.f32 %v5375_v43, %v12585_v33 }
 0x7e2   : > { %v5472_v27 = vmul.f32 %v12696_v50, %v12696_v50 }
 0x7e3   : > { %v5471_v4 = vmul.f32 %v12701_v52, %v12701_v52  ;;  %v5501_v54 = vadd.f32 %v5500_v51, %v5470_v61  ;;  %v6250_v55 = vpop.f32.mrb[146].mxu1 }
 0x7e4   : > { %v12706_v16 = vadd.f32 %v6250_v55, %v12591_v26  ;;  %v5385_v23 = vpop.f32.mrb[147].mxu1 }
 0x7e5   : > { %v5502_v44 = vadd.f32 %v5501_v54, %v5471_v4  ;;  %v12711_v2 = vadd.f32 %v5385_v23, %v12589_v7 }
 0x7e6   : > { %v5474_v26 = vmul.f32 %v12706_v16, %v12706_v16 }
 0x7e7   : > { %v5473_v33 = vmul.f32 %v12711_v2, %v12711_v2  ;;  %v5503_v36 = vadd.f32 %v5502_v44, %v5472_v27  ;;  %v6253_v9 = vpop.f32.mrb[148].mxu1 }
 0x7e8   : > { %v12716_v31 = vadd.f32 %v6253_v9, %v12595_v17  ;;  %v5395_v13 = vpop.f32.mrb[149].mxu1 }
 0x7e9   : > { %v5504_v18 = vadd.f32 %v5503_v36, %v5473_v33  ;;  %v12721_v29 = vadd.f32 %v5395_v13, %v12593_v46 }
 0x7ea   : > { %v5476_v17 = vmul.f32 %v12716_v31, %v12716_v31 }
 0x7eb   : > { %v5475_v7 = vmul.f32 %v12721_v29, %v12721_v29  ;;  %v5505_v47 = vadd.f32 %v5504_v18, %v5474_v26  ;;  %v6256_v34 = vpop.f32.mrb[150].mxu1 }
 0x7ec   : > { %v12726_v3 = vadd.f32 %v6256_v34, %v12599_v20  ;;  %v5405_v0 = vpop.f32.mrb[151].mxu1 }
 0x7ed   : > { %v5506_v1 = vadd.f32 %v5505_v47, %v5475_v7  ;;  %v12731_v48 = vadd.f32 %v5405_v0, %v12597_v32 }
 0x7ee   : > { %v5478_v20 = vmul.f32 %v12726_v3, %v12726_v3 }
 0x7ef   : > { %v5477_v46 = vmul.f32 %v12731_v48, %v12731_v48  ;;  %v5507_v42 = vadd.f32 %v5506_v1, %v5476_v17  ;;  %v6259_v24 = vpop.f32.mrb[152].mxu1 }
 0x7f0   : > { %v12736_v60 = vadd.f32 %v6259_v24, %v12603_v58  ;;  %v5415_v11 = vpop.f32.mrb[153].mxu1 }
 0x7f1   : > { %v5508_v10 = vadd.f32 %v5507_v42, %v5477_v46  ;;  %v12741_v41 = vadd.f32 %v5415_v11, %v12601_v37 }
 0x7f2   : > { %v5480_v58 = vmul.f32 %v12736_v60, %v12736_v60 }
 0x7f3   : > { %v5479_v32 = vmul.f32 %v12741_v41, %v12741_v41  ;;  %v5509_v49 = vadd.f32 %v5508_v10, %v5478_v20  ;;  %v6262_v5 = vpop.f32.mrb[154].mxu1  ;;  %v5526_v20 = vstv %s5525_s10 }
 0x7f4   : > { %v12746_v43 = vadd.f32 %v6262_v5, %v12607_v8  ;;  %v5425_v61 = vpop.f32.mrb[155].mxu1 }
 0x7f5   : > { %v5510_v51 = vadd.f32 %v5509_v49, %v5479_v32  ;;  %v12751_v4 = vadd.f32 %v5425_v61, %v12605_v63  ;;  %v14257_v49 = vld [vmem:[#allocation42_spill] sm:$0xff] }
 0x7f6   : > { %v5482_v8 = vmul.f32 %v12746_v43, %v12746_v43  ;;  %v14258_v5 = vsub.s32 0, %v14257_v49 }
 0x7f7   : > { %v5481_v37 = vmul.f32 %v12751_v4, %v12751_v4  ;;  %v5511_v54 = vadd.f32 %v5510_v51, %v5480_v58  ;;  %v6265_v55 = vpop.f32.mrb[156].mxu1  ;;  %v14259_v51 = vsub.s32 1, %v14257_v49 }
 0x7f8   : > { %v12756_v23 = vadd.f32 %v6265_v55, %v12611_v56  ;;  %v5435_v27 = vpop.f32.mrb[157].mxu1 }
 0x7f9   : > { %v5512_v44 = vadd.f32 %v5511_v54, %v5481_v37  ;;  %v12761_v33 = vadd.f32 %v5435_v27, %v12609_v14  ;;  %v14260_v54 = vsub.s32 2, %v14257_v49 }
 0x7fa   : > { %v5484_v56 = vmul.f32 %v12756_v23, %v12756_v23 }
 0x7fb   : > { %v5483_v63 = vmul.f32 %v12761_v33, %v12761_v33  ;;  %v5513_v36 = vadd.f32 %v5512_v44, %v5482_v8  ;;  %v6268_v9 = vpop.f32.mrb[158].mxu1 }
 0x7fc   : > { %v12766_v13 = vadd.f32 %v6268_v9, %v12615_v62  ;;  %v5445_v26 = vpop.f32.mrb[159].mxu1 }
 0x7fd   : > { %v5514_v18 = vadd.f32 %v5513_v36, %v5483_v63  ;;  %v5446_v7 = vadd.f32 %v5445_v26, %v12613_v6  ;;  %v285_v6 = vld [vmem:[%s13068_s4 + $0x4] sm:$0x7] }
 0x7fe   : > { %v5486_v14 = vmul.f32 %v12766_v13, %v12766_v13  ;;  %v12778_v61 = vrot.slane %v285_v6, %v14258_v5  ;;  %v12782_v37 = vrot.slane %v285_v6, %v14259_v51  ;;  %v12786_v55 = vrot.slane %v285_v6, %v14260_v54 }
 0x7ff   : > { %v5485_v47 = vmul.f32 %v5446_v7, %v5446_v7  ;;  %v5515_v34 = vadd.f32 %v5514_v18, %v5484_v56 }
 0x801   : > { %v5516_v0 = vadd.f32 %v5515_v34, %v5485_v47 }
 0x803   : > { %v5517_v17 = vadd.f32 %v5516_v0, %v5486_v14 }
 0x805   : > { %v5518_v1 = vrot.slane %v5517_v17, 4 }
 0x807   : > { %v5519_v46 = vadd.f32 %v5518_v1, %v5517_v17 }
 0x809   : > { %v5520_v42 = vrot.slane %v5519_v46, 2 }
 0x80b   : > { %v5521_v62 = vadd.f32 %v5520_v42, %v5519_v46 }
 0x80d   : > { %v5522_v24 = vrot.slane %v5521_v62, 1 }
 0x80f   : > { %v5523_v11 = vadd.f32 %v5522_v24, %v5521_v62 }
 0x811   : > { %v5524_v10 = vmul.f32 0.00390625, %v5523_v11 }
 0x813   : > { %v5527_v32 = vadd.f32 %v5526_v20, %v5524_v10 }
 0x815   : > { %7653 = vrsqrt.f32 %v5527_v32 }
 0x81f   : > { %v7654_v58 = vpop.eup %7653 }
 0x820   : > { %v5559_v27 = vmul.f32 %v7654_v58, %v5446_v7  ;;  %v5529_v8 = vmul.f32 %v7654_v58, %v12621_v19  ;;  %v5530_v44 = vmul.f32 %v7654_v58, %v12618_v28  ;;  %v5531_v63 = vmul.f32 %v7654_v58, %v12631_v53 }
 0x821   : > { %v5532_v36 = vmul.f32 %v7654_v58, %v12628_v57  ;;  %v5533_v9 = vmul.f32 %v7654_v58, %v12641_v25  ;;  %v5534_v26 = vmul.f32 %v7654_v58, %v12636_v38  ;;  %v5535_v56 = vmul.f32 %v7654_v58, %v12651_v59 }
 0x822   : > { %v5595_v18 = vmul.f32 %v12778_v61, %v5559_v27  ;;  %v5536_v7 = vmul.f32 %v7654_v58, %v12646_v40  ;;  %v5537_v19 = vmul.f32 %v7654_v58, %v12661_v22  ;;  %v5538_v47 = vmul.f32 %v7654_v58, %v12656_v12 }
 0x823   : > { %v5539_v28 = vmul.f32 %v7654_v58, %v12671_v39  ;;  %v5540_v53 = vmul.f32 %v7654_v58, %v12666_v15  ;;  %v5541_v57 = vmul.f32 %v7654_v58, %v12681_v35  ;;  %v5542_v25 = vmul.f32 %v7654_v58, %v12676_v45 }
 0x824   : > { %v5631_v38 = vadd.f32 %v12782_v37, %v5595_v18  ;;  %v5543_v59 = vmul.f32 %v7654_v58, %v12691_v30  ;;  %v5544_v40 = vmul.f32 %v7654_v58, %v12686_v21  ;;  %v5545_v22 = vmul.f32 %v7654_v58, %v12701_v52 }
 0x825   : > { %v5546_v12 = vmul.f32 %v7654_v58, %v12696_v50  ;;  %v5547_v39 = vmul.f32 %v7654_v58, %v12711_v2  ;;  %v5548_v15 = vmul.f32 %v7654_v58, %v12706_v16  ;;  %v5549_v35 = vmul.f32 %v7654_v58, %v12721_v29 }
 0x826   : > { %v5667_v45 = vmax.f32 %v5631_v38, %v12786_v55  ;;  %v5550_v34 = vmul.f32 %v7654_v58, %v12716_v31  ;;  %v5551_v14 = vmul.f32 %v7654_v58, %v12731_v48  ;;  %v5552_v30 = vmul.f32 %v7654_v58, %v12726_v3 }
 0x827   : > { %v5553_v21 = vmul.f32 %v7654_v58, %v12741_v41  ;;  %v5554_v52 = vmul.f32 %v7654_v58, %v12736_v60  ;;  %v5555_v50 = vmul.f32 %v7654_v58, %v12751_v4  ;;  %v5556_v2 = vmul.f32 %v7654_v58, %v12746_v43 }
 0x828   : > { %v5699_v0 = vmax.f32 %v5667_v45, 0.0  ;;  %v5557_v16 = vmul.f32 %v7654_v58, %v12761_v33  ;;  %v5558_v29 = vmul.f32 %v7654_v58, %v12756_v23  ;;  %v5560_v17 = vmul.f32 %v7654_v58, %v12766_v13 }
 0x829   : > { %v5565_v31 = vmul.f32 %v12778_v61, %v5529_v8  ;;  %v5566_v48 = vmul.f32 %v12778_v61, %v5530_v44  ;;  %v5567_v3 = vmul.f32 %v12778_v61, %v5531_v63  ;;  %v5568_v41 = vmul.f32 %v12778_v61, %v5532_v36 }
 0x82a   : > { %5731 = vst [vmem:[%s12829_s16 + $0xf0] sm:$0xff] %v5699_v0  ;;  %v5569_v60 = vmul.f32 %v12778_v61, %v5533_v9  ;;  %v5570_v43 = vmul.f32 %v12778_v61, %v5534_v26  ;;  %v5571_v4 = vmul.f32 %v12778_v61, %v5535_v56  ;;  %v5572_v23 = vmul.f32 %v12778_v61, %v5536_v7 }
 0x82b   : > { %v5573_v33 = vmul.f32 %v12778_v61, %v5537_v19  ;;  %v5574_v13 = vmul.f32 %v12778_v61, %v5538_v47  ;;  %v5575_v1 = vmul.f32 %v12778_v61, %v5539_v28  ;;  %v5576_v46 = vmul.f32 %v12778_v61, %v5540_v53 }
 0x82c   : > { %v5577_v42 = vmul.f32 %v12778_v61, %v5541_v57  ;;  %v5578_v62 = vmul.f32 %v12778_v61, %v5542_v25  ;;  %v5579_v24 = vmul.f32 %v12778_v61, %v5543_v59  ;;  %v5580_v11 = vmul.f32 %v12778_v61, %v5544_v40 }
 0x82d   : > { %v5581_v20 = vmul.f32 %v12778_v61, %v5545_v22  ;;  %v5582_v10 = vmul.f32 %v12778_v61, %v5546_v12  ;;  %v5583_v32 = vmul.f32 %v12778_v61, %v5547_v39  ;;  %v5584_v6 = vmul.f32 %v12778_v61, %v5548_v15 }
 0x82e   : > { %v5585_v49 = vmul.f32 %v12778_v61, %v5549_v35  ;;  %v5586_v5 = vmul.f32 %v12778_v61, %v5550_v34  ;;  %v5587_v58 = vmul.f32 %v12778_v61, %v5551_v14  ;;  %v5588_v51 = vmul.f32 %v12778_v61, %v5552_v30 }
 0x82f   : > { %v5589_v54 = vmul.f32 %v12778_v61, %v5553_v21  ;;  %v5590_v27 = vmul.f32 %v12778_v61, %v5554_v52  ;;  %v5591_v8 = vmul.f32 %v12778_v61, %v5555_v50  ;;  %v5592_v44 = vmul.f32 %v12778_v61, %v5556_v2 }
 0x830   : > { %v5593_v63 = vmul.f32 %v12778_v61, %v5557_v16  ;;  %v5594_v36 = vmul.f32 %v12778_v61, %v5558_v29  ;;  %v5596_v9 = vmul.f32 %v12778_v61, %v5560_v17  ;;  %v5601_v26 = vadd.f32 %v12782_v37, %v5565_v31 }
 0x831   : > { %v5602_v56 = vadd.f32 %v12782_v37, %v5566_v48  ;;  %v5603_v18 = vadd.f32 %v12782_v37, %v5567_v3  ;;  %v5604_v7 = vadd.f32 %v12782_v37, %v5568_v41  ;;  %v5605_v19 = vadd.f32 %v12782_v37, %v5569_v60 }
 0x832   : > { %v5606_v47 = vadd.f32 %v12782_v37, %v5570_v43  ;;  %v5607_v28 = vadd.f32 %v12782_v37, %v5571_v4  ;;  %v5608_v53 = vadd.f32 %v12782_v37, %v5572_v23  ;;  %v5609_v57 = vadd.f32 %v12782_v37, %v5573_v33 }
 0x833   : > { %v5610_v61 = vadd.f32 %v12782_v37, %v5574_v13  ;;  %v5611_v25 = vadd.f32 %v12782_v37, %v5575_v1  ;;  %v12871_v38 = vadd.f32 %v12782_v37, %v5576_v46  ;;  %v12874_v59 = vadd.f32 %v12782_v37, %v5577_v42 }
 0x834   : > { %v12877_v40 = vadd.f32 %v12782_v37, %v5578_v62  ;;  %v12880_v22 = vadd.f32 %v12782_v37, %v5579_v24  ;;  %v12883_v12 = vadd.f32 %v12782_v37, %v5580_v11  ;;  %v12886_v39 = vadd.f32 %v12782_v37, %v5581_v20 }
 0x835   : > { %v12889_v15 = vadd.f32 %v12782_v37, %v5582_v10  ;;  %v12892_v35 = vadd.f32 %v12782_v37, %v5583_v32  ;;  %v12895_v45 = vadd.f32 %v12782_v37, %v5584_v6  ;;  %v12898_v34 = vadd.f32 %v12782_v37, %v5585_v49 }
 0x836   : > { %v12901_v14 = vadd.f32 %v12782_v37, %v5586_v5  ;;  %v12904_v30 = vadd.f32 %v12782_v37, %v5587_v58  ;;  %v12907_v21 = vadd.f32 %v12782_v37, %v5588_v51  ;;  %v12910_v52 = vadd.f32 %v12782_v37, %v5589_v54 }
 0x837   : > { %v12913_v50 = vadd.f32 %v12782_v37, %v5590_v27  ;;  %v12916_v2 = vadd.f32 %v12782_v37, %v5591_v8  ;;  %v12919_v0 = vadd.f32 %v12782_v37, %v5592_v44  ;;  %v12922_v16 = vadd.f32 %v12782_v37, %v5593_v63 }
 0x838   : > { %v12925_v29 = vadd.f32 %v12782_v37, %v5594_v36  ;;  %v12928_v17 = vadd.f32 %v12782_v37, %v5596_v9  ;;  %v5637_v31 = vmax.f32 %v5601_v26, %v12786_v55  ;;  %v5638_v48 = vmax.f32 %v5602_v56, %v12786_v55 }
 0x839   : > { %v5639_v3 = vmax.f32 %v5603_v18, %v12786_v55  ;;  %v5640_v41 = vmax.f32 %v5604_v7, %v12786_v55  ;;  %v5641_v60 = vmax.f32 %v5605_v19, %v12786_v55  ;;  %v5642_v43 = vmax.f32 %v5606_v47, %v12786_v55 }
 0x83a   : > { %v5643_v4 = vmax.f32 %v5607_v28, %v12786_v55  ;;  %v5644_v23 = vmax.f32 %v5608_v53, %v12786_v55  ;;  %v5645_v33 = vmax.f32 %v5609_v57, %v12786_v55  ;;  %v5646_v37 = vmax.f32 %v5610_v61, %v12786_v55 }
 0x83b   : > { %v5647_v13 = vmax.f32 %v5611_v25, %v12786_v55  ;;  %v5648_v1 = vmax.f32 %v12871_v38, %v12786_v55  ;;  %v5649_v46 = vmax.f32 %v12874_v59, %v12786_v55  ;;  %v5650_v42 = vmax.f32 %v12877_v40, %v12786_v55 }
 0x83c   : > { %v5651_v62 = vmax.f32 %v12880_v22, %v12786_v55  ;;  %v5652_v24 = vmax.f32 %v12883_v12, %v12786_v55  ;;  %v5653_v11 = vmax.f32 %v12886_v39, %v12786_v55  ;;  %v5654_v20 = vmax.f32 %v12889_v15, %v12786_v55 }
 0x83d   : > { %v5655_v10 = vmax.f32 %v12892_v35, %v12786_v55  ;;  %v5656_v32 = vmax.f32 %v12895_v45, %v12786_v55  ;;  %v5657_v6 = vmax.f32 %v12898_v34, %v12786_v55  ;;  %v5658_v49 = vmax.f32 %v12901_v14, %v12786_v55 }
 0x83e   : > { %v5659_v5 = vmax.f32 %v12904_v30, %v12786_v55  ;;  %v5660_v58 = vmax.f32 %v12907_v21, %v12786_v55  ;;  %v5661_v51 = vmax.f32 %v12910_v52, %v12786_v55  ;;  %v5662_v54 = vmax.f32 %v12913_v50, %v12786_v55 }
 0x83f   : > { %v5663_v27 = vmax.f32 %v12916_v2, %v12786_v55  ;;  %v5664_v8 = vmax.f32 %v12919_v0, %v12786_v55  ;;  %v5665_v44 = vmax.f32 %v12922_v16, %v12786_v55  ;;  %v5666_v63 = vmax.f32 %v12925_v29, %v12786_v55 }
 0x840   : > { %v5668_v36 = vmax.f32 %v12928_v17, %v12786_v55  ;;  %v5669_v9 = vmax.f32 %v5637_v31, 0.0  ;;  %v5670_v26 = vmax.f32 %v5638_v48, 0.0  ;;  %v5671_v56 = vmax.f32 %v5639_v3, 0.0 }
 0x841   : > { %v5672_v18 = vmax.f32 %v5640_v41, 0.0  ;;  %v5673_v7 = vmax.f32 %v5641_v60, 0.0  ;;  %v5674_v19 = vmax.f32 %v5642_v43, 0.0  ;;  %v5675_v47 = vmax.f32 %v5643_v4, 0.0 }
 0x842   : > { %v5676_v28 = vmax.f32 %v5644_v23, 0.0  ;;  %v5677_v53 = vmax.f32 %v5645_v33, 0.0  ;;  %v5678_v57 = vmax.f32 %v5646_v37, 0.0  ;;  %v5679_v61 = vmax.f32 %v5647_v13, 0.0  ;;  %5701 = vst [vmem:[%s12829_s16] sm:$0xff] %v5669_v9  ;;  %5702 = vst [vmem:[%s12829_s16 + $0x8] sm:$0xff] %v5670_v26 }
 0x843   : > { %5703 = vst [vmem:[%s12829_s16 + $0x10] sm:$0xff] %v5671_v56  ;;  %v5680_v55 = vmax.f32 %v5648_v1, 0.0  ;;  %v5681_v25 = vmax.f32 %v5649_v46, 0.0  ;;  %v5682_v38 = vmax.f32 %v5650_v42, 0.0  ;;  %v5683_v59 = vmax.f32 %v5651_v62, 0.0  ;;  %5704 = vst [vmem:[%s12829_s16 + $0x18] sm:$0xff] %v5672_v18 }
 0x844   : > { %5705 = vst [vmem:[%s12829_s16 + $0x20] sm:$0xff] %v5673_v7  ;;  %5706 = vst [vmem:[%s12829_s16 + $0x28] sm:$0xff] %v5674_v19  ;;  %v5684_v40 = vmax.f32 %v5652_v24, 0.0  ;;  %v5685_v22 = vmax.f32 %v5653_v11, 0.0  ;;  %v5686_v12 = vmax.f32 %v5654_v20, 0.0  ;;  %v5687_v39 = vmax.f32 %v5655_v10, 0.0 }
 0x845   : > { %5707 = vst [vmem:[%s12829_s16 + $0x30] sm:$0xff] %v5675_v47  ;;  %5708 = vst [vmem:[%s12829_s16 + $0x38] sm:$0xff] %v5676_v28  ;;  %v5688_v15 = vmax.f32 %v5656_v32, 0.0  ;;  %v5689_v35 = vmax.f32 %v5657_v6, 0.0  ;;  %v5690_v45 = vmax.f32 %v5658_v49, 0.0  ;;  %v5691_v34 = vmax.f32 %v5659_v5, 0.0 }
 0x846   : > { %5709 = vst [vmem:[%s12829_s16 + $0x40] sm:$0xff] %v5677_v53  ;;  %5710 = vst [vmem:[%s12829_s16 + $0x48] sm:$0xff] %v5678_v57  ;;  %v5692_v14 = vmax.f32 %v5660_v58, 0.0  ;;  %v5693_v30 = vmax.f32 %v5661_v51, 0.0  ;;  %v5694_v21 = vmax.f32 %v5662_v54, 0.0  ;;  %v5695_v52 = vmax.f32 %v5663_v27, 0.0 }
 0x847   : > { %5711 = vst [vmem:[%s12829_s16 + $0x50] sm:$0xff] %v5679_v61  ;;  %5712 = vst [vmem:[%s12829_s16 + $0x58] sm:$0xff] %v5680_v55  ;;  %v5696_v50 = vmax.f32 %v5664_v8, 0.0  ;;  %v5697_v2 = vmax.f32 %v5665_v44, 0.0  ;;  %v5698_v0 = vmax.f32 %v5666_v63, 0.0  ;;  %v5700_v16 = vmax.f32 %v5668_v36, 0.0 }
 0x848   : > { %5713 = vst [vmem:[%s12829_s16 + $0x60] sm:$0xff] %v5681_v25  ;;  %5714 = vst [vmem:[%s12829_s16 + $0x68] sm:$0xff] %v5682_v38 }
 0x849   : > { %5715 = vst [vmem:[%s12829_s16 + $0x70] sm:$0xff] %v5683_v59  ;;  %5716 = vst [vmem:[%s12829_s16 + $0x78] sm:$0xff] %v5684_v40 }
 0x84a   : > { %5717 = vst [vmem:[%s12829_s16 + $0x80] sm:$0xff] %v5685_v22  ;;  %5718 = vst [vmem:[%s12829_s16 + $0x88] sm:$0xff] %v5686_v12 }
 0x84b   : > { %5719 = vst [vmem:[%s12829_s16 + $0x90] sm:$0xff] %v5687_v39  ;;  %5720 = vst [vmem:[%s12829_s16 + $0x98] sm:$0xff] %v5688_v15 }
 0x84c   : > { %5721 = vst [vmem:[%s12829_s16 + $0xa0] sm:$0xff] %v5689_v35  ;;  %5722 = vst [vmem:[%s12829_s16 + $0xa8] sm:$0xff] %v5690_v45 }
 0x84d   : > { %5723 = vst [vmem:[%s12829_s16 + $0xb0] sm:$0xff] %v5691_v34  ;;  %5724 = vst [vmem:[%s12829_s16 + $0xb8] sm:$0xff] %v5692_v14 }
 0x84e   : > { %5725 = vst [vmem:[%s12829_s16 + $0xc0] sm:$0xff] %v5693_v30  ;;  %5726 = vst [vmem:[%s12829_s16 + $0xc8] sm:$0xff] %v5694_v21 }
 0x84f   : > { %5727 = vst [vmem:[%s12829_s16 + $0xd0] sm:$0xff] %v5695_v52  ;;  %5728 = vst [vmem:[%s12829_s16 + $0xd8] sm:$0xff] %v5696_v50 }
 0x850   : > { %5729 = vst [vmem:[%s12829_s16 + $0xe0] sm:$0xff] %v5697_v2  ;;  %5730 = vst [vmem:[%s12829_s16 + $0xe8] sm:$0xff] %v5698_v0 }
 0x851   : > { %5732 = vst [vmem:[%s12829_s16 + $0xf8] sm:$0xff] %v5700_v16 }
 0x852   : > { %7683 = shalt.err (!%p7680_p2)
}
 0x853   : > { %s7684_s10 = scalar_lea.hbm %s13005_s20, 4096  ;;  %s7688_s13 = scalar_lea.hbm %s13070_s6, 8192 }
 0x854   : > { %p7685_p3 = scmp.ne.s32.totalorder %s13005_s20, %s7684_s10  ;;  %p7689_p8 = scmp.lt.u32.totalorder %s13005_s20, %s13070_s6 }
 0x855   : > { %p7690_p9 = scmp.lt.u32.totalorder %s7688_s13, %s7684_s10  ;;  %p7692_p11 = scmp.lt.u32.totalorder %s7684_s10, %s13005_s20 }
 0x856   : > { %p7686_p4 = pnand %p7685_p3, %p7817_p5 }
 0x857   : > { %p7691_p10 = por %p7690_p9, %p7689_p8 }
 0x858   : > { %p7687_p7 = pneg %p7686_p4 }
 0x859   : > { %p7693_p12 = por %p7692_p11, %p7691_p10 }
 0x85b   : > { %p7694_p13 = pnand %p7693_p12, %p7687_p7 }
 0x85d   : > { %7697 = shalt.err (!%p7694_p13)
}
 0x85e   : > { %s7742_s17 = smov 128   ;;  %s7743_s25 = smov 8  }
 0x85f   : > { %7601 = dma.vmem_to_hbm [thread:$0]  (%p7817_p5), %s13007_s18, 4096, %s13005_s20, %s13023_s26, %s7742_s17, %s7742_s17, %s7743_s25  }
 0x860 PF: > { %p7613_p0 = scmp.ge.s32.totalorder %s7736_s24, 2  ;;  %s5762_s19 = sand.u32 1, %s7724_s21  }
 0x861   : > { %s5763_s29 = scalar_lea.sflag [#allocation3], %s5762_s19 }
 0x862   : > { %p7608_p1 = pnand %p7613_p0, %p7821_p6 }
 0x864   : > { %7719 = dma.done.wait (!%p7608_p1), %s5763_s29, 4096  }
 0x865   : > { %7721 = vsyncadd (!%p7608_p1), %s5763_s29, 4294963200  ;;  %p17_p2 = scmp.ge.s32.totalorder %s7804_s27, 4   ;;  %s14261_s21 = smov %s7728_s22 }
 0x866   : > { %s14262_s22 = smov %s7732_s23  ;;  %s14263_s23 = smov %s7815_s30 }
 0x867   : > { %s14264_s24 = smov %s7804_s27  ;;  %19 = sbr.rel (!%p17_p2) target bundleno = 4 (0x4), region = 87 }
 0x86e   :  { %5768 = vsyncpa [#allocation3], 1 }
 0x86f   :  { %5770 = vsyncpa [#allocation3 + $0x1], 1 }
 0x870   :  { %5771 = vsyncpa [#allocation4], 1 }
 0x871   :  { %5773 = vsyncpa [#allocation4 + $0x1], 1 }

</bundles_post_ra>
